<compile_context>
chip_gen: v6e
topology: v6e:2x2x1
jax: 0.10.0
libtpu: 0.0.40
codegen_flags: <defaults>
</compile_context>

<pallas_src>
import numpy as np
import jax
import jax.numpy as jnp
from jax.experimental import pallas as pl
from jax.experimental.pallas import tpu as pltpu


def _round_up(x, m):
    return (x + m - 1) // m * m


def _bilinear_width_matrix(w_in, w_out):
    """Width-resize matrix matching F.interpolate(mode='bilinear', align_corners=False)."""
    m = np.zeros((w_in, w_out), np.float32)
    scale = w_in / w_out
    for j in range(w_out):
        src = max((j + 0.5) * scale - 0.5, 0.0)
        w0 = min(int(np.floor(src)), w_in - 1)
        lam = src - w0
        w1 = min(w0 + 1, w_in - 1)
        m[w0, j] += 1.0 - lam
        m[w1, j] += lam
    return m


def _make_kernel(kh, kw, h, wc_pad, apply_tanh):
    def kernel(x_ref, w_ref, b_ref, m_ref, o_ref):
        # x_ref: (1, H+2, Wp_pad, Cin)    bf16, zero padded NHWC image
        # w_ref: (KH*KW, Cin, Cout_pad)   bf16, per-tap conv weights
        # b_ref: (1, Cout_pad)            f32
        # m_ref: (Wc_pad, Wo)             f32 width-resize / column-selector matrix
        # o_ref: (1, H*Cout_pad, Wo)      f32
        cin = x_ref.shape[-1]
        cout_p = w_ref.shape[-1]

        # Conv as KH*KW accumulated flat MXU matmuls (f32 accumulation).
        acc = None
        for ki in range(kh):
            for kj in range(kw):
                patch = x_ref[0, ki:ki + h, kj:kj + wc_pad, :]       # (H, Wc_pad, Cin)
                lhs = patch.reshape(h * wc_pad, cin)                 # aligned collapse (Wc_pad % 8 == 0)
                part = jnp.dot(lhs, w_ref[ki * kw + kj],
                               preferred_element_type=jnp.float32)   # (H*Wc_pad, Cout_pad)
                acc = part if acc is None else acc + part

        conv = acc + b_ref[...]                                      # + bias (single VPU add)

        # Bilinear width resize (or column selection) as ONE matmul.
        conv = conv.reshape(h, wc_pad, cout_p)                       # aligned split
        conv = jnp.swapaxes(conv, 1, 2)                              # (H, Cout_pad, Wc_pad)
        conv = conv.reshape(h * cout_p, wc_pad)                      # aligned collapse (Cout_pad % 8 == 0)
        out = jnp.dot(conv, m_ref[...],
                      preferred_element_type=jnp.float32)            # (H*Cout_pad, Wo)
        if apply_tanh:
            out = jnp.tanh(out)
        o_ref[0] = out
    return kernel


def _conv_resize_tanh(x_pad, w_taps, bias, m, h, wc_pad, kh, kw, apply_tanh):
    n, hp, wp_pad, cin = x_pad.shape
    cout_p = w_taps.shape[-1]
    wo = m.shape[-1]
    kernel = _make_kernel(kh, kw, h, wc_pad, apply_tanh)
    return pl.pallas_call(
        kernel,
        out_shape=jax.ShapeDtypeStruct((n, h * cout_p, wo), jnp.float32),
        grid_spec=pltpu.PrefetchScalarGridSpec(
            num_scalar_prefetch=0,
            grid=(n,),
            in_specs=[
                pl.BlockSpec((1, hp, wp_pad, cin), lambda b: (b, 0, 0, 0)),
                pl.BlockSpec((kh * kw, cin, cout_p), lambda b: (0, 0, 0)),
                pl.BlockSpec((1, cout_p), lambda b: (0, 0)),
                pl.BlockSpec((wc_pad, wo), lambda b: (0, 0)),
            ],
            out_specs=pl.BlockSpec((1, h * cout_p, wo), lambda b: (b, 0, 0)),
        ),
        compiler_params=pltpu.CompilerParams(
            dimension_semantics=("parallel",),
            vmem_limit_bytes=32 * 1024 * 1024,
        ),
    )(x_pad, w_taps, bias, m)


def itm3x5_forward(x, params, regression=True):
    """ITM3x5.forward.  x: (N, Cin, H, W) float32 NCHW -> (N, Cout, H, W)."""
    n, cin, h, w = x.shape
    if w < 5:
        weight, bias = params["w3x3"], params["b3x3"]
        kh, kw = 3, 3
        wc = w                                        # conv3x3 (pad=1) output width
        wc_pad = _round_up(wc, 8)
        m_np = np.zeros((wc_pad, w), np.float32)
        m_np[:wc, :] = np.eye(wc, w, dtype=np.float32)      # valid-column selector
    else:
        weight, bias = params["w3x5"], params["b3x5"]
        kh, kw = 3, 5
        wc = w - 2                                    # conv3x5 (pad=1) output width
        wc_pad = _round_up(wc, 8)
        m_np = np.zeros((wc_pad, w), np.float32)
        m_np[:wc, :] = _bilinear_width_matrix(wc, w)  # bilinear width upsample wc -> w
    cout = weight.shape[0]
    cout_p = _round_up(cout, 8)

    # Zero-padded bf16 NHWC input: 1 row top/bottom, 1 column left, and enough
    # zero columns on the right that wc_pad conv columns can be computed (the
    # extra columns are masked by the zero rows of m).
    wp_pad = wc_pad + kw - 1
    x_nhwc = jnp.transpose(x, (0, 2, 3, 1))
    x_pad = jnp.pad(x_nhwc, ((0, 0), (1, 1), (1, wp_pad - 1 - w), (0, 0)))
    x_pad = x_pad.astype(jnp.bfloat16)

    # Per-tap weights (KH*KW, Cin, Cout_pad) bf16; bias (1, Cout_pad) f32.
    w_taps = jnp.transpose(weight, (2, 3, 1, 0)).reshape(kh * kw, cin, cout)
    w_taps = jnp.pad(w_taps, ((0, 0), (0, 0), (0, cout_p - cout))).astype(jnp.bfloat16)
    b_pad = jnp.pad(bias, (0, cout_p - cout)).reshape(1, cout_p).astype(jnp.float32)
    m = jnp.asarray(m_np)

    out = _conv_resize_tanh(x_pad, w_taps, b_pad, m, h, wc_pad, kh, kw,
                            apply_tanh=regression)
    out = out.reshape(n, h, cout_p, w)[:, :, :cout, :]
    return jnp.transpose(out, (0, 2, 1, 3))           # -> NCHW (N, Cout, H, W)


def _reference_forward(x, params, regression=True):
    """Pure-JAX reference (XLA conv + same resize matrix), all f32."""
    n, cin, h, w = x.shape
    if w < 5:
        conv = jax.lax.conv_general_dilated(
            x, params["w3x3"], (1, 1), ((1, 1), (1, 1)),
            dimension_numbers=("NCHW", "OIHW", "NCHW"))
        out = conv + params["b3x3"].reshape(1, -1, 1, 1)
    else:
        conv = jax.lax.conv_general_dilated(
            x, params["w3x5"], (1, 1), ((1, 1), (1, 1)),
            dimension_numbers=("NCHW", "OIHW", "NCHW"))
        conv = conv + params["b3x5"].reshape(1, -1, 1, 1)
        out = jnp.einsum("nchw,wj->nchj", conv,
                         jnp.asarray(_bilinear_width_matrix(w - 2, w)))
    return jnp.tanh(out) if regression else out


if __name__ == "__main__":
    key = jax.random.PRNGKey(0)
    k1, k2, k3, k4, kx = jax.random.split(key, 5)
    n, cin, cout, h, w = 2, 4, 8, 16, 16
    params = {
        "w3x3": 0.1 * jax.random.normal(k1, (cout, cin, 3, 3), jnp.float32),
        "b3x3": 0.1 * jax.random.normal(k2, (cout,), jnp.float32),
        "w3x5": 0.1 * jax.random.normal(k3, (cout, cin, 3, 5), jnp.float32),
        "b3x5": 0.1 * jax.random.normal(k4, (cout,), jnp.float32),
    }
    x = jax.random.normal(kx, (n, cin, h, w), jnp.float32)

    # Main branch: W >= 5 (conv3x5 + bilinear width resize + tanh).
    out = jax.block_until_ready(itm3x5_forward(x, params, regression=True))
    ref = jax.block_until_ready(_reference_forward(x, params, regression=True))
    assert out.shape == (n, cout, h, w), out.shape
    err = float(jnp.max(jnp.abs(out - ref)))
    # bf16 MXU operands for the conv -> slightly looser tolerance than pure f32.
    assert err < 2e-2, f"max abs error (3x5 branch) {err}"

    # Small-width branch: W < 5 (conv3x3 only, no tanh).
    x_small = x[:, :, :, :4]
    out_s = jax.block_until_ready(itm3x5_forward(x_small, params, regression=False))
    ref_s = jax.block_until_ready(_reference_forward(x_small, params, regression=False))
    assert out_s.shape == (n, cout, h, 4), out_s.shape
    err_s = float(jnp.max(jnp.abs(out_s - ref_s)))
    assert err_s < 2e-2, f"max abs error (3x3 branch) {err_s}"

    print("KERNEL_OK")
</pallas_src>

<mosaic_0001>
module attributes {stable_mosaic.version = 11 : i64} {
  func.func @kernel(%arg0: i32, %arg1: memref<1x18x20x4xbf16, #tpu.memory_space<vmem>>, %arg2: memref<15x4x8xbf16, #tpu.memory_space<vmem>>, %arg3: memref<1x8xf32, #tpu.memory_space<vmem>>, %arg4: memref<16x16xf32, #tpu.memory_space<vmem>>, %arg5: memref<1x128x16xf32, #tpu.memory_space<vmem>>) attributes {dimension_semantics = [#tpu.dimension_semantics<parallel>], iteration_bounds = array<i64: 2>, scalar_prefetch = 0 : i64, scratch_operands = 0 : i64, tpu.core_type = #tpu.core_type<tc>, window_params = [{transform_indices = @transform_0, window_bounds = array<i64: 1, 18, 20, 4>}, {pipeline_mode = #tpu.pipeline_mode<synchronous>, transform_indices = @transform_1, window_bounds = array<i64: 15, 4, 8>}, {pipeline_mode = #tpu.pipeline_mode<synchronous>, transform_indices = @transform_2, window_bounds = array<i64: 1, 8>}, {pipeline_mode = #tpu.pipeline_mode<synchronous>, transform_indices = @transform_3, window_bounds = array<i64: 16, 16>}, {transform_indices = @transform_4, window_bounds = array<i64: 1, 128, 16>}]} {
    %c0 = arith.constant 0 : index
    %c0_0 = arith.constant 0 : index
    %c0_1 = arith.constant 0 : index
    %c0_2 = arith.constant 0 : index
    %0 = vector.load %arg1[%c0, %c0_0, %c0_1, %c0_2] : memref<1x18x20x4xbf16, #tpu.memory_space<vmem>>, vector<1x16x16x4xbf16>
    %1 = vector.shape_cast %0 : vector<1x16x16x4xbf16> to vector<16x16x4xbf16>
    %2 = vector.shape_cast %1 : vector<16x16x4xbf16> to vector<256x4xbf16>
    %c0_3 = arith.constant 0 : index
    %c0_4 = arith.constant 0 : index
    %c0_5 = arith.constant 0 : index
    %3 = vector.load %arg2[%c0_3, %c0_4, %c0_5] : memref<15x4x8xbf16, #tpu.memory_space<vmem>>, vector<1x4x8xbf16>
    %4 = vector.shape_cast %3 : vector<1x4x8xbf16> to vector<4x8xbf16>
    %cst = arith.constant dense<0.000000e+00> : vector<256x8xf32>
    %5 = tpu.matmul %2, %4, %cst {dimension_numbers = #tpu.dot_dimension_numbers<[1], [0], [0], [1], [0, 0, 1, 1], [], []>} : vector<256x4xbf16>, vector<4x8xbf16>, vector<256x8xf32> -> vector<256x8xf32>
    %c0_6 = arith.constant 0 : index
    %c0_7 = arith.constant 0 : index
    %c1 = arith.constant 1 : index
    %c0_8 = arith.constant 0 : index
    %6 = vector.load %arg1[%c0_6, %c0_7, %c1, %c0_8] : memref<1x18x20x4xbf16, #tpu.memory_space<vmem>>, vector<1x16x16x4xbf16>
    %7 = vector.shape_cast %6 : vector<1x16x16x4xbf16> to vector<16x16x4xbf16>
    %8 = vector.shape_cast %7 : vector<16x16x4xbf16> to vector<256x4xbf16>
    %c1_9 = arith.constant 1 : index
    %c0_10 = arith.constant 0 : index
    %c0_11 = arith.constant 0 : index
    %9 = vector.load %arg2[%c1_9, %c0_10, %c0_11] : memref<15x4x8xbf16, #tpu.memory_space<vmem>>, vector<1x4x8xbf16>
    %10 = vector.shape_cast %9 : vector<1x4x8xbf16> to vector<4x8xbf16>
    %cst_12 = arith.constant dense<0.000000e+00> : vector<256x8xf32>
    %11 = tpu.matmul %8, %10, %cst_12 {dimension_numbers = #tpu.dot_dimension_numbers<[1], [0], [0], [1], [0, 0, 1, 1], [], []>} : vector<256x4xbf16>, vector<4x8xbf16>, vector<256x8xf32> -> vector<256x8xf32>
    %12 = arith.addf %5, %11 : vector<256x8xf32>
    %c0_13 = arith.constant 0 : index
    %c0_14 = arith.constant 0 : index
    %c2 = arith.constant 2 : index
    %c0_15 = arith.constant 0 : index
    %13 = vector.load %arg1[%c0_13, %c0_14, %c2, %c0_15] : memref<1x18x20x4xbf16, #tpu.memory_space<vmem>>, vector<1x16x16x4xbf16>
    %14 = vector.shape_cast %13 : vector<1x16x16x4xbf16> to vector<16x16x4xbf16>
    %15 = vector.shape_cast %14 : vector<16x16x4xbf16> to vector<256x4xbf16>
    %c2_16 = arith.constant 2 : index
    %c0_17 = arith.constant 0 : index
    %c0_18 = arith.constant 0 : index
    %16 = vector.load %arg2[%c2_16, %c0_17, %c0_18] : memref<15x4x8xbf16, #tpu.memory_space<vmem>>, vector<1x4x8xbf16>
    %17 = vector.shape_cast %16 : vector<1x4x8xbf16> to vector<4x8xbf16>
    %cst_19 = arith.constant dense<0.000000e+00> : vector<256x8xf32>
    %18 = tpu.matmul %15, %17, %cst_19 {dimension_numbers = #tpu.dot_dimension_numbers<[1], [0], [0], [1], [0, 0, 1, 1], [], []>} : vector<256x4xbf16>, vector<4x8xbf16>, vector<256x8xf32> -> vector<256x8xf32>
    %19 = arith.addf %12, %18 : vector<256x8xf32>
    %c0_20 = arith.constant 0 : index
    %c0_21 = arith.constant 0 : index
    %c3 = arith.constant 3 : index
    %c0_22 = arith.constant 0 : index
    %20 = vector.load %arg1[%c0_20, %c0_21, %c3, %c0_22] : memref<1x18x20x4xbf16, #tpu.memory_space<vmem>>, vector<1x16x16x4xbf16>
    %21 = vector.shape_cast %20 : vector<1x16x16x4xbf16> to vector<16x16x4xbf16>
    %22 = vector.shape_cast %21 : vector<16x16x4xbf16> to vector<256x4xbf16>
    %c3_23 = arith.constant 3 : index
    %c0_24 = arith.constant 0 : index
    %c0_25 = arith.constant 0 : index
    %23 = vector.load %arg2[%c3_23, %c0_24, %c0_25] : memref<15x4x8xbf16, #tpu.memory_space<vmem>>, vector<1x4x8xbf16>
    %24 = vector.shape_cast %23 : vector<1x4x8xbf16> to vector<4x8xbf16>
    %cst_26 = arith.constant dense<0.000000e+00> : vector<256x8xf32>
    %25 = tpu.matmul %22, %24, %cst_26 {dimension_numbers = #tpu.dot_dimension_numbers<[1], [0], [0], [1], [0, 0, 1, 1], [], []>} : vector<256x4xbf16>, vector<4x8xbf16>, vector<256x8xf32> -> vector<256x8xf32>
    %26 = arith.addf %19, %25 : vector<256x8xf32>
    %c0_27 = arith.constant 0 : index
    %c0_28 = arith.constant 0 : index
    %c4 = arith.constant 4 : index
    %c0_29 = arith.constant 0 : index
    %27 = vector.load %arg1[%c0_27, %c0_28, %c4, %c0_29] : memref<1x18x20x4xbf16, #tpu.memory_space<vmem>>, vector<1x16x16x4xbf16>
    %28 = vector.shape_cast %27 : vector<1x16x16x4xbf16> to vector<16x16x4xbf16>
    %29 = vector.shape_cast %28 : vector<16x16x4xbf16> to vector<256x4xbf16>
    %c4_30 = arith.constant 4 : index
    %c0_31 = arith.constant 0 : index
    %c0_32 = arith.constant 0 : index
    %30 = vector.load %arg2[%c4_30, %c0_31, %c0_32] : memref<15x4x8xbf16, #tpu.memory_space<vmem>>, vector<1x4x8xbf16>
    %31 = vector.shape_cast %30 : vector<1x4x8xbf16> to vector<4x8xbf16>
    %cst_33 = arith.constant dense<0.000000e+00> : vector<256x8xf32>
    %32 = tpu.matmul %29, %31, %cst_33 {dimension_numbers = #tpu.dot_dimension_numbers<[1], [0], [0], [1], [0, 0, 1, 1], [], []>} : vector<256x4xbf16>, vector<4x8xbf16>, vector<256x8xf32> -> vector<256x8xf32>
    %33 = arith.addf %26, %32 : vector<256x8xf32>
    %c0_34 = arith.constant 0 : index
    %c1_35 = arith.constant 1 : index
    %c0_36 = arith.constant 0 : index
    %c0_37 = arith.constant 0 : index
    %34 = vector.load %arg1[%c0_34, %c1_35, %c0_36, %c0_37] : memref<1x18x20x4xbf16, #tpu.memory_space<vmem>>, vector<1x16x16x4xbf16>
    %35 = vector.shape_cast %34 : vector<1x16x16x4xbf16> to vector<16x16x4xbf16>
    %36 = vector.shape_cast %35 : vector<16x16x4xbf16> to vector<256x4xbf16>
    %c5 = arith.constant 5 : index
    %c0_38 = arith.constant 0 : index
    %c0_39 = arith.constant 0 : index
    %37 = vector.load %arg2[%c5, %c0_38, %c0_39] : memref<15x4x8xbf16, #tpu.memory_space<vmem>>, vector<1x4x8xbf16>
    %38 = vector.shape_cast %37 : vector<1x4x8xbf16> to vector<4x8xbf16>
    %cst_40 = arith.constant dense<0.000000e+00> : vector<256x8xf32>
    %39 = tpu.matmul %36, %38, %cst_40 {dimension_numbers = #tpu.dot_dimension_numbers<[1], [0], [0], [1], [0, 0, 1, 1], [], []>} : vector<256x4xbf16>, vector<4x8xbf16>, vector<256x8xf32> -> vector<256x8xf32>
    %40 = arith.addf %33, %39 : vector<256x8xf32>
    %c0_41 = arith.constant 0 : index
    %c1_42 = arith.constant 1 : index
    %c1_43 = arith.constant 1 : index
    %c0_44 = arith.constant 0 : index
    %41 = vector.load %arg1[%c0_41, %c1_42, %c1_43, %c0_44] : memref<1x18x20x4xbf16, #tpu.memory_space<vmem>>, vector<1x16x16x4xbf16>
    %42 = vector.shape_cast %41 : vector<1x16x16x4xbf16> to vector<16x16x4xbf16>
    %43 = vector.shape_cast %42 : vector<16x16x4xbf16> to vector<256x4xbf16>
    %c6 = arith.constant 6 : index
    %c0_45 = arith.constant 0 : index
    %c0_46 = arith.constant 0 : index
    %44 = vector.load %arg2[%c6, %c0_45, %c0_46] : memref<15x4x8xbf16, #tpu.memory_space<vmem>>, vector<1x4x8xbf16>
    %45 = vector.shape_cast %44 : vector<1x4x8xbf16> to vector<4x8xbf16>
    %cst_47 = arith.constant dense<0.000000e+00> : vector<256x8xf32>
    %46 = tpu.matmul %43, %45, %cst_47 {dimension_numbers = #tpu.dot_dimension_numbers<[1], [0], [0], [1], [0, 0, 1, 1], [], []>} : vector<256x4xbf16>, vector<4x8xbf16>, vector<256x8xf32> -> vector<256x8xf32>
    %47 = arith.addf %40, %46 : vector<256x8xf32>
    %c0_48 = arith.constant 0 : index
    %c1_49 = arith.constant 1 : index
    %c2_50 = arith.constant 2 : index
    %c0_51 = arith.constant 0 : index
    %48 = vector.load %arg1[%c0_48, %c1_49, %c2_50, %c0_51] : memref<1x18x20x4xbf16, #tpu.memory_space<vmem>>, vector<1x16x16x4xbf16>
    %49 = vector.shape_cast %48 : vector<1x16x16x4xbf16> to vector<16x16x4xbf16>
    %50 = vector.shape_cast %49 : vector<16x16x4xbf16> to vector<256x4xbf16>
    %c7 = arith.constant 7 : index
    %c0_52 = arith.constant 0 : index
    %c0_53 = arith.constant 0 : index
    %51 = vector.load %arg2[%c7, %c0_52, %c0_53] : memref<15x4x8xbf16, #tpu.memory_space<vmem>>, vector<1x4x8xbf16>
    %52 = vector.shape_cast %51 : vector<1x4x8xbf16> to vector<4x8xbf16>
    %cst_54 = arith.constant dense<0.000000e+00> : vector<256x8xf32>
    %53 = tpu.matmul %50, %52, %cst_54 {dimension_numbers = #tpu.dot_dimension_numbers<[1], [0], [0], [1], [0, 0, 1, 1], [], []>} : vector<256x4xbf16>, vector<4x8xbf16>, vector<256x8xf32> -> vector<256x8xf32>
    %54 = arith.addf %47, %53 : vector<256x8xf32>
    %c0_55 = arith.constant 0 : index
    %c1_56 = arith.constant 1 : index
    %c3_57 = arith.constant 3 : index
    %c0_58 = arith.constant 0 : index
    %55 = vector.load %arg1[%c0_55, %c1_56, %c3_57, %c0_58] : memref<1x18x20x4xbf16, #tpu.memory_space<vmem>>, vector<1x16x16x4xbf16>
    %56 = vector.shape_cast %55 : vector<1x16x16x4xbf16> to vector<16x16x4xbf16>
    %57 = vector.shape_cast %56 : vector<16x16x4xbf16> to vector<256x4xbf16>
    %c8 = arith.constant 8 : index
    %c0_59 = arith.constant 0 : index
    %c0_60 = arith.constant 0 : index
    %58 = vector.load %arg2[%c8, %c0_59, %c0_60] : memref<15x4x8xbf16, #tpu.memory_space<vmem>>, vector<1x4x8xbf16>
    %59 = vector.shape_cast %58 : vector<1x4x8xbf16> to vector<4x8xbf16>
    %cst_61 = arith.constant dense<0.000000e+00> : vector<256x8xf32>
    %60 = tpu.matmul %57, %59, %cst_61 {dimension_numbers = #tpu.dot_dimension_numbers<[1], [0], [0], [1], [0, 0, 1, 1], [], []>} : vector<256x4xbf16>, vector<4x8xbf16>, vector<256x8xf32> -> vector<256x8xf32>
    %61 = arith.addf %54, %60 : vector<256x8xf32>
    %c0_62 = arith.constant 0 : index
    %c1_63 = arith.constant 1 : index
    %c4_64 = arith.constant 4 : index
    %c0_65 = arith.constant 0 : index
    %62 = vector.load %arg1[%c0_62, %c1_63, %c4_64, %c0_65] : memref<1x18x20x4xbf16, #tpu.memory_space<vmem>>, vector<1x16x16x4xbf16>
    %63 = vector.shape_cast %62 : vector<1x16x16x4xbf16> to vector<16x16x4xbf16>
    %64 = vector.shape_cast %63 : vector<16x16x4xbf16> to vector<256x4xbf16>
    %c9 = arith.constant 9 : index
    %c0_66 = arith.constant 0 : index
    %c0_67 = arith.constant 0 : index
    %65 = vector.load %arg2[%c9, %c0_66, %c0_67] : memref<15x4x8xbf16, #tpu.memory_space<vmem>>, vector<1x4x8xbf16>
    %66 = vector.shape_cast %65 : vector<1x4x8xbf16> to vector<4x8xbf16>
    %cst_68 = arith.constant dense<0.000000e+00> : vector<256x8xf32>
    %67 = tpu.matmul %64, %66, %cst_68 {dimension_numbers = #tpu.dot_dimension_numbers<[1], [0], [0], [1], [0, 0, 1, 1], [], []>} : vector<256x4xbf16>, vector<4x8xbf16>, vector<256x8xf32> -> vector<256x8xf32>
    %68 = arith.addf %61, %67 : vector<256x8xf32>
    %c0_69 = arith.constant 0 : index
    %c2_70 = arith.constant 2 : index
    %c0_71 = arith.constant 0 : index
    %c0_72 = arith.constant 0 : index
    %69 = vector.load %arg1[%c0_69, %c2_70, %c0_71, %c0_72] : memref<1x18x20x4xbf16, #tpu.memory_space<vmem>>, vector<1x16x16x4xbf16>
    %70 = vector.shape_cast %69 : vector<1x16x16x4xbf16> to vector<16x16x4xbf16>
    %71 = vector.shape_cast %70 : vector<16x16x4xbf16> to vector<256x4xbf16>
    %c10 = arith.constant 10 : index
    %c0_73 = arith.constant 0 : index
    %c0_74 = arith.constant 0 : index
    %72 = vector.load %arg2[%c10, %c0_73, %c0_74] : memref<15x4x8xbf16, #tpu.memory_space<vmem>>, vector<1x4x8xbf16>
    %73 = vector.shape_cast %72 : vector<1x4x8xbf16> to vector<4x8xbf16>
    %cst_75 = arith.constant dense<0.000000e+00> : vector<256x8xf32>
    %74 = tpu.matmul %71, %73, %cst_75 {dimension_numbers = #tpu.dot_dimension_numbers<[1], [0], [0], [1], [0, 0, 1, 1], [], []>} : vector<256x4xbf16>, vector<4x8xbf16>, vector<256x8xf32> -> vector<256x8xf32>
    %75 = arith.addf %68, %74 : vector<256x8xf32>
    %c0_76 = arith.constant 0 : index
    %c2_77 = arith.constant 2 : index
    %c1_78 = arith.constant 1 : index
    %c0_79 = arith.constant 0 : index
    %76 = vector.load %arg1[%c0_76, %c2_77, %c1_78, %c0_79] : memref<1x18x20x4xbf16, #tpu.memory_space<vmem>>, vector<1x16x16x4xbf16>
    %77 = vector.shape_cast %76 : vector<1x16x16x4xbf16> to vector<16x16x4xbf16>
    %78 = vector.shape_cast %77 : vector<16x16x4xbf16> to vector<256x4xbf16>
    %c11 = arith.constant 11 : index
    %c0_80 = arith.constant 0 : index
    %c0_81 = arith.constant 0 : index
    %79 = vector.load %arg2[%c11, %c0_80, %c0_81] : memref<15x4x8xbf16, #tpu.memory_space<vmem>>, vector<1x4x8xbf16>
    %80 = vector.shape_cast %79 : vector<1x4x8xbf16> to vector<4x8xbf16>
    %cst_82 = arith.constant dense<0.000000e+00> : vector<256x8xf32>
    %81 = tpu.matmul %78, %80, %cst_82 {dimension_numbers = #tpu.dot_dimension_numbers<[1], [0], [0], [1], [0, 0, 1, 1], [], []>} : vector<256x4xbf16>, vector<4x8xbf16>, vector<256x8xf32> -> vector<256x8xf32>
    %82 = arith.addf %75, %81 : vector<256x8xf32>
    %c0_83 = arith.constant 0 : index
    %c2_84 = arith.constant 2 : index
    %c2_85 = arith.constant 2 : index
    %c0_86 = arith.constant 0 : index
    %83 = vector.load %arg1[%c0_83, %c2_84, %c2_85, %c0_86] : memref<1x18x20x4xbf16, #tpu.memory_space<vmem>>, vector<1x16x16x4xbf16>
    %84 = vector.shape_cast %83 : vector<1x16x16x4xbf16> to vector<16x16x4xbf16>
    %85 = vector.shape_cast %84 : vector<16x16x4xbf16> to vector<256x4xbf16>
    %c12 = arith.constant 12 : index
    %c0_87 = arith.constant 0 : index
    %c0_88 = arith.constant 0 : index
    %86 = vector.load %arg2[%c12, %c0_87, %c0_88] : memref<15x4x8xbf16, #tpu.memory_space<vmem>>, vector<1x4x8xbf16>
    %87 = vector.shape_cast %86 : vector<1x4x8xbf16> to vector<4x8xbf16>
    %cst_89 = arith.constant dense<0.000000e+00> : vector<256x8xf32>
    %88 = tpu.matmul %85, %87, %cst_89 {dimension_numbers = #tpu.dot_dimension_numbers<[1], [0], [0], [1], [0, 0, 1, 1], [], []>} : vector<256x4xbf16>, vector<4x8xbf16>, vector<256x8xf32> -> vector<256x8xf32>
    %89 = arith.addf %82, %88 : vector<256x8xf32>
    %c0_90 = arith.constant 0 : index
    %c2_91 = arith.constant 2 : index
    %c3_92 = arith.constant 3 : index
    %c0_93 = arith.constant 0 : index
    %90 = vector.load %arg1[%c0_90, %c2_91, %c3_92, %c0_93] : memref<1x18x20x4xbf16, #tpu.memory_space<vmem>>, vector<1x16x16x4xbf16>
    %91 = vector.shape_cast %90 : vector<1x16x16x4xbf16> to vector<16x16x4xbf16>
    %92 = vector.shape_cast %91 : vector<16x16x4xbf16> to vector<256x4xbf16>
    %c13 = arith.constant 13 : index
    %c0_94 = arith.constant 0 : index
    %c0_95 = arith.constant 0 : index
    %93 = vector.load %arg2[%c13, %c0_94, %c0_95] : memref<15x4x8xbf16, #tpu.memory_space<vmem>>, vector<1x4x8xbf16>
    %94 = vector.shape_cast %93 : vector<1x4x8xbf16> to vector<4x8xbf16>
    %cst_96 = arith.constant dense<0.000000e+00> : vector<256x8xf32>
    %95 = tpu.matmul %92, %94, %cst_96 {dimension_numbers = #tpu.dot_dimension_numbers<[1], [0], [0], [1], [0, 0, 1, 1], [], []>} : vector<256x4xbf16>, vector<4x8xbf16>, vector<256x8xf32> -> vector<256x8xf32>
    %96 = arith.addf %89, %95 : vector<256x8xf32>
    %c0_97 = arith.constant 0 : index
    %c2_98 = arith.constant 2 : index
    %c4_99 = arith.constant 4 : index
    %c0_100 = arith.constant 0 : index
    %97 = vector.load %arg1[%c0_97, %c2_98, %c4_99, %c0_100] : memref<1x18x20x4xbf16, #tpu.memory_space<vmem>>, vector<1x16x16x4xbf16>
    %98 = vector.shape_cast %97 : vector<1x16x16x4xbf16> to vector<16x16x4xbf16>
    %99 = vector.shape_cast %98 : vector<16x16x4xbf16> to vector<256x4xbf16>
    %c14 = arith.constant 14 : index
    %c0_101 = arith.constant 0 : index
    %c0_102 = arith.constant 0 : index
    %100 = vector.load %arg2[%c14, %c0_101, %c0_102] : memref<15x4x8xbf16, #tpu.memory_space<vmem>>, vector<1x4x8xbf16>
    %101 = vector.shape_cast %100 : vector<1x4x8xbf16> to vector<4x8xbf16>
    %cst_103 = arith.constant dense<0.000000e+00> : vector<256x8xf32>
    %102 = tpu.matmul %99, %101, %cst_103 {dimension_numbers = #tpu.dot_dimension_numbers<[1], [0], [0], [1], [0, 0, 1, 1], [], []>} : vector<256x4xbf16>, vector<4x8xbf16>, vector<256x8xf32> -> vector<256x8xf32>
    %103 = arith.addf %96, %102 : vector<256x8xf32>
    %c0_104 = arith.constant 0 : index
    %c0_105 = arith.constant 0 : index
    %104 = vector.load %arg3[%c0_104, %c0_105] : memref<1x8xf32, #tpu.memory_space<vmem>>, vector<1x8xf32>
    %105 = vector.broadcast %104 : vector<1x8xf32> to vector<256x8xf32>
    %106 = arith.addf %103, %105 : vector<256x8xf32>
    %107 = vector.shape_cast %106 : vector<256x8xf32> to vector<16x16x8xf32>
    %108 = tpu.transpose %107, [0, 2, 1] : vector<16x16x8xf32> -> vector<16x8x16xf32>
    %109 = vector.shape_cast %108 : vector<16x8x16xf32> to vector<128x16xf32>
    %c0_106 = arith.constant 0 : index
    %c0_107 = arith.constant 0 : index
    %110 = vector.load %arg4[%c0_106, %c0_107] : memref<16x16xf32, #tpu.memory_space<vmem>>, vector<16x16xf32>
    %cst_108 = arith.constant dense<0.000000e+00> : vector<128x16xf32>
    %111 = tpu.matmul %109, %110, %cst_108 {dimension_numbers = #tpu.dot_dimension_numbers<[1], [0], [0], [1], [0, 0, 1, 1], [], []>} : vector<128x16xf32>, vector<16x16xf32>, vector<128x16xf32> -> vector<128x16xf32>
    %112 = math.tanh %111 : vector<128x16xf32>
    %c0_109 = arith.constant 0 : index
    %c0_110 = arith.constant 0 : index
    %c0_111 = arith.constant 0 : index
    %113 = vector.load %arg5[%c0_109, %c0_110, %c0_111] : memref<1x128x16xf32, #tpu.memory_space<vmem>>, vector<1x128x16xf32>
    %114 = vector.shape_cast %113 : vector<1x128x16xf32> to vector<128x16xf32>
    %115 = vector.shape_cast %112 : vector<128x16xf32> to vector<1x128x16xf32>
    tpu.vector_store %arg5[%c0_109, %c0_110, %c0_111], %115 {strides = array<i32>} : memref<1x128x16xf32, #tpu.memory_space<vmem>>, vector<1x128x16xf32>,
    return
  }
  func.func @transform_0(%arg0: i32) -> (i32, i32, i32, i32) {
    %c0_i32 = arith.constant 0 : i32
    %c0_i32_0 = arith.constant 0 : i32
    %c0_i32_1 = arith.constant 0 : i32
    %c0_i32_2 = arith.constant 0 : i32
    return %arg0, %c0_i32, %c0_i32_0, %c0_i32_1 : i32, i32, i32, i32
  }
  func.func @transform_1(%arg0: i32) -> (i32, i32, i32) {
    %c0_i32 = arith.constant 0 : i32
    %c0_i32_0 = arith.constant 0 : i32
    %c0_i32_1 = arith.constant 0 : i32
    %c0_i32_2 = arith.constant 0 : i32
    return %c0_i32, %c0_i32_0, %c0_i32_1 : i32, i32, i32
  }
  func.func @transform_2(%arg0: i32) -> (i32, i32) {
    %c0_i32 = arith.constant 0 : i32
    %c0_i32_0 = arith.constant 0 : i32
    %c0_i32_1 = arith.constant 0 : i32
    return %c0_i32, %c0_i32_0 : i32, i32
  }
  func.func @transform_3(%arg0: i32) -> (i32, i32) {
    %c0_i32 = arith.constant 0 : i32
    %c0_i32_0 = arith.constant 0 : i32
    %c0_i32_1 = arith.constant 0 : i32
    return %c0_i32, %c0_i32_0 : i32, i32
  }
  func.func @transform_4(%arg0: i32) -> (i32, i32, i32) {
    %c0_i32 = arith.constant 0 : i32
    %c0_i32_0 = arith.constant 0 : i32
    %c0_i32_1 = arith.constant 0 : i32
    return %arg0, %c0_i32, %c0_i32_0 : i32, i32, i32
  }
}

</mosaic_0001>

<bundles_post_ra>
// kernel: tpu_custom_call.1
= control target key start
LH: loop header
LB: loop body
LE: loop exit
PB: predicated region body
PF: predicated region fallthrough
CT: control target
= control target key end

     0   :  { %s10874_s15 = smov 0   ;;  %s16093_s0 = inlined_call_operand.vmem [shape: bf16[2,18,20,4], index: 0, kind: input, shape index: {}]   ;;  %s16094_s1 = inlined_call_operand.vmem [shape: bf16[15,4,8], index: 1, kind: input, shape index: {}]   ;;  %s16095_s2 = inlined_call_operand.vmem [shape: f32[1,8], index: 2, kind: input, shape index: {}]   ;;  %s16096_s3 = inlined_call_operand.vmem [shape: f32[16,16], index: 3, kind: input, shape index: {}]   ;;  %s16097_s4 = inlined_call_operand.vmem [shape: f32[2,128,16], index: 4, kind: output, shape index: {}]  }
   0x1 LB: > { %s8994_s16 = sadd.s32 4294967295, %s10847_s15   ;;  %p8998_p0 = scmp.ge.s32.totalorder %s10847_s15, 1  ;;  %s10847_s15 = sphi %s10874_s15, %s14_s15  }
   0x2   : > { %p162_p1 = scmp.lt.s32.totalorder %s10847_s15, 3 }
   0x4   : > { %p163_p2 = pnand %p8998_p0, %p162_p1 }
   0x6   : > { %166 = sbr.rel (%p163_p2) target bundleno = 1257 (0x4e9), region = 36 }
   0xb   : > { %v9002_v0 = vld [vmem:[%s16094_s1 + $0x2] sm:$0x3]  ;;  %vm734_vm0 = vcmask 1041408   ;;  %p188_p3 = scmp.lt.s32.totalorder %s8994_s16, 1  ;;  %v9083_v2 = vld [vmem:[%s16094_s1 + $0x4] sm:$0x3] }
   0xc   : > { %10681 = vmatprep.subr.msk.bf16.mxu0 %vm734_vm0, %v9002_v0  ;;  %10682 = vmatprep.subr.msk.bf16.mxu1 %vm734_vm0, %v9002_v0  ;;  %v736_v1 = vsel %vm734_vm0, %v9002_v0, 0  ;;  %v231_v3 = vld [vmem:[%s16094_s1] sm:$0x3]  ;;  %v10901_v4 = vld [vmem:[%s16094_s1 + $0x6] sm:$0x3]  ;;  %v10910_v5 = vsel %vm734_vm0, %v9083_v2, 0 }
   0xd   : > { %10142 = vmatpush3.bf16.msra.mxu0 %v736_v1  ;;  %10680 = vmatpush3.bf16.msra.mxu1 %v736_v1  ;;  %s17191_s16 = smov (!%p188_p3, %s8994_s16), 1  ;;  %vm248_vm1 = vsmask.f32 3328  ;;  %vm249_vm2 = vsmask.f32 7440  ;;  %v10913_v6 = vsel %vm734_vm0, %v231_v3, 0 }
   0xe   : > { %10684 = vmatprep.subr.msk.bf16.mxu0 %vm734_vm0, %v9083_v2  ;;  %10683 = vmatprep.subr.msk.bf16.mxu1 %vm734_vm0, %v231_v3  ;;  %s10697_s25 = smul.u32 216, %s17191_s16  ;;  %v10917_v7 = vsel %vm734_vm0, %v10901_v4, 0  ;;  %v10922_v8 = vld [vmem:[%s16094_s1 + $0x8] sm:$0x3]  ;;  %vm685_vm3 = vcmask 31744   ;;  %vm10963_vm4 = vmor %vm248_vm1, %vm249_vm2  ;;  %v16274_v35 = vmov 0 }
   0xf   : > { %v10949_v21 = vsel %vm734_vm0, %v10922_v8, 0  ;;  %v16275_v35 = vsel %vm10963_vm4, 4294967295, %v16274_v35  ;;  %vm1239_vm5 = vcmask 1042432   ;;  %vm1240_vm6 = vcmask 1046532   ;;  %s9867_s13 = sshll.u32 %s17191_s16, 7 }
  0x10   : > { %s10907_s28 = scalar_lea.vmem %s16093_s0, %s10697_s25  ;;  %16276 = vst [vmem:[#allocation3_spill] sm:$0xff] %v16275_v35  ;;  %vm11337_vm7 = vmor %vm1239_vm5, %vm1240_vm6  ;;  %vm1664_vm8 = vsmask.f32 2304  ;;  %vm1665_vm9 = vsmask.f32 6416  ;;  %vm2378_vm11 = vcmask 1045508   ;;  %s16056_s18 = scalar_lea.vmem %s16097_s4, %s9867_s13 }
  0x11   : > { %v10925_v9 = vld [vmem:[%s10907_s28] sm:$0xf]  ;;  %v10928_v10 = vld [vmem:[%s10907_s28 + $0x4] sm:$0xf]  ;;  %v10931_v11 = vld [vmem:[%s10907_s28 + $0x8] sm:$0x1] }
  0x12   : > { %v252_v12 = vshrl.u32 %v10925_v9, 16  ;;  %v255_v13 = vshll.u32 %v10925_v9, 16  ;;  %v261_v14 = vshll.u32 %v10928_v10, 16  ;;  %v265_v15 = vshrl.u32 %v10928_v10, 16  ;;  %v10938_v16 = vld [vmem:[%s10907_s28 + $0x90] sm:$0xf]  ;;  %vm11523_vm10 = vmor %vm1664_vm8, %vm1665_vm9 }
  0x13   : > { %v271_v17 = vshll.u32 %v10931_v11, 16  ;;  %v10943_v19 = vld [vmem:[%s10907_s28 + $0x94] sm:$0xf]  ;;  %v9035_v20 = vcombine.low %v10925_v9, %v10928_v10  ;;  %v10952_v26 = vld [vmem:[%s10907_s28 + $0x98] sm:$0x1]  ;;  %v540_v30 = vshrl.u32 %v10938_v16, 16  ;;  %vm11818_vm12 = vmor %vm734_vm0, %vm2378_vm11 }
  0x14   : > { %v254_v22 = vrot.slane %v252_v12, 4  ;;  %v257_v23 = vrot.slane %v255_v13, 5  ;;  %v263_v24 = vrot.slane %v261_v14, 5  ;;  %v267_v25 = vrot.slane %v265_v15, 4  ;;  %16273 = vst [vmem:[#allocation2_spill] sm:$0xff] %v10952_v26 }
  0x15   : > { %v273_v27 = vrot.slane %v271_v17, 5  ;;  %v10954_v28 = vrot.slane %v265_v15, 5  ;;  %v10956_v29 = vrot.slane %v261_v14, 6  ;;  %v543_v33 = vshll.u32 %v10938_v16, 16  ;;  %v10971_v40 = vld [vmem:[%s10907_s28 + $0xc] sm:$0xf] }
  0x16   : > { %v258_v31 = vor.u32 %v257_v23, %v254_v22  ;;  %v268_v32 = vor.u32 %v267_v25, %v263_v24  ;;  %v549_v34 = vshll.u32 %v10943_v19, 16  ;;  %v542_v36 = vrot.slane %v540_v30, 4  ;;  %v10974_v45 = vld [vmem:[%s10907_s28 + $0x10] sm:$0xf]  ;;  %v10981_v50 = vld [vmem:[%s10907_s28 + $0x14] sm:$0x1] }
  0x17   : > { %v553_v37 = vshrl.u32 %v10943_v19, 16  ;;  %v559_v38 = vshll.u32 %v10952_v26, 16  ;;  %v545_v43 = vrot.slane %v543_v33, 5  ;;  %v276_v54 = vshrl.u32 %v10971_v40, 16  ;;  %v10993_v63 = vld [vmem:[%s10907_s28 + $0x9c] sm:$0xf] }
  0x18   : > { %v259_v41 = vrot.slane %v258_v31, 4  ;;  %v269_v42 = vrot.slane %v268_v32, 4  ;;  %v551_v44 = vrot.slane %v549_v34, 5  ;;  %v10978_v49 = vrot.slane %v549_v34, 6  ;;  %v10998_v12 = vld [vmem:[%s10907_s28 + $0xa0] sm:$0xf] }
  0x19   : > { %v555_v46 = vrot.slane %v553_v37, 4  ;;  %v561_v47 = vrot.slane %v559_v38, 5  ;;  %v10976_v48 = vrot.slane %v553_v37, 5  ;;  %v546_v53 = vor.u32 %v545_v43, %v542_v36  ;;  %v245_v25 = vld [vmem:[%s10907_s28 + $0xa4] sm:$0x1] }
  0x1a   : > { %16278 = vst [vmem:[#allocation5_spill] sm:$0xff] %v10978_v49  ;;  %v264_v51 = vsel %vm10963_vm4, %v259_v41, %v263_v24  ;;  %v274_v52 = vsel %vm10963_vm4, %v269_v42, %v273_v27  ;;  %v279_v57 = vshll.u32 %v10971_v40, 16  ;;  %v285_v58 = vshll.u32 %v10974_v45, 16  ;;  %v11009_v34 = vld [vmem:[%s10907_s28 + $0x18] sm:$0xf] }
  0x1b   : > { %16277 = vst [vmem:[#allocation4_spill] sm:$0xff] %v10976_v48  ;;  %v9003_v55 = vcombine.low %v264_v51, %v274_v52  ;;  %v556_v56 = vor.u32 %v555_v46, %v551_v44  ;;  %v547_v59 = vrot.slane %v546_v53, 4  ;;  %v278_v60 = vrot.slane %v276_v54, 4  ;;  %v11026_v54 = vld [vmem:[%s10907_s28 + $0x20] sm:$0x1] }
  0x1c   : > { %v289_v61 = vshrl.u32 %v10974_v45, 16  ;;  %v295_v62 = vshll.u32 %v10981_v50, 16  ;;  %v281_v1 = vrot.slane %v279_v57, 5  ;;  %v287_v2 = vrot.slane %v285_v58, 5  ;;  %v11177_v9 = vld [vmem:[%s10907_s28 + $0x54] sm:$0xf] }
  0x1d   : > { %10143 = vmatprep.mubr.msk.bf16.mxu0 %vm685_vm3, %v9003_v55  ;;  %v557_v0 = vrot.slane %v556_v56, 4  ;;  %v552_v13 = vsel %vm10963_vm4, %v547_v59, %v551_v44  ;;  %v1700_v24 = vrot.slane %v285_v58, 6  ;;  %v564_v27 = vshrl.u32 %v10993_v63, 16  ;;  %v11290_v3 = vld [vmem:[%s10907_s28 + $0x84] sm:$0xf] }
  0x1e   : > { %v291_v14 = vrot.slane %v289_v61, 4  ;;  %v297_v15 = vrot.slane %v295_v62, 5  ;;  %v1699_v17 = vrot.slane %v289_v61, 5  ;;  %v282_v23 = vor.u32 %v281_v1, %v278_v60  ;;  %v11033_v60 = vld [vmem:[%s10907_s28 + $0xa8] sm:$0xf] }
  0x1f   : > { %v562_v22 = vsel %vm10963_vm4, %v557_v0, %v561_v47  ;;  %v567_v32 = vshll.u32 %v10993_v63, 16  ;;  %v16102_v33 = vshll.u32 %v10998_v12, 16  ;;  %v566_v38 = vrot.slane %v564_v27, 4  ;;  %v11018_v47 = vld [vmem:[%s10907_s28 + $0x1c] sm:$0xf] }
  0x20   : > { %v9015_v30 = vcombine.low %v552_v13, %v562_v22  ;;  %v292_v31 = vor.u32 %v291_v14, %v287_v2  ;;  %v283_v36 = vrot.slane %v282_v23, 4  ;;  %v11011_v37 = vor.u32 %v1700_v24, %v1699_v17  ;;  %v11313_v48 = vld [vmem:[%s10907_s28] sm:$0xe] }
  0x21   : > { %v16103_v41 = vshrl.u32 %v10998_v12, 16  ;;  %v569_v43 = vrot.slane %v567_v32, 5  ;;  %v575_v44 = vrot.slane %v16102_v33, 5  ;;  %v583_v46 = vshll.u32 %v245_v25, 16 }
  0x22   : > { %10167 = vmatprep.mubr.msk.bf16.mxu1 %vm685_vm3, %v9015_v30  ;;  %v293_v42 = vrot.slane %v292_v31, 4  ;;  %v288_v51 = vsel %vm10963_vm4, %v283_v36, %v287_v2  ;;  %v300_v55 = vshrl.u32 %v11009_v34, 16  ;;  %v303_v59 = vshll.u32 %v11009_v34, 16  ;;  %v246_v36 = vld [vmem:[%s10907_s28 + $0xb0] sm:$0x1] }
  0x23   : > { %v579_v53 = vrot.slane %v16103_v41, 4  ;;  %v570_v57 = vor.u32 %v569_v43, %v566_v38  ;;  %v585_v58 = vrot.slane %v583_v46, 5  ;;  %v16114_v1 = vshll.u32 %v11018_v47, 16  ;;  %v11053_v38 = vld [vmem:[%s10907_s28 + $0x24] sm:$0xf] }
  0x24   : > { %v298_v56 = vsel %vm10963_vm4, %v293_v42, %v297_v15  ;;  %v302_v0 = vrot.slane %v300_v55, 4  ;;  %v305_v13 = vrot.slane %v303_v59, 5  ;;  %v16115_v14 = vshrl.u32 %v11018_v47, 16  ;;  %v11039_v15 = vld [vmem:[%s10907_s28 + $0xac] sm:$0xf] }
  0x25   : > { %v9004_v61 = vcombine.low %v288_v51, %v298_v56  ;;  %v580_v62 = vor.u32 %v579_v53, %v575_v44  ;;  %v571_v2 = vrot.slane %v570_v57, 4  ;;  %v319_v17 = vshll.u32 %v11026_v54, 16  ;;  %v11062_v56 = vld [vmem:[%s10907_s28 + $0x28] sm:$0xf]  ;;  %v11135_v41 = vld [vmem:[%s10907_s28 + $0x40] sm:$0xf] }
  0x26   : > { %v311_v23 = vrot.slane %v16114_v1, 5  ;;  %v588_v24 = vshrl.u32 %v11033_v60, 16  ;;  %v591_v25 = vshll.u32 %v11033_v60, 16  ;;  %v306_v30 = vor.u32 %v305_v13, %v302_v0 }
  0x27   : > { %10144 = vmatmul.mubr.msk.bf16.vlgmr.msra.gmra.mxu0 %vm685_vm3, %v9004_v61  ;;  %v581_v22 = vrot.slane %v580_v62, 4  ;;  %v576_v27 = vsel %vm10963_vm4, %v571_v2, %v575_v44  ;;  %v315_v31 = vrot.slane %v16115_v14, 4  ;;  %v321_v32 = vrot.slane %v319_v17, 5  ;;  %v11073_v2 = vld [vmem:[%s10907_s28 + $0x2c] sm:$0x1] }
  0x28   : > { %10210 = vmatpush3.bf16.msra.mxu0 %v10910_v5  ;;  %v590_v43 = vrot.slane %v588_v24, 4  ;;  %v593_v46 = vrot.slane %v591_v25, 5  ;;  %v16098_v51 = vshll.u32 %v11039_v15, 16  ;;  %v307_v44 = vrot.slane %v306_v30, 4  ;;  %v11244_v14 = vld [vmem:[%s10907_s28 + $0x70] sm:$0xf] }
  0x29   : > { %v586_v42 = vsel %vm10963_vm4, %v581_v22, %v585_v58  ;;  %10686 = vmatprep.subr.msk.bf16.mxu0 %vm734_vm0, %v10922_v8  ;;  %v316_v53 = vor.u32 %v315_v31, %v311_v23  ;;  %v16099_v55 = vshrl.u32 %v11039_v15, 16  ;;  %v607_v59 = vshll.u32 %v246_v36, 16 }
  0x2a   : > { %v9016_v5 = vcombine.low %v576_v27, %v586_v42  ;;  %v594_v57 = vor.u32 %v593_v46, %v590_v43  ;;  %v599_v58 = vrot.slane %v16098_v51, 5  ;;  %v324_v61 = vshrl.u32 %v11053_v38, 16  ;;  %v11078_v27 = vld [vmem:[%s10907_s28 + $0xb4] sm:$0xf]  ;;  %v11085_v42 = vld [vmem:[%s10907_s28 + $0xb8] sm:$0xf] }
  0x2b   : > { %v312_v8 = vsel %vm10963_vm4, %v307_v44, %v311_v23  ;;  %v317_v62 = vrot.slane %v316_v53, 4  ;;  %v603_v0 = vrot.slane %v16099_v55, 4  ;;  %v327_v13 = vshll.u32 %v11053_v38, 16 }
  0x2c   : > { %10168 = vmatmul.mubr.msk.bf16.vlgmr.msra.gmra.mxu1 %vm685_vm3, %v9016_v5  ;;  %v595_v17 = vrot.slane %v594_v57, 4  ;;  %v609_v22 = vrot.slane %v607_v59, 5  ;;  %v326_v24 = vrot.slane %v324_v61, 4  ;;  %v16108_v25 = vshll.u32 %v11062_v56, 16  ;;  %v247_v57 = vld [vmem:[%s10907_s28 + $0xbc] sm:$0x1] }
  0x2d   : > { %10176 = vmatpush3.bf16.msra.mxu1 %v10913_v6  ;;  %v322_v23 = vsel %vm10963_vm4, %v317_v62, %v321_v32  ;;  %v604_v30 = vor.u32 %v603_v0, %v599_v58  ;;  %v329_v31 = vrot.slane %v327_v13, 5  ;;  %v16110_v36 = vshrl.u32 %v11062_v56, 16  ;;  %v11103_v62 = vld [vmem:[%s10907_s28 + $0x30] sm:$0xf] }
  0x2e   : > { %10685 = vmatprep.subr.msk.bf16.mxu1 %vm734_vm0, %v10901_v4  ;;  %v9005_v43 = vcombine.low %v312_v8, %v322_v23  ;;  %v600_v46 = vsel %vm10963_vm4, %v595_v17, %v599_v58  ;;  %v335_v6 = vrot.slane %v16108_v25, 5  ;;  %v343_v5 = vshll.u32 %v11073_v2, 16  ;;  %v11108_v23 = vld [vmem:[%s10907_s28 + $0x34] sm:$0xf] }
  0x2f   : > { %v605_v32 = vrot.slane %v604_v30, 4  ;;  %v330_v44 = vor.u32 %v329_v31, %v326_v24  ;;  %v339_v53 = vrot.slane %v16110_v36, 4  ;;  %v612_v59 = vshrl.u32 %v11078_v27, 16 }
  0x30   : > { %10147 = vmatprep.mubr.msk.bf16.mxu0 %vm685_vm3, %v9005_v43  ;;  %v345_v4 = vrot.slane %v343_v5, 5  ;;  %v615_v61 = vshll.u32 %v11078_v27, 16  ;;  %v16100_v58 = vshll.u32 %v11085_v42, 16  ;;  %v16101_v8 = vshrl.u32 %v11085_v42, 16 }
  0x31   : > { %v610_v0 = vsel %vm10963_vm4, %v605_v32, %v609_v22  ;;  %v331_v13 = vrot.slane %v330_v44, 4  ;;  %v340_v17 = vor.u32 %v339_v53, %v335_v6  ;;  %v614_v24 = vrot.slane %v612_v59, 4 }
  0x32   : > { %v9017_v30 = vcombine.low %v600_v46, %v610_v0  ;;  %v617_v31 = vrot.slane %v615_v61, 5  ;;  %v623_v43 = vrot.slane %v16100_v58, 5  ;;  %v627_v5 = vrot.slane %v16101_v8, 4  ;;  %v11119_v46 = vld [vmem:[%s10907_s28 + $0x38] sm:$0x1] }
  0x33   : > { %v336_v51 = vsel %vm10963_vm4, %v331_v13, %v335_v6  ;;  %v341_v55 = vrot.slane %v340_v17, 4  ;;  %v631_v22 = vshll.u32 %v247_v57, 16  ;;  %v348_v32 = vshrl.u32 %v11103_v62, 16  ;;  %v11124_v0 = vld [vmem:[%s10907_s28 + $0x3c] sm:$0xf] }
  0x34   : > { %10171 = vmatprep.mubr.msk.bf16.mxu1 %vm685_vm3, %v9017_v30  ;;  %v618_v44 = vor.u32 %v617_v31, %v614_v24  ;;  %v628_v53 = vor.u32 %v627_v5, %v623_v43  ;;  %v351_v59 = vshll.u32 %v11103_v62, 16  ;;  %v16104_v61 = vshll.u32 %v11108_v23, 16 }
  0x35   : > { %v346_v6 = vsel %vm10963_vm4, %v341_v55, %v345_v4  ;;  %v633_v13 = vrot.slane %v631_v22, 5  ;;  %v350_v57 = vrot.slane %v348_v32, 4  ;;  %v16105_v17 = vshrl.u32 %v11108_v23, 16  ;;  %v11144_v32 = vld [vmem:[%s10907_s28 + $0x44] sm:$0x1] }
  0x36   : > { %v9006_v24 = vcombine.low %v336_v51, %v346_v6  ;;  %v619_v30 = vrot.slane %v618_v44, 4  ;;  %v629_v31 = vrot.slane %v628_v53, 4  ;;  %v353_v5 = vrot.slane %v351_v59, 5  ;;  %v11148_v53 = vld [vmem:[%s10907_s28 + $0x48] sm:$0xf] }
  0x37   : > { %v359_v58 = vrot.slane %v16104_v61, 5  ;;  %v363_v8 = vrot.slane %v16105_v17, 4  ;;  %v367_v33 = vshll.u32 %v11119_v46, 16  ;;  %v372_v55 = vshrl.u32 %v11124_v0, 16 }
  0x38   : > { %10148 = vmatmul.mubr.msk.bf16.gmra.mxu0 %vm685_vm3, %v9006_v24  ;;  %v624_v51 = vsel %vm10963_vm4, %v619_v30, %v623_v43  ;;  %v634_v4 = vsel %vm10963_vm4, %v629_v31, %v633_v13  ;;  %v354_v22 = vor.u32 %v353_v5, %v350_v57  ;;  %v375_v44 = vshll.u32 %v11124_v0, 16  ;;  %v11157_v5 = vld [vmem:[%s10907_s28 + $0x4c] sm:$0xf] }
  0x39   : > { %v9018_v59 = vcombine.low %v624_v51, %v634_v4  ;;  %v364_v6 = vor.u32 %v363_v8, %v359_v58  ;;  %v369_v39 = vrot.slane %v367_v33, 5  ;;  %v374_v61 = vrot.slane %v372_v55, 4  ;;  %v11171_v4 = vld [vmem:[%s10907_s28 + $0x50] sm:$0x1] }
  0x3a   : > { %v355_v24 = vrot.slane %v354_v22, 4  ;;  %v377_v17 = vrot.slane %v375_v44, 5  ;;  %v16106_v43 = vshll.u32 %v11135_v41, 16  ;;  %v16107_v30 = vshrl.u32 %v11135_v41, 16 }
  0x3b   : > { %10172 = vmatmul.mubr.msk.bf16.gmra.mxu1 %vm685_vm3, %v9018_v59  ;;  %v365_v13 = vrot.slane %v364_v6, 4  ;;  %v391_v57 = vshll.u32 %v11144_v32, 16  ;;  %v9036_v31 = vcombine.low %v10971_v40, %v10974_v45  ;;  %v396_v33 = vshrl.u32 %v11148_v53, 16 }
  0x3c   : > { %v360_v8 = vsel %vm10963_vm4, %v355_v24, %v359_v58  ;;  %10177 = vmatprep.mubr.msk.bf16.mxu1 %vm685_vm3, %v9035_v20  ;;  %v378_v55 = vor.u32 %v377_v17, %v374_v61  ;;  %v383_v51 = vrot.slane %v16106_v43, 5  ;;  %v387_v40 = vrot.slane %v16107_v30, 4 }
  0x3d   : > { %v370_v22 = vsel %vm10963_vm4, %v365_v13, %v369_v39  ;;  %v393_v44 = vrot.slane %v391_v57, 5  ;;  %v398_v58 = vrot.slane %v396_v33, 4  ;;  %v399_v59 = vshll.u32 %v11148_v53, 16  ;;  %v11185_v13 = vld [vmem:[%s10907_s28 + $0x58] sm:$0xf] }
  0x3e   : > { %v9007_v20 = vcombine.low %v360_v8, %v370_v22  ;;  %v379_v61 = vrot.slane %v378_v55, 4  ;;  %v388_v17 = vor.u32 %v387_v40, %v383_v51  ;;  %v16109_v6 = vshll.u32 %v11157_v5, 16 }
  0x3f   : > { %v401_v24 = vrot.slane %v399_v59, 5  ;;  %v16111_v43 = vshrl.u32 %v11157_v5, 16  ;;  %v415_v30 = vshll.u32 %v11171_v4, 16  ;;  %v9037_v39 = vcombine.low %v11009_v34, %v11018_v47  ;;  %v11196_v59 = vld [vmem:[%s10907_s28 + $0x5c] sm:$0x1] }
  0x40   : > { %10151 = vmatprep.mubr.msk.bf16.mxu0 %vm685_vm3, %v9007_v20  ;;  %v384_v57 = vsel %vm10963_vm4, %v379_v61, %v383_v51  ;;  %v389_v33 = vrot.slane %v388_v17, 4  ;;  %v407_v8 = vrot.slane %v16109_v6, 5  ;;  %v420_v55 = vshrl.u32 %v11177_v9, 16  ;;  %v11204_v6 = vld [vmem:[%s10907_s28 + $0x60] sm:$0xf] }
  0x41   : > { %v402_v40 = vor.u32 %v401_v24, %v398_v58  ;;  %v411_v22 = vrot.slane %v16111_v43, 4  ;;  %v417_v34 = vrot.slane %v415_v30, 5  ;;  %v423_v25 = vshll.u32 %v11177_v9, 16  ;;  %v11208_v43 = vld [vmem:[%s10907_s28 + $0x64] sm:$0xf] }
  0x42   : > { %v394_v20 = vsel %vm10963_vm4, %v389_v33, %v393_v44  ;;  %v422_v51 = vrot.slane %v420_v55, 4  ;;  %v16112_v61 = vshll.u32 %v11185_v13, 16  ;;  %v16113_v17 = vshrl.u32 %v11185_v13, 16  ;;  %v11213_v44 = vld [vmem:[%s16094_s1 + $0xa] sm:$0x3] }
  0x43   : > { %v9008_v36 = vcombine.low %v384_v57, %v394_v20  ;;  %10178 = vmatmul.mubr.msk.bf16.vlgmr.msra.gmra.mxu1 %vm685_vm3, %v9036_v31  ;;  %v403_v58 = vrot.slane %v402_v40, 4  ;;  %v412_v24 = vor.u32 %v411_v22, %v407_v8  ;;  %v425_v30 = vrot.slane %v423_v25, 5  ;;  %16279 = vst [vmem:[#allocation6_spill] sm:$0xff] %v11213_v44 }
  0x44   : > { %10181 = vmatprep.mubr.msk.bf16.mxu1 %vm685_vm3, %v9037_v39  ;;  %v431_v33 = vrot.slane %v16112_v61, 5  ;;  %v435_v57 = vrot.slane %v16113_v17, 4  ;;  %v439_v31 = vshll.u32 %v11196_v59, 16  ;;  %v9038_v25 = vcombine.low %v11053_v38, %v11062_v56  ;;  %10244 = vmatpush3.bf16.msra.mxu1 %v10917_v7  ;;  %v11231_v17 = vld [vmem:[%s10907_s28 + $0x68] sm:$0x1] }
  0x45   : > { %10152 = vmatmul.mubr.msk.bf16.gmra.mxu0 %vm685_vm3, %v9008_v36  ;;  %v408_v55 = vsel %vm10963_vm4, %v403_v58, %v407_v8  ;;  %v413_v39 = vrot.slane %v412_v24, 4  ;;  %v426_v40 = vor.u32 %v425_v30, %v422_v51  ;;  %v444_v22 = vshrl.u32 %v11204_v6, 16  ;;  %10687 = vmatprep.subr.msk.bf16.mxu1 %vm734_vm0, %v11213_v44  ;;  %v11239_v24 = vld [vmem:[%s10907_s28 + $0x6c] sm:$0xf] }
  0x46   : > { %v436_v20 = vor.u32 %v435_v57, %v431_v33  ;;  %v441_v61 = vrot.slane %v439_v31, 5  ;;  %v447_v7 = vshll.u32 %v11204_v6, 16  ;;  %v16116_v38 = vshll.u32 %v11208_v43, 16 }
  0x47   : > { %v418_v36 = vsel %vm10963_vm4, %v413_v39, %v417_v34  ;;  %v427_v8 = vrot.slane %v426_v40, 4  ;;  %v446_v51 = vrot.slane %v444_v22, 4  ;;  %v16117_v58 = vshrl.u32 %v11208_v43, 16 }
  0x48   : > { %v9009_v30 = vcombine.low %v408_v55, %v418_v36  ;;  %v437_v1 = vrot.slane %v436_v20, 4  ;;  %v449_v57 = vrot.slane %v447_v7, 5  ;;  %v455_v31 = vrot.slane %v16116_v38, 5  ;;  %v11257_v20 = vld [vmem:[%s10907_s28 + $0x74] sm:$0x1] }
  0x49   : > { %v432_v52 = vsel %vm10963_vm4, %v427_v8, %v431_v33  ;;  %v459_v34 = vrot.slane %v16117_v58, 4  ;;  %v463_v39 = vshll.u32 %v11231_v17, 16  ;;  %v9039_v40 = vcombine.low %v11103_v62, %v11108_v23  ;;  %v11264_v58 = vld [vmem:[%s10907_s28 + $0x78] sm:$0xf] }
  0x4a   : > { %10155 = vmatprep.mubr.msk.bf16.mxu0 %vm685_vm3, %v9009_v30  ;;  %v442_v55 = vsel %vm10963_vm4, %v437_v1, %v441_v61  ;;  %v450_v22 = vor.u32 %v449_v57, %v446_v51  ;;  %v468_v7 = vshrl.u32 %v11239_v24, 16  ;;  %v471_v33 = vshll.u32 %v11239_v24, 16  ;;  %v11269_v57 = vld [vmem:[%s10907_s28 + $0x7c] sm:$0xf] }
  0x4b   : > { %v9010_v36 = vcombine.low %v432_v52, %v442_v55  ;;  %10182 = vmatmul.mubr.msk.bf16.gmra.mxu1 %vm685_vm3, %v9038_v25  ;;  %v460_v8 = vor.u32 %v459_v34, %v455_v31  ;;  %v465_v38 = vrot.slane %v463_v39, 5  ;;  %v16118_v62 = vshll.u32 %v11244_v14, 16 }
  0x4c   : > { %v451_v30 = vrot.slane %v450_v22, 4  ;;  %10185 = vmatprep.mubr.msk.bf16.mxu1 %vm685_vm3, %v9039_v40  ;;  %v470_v1 = vrot.slane %v468_v7, 4  ;;  %v473_v61 = vrot.slane %v471_v33, 5  ;;  %v16119_v51 = vshrl.u32 %v11244_v14, 16  ;;  %v11282_v7 = vld [vmem:[%s10907_s28 + $0x80] sm:$0x1] }
  0x4d   : > { %10156 = vmatmul.mubr.msk.bf16.gmra.mxu0 %vm685_vm3, %v9010_v36  ;;  %v461_v52 = vrot.slane %v460_v8, 4  ;;  %v479_v25 = vrot.slane %v16118_v62, 5  ;;  %v487_v34 = vshll.u32 %v11257_v20, 16  ;;  %v9040_v39 = vcombine.low %v11124_v0, %v11135_v41 }
  0x4e   : > { %v456_v40 = vsel %vm10963_vm4, %v451_v30, %v455_v31  ;;  %v474_v55 = vor.u32 %v473_v61, %v470_v1  ;;  %v483_v22 = vrot.slane %v16119_v51, 4  ;;  %v492_v33 = vshrl.u32 %v11264_v58, 16  ;;  %v11293_v51 = vld [vmem:[%s10907_s28 + $0x88] sm:$0xf] }
  0x4f   : > { %v466_v36 = vsel %vm10963_vm4, %v461_v52, %v465_v38  ;;  %v489_v8 = vrot.slane %v487_v34, 5  ;;  %v495_v62 = vshll.u32 %v11264_v58, 16  ;;  %v16120_v0 = vshll.u32 %v11269_v57, 16 }
  0x50   : > { %v9011_v31 = vcombine.low %v456_v40, %v466_v36  ;;  %v475_v30 = vrot.slane %v474_v55, 4  ;;  %v484_v1 = vor.u32 %v483_v22, %v479_v25  ;;  %v494_v61 = vrot.slane %v492_v33, 4  ;;  %v11305_v22 = vld [vmem:[%s10907_s28 + $0x8c] sm:$0x1] }
  0x51   : > { %v497_v18 = vrot.slane %v495_v62, 5  ;;  %v503_v49 = vrot.slane %v16120_v0, 5  ;;  %v16121_v38 = vshrl.u32 %v11269_v57, 16  ;;  %v511_v52 = vshll.u32 %v11282_v7, 16 }
  0x52   : > { %10159 = vmatprep.mubr.msk.bf16.mxu0 %vm685_vm3, %v9011_v31  ;;  %v480_v34 = vsel %vm10963_vm4, %v475_v30, %v479_v25  ;;  %v485_v40 = vrot.slane %v484_v1, 4  ;;  %v9041_v55 = vcombine.low %v11148_v53, %v11157_v5  ;;  %v516_v62 = vshrl.u32 %v11290_v3, 16 }
  0x53   : > { %10186 = vmatmul.mubr.msk.bf16.gmra.mxu1 %vm685_vm3, %v9040_v39  ;;  %v498_v33 = vor.u32 %v497_v18, %v494_v61  ;;  %v507_v36 = vrot.slane %v16121_v38, 4  ;;  %v513_v0 = vrot.slane %v511_v52, 5  ;;  %v519_v31 = vshll.u32 %v11290_v3, 16  ;;  %v11321_v39 = vld [vmem:[%s10907_s28 + $0xc] sm:$0xe] }
  0x54   : > { %v490_v25 = vsel %vm10963_vm4, %v485_v40, %v489_v8  ;;  %10189 = vmatprep.mubr.msk.bf16.mxu1 %vm685_vm3, %v9041_v55  ;;  %v518_v53 = vrot.slane %v516_v62, 4  ;;  %v16123_v30 = vshll.u32 %v11293_v51, 16  ;;  %v16124_v1 = vshrl.u32 %v11293_v51, 16 }
  0x55   : > { %v9012_v18 = vcombine.low %v480_v34, %v490_v25  ;;  %v499_v61 = vrot.slane %v498_v33, 4  ;;  %v508_v38 = vor.u32 %v507_v36, %v503_v49  ;;  %v521_v52 = vrot.slane %v519_v31, 5 }
  0x56   : > { %v527_v44 = vrot.slane %v16123_v30, 5  ;;  %v531_v8 = vrot.slane %v16124_v1, 4  ;;  %v535_v40 = vshll.u32 %v11305_v22, 16  ;;  %v9042_v55 = vcombine.low %v11177_v9, %v11185_v13  ;;  %v11344_v1 = vld [vmem:[%s10907_s28 + $0x18] sm:$0xe] }
  0x57   : > { %10160 = vmatmul.mubr.msk.bf16.gmra.mxu0 %vm685_vm3, %v9012_v18  ;;  %v504_v34 = vsel %vm10963_vm4, %v499_v61, %v503_v49  ;;  %v509_v62 = vrot.slane %v508_v38, 4  ;;  %v522_v33 = vor.u32 %v521_v52, %v518_v53  ;;  %v9043_v36 = vcombine.low %v11204_v6, %v11208_v43  ;;  %v11352_v61 = vld [vmem:[%s10907_s28 + $0x24] sm:$0xe] }
  0x58   : > { %v16280_v31 = vmov 0  ;;  %v532_v25 = vor.u32 %v531_v8, %v527_v44  ;;  %v537_v30 = vrot.slane %v535_v40, 5  ;;  %v9067_v9 = vrot.slane %v11313_v48, 9 }
  0x59   : > { %v16281_v31 = vsel %vm11337_vm7, 4294967295, %v16280_v31  ;;  %v1244_v18 = vrot.slane %v10928_v10, 5  ;;  %v514_v49 = vsel %vm10963_vm4, %v509_v62, %v513_v0  ;;  %v523_v38 = vrot.slane %v522_v33, 4  ;;  %v11364_v33 = vld [vmem:[%s10907_s28 + $0x30] sm:$0xe] }
  0x5a   : > { %16282 = vst [vmem:[#allocation7_spill] sm:$0xff] %v16281_v31  ;;  %v9044_v6 = vcombine.low %v11239_v24, %v11244_v14  ;;  %v9068_v53 = vrot.slane %v11321_v39, 9  ;;  %v9013_v52 = vcombine.low %v504_v34, %v514_v49  ;;  %v533_v8 = vrot.slane %v532_v25, 4 }
  0x5b   : > { %v1245_v40 = vsel %vm11337_vm7, %v9067_v9, %v1244_v18  ;;  %v1246_v10 = vrot.slane %v1244_v18, 4  ;;  %v528_v26 = vsel %vm10963_vm4, %v523_v38, %v527_v44  ;;  %10190 = vmatmul.mubr.msk.bf16.gmra.mxu1 %vm685_vm3, %v9042_v55  ;;  %v1251_v0 = vrot.slane %v10974_v45, 5 }
  0x5c   : > { %v9045_v24 = vcombine.low %v11264_v58, %v11269_v57  ;;  %v9069_v62 = vrot.slane %v11344_v1, 9  ;;  %10163 = vmatprep.mubr.msk.bf16.mxu0 %vm685_vm3, %v9013_v52  ;;  %v538_v34 = vsel %vm10963_vm4, %v533_v8, %v537_v30  ;;  %10193 = vmatprep.mubr.msk.bf16.mxu1 %vm685_vm3, %v9043_v36  ;;  %v16283_v44 = vrot.slane %v10931_v11, 5  ;;  %v11384_v52 = vld [vmem:[%s10907_s28 + $0x3c] sm:$0xe] }
  0x5d   : > { %v1258_v55 = vrot.slane %v11018_v47, 5  ;;  %v1261_v58 = vrot.slane %v11026_v54, 5  ;;  %v9014_v25 = vcombine.low %v528_v26, %v538_v34  ;;  %v1252_v18 = vsel %vm11337_vm7, %v9068_v53, %v1251_v0  ;;  %v11401_v34 = vld [vmem:[%s10907_s28 + $0x48] sm:$0xe] }
  0x5e   : > { %v1248_v45 = vsel %vm11337_vm7, %v1246_v10, %v16283_v44  ;;  %v1253_v49 = vrot.slane %v1251_v0, 4  ;;  %v9046_v11 = vcombine.low %v11290_v3, %v11293_v51  ;;  %v9070_v38 = vrot.slane %v11352_v61, 9 }
  0x5f   : > { %v9084_v9 = vcombine.low %v1245_v40, %v1248_v45  ;;  %v1259_v30 = vsel %vm11337_vm7, %v9069_v62, %v1258_v55  ;;  %v1260_v36 = vrot.slane %v1258_v55, 4  ;;  %10164 = vmatmul.mubr.msk.bf16.gmra.mxu0 %vm685_vm3, %v9014_v25  ;;  %v16284_v26 = vrot.slane %v10981_v50, 5  ;;  %v11409_v25 = vld [vmem:[%s10907_s28 + $0x54] sm:$0xe] }
  0x60   : > { %v1265_v53 = vrot.slane %v11062_v56, 5  ;;  %v1268_v8 = vrot.slane %v11073_v2, 5  ;;  %v9047_v40 = vcombine.low %v10938_v16, %v10943_v19  ;;  %v9071_v62 = vrot.slane %v11364_v33, 9 }
  0x61   : > { %v1255_v54 = vsel %vm11337_vm7, %v1253_v49, %v16284_v26  ;;  %10211 = vmatprep.mubr.msk.bf16.mxu0 %vm685_vm3, %v9084_v9  ;;  %v1262_v0 = vsel %vm11337_vm7, %v1260_v36, %v1261_v58  ;;  %v1272_v50 = vrot.slane %v11108_v23, 5  ;;  %v1275_v55 = vrot.slane %v11119_v46, 5 }
  0x62   : > { %v9085_v10 = vcombine.low %v1252_v18, %v1255_v54  ;;  %v9086_v44 = vcombine.low %v1259_v30, %v1262_v0  ;;  %v11405_v2 = vsel %vm11337_vm7, %v9070_v38, %v1265_v53  ;;  %v1267_v45 = vrot.slane %v1265_v53, 4  ;;  %v11419_v30 = vld [vmem:[%s10907_s28 + $0x60] sm:$0xe] }
  0x63   : > { %v11413_v9 = vsel %vm11337_vm7, %v9071_v62, %v1272_v50  ;;  %v1274_v58 = vrot.slane %v1272_v50, 4  ;;  %v9048_v18 = vcombine.low %v10993_v63, %v10998_v12  ;;  %v9072_v49 = vrot.slane %v11384_v52, 9  ;;  %10194 = vmatmul.mubr.msk.bf16.gmra.mxu1 %vm685_vm3, %v9044_v6 }
  0x64   : > { %v11424_v36 = vsel %vm11337_vm7, %v1267_v45, %v1268_v8  ;;  %v1279_v46 = vrot.slane %v11135_v41, 5  ;;  %v1282_v38 = vrot.slane %v11144_v32, 5  ;;  %10197 = vmatprep.mubr.msk.bf16.mxu1 %vm685_vm3, %v9045_v24  ;;  %v9073_v53 = vrot.slane %v11401_v34, 9 }
  0x65   : > { %v9087_v54 = vcombine.low %v11405_v2, %v11424_v36  ;;  %v1276_v6 = vsel %vm11337_vm7, %v1274_v58, %v1275_v55  ;;  %v1286_v8 = vrot.slane %v11157_v5, 5  ;;  %v1289_v50 = vrot.slane %v11171_v4, 5 }
  0x66   : > { %v9088_v0 = vcombine.low %v11413_v9, %v1276_v6  ;;  %v11440_v32 = vsel %vm11337_vm7, %v9072_v49, %v1279_v46  ;;  %v1281_v62 = vrot.slane %v1279_v46, 4  ;;  %v9074_v55 = vrot.slane %v11409_v25, 9  ;;  %v11453_v9 = vld [vmem:[%s16094_s1 + $0xc] sm:$0x3] }
  0x67   : > { %v11445_v24 = vsel %vm11337_vm7, %v9073_v53, %v1286_v8  ;;  %v1288_v2 = vrot.slane %v1286_v8, 4  ;;  %10212 = vmatmul.mubr.msk.bf16.vlgmr.msra.gmra.mxu0 %vm685_vm3, %v9085_v10  ;;  %v1293_v58 = vrot.slane %v11185_v13, 5  ;;  %v1296_v49 = vrot.slane %v11196_v59, 5  ;;  %v11474_v53 = vld [vmem:[%s10907_s28 + $0x8] sm:$0x3] }
  0x68   : > { %v11458_v4 = vsel %vm11337_vm7, %v1281_v62, %v1282_v38  ;;  %v9075_v36 = vrot.slane %v11419_v30, 9  ;;  %10278 = vmatpush3.bf16.msra.mxu0 %v10949_v21  ;;  %10215 = vmatprep.mubr.msk.bf16.mxu0 %vm685_vm3, %v9086_v44  ;;  %v1300_v38 = vrot.slane %v11208_v43, 5  ;;  %v1303_v6 = vrot.slane %v11231_v17, 5  ;;  %v11484_v62 = vld [vmem:[%s10907_s28 + $0x6c] sm:$0xe] }
  0x69   : > { %v11469_v10 = vsel %vm11337_vm7, %v1288_v2, %v1289_v50  ;;  %v11480_v21 = vsel %vm11337_vm7, %v9074_v55, %v1293_v58  ;;  %v1295_v44 = vrot.slane %v1293_v58, 4  ;;  %v1668_v8 = vshrl.u32 %v11313_v48, 16  ;;  %10688 = vmatprep.subr.msk.bf16.mxu0 %vm734_vm0, %v11453_v9 }
  0x6a   : > { %v11490_v17 = vsel %vm11337_vm7, %v9075_v36, %v1300_v38  ;;  %v1302_v50 = vrot.slane %v1300_v38, 4  ;;  %v1671_v2 = vshll.u32 %v11313_v48, 16  ;;  %v1678_v55 = vor.u32 %v10956_v29, %v10954_v28  ;;  %v11535_v28 = vld [vmem:[%s10907_s28 + $0x78] sm:$0xe] }
  0x6b   : > { %10198 = vmatmul.mubr.msk.bf16.gmra.mxu1 %vm685_vm3, %v9046_v11  ;;  %v11501_v58 = vsel %vm11337_vm7, %v1295_v44, %v1296_v49  ;;  %v1670_v45 = vrot.slane %v1668_v8, 5  ;;  %v1682_v59 = vshrl.u32 %v11474_v53, 16  ;;  %v1685_v36 = vshll.u32 %v11474_v53, 16  ;;  %v11516_v11 = vld [vmem:[%s10907_s28 + $0x14] sm:$0x3] }
  0x6c   : > { %10201 = vmatprep.mubr.msk.bf16.mxu1 %vm685_vm3, %v9047_v40  ;;  %v11513_v29 = vsel %vm11337_vm7, %v1302_v50, %v1303_v6  ;;  %v1673_v48 = vrot.slane %v1671_v2, 6  ;;  %v1680_v3 = vrot.slane %v1678_v55, 4  ;;  %v9076_v16 = vrot.slane %v11484_v62, 9 }
  0x6d   : > { %v1684_v38 = vrot.slane %v1682_v59, 5  ;;  %v1687_v44 = vrot.slane %v1685_v36, 6  ;;  %v16285_v19 = vmov 0  ;;  %v1307_v6 = vrot.slane %v11244_v14, 5 }
  0x6e   : > { %v16286_v19 = vsel %vm11523_vm10, 4294967295, %v16285_v19  ;;  %v1674_v40 = vor.u32 %v1673_v48, %v1670_v45  ;;  %v1310_v8 = vrot.slane %v11257_v20, 5  ;;  %v1691_v50 = vshrl.u32 %v11321_v39, 16 }
  0x6f   : > { %16287 = vst [vmem:[#allocation8_spill] sm:$0xff] %v16286_v19  ;;  %10216 = vmatmul.mubr.msk.bf16.gmra.mxu0 %vm685_vm3, %v9087_v54  ;;  %v1688_v2 = vor.u32 %v1687_v44, %v1684_v38  ;;  %v1694_v59 = vshll.u32 %v11321_v39, 16  ;;  %v1705_v36 = vshrl.u32 %v11516_v11, 16  ;;  %v1708_v49 = vshll.u32 %v11516_v11, 16 }
  0x70   : > { %10219 = vmatprep.mubr.msk.bf16.mxu0 %vm685_vm3, %v9088_v0  ;;  %v1675_v45 = vrot.slane %v1674_v40, 4  ;;  %v11540_v48 = vsel %vm11337_vm7, %v9076_v16, %v1307_v6  ;;  %v1309_v20 = vrot.slane %v1307_v6, 4  ;;  %v1693_v46 = vrot.slane %v1691_v50, 5  ;;  %v11559_v50 = vld [vmem:[%s10907_s28 + $0x20] sm:$0x3] }
  0x71   : > { %v1689_v54 = vsel %vm11523_vm10, %v1680_v3, %v1688_v2  ;;  %v1696_v39 = vrot.slane %v1694_v59, 6  ;;  %v1707_v38 = vrot.slane %v1705_v36, 5  ;;  %v1710_v44 = vrot.slane %v1708_v49, 6 }
  0x72   : > { %v1679_v26 = vsel %vm11523_vm10, %v1675_v45, %v1678_v55  ;;  %v11548_v0 = vsel %vm11337_vm7, %v1309_v20, %v1310_v8  ;;  %v9077_v40 = vrot.slane %v11535_v28, 9  ;;  %v1314_v16 = vrot.slane %v11269_v57, 5 }
  0x73   : > { %10202 = vmatmul.mubr.msk.bf16.gmra.mxu1 %vm685_vm3, %v9048_v18  ;;  %v9117_v3 = vcombine.low %v1679_v26, %v1689_v54  ;;  %v9093_v49 = vcombine.low %v11540_v48, %v11548_v0  ;;  %v1697_v6 = vor.u32 %v1696_v39, %v1693_v46  ;;  %v1711_v55 = vor.u32 %v1710_v44, %v1707_v38  ;;  %v11579_v54 = vld [vmem:[%s10907_s28 + $0x84] sm:$0xe] }
  0x74   : > { %v16288_v8 = vcombine.low %v11033_v60, %v11039_v15  ;;  %v11567_v2 = vsel %vm11337_vm7, %v9077_v40, %v1314_v16  ;;  %v1316_v63 = vrot.slane %v1314_v16, 4  ;;  %v1317_v18 = vrot.slane %v11282_v7, 5 }
  0x75   : > { %v1714_v26 = vshrl.u32 %v11344_v1, 16  ;;  %v1698_v59 = vrot.slane %v1697_v6, 4  ;;  %v16289_v46 = vrot.slane %v11011_v37, 4  ;;  %v1717_v45 = vshll.u32 %v11344_v1, 16 }
  0x76   : > { %10205 = vmatprep.mubr.msk.bf16.mxu1 %vm685_vm3, %v16288_v8  ;;  %v16290_v60 = vshrl.u32 %v11018_v47, 16  ;;  %v11583_v39 = vsel %vm11337_vm7, %v1316_v63, %v1317_v18  ;;  %v16291_v38 = vshll.u32 %v11018_v47, 16  ;;  %v1728_v40 = vshrl.u32 %v11559_v50, 16 }
  0x77   : > { %v1712_v36 = vsel %vm11523_vm10, %v16289_v46, %v1711_v55  ;;  %v1716_v7 = vrot.slane %v1714_v26, 5  ;;  %v16292_v16 = vcombine.low %v11440_v32, %v11458_v4  ;;  %v1702_v1 = vsel %vm11523_vm10, %v1698_v59, %v11011_v37  ;;  %v11604_v26 = vld [vmem:[%s10907_s28 + $0x2c] sm:$0x3] }
  0x78   : > { %v1722_v20 = vrot.slane %v16290_v60, 5  ;;  %v1723_v44 = vrot.slane %v16291_v38, 6  ;;  %v9094_v6 = vcombine.low %v11567_v2, %v11583_v39  ;;  %v1719_v55 = vrot.slane %v1717_v45, 6 }
  0x79   : > { %10220 = vmatmul.mubr.msk.bf16.gmra.mxu0 %vm685_vm3, %v16292_v16  ;;  %v1731_v8 = vshll.u32 %v11559_v50, 16  ;;  %v16293_v47 = vcombine.low %v11445_v24, %v11469_v10  ;;  %v9118_v63 = vcombine.low %v1702_v1, %v1712_v36  ;;  %v1730_v32 = vrot.slane %v1728_v40, 5 }
  0x7a   : > { %v1724_v18 = vor.u32 %v1723_v44, %v1722_v20  ;;  %v9078_v4 = vrot.slane %v11579_v54, 9  ;;  %v1720_v46 = vor.u32 %v1719_v55, %v1716_v7  ;;  %v1321_v59 = vrot.slane %v11293_v51, 5 }
  0x7b   : > { %10223 = vmatprep.mubr.msk.bf16.mxu0 %vm685_vm3, %v16293_v47  ;;  %v1733_v37 = vrot.slane %v1731_v8, 6  ;;  %v1324_v45 = vrot.slane %v11305_v22, 5  ;;  %v1737_v38 = vshrl.u32 %v11352_v61, 16  ;;  %v1740_v24 = vshll.u32 %v11352_v61, 16 }
  0x7c   : > { %v1726_v60 = vrot.slane %v1724_v18, 4  ;;  %v16294_v10 = vshrl.u32 %v11062_v56, 16  ;;  %v16295_v20 = vcombine.low %v11078_v27, %v11085_v42  ;;  %v1721_v7 = vrot.slane %v1720_v46, 4  ;;  %v11625_v27 = vld [vmem:[%s10907_s28 + $0x90] sm:$0xe] }
  0x7d   : > { %v1734_v44 = vor.u32 %v1733_v37, %v1730_v32  ;;  %v11618_v40 = vsel %vm11337_vm7, %v9078_v4, %v1321_v59  ;;  %v1323_v22 = vrot.slane %v1321_v59, 4  ;;  %v1739_v16 = vrot.slane %v1737_v38, 5 }
  0x7e   : > { %v1745_v36 = vrot.slane %v16294_v10, 5  ;;  %10206 = vmatmul.mubr.msk.bf16.gmra.mxu1 %vm685_vm3, %v16295_v20  ;;  %v1742_v1 = vrot.slane %v1740_v24, 6  ;;  %v16296_v61 = vshll.u32 %v11062_v56, 16  ;;  %v1751_v8 = vshrl.u32 %v11604_v26, 16 }
  0x7f   : > { %10245 = vmatprep.mubr.msk.bf16.mxu1 %vm685_vm3, %v9117_v3  ;;  %v1725_v47 = vsel %vm11523_vm10, %v1721_v7, %v1724_v18  ;;  %v1735_v32 = vsel %vm11523_vm10, %v1726_v60, %v1734_v44  ;;  %v11633_v3 = vsel %vm11337_vm7, %v1323_v22, %v1324_v45  ;;  %v1754_v4 = vshll.u32 %v11604_v26, 16  ;;  %v11644_v45 = vld [vmem:[%s10907_s28 + $0x94] sm:$0xf]  ;;  %v11652_v44 = vld [vmem:[%s10907_s28 + $0x38] sm:$0x3] }
  0x80   : > { %v1746_v55 = vrot.slane %v16296_v61, 6  ;;  %v9119_v56 = vcombine.low %v1725_v47, %v1735_v32  ;;  %v9095_v46 = vcombine.low %v11618_v40, %v11633_v3  ;;  %v1743_v37 = vor.u32 %v1742_v1, %v1739_v16 }
  0x81   : > { %v16297_v38 = vcombine.low %v11480_v21, %v11501_v58  ;;  %v1753_v18 = vrot.slane %v1751_v8, 5  ;;  %v1756_v60 = vrot.slane %v1754_v4, 6  ;;  %v9079_v24 = vrot.slane %v11625_v27, 9 }
  0x82   : > { %v1747_v59 = vor.u32 %v1746_v55, %v1745_v36  ;;  %v1328_v10 = vrot.slane %v11644_v45, 5  ;;  %v16298_v20 = vcombine.low %v11490_v17, %v11513_v29  ;;  %v1744_v36 = vrot.slane %v1743_v37, 4  ;;  %v11663_v17 = vld [vmem:[%s10907_s28 + $0x9c] sm:$0xe]  ;;  %v16301_v37 = vld [vmem:[#allocation2_spill] sm:$0xff] }
  0x83   : > { %10224 = vmatmul.mubr.msk.bf16.gmra.mxu0 %vm685_vm3, %v16297_v38  ;;  %v1760_v21 = vshrl.u32 %v11364_v33, 16  ;;  %v1763_v58 = vshll.u32 %v11364_v33, 16  ;;  %v1757_v22 = vor.u32 %v1756_v60, %v1753_v18  ;;  %v16299_v61 = vshrl.u32 %v11108_v23, 16 }
  0x84   : > { %10227 = vmatprep.mubr.msk.bf16.mxu0 %vm685_vm3, %v16298_v20  ;;  %v1749_v7 = vrot.slane %v1747_v59, 4  ;;  %v11658_v16 = vsel %vm11337_vm7, %v9079_v24, %v1328_v10  ;;  %v1330_v1 = vrot.slane %v1328_v10, 4  ;;  %v1748_v29 = vsel %vm11523_vm10, %v1744_v36, %v1747_v59  ;;  %v11684_v20 = vld [vmem:[%s10907_s28 + $0x44] sm:$0x3] }
  0x85   : > { %v1768_v55 = vrot.slane %v16299_v61, 5  ;;  %v1762_v8 = vrot.slane %v1760_v21, 5  ;;  %v1765_v47 = vrot.slane %v1763_v58, 6  ;;  %v16300_v32 = vshll.u32 %v11108_v23, 16  ;;  %v11688_v58 = vld [vmem:[%s10907_s28 + $0xa0] sm:$0xf] }
  0x86   : > { %10246 = vmatmul.mubr.msk.bf16.vlgmr.msra.gmra.mxu1 %vm685_vm3, %v9118_v63  ;;  %v1758_v4 = vsel %vm11523_vm10, %v1749_v7, %v1757_v22  ;;  %v16302_v38 = vrot.slane %v16301_v37, 5  ;;  %v1774_v59 = vshrl.u32 %v11652_v44, 16  ;;  %v1777_v60 = vshll.u32 %v11652_v44, 16 }
  0x87   : > { %v1769_v33 = vrot.slane %v16300_v32, 6  ;;  %10249 = vmatprep.mubr.msk.bf16.mxu1 %vm685_vm3, %v9119_v56  ;;  %v9120_v23 = vcombine.low %v1748_v29, %v1758_v4  ;;  %v1766_v24 = vor.u32 %v1765_v47, %v1762_v8  ;;  %v9080_v21 = vrot.slane %v11663_v17, 9  ;;  %v10789_v56 = vld [vmem:[%s10907_s28 + $0xa4] sm:$0x1] }
  0x88   : > { %v11676_v18 = vsel %vm11337_vm7, %v1330_v1, %v16302_v38  ;;  %v1776_v36 = vrot.slane %v1774_v59, 5  ;;  %v1779_v7 = vrot.slane %v1777_v60, 6  ;;  %v1335_v22 = vrot.slane %v11688_v58, 5  ;;  %v11713_v38 = vld [vmem:[%s10907_s28 + $0xa8] sm:$0xe] }
  0x89   : > { %v9096_v63 = vcombine.low %v11658_v16, %v11676_v18  ;;  %v1770_v10 = vor.u32 %v1769_v33, %v1768_v55  ;;  %v1767_v1 = vrot.slane %v1766_v24, 4  ;;  %v1338_v29 = vrot.slane %v10789_v56, 5 }
  0x8a   : > { %v1783_v32 = vshrl.u32 %v11384_v52, 16  ;;  %v1780_v16 = vor.u32 %v1779_v7, %v1776_v36  ;;  %v11699_v55 = vsel %vm11337_vm7, %v9080_v21, %v1335_v22  ;;  %v1337_v8 = vrot.slane %v1335_v22, 4  ;;  %v11728_v7 = vld [vmem:[%s10907_s28 + $0xac] sm:$0xf] }
  0x8b   : > { %v1772_v61 = vrot.slane %v1770_v10, 4  ;;  %10228 = vmatmul.mubr.msk.bf16.gmra.mxu0 %vm685_vm3, %v9093_v49  ;;  %v1786_v47 = vshll.u32 %v11384_v52, 16  ;;  %v1771_v33 = vsel %vm11523_vm10, %v1767_v1, %v1770_v10  ;;  %v16303_v48 = vshrl.u32 %v11135_v41, 16 }
  0x8c   : > { %10231 = vmatprep.mubr.msk.bf16.mxu0 %vm685_vm3, %v9094_v6  ;;  %v1785_v4 = vrot.slane %v1783_v32, 5  ;;  %v16304_v49 = vshll.u32 %v11135_v41, 16  ;;  %v11719_v2 = vsel %vm11337_vm7, %v1337_v8, %v1338_v29  ;;  %v1797_v6 = vshrl.u32 %v11684_v20, 16  ;;  %v11734_v29 = vld [vmem:[%s10907_s28 + $0x50] sm:$0x3] }
  0x8d   : > { %v1791_v0 = vrot.slane %v16303_v48, 5  ;;  %v1781_v52 = vsel %vm11523_vm10, %v1772_v61, %v1780_v16  ;;  %v1788_v39 = vrot.slane %v1786_v47, 6  ;;  %v9097_v59 = vcombine.low %v11699_v55, %v11719_v2  ;;  %v10791_v61 = vld [vmem:[%s10907_s28 + $0xb0] sm:$0x1] }
  0x8e   : > { %v1792_v37 = vrot.slane %v16304_v49, 6  ;;  %v9121_v18 = vcombine.low %v1771_v33, %v1781_v52  ;;  %v1800_v60 = vshll.u32 %v11684_v20, 16  ;;  %10250 = vmatmul.mubr.msk.bf16.gmra.mxu1 %vm685_vm3, %v9120_v23  ;;  %v1799_v10 = vrot.slane %v1797_v6, 5  ;;  %v11745_v52 = vld [vmem:[%s10907_s28 + $0xb4] sm:$0xe] }
  0x8f   : > { %v1789_v24 = vor.u32 %v1788_v39, %v1785_v4  ;;  %v9081_v36 = vrot.slane %v11713_v38, 9  ;;  %v1342_v21 = vrot.slane %v11728_v7, 5  ;;  %v1345_v56 = vrot.slane %v10791_v61, 5 }
  0x90   : > { %v1793_v41 = vor.u32 %v1792_v37, %v1791_v0  ;;  %10253 = vmatprep.mubr.msk.bf16.mxu1 %vm685_vm3, %v9121_v18  ;;  %v1802_v1 = vrot.slane %v1800_v60, 6  ;;  %v1806_v32 = vshrl.u32 %v11401_v34, 16  ;;  %v1809_v47 = vshll.u32 %v11401_v34, 16 }
  0x91   : > { %v1790_v23 = vrot.slane %v1789_v24, 4  ;;  %v1343_v16 = vsel %vm11337_vm7, %v9081_v36, %v1342_v21  ;;  %v1344_v8 = vrot.slane %v1342_v21, 4  ;;  %v16305_v48 = vshrl.u32 %v11157_v5, 16 }
  0x92   : > { %v1795_v22 = vrot.slane %v1793_v41, 4  ;;  %v1803_v33 = vor.u32 %v1802_v1, %v1799_v10  ;;  %v1808_v4 = vrot.slane %v1806_v32, 5  ;;  %v16306_v49 = vshll.u32 %v11157_v5, 16  ;;  %v11762_v1 = vld [vmem:[%s10907_s28 + $0xb8] sm:$0xf] }
  0x93   : > { %v1814_v0 = vrot.slane %v16305_v48, 5  ;;  %10232 = vmatmul.mubr.msk.bf16.gmra.mxu0 %vm685_vm3, %v9095_v46  ;;  %v1794_v39 = vsel %vm11523_vm10, %v1790_v23, %v1793_v41  ;;  %v1346_v34 = vsel %vm11337_vm7, %v1344_v8, %v1345_v56  ;;  %v1811_v6 = vrot.slane %v1809_v47, 6  ;;  %v10793_v56 = vld [vmem:[%s10907_s28 + $0xbc] sm:$0x1] }
  0x94   : > { %v1815_v37 = vrot.slane %v16306_v49, 6  ;;  %v1820_v18 = vshrl.u32 %v11734_v29, 16  ;;  %10235 = vmatprep.mubr.msk.bf16.mxu0 %vm685_vm3, %v9096_v63  ;;  %v1804_v5 = vsel %vm11523_vm10, %v1795_v22, %v1803_v33  ;;  %v9098_v40 = vcombine.low %v1343_v16, %v1346_v34  ;;  %v11767_v32 = vld [vmem:[%s10907_s28 + $0x5c] sm:$0x3] }
  0x95   : > { %v1823_v46 = vshll.u32 %v11734_v29, 16  ;;  %v9122_v60 = vcombine.low %v1794_v39, %v1804_v5  ;;  %v1812_v24 = vor.u32 %v1811_v6, %v1808_v4  ;;  %v9082_v10 = vrot.slane %v11745_v52, 9 }
  0x96   : > { %v1816_v3 = vor.u32 %v1815_v37, %v1814_v0  ;;  %v1822_v41 = vrot.slane %v1820_v18, 5  ;;  %v1349_v61 = vrot.slane %v11762_v1, 5  ;;  %v1352_v63 = vrot.slane %v10793_v56, 5  ;;  %v11782_v18 = vld [vmem:[%s10907_s28 + $0x68] sm:$0x3] }
  0x97   : > { %v1825_v21 = vrot.slane %v1823_v46, 6  ;;  %10254 = vmatmul.mubr.msk.bf16.gmra.mxu1 %vm685_vm3, %v9122_v60  ;;  %v1813_v22 = vrot.slane %v1812_v24, 4  ;;  %v1829_v23 = vshrl.u32 %v11409_v25, 16  ;;  %v1832_v16 = vshll.u32 %v11409_v25, 16 }
  0x98   : > { %v1818_v36 = vrot.slane %v1816_v3, 4  ;;  %v16307_v8 = vshrl.u32 %v11185_v13, 16  ;;  %v1350_v4 = vsel %vm11337_vm7, %v9082_v10, %v1349_v61  ;;  %v1351_v48 = vrot.slane %v1349_v61, 4  ;;  %v11796_v10 = vld [vmem:[%s16094_s1 + $0xe] sm:$0x3]  ;;  %v16309_v61 = vld [vmem:[#allocation6_spill] sm:$0xff] }
  0x99   : > { %v1826_v33 = vor.u32 %v1825_v21, %v1822_v41  ;;  %v16308_v0 = vshll.u32 %v11185_v13, 16  ;;  %v1817_v37 = vsel %vm11523_vm10, %v1813_v22, %v1816_v3  ;;  %v1831_v39 = vrot.slane %v1829_v23, 5 }
  0x9a   : > { %v1837_v47 = vrot.slane %v16307_v8, 5  ;;  %v1834_v34 = vrot.slane %v1832_v16, 6  ;;  %v1843_v6 = vshrl.u32 %v11767_v32, 16  ;;  %v1353_v5 = vsel %vm11337_vm7, %v1351_v48, %v1352_v63 }
  0x9b   : > { %v1838_v49 = vrot.slane %v16308_v0, 6  ;;  %v1827_v25 = vsel %vm11523_vm10, %v1818_v36, %v1826_v33  ;;  %v1846_v60 = vshll.u32 %v11767_v32, 16  ;;  %10236 = vmatmul.mubr.msk.bf16.gmra.mxu0 %vm685_vm3, %v9097_v59  ;;  %v9099_v3 = vcombine.low %v1350_v4, %v1353_v5 }
  0x9c   : > { %v9123_v13 = vcombine.low %v1817_v37, %v1827_v25  ;;  %v1835_v24 = vor.u32 %v1834_v34, %v1831_v39  ;;  %v1845_v41 = vrot.slane %v1843_v6, 5  ;;  %10239 = vmatprep.mubr.msk.bf16.mxu0 %vm685_vm3, %v9098_v40  ;;  %v2950_v56 = vsel %vm734_vm0, %v16309_v61, 0  ;;  %v2329_v40 = vld [vmem:[%s10907_s28] sm:$0xc] }
  0x9d   : > { %v1839_v46 = vor.u32 %v1838_v49, %v1837_v47  ;;  %v1848_v21 = vrot.slane %v1846_v60, 6  ;;  %v1852_v55 = vshrl.u32 %v11419_v30, 16  ;;  %10312 = vmatpush3.bf16.msra.mxu1 %v2950_v56  ;;  %v1855_v59 = vshll.u32 %v11419_v30, 16  ;;  %v10794_v60 = vld [vmem:[%s10907_s28 + $0x4] sm:$0xf] }
  0x9e   : > { %10257 = vmatprep.mubr.msk.bf16.mxu1 %vm685_vm3, %v9123_v13  ;;  %v1836_v2 = vrot.slane %v1835_v24, 4  ;;  %v16310_v63 = vshrl.u32 %v11208_v43, 16  ;;  %v16311_v23 = vshll.u32 %v11208_v43, 16  ;;  %v1866_v33 = vshrl.u32 %v11782_v18, 16  ;;  %10689 = vmatprep.subr.msk.bf16.mxu1 %vm734_vm0, %v11796_v10 }
  0x9f   : > { %v1841_v36 = vrot.slane %v1839_v46, 4  ;;  %v1849_v8 = vor.u32 %v1848_v21, %v1845_v41  ;;  %v1854_v47 = vrot.slane %v1852_v55, 5  ;;  %v1869_v4 = vshll.u32 %v11782_v18, 16 }
  0xa0   : > { %v1860_v22 = vrot.slane %v16310_v63, 5  ;;  %v1861_v16 = vrot.slane %v16311_v23, 6  ;;  %v1840_v30 = vsel %vm11523_vm10, %v1836_v2, %v1839_v46  ;;  %v1857_v48 = vrot.slane %v1855_v59, 6  ;;  %v11824_v46 = vld [vmem:[%s10907_s28 + $0x74] sm:$0x3] }
  0xa1   : > { %v1850_v43 = vsel %vm11523_vm10, %v1841_v36, %v1849_v8  ;;  %v1868_v49 = vrot.slane %v1866_v33, 5  ;;  %v1871_v37 = vrot.slane %v1869_v4, 6  ;;  %v16312_v39 = vmov 0 }
  0xa2   : > { %v1862_v0 = vor.u32 %v1861_v16, %v1860_v22  ;;  %v16313_v39 = vsel %vm11818_vm12, 4294967295, %v16312_v39  ;;  %v9149_v34 = vrot.slane %v2329_v40, 10  ;;  %v9124_v6 = vcombine.low %v1840_v30, %v1850_v43 }
  0xa3   : > { %16314 = vst [vmem:[#allocation2_spill] sm:$0xff] %v16313_v39  ;;  %v1858_v25 = vor.u32 %v1857_v48, %v1854_v47  ;;  %v2382_v13 = vrot.slane %v10794_v60, 6  ;;  %v1872_v24 = vor.u32 %v1871_v37, %v1868_v49  ;;  %v2385_v41 = vrot.slane %v11474_v53, 6  ;;  %10240 = vmatmul.mubr.msk.bf16.gmra.mxu0 %vm685_vm3, %v9099_v3  ;;  %v2330_v3 = vld [vmem:[%s10907_s28 + $0xc] sm:$0xc] }
  0xa4   : > { %v1864_v5 = vrot.slane %v1862_v0, 4  ;;  %v1875_v36 = vshrl.u32 %v11484_v62, 16  ;;  %v1878_v21 = vshll.u32 %v11484_v62, 16  ;;  %10258 = vmatmul.mubr.msk.bf16.gmra.mxu1 %vm685_vm3, %v9124_v6  ;;  %v16315_v2 = vshrl.u32 %v11244_v14, 16  ;;  %v10795_v37 = vld [vmem:[%s10907_s28 + $0x10] sm:$0xf] }
  0xa5   : > { %v1859_v61 = vrot.slane %v1858_v25, 4  ;;  %v2383_v56 = vsel %vm11818_vm12, %v9149_v34, %v2382_v13  ;;  %v2384_v55 = vrot.slane %v2382_v13, 4  ;;  %v16316_v62 = vshll.u32 %v11244_v14, 16  ;;  %v11853_v60 = vld [vmem:[%s10907_s28 + $0x80] sm:$0x3] }
  0xa6   : > { %v1883_v59 = vrot.slane %v16315_v2, 5  ;;  %v1873_v63 = vsel %vm11523_vm10, %v1864_v5, %v1872_v24  ;;  %v1877_v53 = vrot.slane %v1875_v36, 5  ;;  %v1880_v22 = vrot.slane %v1878_v21, 6  ;;  %v2331_v2 = vld [vmem:[%s10907_s28 + $0x18] sm:$0xc] }
  0xa7   : > { %v1884_v23 = vrot.slane %v16316_v62, 6  ;;  %v1863_v16 = vsel %vm11523_vm10, %v1859_v61, %v1862_v0  ;;  %v2386_v40 = vsel %vm11818_vm12, %v2384_v55, %v2385_v41  ;;  %v1889_v8 = vshrl.u32 %v11824_v46, 16 }
  0xa8   : > { %v1892_v47 = vshll.u32 %v11824_v46, 16  ;;  %v9125_v33 = vcombine.low %v1863_v16, %v1873_v63  ;;  %v9166_v4 = vcombine.low %v2383_v56, %v2386_v40  ;;  %v1881_v30 = vor.u32 %v1880_v22, %v1877_v53 }
  0xa9   : > { %v1885_v48 = vor.u32 %v1884_v23, %v1883_v59  ;;  %v1891_v43 = vrot.slane %v1889_v8, 5  ;;  %v9150_v14 = vrot.slane %v2330_v3, 10  ;;  %v2389_v34 = vrot.slane %v10795_v37, 6  ;;  %v10796_v8 = vld [vmem:[%s10907_s28 + $0x1c] sm:$0xf] }
  0xaa   : > { %v1894_v49 = vrot.slane %v1892_v47, 6  ;;  %10261 = vmatprep.mubr.msk.bf16.mxu1 %vm685_vm3, %v9125_v33  ;;  %10279 = vmatprep.mubr.msk.bf16.mxu0 %vm685_vm3, %v9166_v4  ;;  %v1882_v0 = vrot.slane %v1881_v30, 4  ;;  %v2392_v25 = vrot.slane %v11516_v11, 6  ;;  %v3676_v5 = vsel %vm734_vm0, %v11453_v9, 0  ;;  %v11876_v33 = vld [vmem:[%s16094_s1 + $0x10] sm:$0x3] }
  0xab   : > { %v1887_v6 = vrot.slane %v1885_v48, 4  ;;  %v2390_v24 = vsel %vm11818_vm12, %v9150_v14, %v2389_v34  ;;  %v2391_v41 = vrot.slane %v2389_v34, 4  ;;  %v1898_v36 = vshrl.u32 %v11535_v28, 16 }
  0xac   : > { %v1895_v13 = vor.u32 %v1894_v49, %v1891_v43  ;;  %v1886_v21 = vsel %vm11523_vm10, %v1882_v0, %v1885_v48  ;;  %v1901_v61 = vshll.u32 %v11535_v28, 16  ;;  %v16317_v11 = vshrl.u32 %v11269_v57, 16  ;;  %v11882_v43 = vld [vmem:[%s10907_s28 + $0x8c] sm:$0x3] }
  0xad   : > { %v16318_v9 = vshll.u32 %v11269_v57, 16  ;;  %v2393_v63 = vsel %vm11818_vm12, %v2391_v41, %v2392_v25  ;;  %v1900_v53 = vrot.slane %v1898_v36, 5  ;;  %v1912_v22 = vshrl.u32 %v11853_v60, 16  ;;  %v2332_v36 = vld [vmem:[%s10907_s28 + $0x24] sm:$0xc] }
  0xae   : > { %v1906_v56 = vrot.slane %v16317_v11, 5  ;;  %v1896_v59 = vsel %vm11523_vm10, %v1887_v6, %v1895_v13  ;;  %v9167_v23 = vcombine.low %v2390_v24, %v2393_v63  ;;  %v1903_v28 = vrot.slane %v1901_v61, 6 }
  0xaf   : > { %v1907_v55 = vrot.slane %v16318_v9, 6  ;;  %v9126_v62 = vcombine.low %v1886_v21, %v1896_v59  ;;  %v1914_v16 = vrot.slane %v1912_v22, 5  ;;  %v1915_v40 = vshll.u32 %v11853_v60, 16 }
  0xb0   : > { %v9151_v57 = vrot.slane %v2331_v2, 10  ;;  %v2396_v47 = vrot.slane %v10796_v8, 6  ;;  %10280 = vmatmul.mubr.msk.bf16.vlgmr.msra.gmra.mxu0 %vm685_vm3, %v9167_v23  ;;  %v1904_v4 = vor.u32 %v1903_v28, %v1900_v53  ;;  %v2399_v48 = vrot.slane %v11559_v50, 6  ;;  %v10797_v23 = vld [vmem:[%s10907_s28 + $0x28] sm:$0xf] }
  0xb1   : > { %v1908_v3 = vor.u32 %v1907_v55, %v1906_v56  ;;  %10262 = vmatmul.mubr.msk.bf16.gmra.mxu1 %vm685_vm3, %v9126_v62  ;;  %v1921_v49 = vshrl.u32 %v11579_v54, 16  ;;  %10346 = vmatpush3.bf16.msra.mxu0 %v3676_v5  ;;  %v1917_v14 = vrot.slane %v1915_v40, 6  ;;  %v1924_v0 = vshll.u32 %v11579_v54, 16 }
  0xb2   : > { %v2397_v37 = vsel %vm11818_vm12, %v9151_v57, %v2396_v47  ;;  %v2398_v34 = vrot.slane %v2396_v47, 4  ;;  %v1905_v6 = vrot.slane %v1904_v4, 4  ;;  %v16319_v13 = vshrl.u32 %v11293_v51, 16  ;;  %10690 = vmatprep.subr.msk.bf16.mxu0 %vm734_vm0, %v11876_v33 }
  0xb3   : > { %v1910_v30 = vrot.slane %v1908_v3, 4  ;;  %v1923_v25 = vrot.slane %v1921_v49, 5  ;;  %v16320_v41 = vshll.u32 %v11293_v51, 16  ;;  %v1918_v5 = vor.u32 %v1917_v14, %v1914_v16  ;;  %v11906_v16 = vld [vmem:[%s10907_s28 + $0x98] sm:$0x3] }
  0xb4   : > { %v1929_v24 = vrot.slane %v16319_v13, 5  ;;  %v2400_v21 = vsel %vm11818_vm12, %v2398_v34, %v2399_v48  ;;  %v1926_v61 = vrot.slane %v1924_v0, 6  ;;  %v1935_v54 = vshrl.u32 %v11882_v43, 16  ;;  %v16321_v48 = vld [vmem:[#allocation4_spill] sm:$0xff]  ;;  %v16322_v49 = vld [vmem:[#allocation5_spill] sm:$0xff] }
  0xb5   : > { %v1930_v50 = vrot.slane %v16320_v41, 6  ;;  %v1909_v11 = vsel %vm11523_vm10, %v1905_v6, %v1908_v3  ;;  %v9168_v56 = vcombine.low %v2397_v37, %v2400_v21  ;;  %v1938_v51 = vshll.u32 %v11882_v43, 16 }
  0xb6   : > { %v1919_v55 = vsel %vm11523_vm10, %v1910_v30, %v1918_v5  ;;  %v1927_v2 = vor.u32 %v1926_v61, %v1923_v25  ;;  %v1937_v59 = vrot.slane %v1935_v54, 5  ;;  %v9152_v63 = vrot.slane %v2332_v36, 10  ;;  %v10798_v54 = vld [vmem:[%s10907_s28 + $0x34] sm:$0xf] }
  0xb7   : > { %v1931_v9 = vor.u32 %v1930_v50, %v1929_v24  ;;  %v9127_v53 = vcombine.low %v1909_v11, %v1919_v55  ;;  %10283 = vmatprep.mubr.msk.bf16.mxu0 %vm685_vm3, %v9168_v56  ;;  %v1940_v62 = vrot.slane %v1938_v51, 6  ;;  %v2403_v28 = vrot.slane %v10797_v23, 6 }
  0xb8   : > { %v1928_v3 = vrot.slane %v1927_v2, 4  ;;  %v2406_v40 = vrot.slane %v11604_v26, 6  ;;  %v1944_v57 = vshrl.u32 %v11625_v27, 16  ;;  %v1947_v8 = vshll.u32 %v11625_v27, 16  ;;  %v2333_v27 = vld [vmem:[%s10907_s28 + $0x30] sm:$0xc] }
  0xb9   : > { %v1933_v22 = vrot.slane %v1931_v9, 4  ;;  %10265 = vmatprep.mubr.msk.bf16.mxu1 %vm685_vm3, %v9127_v53  ;;  %v1941_v47 = vor.u32 %v1940_v62, %v1937_v59  ;;  %v2404_v4 = vsel %vm11818_vm12, %v9152_v63, %v2403_v28  ;;  %v2405_v30 = vrot.slane %v2403_v28, 4 }
  0xba   : > { %v1954_v14 = vor.u32 %v16322_v49, %v16321_v48  ;;  %v1932_v37 = vsel %vm11523_vm10, %v1928_v3, %v1931_v9  ;;  %v1946_v34 = vrot.slane %v1944_v57, 5  ;;  %v1949_v26 = vrot.slane %v1947_v8, 6  ;;  %v11928_v9 = vld [vmem:[%s10907_s28 + $0xa4] sm:$0x3] }
  0xbb   : > { %v1958_v0 = vshrl.u32 %v11906_v16, 16  ;;  %v1942_v6 = vsel %vm11523_vm10, %v1933_v22, %v1941_v47  ;;  %v2407_v25 = vsel %vm11818_vm12, %v2405_v30, %v2406_v40  ;;  %v1961_v24 = vshll.u32 %v11906_v16, 16 }
  0xbc   : > { %v1956_v13 = vrot.slane %v1954_v14, 4  ;;  %v9128_v41 = vcombine.low %v1932_v37, %v1942_v6  ;;  %v9169_v50 = vcombine.low %v2404_v4, %v2407_v25  ;;  %v1950_v36 = vor.u32 %v1949_v26, %v1946_v34 }
  0xbd   : > { %v1960_v5 = vrot.slane %v1958_v0, 5  ;;  %v1963_v21 = vrot.slane %v1961_v24, 6  ;;  %v9153_v61 = vrot.slane %v2333_v27, 10  ;;  %v2410_v11 = vrot.slane %v10798_v54, 6  ;;  %v10799_v0 = vld [vmem:[%s10907_s28 + $0x40] sm:$0xf] }
  0xbe   : > { %v2413_v56 = vrot.slane %v11652_v44, 6  ;;  %10266 = vmatmul.mubr.msk.bf16.gmra.mxu1 %vm685_vm3, %v9128_v41  ;;  %10284 = vmatmul.mubr.msk.bf16.gmra.mxu0 %vm685_vm3, %v9169_v50  ;;  %v1951_v51 = vrot.slane %v1950_v36, 4  ;;  %v1967_v55 = vshrl.u32 %v11663_v17, 16  ;;  %v1970_v2 = vshll.u32 %v11663_v17, 16  ;;  %v2334_v17 = vld [vmem:[%s10907_s28 + $0x3c] sm:$0xc] }
  0xbf   : > { %v16323_v59 = vshrl.u32 %v10998_v12, 16  ;;  %v1964_v53 = vor.u32 %v1963_v21, %v1960_v5  ;;  %v2411_v22 = vsel %vm11818_vm12, %v9153_v61, %v2410_v11  ;;  %v2412_v44 = vrot.slane %v2410_v11, 4 }
  0xc0   : > { %v16324_v62 = vshll.u32 %v10998_v12, 16  ;;  %v1955_v28 = vsel %vm11523_vm10, %v1951_v51, %v1954_v14  ;;  %v1969_v3 = vrot.slane %v1967_v55, 5  ;;  %v1972_v40 = vrot.slane %v1970_v2, 6  ;;  %v2335_v55 = vld [vmem:[%s10907_s28 + $0x48] sm:$0xc] }
  0xc1   : > { %v1975_v63 = vrot.slane %v16323_v59, 5  ;;  %v1981_v57 = vshrl.u32 %v11928_v9, 16  ;;  %v1965_v8 = vsel %vm11523_vm10, %v1956_v13, %v1964_v53  ;;  %v2414_v47 = vsel %vm11818_vm12, %v2412_v44, %v2413_v56  ;;  %v11954_v13 = vld [vmem:[%s10907_s28 + $0xb0] sm:$0x3] }
  0xc2   : > { %v1976_v23 = vrot.slane %v16324_v62, 6  ;;  %v1984_v12 = vshll.u32 %v11928_v9, 16  ;;  %v9129_v30 = vcombine.low %v1955_v28, %v1965_v8  ;;  %v9170_v48 = vcombine.low %v2411_v22, %v2414_v47  ;;  %v11978_v47 = vld [vmem:[%s10907_s28 + $0xbc] sm:$0x3] }
  0xc3   : > { %v1973_v49 = vor.u32 %v1972_v40, %v1969_v3  ;;  %v1983_v14 = vrot.slane %v1981_v57, 5  ;;  %v9154_v26 = vrot.slane %v2334_v17, 10  ;;  %v2417_v27 = vrot.slane %v10799_v0, 6  ;;  %v10800_v3 = vld [vmem:[%s10907_s28 + $0x4c] sm:$0xf] }
  0xc4   : > { %v1977_v4 = vor.u32 %v1976_v23, %v1975_v63  ;;  %v1986_v34 = vrot.slane %v1984_v12, 6  ;;  %10269 = vmatprep.mubr.msk.bf16.mxu1 %vm685_vm3, %v9129_v30  ;;  %10287 = vmatprep.mubr.msk.bf16.mxu0 %vm685_vm3, %v9170_v48  ;;  %v2420_v25 = vrot.slane %v11684_v20, 6  ;;  %v1990_v24 = vshrl.u32 %v11713_v38, 16 }
  0xc5   : > { %v1974_v6 = vrot.slane %v1973_v49, 4  ;;  %v1993_v41 = vshll.u32 %v11713_v38, 16  ;;  %v2418_v36 = vsel %vm11818_vm12, %v9154_v26, %v2417_v27  ;;  %v2419_v5 = vrot.slane %v2417_v27, 4  ;;  %v2336_v27 = vld [vmem:[%s10907_s28 + $0x54] sm:$0xc] }
  0xc6   : > { %v1979_v37 = vrot.slane %v1977_v4, 4  ;;  %v1987_v50 = vor.u32 %v1986_v34, %v1983_v14  ;;  %v16325_v21 = vshrl.u32 %v11039_v15, 16  ;;  %v1992_v11 = vrot.slane %v1990_v24, 5 }
  0xc7   : > { %v1978_v54 = vsel %vm11523_vm10, %v1974_v6, %v1977_v4  ;;  %v1995_v20 = vrot.slane %v1993_v41, 6  ;;  %v16326_v56 = vshll.u32 %v11039_v15, 16  ;;  %v2421_v2 = vsel %vm11818_vm12, %v2419_v5, %v2420_v25  ;;  %v2337_v41 = vld [vmem:[%s10907_s28 + $0x60] sm:$0xc] }
  0xc8   : > { %v1998_v61 = vrot.slane %v16325_v21, 5  ;;  %v1988_v38 = vsel %vm11523_vm10, %v1979_v37, %v1987_v50  ;;  %v2004_v59 = vshrl.u32 %v11954_v13, 16  ;;  %v2007_v63 = vshll.u32 %v11954_v13, 16 }
  0xc9   : > { %v1999_v51 = vrot.slane %v16326_v56, 6  ;;  %v9130_v53 = vcombine.low %v1978_v54, %v1988_v38  ;;  %v9171_v22 = vcombine.low %v2418_v36, %v2421_v2  ;;  %v1996_v44 = vor.u32 %v1995_v20, %v1992_v11  ;;  %v10801_v11 = vld [vmem:[%s10907_s28 + $0x58] sm:$0xf]  ;;  %v2338_v56 = vld [vmem:[%s10907_s28 + $0x6c] sm:$0xc] }
  0xca   : > { %v2006_v23 = vrot.slane %v2004_v59, 5  ;;  %v2009_v28 = vrot.slane %v2007_v63, 6  ;;  %v9155_v15 = vrot.slane %v2335_v55, 10  ;;  %v2424_v40 = vrot.slane %v10800_v3, 6 }
  0xcb   : > { %v2000_v62 = vor.u32 %v1999_v51, %v1998_v61  ;;  %10270 = vmatmul.mubr.msk.bf16.gmra.mxu1 %vm685_vm3, %v9130_v53  ;;  %10288 = vmatmul.mubr.msk.bf16.gmra.mxu0 %vm685_vm3, %v9171_v22  ;;  %v1997_v57 = vrot.slane %v1996_v44, 4  ;;  %v2427_v8 = vrot.slane %v11734_v29, 6  ;;  %v2013_v4 = vshrl.u32 %v11745_v52, 16  ;;  %v10802_v22 = vld [vmem:[%s10907_s28 + $0x64] sm:$0xf] }
  0xcc   : > { %v2010_v12 = vor.u32 %v2009_v28, %v2006_v23  ;;  %v2425_v30 = vsel %vm11818_vm12, %v9155_v15, %v2424_v40  ;;  %v2426_v48 = vrot.slane %v2424_v40, 4  ;;  %v2016_v49 = vshll.u32 %v11745_v52, 16  ;;  %v10803_v15 = vld [vmem:[%s10907_s28 + $0x70] sm:$0xf]  ;;  %v2339_v40 = vld [vmem:[%s10907_s28 + $0x78] sm:$0xc] }
  0xcd   : > { %v2002_v17 = vrot.slane %v2000_v62, 4  ;;  %v2001_v14 = vsel %vm11523_vm10, %v1997_v57, %v2000_v62  ;;  %v2015_v37 = vrot.slane %v2013_v4, 5  ;;  %v16327_v34 = vshrl.u32 %v11085_v42, 16  ;;  %v2340_v4 = vld [vmem:[%s10907_s28 + $0x84] sm:$0xc] }
  0xce   : > { %v16328_v26 = vshll.u32 %v11085_v42, 16  ;;  %v2428_v25 = vsel %vm11818_vm12, %v2426_v48, %v2427_v8  ;;  %v2018_v52 = vrot.slane %v2016_v49, 6  ;;  %v2027_v24 = vshrl.u32 %v11978_v47, 16 }
  0xcf   : > { %v2021_v29 = vrot.slane %v16327_v34, 5  ;;  %v2011_v6 = vsel %vm11523_vm10, %v2002_v17, %v2010_v12  ;;  %v9172_v36 = vcombine.low %v2425_v30, %v2428_v25  ;;  %v2030_v21 = vshll.u32 %v11978_v47, 16  ;;  %v10723_v30 = vld [vmem:[%s10907_s28 + $0xc] sm:$0xff]  }
  0xd0   : > { %v2022_v0 = vrot.slane %v16328_v26, 6  ;;  %v9131_v50 = vcombine.low %v2001_v14, %v2011_v6  ;;  %v2019_v42 = vor.u32 %v2018_v52, %v2015_v37  ;;  %v2029_v61 = vrot.slane %v2027_v24, 5  ;;  %v2341_v14 = vld [vmem:[%s10907_s28 + $0x90] sm:$0xc]  ;;  %v2342_v24 = vld [vmem:[%s10907_s28 + $0x9c] sm:$0xc] }
  0xd1   : > { %v9156_v54 = vrot.slane %v2336_v27, 10  ;;  %v2431_v20 = vrot.slane %v10801_v11, 6  ;;  %10291 = vmatprep.mubr.msk.bf16.mxu0 %vm685_vm3, %v9172_v36  ;;  %v2032_v55 = vrot.slane %v2030_v21, 6  ;;  %v2434_v38 = vrot.slane %v11767_v32, 6  ;;  %v10804_v27 = vld [vmem:[%s10907_s28 + $0x7c] sm:$0xf] }
  0xd2   : > { %v2023_v5 = vor.u32 %v2022_v0, %v2021_v29  ;;  %10273 = vmatprep.mubr.msk.bf16.mxu1 %vm685_vm3, %v9131_v50  ;;  %v9157_v2 = vrot.slane %v2337_v41, 10  ;;  %v2020_v59 = vrot.slane %v2019_v42, 4  ;;  %v2438_v44 = vrot.slane %v10802_v22, 6  ;;  %v10805_v50 = vld [vmem:[%s10907_s28 + $0x88] sm:$0xf] }
  0xd3   : > { %v2432_v63 = vsel %vm11818_vm12, %v9156_v54, %v2431_v20  ;;  %v2433_v53 = vrot.slane %v2431_v20, 4  ;;  %v2033_v62 = vor.u32 %v2032_v55, %v2029_v61  ;;  %v2441_v23 = vrot.slane %v11782_v18, 6  ;;  %v10725_v22 = vld [vmem:[%s10907_s28 + $0x24] sm:$0xff]  }
  0xd4   : > { %v2025_v51 = vrot.slane %v2023_v5, 4  ;;  %v9158_v28 = vrot.slane %v2338_v56, 10  ;;  %v2445_v3 = vrot.slane %v10803_v15, 6  ;;  %v2024_v32 = vsel %vm11523_vm10, %v2020_v59, %v2023_v5 }
  0xd5   : > { %v2435_v57 = vsel %vm11818_vm12, %v2433_v53, %v2434_v38  ;;  %v2439_v17 = vsel %vm11818_vm12, %v9157_v2, %v2438_v44  ;;  %v2440_v8 = vrot.slane %v2438_v44, 4  ;;  %v2448_v29 = vrot.slane %v11824_v46, 6  ;;  %v2344_v53 = vld [vmem:[%s10907_s28 + $0xb4] sm:$0xc] }
  0xd6   : > { %v2034_v12 = vsel %vm11523_vm10, %v2025_v51, %v2033_v62  ;;  %v9173_v18 = vcombine.low %v2432_v63, %v2435_v57  ;;  %v2446_v48 = vsel %vm11818_vm12, %v9158_v28, %v2445_v3  ;;  %v2447_v49 = vrot.slane %v2445_v3, 4 }
  0xd7   : > { %v9132_v37 = vcombine.low %v2024_v32, %v2034_v12  ;;  %v2442_v34 = vsel %vm11818_vm12, %v2440_v8, %v2441_v23  ;;  %v9159_v26 = vrot.slane %v2339_v40, 10  ;;  %v2452_v6 = vrot.slane %v10804_v27, 6  ;;  %v9263_v23 = vld [vmem:[%s10907_s28 + $0xc] sm:$0xf]  ;;  %v12074_v32 = vld [vmem:[%s10907_s28 + $0x14] sm:$0x1] }
  0xd8   : > { %10292 = vmatmul.mubr.msk.bf16.gmra.mxu0 %vm685_vm3, %v9173_v18  ;;  %v9174_v0 = vcombine.low %v2439_v17, %v2442_v34  ;;  %v2455_v25 = vrot.slane %v11853_v60, 6  ;;  %v9160_v52 = vrot.slane %v2340_v4, 10  ;;  %v2449_v41 = vsel %vm11818_vm12, %v2447_v49, %v2448_v29 }
  0xd9   : > { %10274 = vmatmul.mubr.msk.bf16.gmra.mxu1 %vm685_vm3, %v9132_v37  ;;  %v2459_v36 = vrot.slane %v10805_v50, 6  ;;  %v2462_v46 = vrot.slane %v11882_v43, 6  ;;  %v9161_v5 = vrot.slane %v2341_v14, 10  ;;  %v2453_v60 = vsel %vm11818_vm12, %v9159_v26, %v2452_v6  ;;  %v2343_v43 = vld [vmem:[%s10907_s28 + $0xa8] sm:$0xc] }
  0xda   : > { %10295 = vmatprep.mubr.msk.bf16.mxu0 %vm685_vm3, %v9174_v0  ;;  %10313 = vmatprep.mubr.msk.bf16.mxu1 %vm685_vm3, %v10723_v30  ;;  %v2454_v21 = vrot.slane %v2452_v6, 4  ;;  %v2466_v42 = vrot.slane %v11644_v45, 6  ;;  %v9175_v61 = vcombine.low %v2446_v48, %v2449_v41  ;;  %v2469_v11 = vrot.slane %v11906_v16, 6  ;;  %v10724_v45 = vld [vmem:[%s10907_s28 + $0x18] sm:$0xff]  }
  0xdb   : > { %v2461_v54 = vrot.slane %v2459_v36, 4  ;;  %v9162_v20 = vrot.slane %v2342_v24, 10  ;;  %v12045_v51 = vsel %vm11818_vm12, %v9160_v52, %v2459_v36  ;;  %v2473_v38 = vrot.slane %v11688_v58, 6  ;;  %v9266_v14 = vld [vmem:[%s10907_s28 + $0x18] sm:$0xf]  ;;  %v10726_v24 = vld [vmem:[%s10907_s28 + $0x30] sm:$0xff]  }
  0xdc   : > { %v2456_v56 = vsel %vm11818_vm12, %v2454_v21, %v2455_v25  ;;  %v2468_v55 = vrot.slane %v2466_v42, 4  ;;  %v12053_v59 = vsel %vm11818_vm12, %v9161_v5, %v2466_v42  ;;  %v2476_v63 = vrot.slane %v11928_v9, 6  ;;  %v12071_v9 = vld [vmem:[%s10907_s28 + $0x10] sm:$0xf]  ;;  %v12106_v26 = vld [vmem:[%s10907_s28 + $0x1c] sm:$0xf] }
  0xdd   : > { %v9176_v2 = vcombine.low %v2453_v60, %v2456_v56  ;;  %v2463_v16 = vsel %vm11818_vm12, %v2461_v54, %v2462_v46  ;;  %v2475_v58 = vrot.slane %v2473_v38, 4  ;;  %v9163_v62 = vrot.slane %v2343_v43, 10  ;;  %v12118_v52 = vld [vmem:[%s10907_s28 + $0x20] sm:$0x1]  ;;  %v9269_v56 = vld [vmem:[%s10907_s28 + $0x24] sm:$0xf] }
  0xde   : > { %v12060_v44 = vsel %vm11818_vm12, %v2468_v55, %v2469_v11  ;;  %v9177_v28 = vcombine.low %v12045_v51, %v2463_v16  ;;  %v12066_v15 = vsel %vm11818_vm12, %v9162_v20, %v2473_v38  ;;  %v2480_v3 = vrot.slane %v11728_v7, 6  ;;  %v9490_v7 = vld [vmem:[%s16094_s1 + $0x12] sm:$0x3]  ;;  %v10727_v5 = vld [vmem:[%s10907_s28 + $0x3c] sm:$0xff]  }
  0xdf   : > { %v2483_v40 = vrot.slane %v11954_v13, 6  ;;  %v9178_v57 = vcombine.low %v12053_v59, %v12060_v44  ;;  %v9164_v17 = vrot.slane %v2344_v53, 10  ;;  %v2487_v8 = vrot.slane %v11762_v1, 6 }
  0xe0   : > { %10296 = vmatmul.mubr.msk.bf16.gmra.mxu0 %vm685_vm3, %v9175_v61  ;;  %v4146_v4 = vsel %vm734_vm0, %v11796_v10, 0  ;;  %v12089_v13 = vsel %vm11818_vm12, %v2475_v58, %v2476_v63  ;;  %v2482_v12 = vrot.slane %v2480_v3, 4  ;;  %v2490_v18 = vrot.slane %v11978_v47, 6 }
  0xe1   : > { %10314 = vmatmul.mubr.msk.bf16.vlgmr.msra.gmra.mxu1 %vm685_vm3, %v10724_v45  ;;  %10299 = vmatprep.mubr.msk.bf16.mxu0 %vm685_vm3, %v9176_v2  ;;  %v3194_v1 = vshrl.u32 %v9263_v23, 16  ;;  %v12095_v10 = vsel %vm11818_vm12, %v9163_v62, %v2480_v3  ;;  %v2489_v30 = vrot.slane %v2487_v8, 4  ;;  %v3197_v48 = vshll.u32 %v9263_v23, 16  ;;  %v12136_v2 = vld [vmem:[%s10907_s28 + $0x28] sm:$0xf] }
  0xe2   : > { %10317 = vmatprep.mubr.msk.bf16.mxu1 %vm685_vm3, %v10725_v22  ;;  %10380 = vmatpush3.bf16.msra.mxu1 %v4146_v4  ;;  %v16134_v49 = vshll.u32 %v12071_v9, 16  ;;  %v12101_v37 = vsel %vm11818_vm12, %v2482_v12, %v2483_v40  ;;  %v16136_v34 = vshrl.u32 %v12071_v9, 16  ;;  %v3213_v29 = vshll.u32 %v12074_v32, 16  ;;  %16329 = vst [vmem:[#allocation6_spill] sm:$0xff] %v12136_v2  ;;  %v12148_v3 = vld [vmem:[%s10907_s28 + $0x2c] sm:$0x1] }
  0xe3   : > { %v3196_v47 = vrot.slane %v3194_v1, 4  ;;  %10691 = vmatprep.subr.msk.bf16.mxu1 %vm734_vm0, %v9490_v7  ;;  %v9179_v0 = vcombine.low %v12066_v15, %v12089_v13  ;;  %v12113_v27 = vsel %vm11818_vm12, %v9164_v17, %v2487_v8  ;;  %v3199_v6 = vrot.slane %v3197_v48, 5  ;;  %v9272_v17 = vld [vmem:[%s10907_s28 + $0x30] sm:$0xf]  ;;  %v10728_v8 = vld [vmem:[%s10907_s28 + $0x48] sm:$0xff]  }
  0xe4   : > { %v3205_v25 = vrot.slane %v16134_v49, 5  ;;  %v9180_v41 = vcombine.low %v12095_v10, %v12101_v37  ;;  %v12125_v50 = vsel %vm11818_vm12, %v2489_v30, %v2490_v18  ;;  %v3209_v36 = vrot.slane %v16136_v34, 4  ;;  %v12156_v1 = vld [vmem:[%s10907_s28 + $0x34] sm:$0xf]  ;;  %v9278_v37 = vld [vmem:[%s10907_s28 + $0x48] sm:$0xf] }
  0xe5   : > { %v3218_v46 = vshrl.u32 %v9266_v14, 16  ;;  %v3200_v60 = vor.u32 %v3199_v6, %v3196_v47  ;;  %v3221_v21 = vshll.u32 %v9266_v14, 16  ;;  %v3227_v42 = vshll.u32 %v12106_v26, 16  ;;  %v10729_v6 = vld [vmem:[%s10907_s28 + $0x54] sm:$0xff]  }
  0xe6   : > { %v3231_v61 = vshrl.u32 %v12106_v26, 16  ;;  %v3210_v54 = vor.u32 %v3209_v36, %v3205_v25  ;;  %v3215_v11 = vrot.slane %v3213_v29, 5  ;;  %v3237_v43 = vshll.u32 %v12118_v52, 16  ;;  %v12168_v29 = vld [vmem:[%s10907_s28 + $0x38] sm:$0x1] }
  0xe7   : > { %v3220_v20 = vrot.slane %v3218_v46, 4  ;;  %v3201_v51 = vrot.slane %v3200_v60, 4  ;;  %v3223_v55 = vrot.slane %v3221_v21, 5  ;;  %v3229_v38 = vrot.slane %v3227_v42, 5 }
  0xe8   : > { %10300 = vmatmul.mubr.msk.bf16.gmra.mxu0 %vm685_vm3, %v9177_v28  ;;  %v3233_v45 = vrot.slane %v3231_v61, 4  ;;  %v3211_v16 = vrot.slane %v3210_v54, 4  ;;  %v3239_v59 = vrot.slane %v3237_v43, 5  ;;  %v4389_v63 = vrot.slane %v3231_v61, 5 }
  0xe9   : > { %10318 = vmatmul.mubr.msk.bf16.gmra.mxu1 %vm685_vm3, %v10726_v24  ;;  %10303 = vmatprep.mubr.msk.bf16.mxu0 %vm685_vm3, %v9178_v57  ;;  %v4390_v53 = vrot.slane %v3227_v42, 6  ;;  %v3206_v22 = vsel %vm10963_vm4, %v3201_v51, %v3205_v25  ;;  %v3224_v44 = vor.u32 %v3223_v55, %v3220_v20  ;;  %v3242_v62 = vshrl.u32 %v9269_v56, 16  ;;  %v12195_v51 = vpop.f32.mrf.mxu0 }
  0xea   : > { %10321 = vmatprep.mubr.msk.bf16.mxu1 %vm685_vm3, %v10727_v5  ;;  %v3234_v58 = vor.u32 %v3233_v45, %v3229_v38  ;;  %v3216_v23 = vsel %vm10963_vm4, %v3211_v16, %v3215_v11  ;;  %v3245_v40 = vshll.u32 %v9269_v56, 16  ;;  %v16132_v57 = vshll.u32 %v12136_v2, 16  ;;  %v9275_v5 = vld [vmem:[%s10907_s28 + $0x3c] sm:$0xf] }
  0xeb   : > { %v12145_v28 = vor.u32 %v4390_v53, %v4389_v63  ;;  %v9181_v4 = vcombine.low %v12113_v27, %v12125_v50  ;;  %v3225_v7 = vrot.slane %v3224_v44, 4  ;;  %v3244_v18 = vrot.slane %v3242_v62, 4  ;;  %v12204_v63 = vld [vmem:[%s10907_s28 + $0x44] sm:$0x1] }
  0xec   : > { %v3235_v12 = vrot.slane %v3234_v58, 4  ;;  %v12160_v30 = vsel %vm734_vm0, %v11876_v33, 0  ;;  %v3247_v48 = vrot.slane %v3245_v40, 5  ;;  %v12164_v14 = vrot.slane %v16132_v57, 5  ;;  %v10730_v40 = vld [vmem:[%s10907_s28 + $0x60] sm:$0xff]  }
  0xed   : > { %16330 = vst [vmem:[#allocation4_spill] sm:$0xff] %v12145_v28  ;;  %v16133_v47 = vshrl.u32 %v12136_v2, 16  ;;  %v9312_v25 = vcombine.low %v3206_v22, %v3216_v23  ;;  %v3261_v24 = vshll.u32 %v12148_v3, 16  ;;  %v3266_v36 = vshrl.u32 %v9272_v17, 16  ;;  %v12207_v23 = vpop.f32.mrf.mxu1 }
  0xee   : > { %v3269_v46 = vshll.u32 %v9272_v17, 16  ;;  %v3230_v33 = vsel %vm10963_vm4, %v3225_v7, %v3229_v38  ;;  %v3240_v60 = vsel %vm10963_vm4, %v3235_v12, %v3239_v59  ;;  %v3248_v21 = vor.u32 %v3247_v48, %v3244_v18  ;;  %16332 = vst [vmem:[#allocation9_spill] sm:$0xff] %v12207_v23  ;;  %v12217_v12 = vld [vmem:[%s10907_s28 + $0x4c] sm:$0xf]  ;;  %v12219_v48 = vpop.f32.mrf.mxu0 }
  0xef   : > { %v3257_v42 = vrot.slane %v16133_v47, 4  ;;  %v3268_v61 = vrot.slane %v3266_v36, 4  ;;  %v3275_v11 = vshll.u32 %v12156_v1, 16  ;;  %v16131_v20 = vshrl.u32 %v12156_v1, 16  ;;  %16334 = vst [vmem:[#allocation11_spill] sm:$0xff] %v12217_v12 }
  0xf0   : > { %10304 = vmatmul.mubr.msk.bf16.gmra.mxu0 %vm685_vm3, %v9179_v0  ;;  %v3271_v54 = vrot.slane %v3269_v46, 5  ;;  %v3249_v43 = vrot.slane %v3248_v21, 4  ;;  %v3285_v13 = vshll.u32 %v12168_v29, 16  ;;  %v12193_v0 = vld [vmem:[%s10907_s28 + $0x40] sm:$0xf]  ;;  %v3290_v56 = vshrl.u32 %v9275_v5, 16 }
  0xf1   : > { %10322 = vmatmul.mubr.msk.bf16.gmra.mxu1 %vm685_vm3, %v10728_v8  ;;  %10307 = vmatprep.mubr.msk.bf16.mxu0 %vm685_vm3, %v9180_v41  ;;  %v3258_v15 = vor.u32 %v3257_v42, %v12164_v14  ;;  %16331 = vst [vmem:[#allocation5_spill] sm:$0xff] %v12193_v0  ;;  %v3263_v55 = vrot.slane %v3261_v24, 5  ;;  %v3277_v45 = vrot.slane %v3275_v11, 5  ;;  %v3281_v10 = vrot.slane %v16131_v20, 4 }
  0xf2   : > { %10325 = vmatprep.mubr.msk.bf16.mxu1 %vm685_vm3, %v10729_v6  ;;  %v3272_v38 = vor.u32 %v3271_v54, %v3268_v61  ;;  %v12201_v41 = vcombine.low %v3230_v33, %v3240_v60  ;;  %v3287_v59 = vrot.slane %v3285_v13, 5  ;;  %v3292_v53 = vrot.slane %v3290_v56, 4  ;;  %v10731_v6 = vld [vmem:[%s10907_s28 + $0x6c] sm:$0xff]  }
  0xf3   : > { %v3259_v16 = vrot.slane %v3258_v15, 4  ;;  %v3282_v44 = vor.u32 %v3281_v10, %v3277_v45  ;;  %v3293_v58 = vshll.u32 %v9275_v5, 16  ;;  %v16129_v62 = vshll.u32 %v12193_v0, 16  ;;  %v12226_v33 = vld [vmem:[%s10907_s28 + $0x50] sm:$0x1]  ;;  %v12243_v15 = vpop.f32.mrf.mxu1 }
  0xf4   : > { %v3273_v22 = vrot.slane %v3272_v38, 4  ;;  %v3254_v17 = vsel %vm10963_vm4, %v3249_v43, %v12164_v14  ;;  %v12213_v8 = vrot.slane %v3275_v11, 6  ;;  %v16130_v7 = vshrl.u32 %v12193_v0, 16  ;;  %16335 = vst [vmem:[#allocation12_spill] sm:$0xff] %v12243_v15 }
  0xf5   : > { %v3314_v18 = vshrl.u32 %v9278_v37, 16  ;;  %v3264_v24 = vsel %vm10963_vm4, %v3259_v16, %v3263_v55  ;;  %v3283_v36 = vrot.slane %v3282_v44, 4  ;;  %v3295_v46 = vrot.slane %v3293_v58, 5  ;;  %v9281_v55 = vld [vmem:[%s10907_s28 + $0x54] sm:$0xf] }
  0xf6   : > { %16333 = vst [vmem:[#allocation10_spill] sm:$0xff] %v12213_v8  ;;  %v3309_v5 = vshll.u32 %v12204_v63, 16  ;;  %v3278_v14 = vsel %vm10963_vm4, %v3273_v22, %v3277_v45  ;;  %v12232_v60 = vrot.slane %v16129_v62, 5  ;;  %v3305_v21 = vrot.slane %v16130_v7, 4  ;;  %v12255_v16 = vld [vmem:[%s10907_s28 + $0x58] sm:$0xf] }
  0xf7   : > { %v3316_v42 = vrot.slane %v3314_v18, 4  ;;  %v3288_v61 = vsel %vm10963_vm4, %v3283_v36, %v3287_v59  ;;  %v3296_v54 = vor.u32 %v3295_v46, %v3292_v53  ;;  %v3317_v11 = vshll.u32 %v9278_v37, 16  ;;  %16336 = vst [vmem:[#allocation13_spill] sm:$0xff] %v12255_v16  ;;  %v12333_v62 = vld [vmem:[%s10907_s28 + $0x74] sm:$0x1] }
  0xf8   : > { %10308 = vmatmul.mubr.msk.bf16.gmra.mxu0 %vm685_vm3, %v9181_v4  ;;  %v3323_v43 = vshll.u32 %v12217_v12, 16  ;;  %v9314_v13 = vcombine.low %v3254_v17, %v3264_v24  ;;  %v3306_v56 = vor.u32 %v3305_v21, %v12232_v60  ;;  %v16128_v27 = vshrl.u32 %v12217_v12, 16  ;;  %v12250_v4 = vpop.f32.mrf.mxu0  ;;  %v12265_v17 = vld [vmem:[%s10907_s28 + $0x5c] sm:$0x1]  ;;  %v10734_v7 = vld [vmem:[%s10907_s28 + $0x90] sm:$0xff]  }
  0xf9   : > { %10326 = vmatmul.mubr.msk.bf16.gmra.mxu1 %vm685_vm3, %v10730_v40  ;;  %10347 = vmatprep.mubr.msk.bf16.mxu0 %vm685_vm3, %v9312_v25  ;;  %v3333_v50 = vshll.u32 %v12226_v33, 16  ;;  %v3297_v38 = vrot.slane %v3296_v54, 4  ;;  %v3311_v45 = vrot.slane %v3309_v5, 5  ;;  %v3319_v10 = vrot.slane %v3317_v11, 5  ;;  %v12262_v40 = vpop.f32.mrf.mxu1  ;;  %v10732_v24 = vld [vmem:[%s10907_s28 + $0x78] sm:$0xff]  }
  0xfa   : > { %10329 = vmatprep.mubr.msk.bf16.mxu1 %vm685_vm3, %v10731_v6  ;;  %v3325_v37 = vrot.slane %v3323_v43, 5  ;;  %v12257_v25 = vcombine.low %v3278_v14, %v3288_v61  ;;  %v3307_v59 = vrot.slane %v3306_v56, 4  ;;  %v3329_v53 = vrot.slane %v16128_v27, 4  ;;  %16337 = vst [vmem:[#allocation14_spill] sm:$0xff] %v12262_v40  ;;  %v12271_v5 = vpop.f32.mrf.mxu0  ;;  %v10733_v61 = vld [vmem:[%s10907_s28 + $0x84] sm:$0xff]  }
  0xfb   : > { %v3320_v44 = vor.u32 %v3319_v10, %v3316_v42  ;;  %v3335_v58 = vrot.slane %v3333_v50, 5  ;;  %v3338_v18 = vshrl.u32 %v9281_v55, 16  ;;  %v3341_v6 = vshll.u32 %v9281_v55, 16  ;;  %v9284_v42 = vld [vmem:[%s10907_s28 + $0x60] sm:$0xf] }
  0xfc   : > { %v3302_v36 = vsel %vm10963_vm4, %v3297_v38, %v12232_v60  ;;  %v3330_v46 = vor.u32 %v3329_v53, %v3325_v37  ;;  %v16126_v14 = vshll.u32 %v12255_v16, 16  ;;  %v16127_v21 = vshrl.u32 %v12255_v16, 16  ;;  %v12280_v55 = vld [vmem:[%s10907_s28 + $0x64] sm:$0xf]  ;;  %v9287_v27 = vld [vmem:[%s10907_s28 + $0x6c] sm:$0xf] }
  0xfd   : > { %v3312_v54 = vsel %vm10963_vm4, %v3307_v59, %v3311_v45  ;;  %v3321_v11 = vrot.slane %v3320_v44, 4  ;;  %v3340_v56 = vrot.slane %v3338_v18, 4  ;;  %v3343_v50 = vrot.slane %v3341_v6, 5  ;;  %v12291_v59 = vpop.f32.mrf.mxu1  ;;  %v12294_v18 = vld [vmem:[%s10907_s28 + $0x68] sm:$0x1] }
  0xfe   : > { %v3331_v10 = vrot.slane %v3330_v46, 4  ;;  %v3349_v60 = vrot.slane %v16126_v14, 5  ;;  %v3353_v38 = vrot.slane %v16127_v21, 4  ;;  %v3357_v53 = vshll.u32 %v12265_v17, 16  ;;  %16338 = vst [vmem:[#allocation15_spill] sm:$0xff] %v12291_v59 }
  0xff   : > { %v3326_v45 = vsel %vm10963_vm4, %v3321_v11, %v3325_v37  ;;  %v3344_v44 = vor.u32 %v3343_v50, %v3340_v56  ;;  %v3362_v6 = vshrl.u32 %v9284_v42, 16  ;;  %v3365_v46 = vshll.u32 %v9284_v42, 16  ;;  %v12299_v14 = vld [vmem:[%s16094_s1 + $0x14] sm:$0x3]  ;;  %v12305_v56 = vpop.f32.mrf.mxu0 }
 0x100   : > { %10348 = vmatmul.mubr.msk.bf16.vlgmr.msra.gmra.mxu0 %vm685_vm3, %v12201_v41  ;;  %16339 = vst [vmem:[#allocation16_spill] sm:$0xff] %v12299_v14  ;;  %v3336_v41 = vsel %vm10963_vm4, %v3331_v10, %v3335_v58  ;;  %v3354_v37 = vor.u32 %v3353_v38, %v3349_v60  ;;  %v3359_v11 = vrot.slane %v3357_v53, 5  ;;  %v16137_v50 = vshll.u32 %v12280_v55, 16 }
 0x101   : > { %10330 = vmatmul.mubr.msk.bf16.gmra.mxu1 %vm685_vm3, %v10732_v24  ;;  %10414 = vmatpush3.bf16.msra.mxu0 %v12160_v30  ;;  %v12310_v42 = vrot.slane %v3323_v43, 6  ;;  %v3345_v21 = vrot.slane %v3344_v44, 4  ;;  %v3364_v24 = vrot.slane %v3362_v6, 4  ;;  %v3367_v30 = vrot.slane %v3365_v46, 5  ;;  %v12322_v43 = vld [vmem:[%s10907_s28 + $0x70] sm:$0xf]  ;;  %v12330_v46 = vpop.f32.mrf.mxu1 }
 0x102   : > { %10333 = vmatprep.mubr.msk.bf16.mxu1 %vm685_vm3, %v10733_v61  ;;  %10351 = vmatprep.mubr.msk.bf16.mxu0 %vm685_vm3, %v9314_v13  ;;  %v3355_v58 = vrot.slane %v3354_v37, 4  ;;  %v12315_v10 = vrot.slane %v16137_v50, 5  ;;  %v16135_v38 = vshrl.u32 %v12280_v55, 16  ;;  %v3381_v61 = vshll.u32 %v12294_v18, 16  ;;  %v12319_v13 = vpop.f32.mrf.mxu0  ;;  %16341 = vst [vmem:[#allocation18_spill] sm:$0xff] %v12322_v43  ;;  %16342 = vst [vmem:[#allocation19_spill] sm:$0xff] %v12330_v46 }
 0x103   : > { %16340 = vst [vmem:[#allocation17_spill] sm:$0xff] %v12310_v42  ;;  %10692 = vmatprep.subr.msk.bf16.mxu0 %vm734_vm0, %v12299_v14  ;;  %v9316_v53 = vcombine.low %v3302_v36, %v3312_v54  ;;  %v12326_v44 = vcombine.low %v3326_v45, %v3336_v41  ;;  %v3350_v6 = vsel %vm10963_vm4, %v3345_v21, %v3349_v60  ;;  %v3386_v54 = vshrl.u32 %v9287_v27, 16  ;;  %v12342_v45 = vld [vmem:[%s10907_s28 + $0xc] sm:$0xe]  ;;  %v10735_v41 = vld [vmem:[%s10907_s28 + $0x9c] sm:$0xff]   ;;  %v12345_v47 = vpop.f32.mrf.mxu1 }
 0x104   : > { %v3368_v37 = vor.u32 %v3367_v30, %v3364_v24  ;;  %v3360_v20 = vsel %vm10963_vm4, %v3355_v58, %v3359_v11  ;;  %v3377_v57 = vrot.slane %v16135_v38, 4  ;;  %v3383_v60 = vrot.slane %v3381_v61, 5  ;;  %16343 = vst [vmem:[#allocation20_spill] sm:$0xff] %v12345_v47  ;;  %v12347_v24 = vpop.f32.mrf.mxu0  ;;  %v9290_v36 = vld [vmem:[%s10907_s28 + $0x78] sm:$0xf]  ;;  %v10736_v46 = vld [vmem:[%s10907_s28 + $0xa8] sm:$0xff]  }
 0x105   : > { %v3389_v30 = vshll.u32 %v9287_v27, 16  ;;  %v16138_v49 = vshll.u32 %v12322_v43, 16  ;;  %v3388_v58 = vrot.slane %v3386_v54, 4  ;;  %v16139_v38 = vshrl.u32 %v12322_v43, 16  ;;  %v12356_v61 = vpop.f32.mrf.mxu1 }
 0x106   : > { %v3369_v21 = vrot.slane %v3368_v37, 4  ;;  %v3378_v11 = vor.u32 %v3377_v57, %v12315_v10  ;;  %v3405_v34 = vshll.u32 %v12333_v62, 16  ;;  %v9318_v37 = vcombine.low %v3350_v6, %v3360_v20  ;;  %16344 = vst [vmem:[#allocation21_spill] sm:$0xff] %v12356_v61  ;;  %v12370_v6 = vpop.f32.mrf.mxu0 }
 0x107   : > { %v3391_v22 = vrot.slane %v3389_v30, 5  ;;  %v3397_v27 = vrot.slane %v16138_v49, 5  ;;  %v9360_v50 = vrot.slane %v12342_v45, 9  ;;  %v3401_v20 = vrot.slane %v16139_v38, 4  ;;  %v12372_v30 = vpop.f32.mrf.mxu1  ;;  %v12376_v49 = vld [vmem:[%s10907_s28 + $0x7c] sm:$0xf] }
 0x108   : > { %10352 = vmatmul.mubr.msk.bf16.gmra.mxu0 %vm685_vm3, %v12257_v25  ;;  %v3374_v57 = vsel %vm10963_vm4, %v3369_v21, %v12315_v10  ;;  %v3379_v54 = vrot.slane %v3378_v11, 4  ;;  %v3937_v25 = vrot.slane %v12071_v9, 5  ;;  %16345 = vst [vmem:[#allocation22_spill] sm:$0xff] %v12372_v30  ;;  %16346 = vst [vmem:[#allocation23_spill] sm:$0xff] %v12376_v49  ;;  %v3410_v10 = vshrl.u32 %v9290_v36, 16 }
 0x109   : > { %10334 = vmatmul.mubr.msk.bf16.gmra.mxu1 %vm685_vm3, %v10734_v7  ;;  %10355 = vmatprep.mubr.msk.bf16.mxu0 %vm685_vm3, %v9316_v53  ;;  %v3392_v7 = vor.u32 %v3391_v22, %v3388_v58  ;;  %v3940_v53 = vrot.slane %v12074_v32, 5  ;;  %v3413_v21 = vshll.u32 %v9290_v36, 16  ;;  %v3402_v38 = vor.u32 %v3401_v20, %v3397_v27  ;;  %v10179_v22 = vpop.f32.mrf.mxu1  ;;  %v12385_v58 = vld [vmem:[%s10907_s28 + $0x80] sm:$0x1] }
 0x10a   : > { %10337 = vmatprep.mubr.msk.bf16.mxu1 %vm685_vm3, %v10735_v41  ;;  %v3384_v11 = vsel %vm10963_vm4, %v3379_v54, %v3383_v60  ;;  %v3407_v39 = vrot.slane %v3405_v34, 5  ;;  %v3939_v61 = vrot.slane %v3937_v25, 4  ;;  %v12382_v47 = vsel %vm11337_vm7, %v9360_v50, %v3937_v25  ;;  %16347 = vst [vmem:[#allocation24_spill] sm:$0xff] %v12385_v58  ;;  %v10737_v54 = vld [vmem:[%s10907_s28 + $0xb4] sm:$0xff]  }
 0x10b   : > { %v3393_v41 = vrot.slane %v3392_v7, 4  ;;  %v3412_v32 = vrot.slane %v3410_v10, 4  ;;  %v3415_v30 = vrot.slane %v3413_v21, 5  ;;  %v3403_v36 = vrot.slane %v3402_v38, 4  ;;  %v12403_v7 = vpop.f32.mrf.mxu0 }
 0x10c   : > { %v12390_v59 = vsel %vm11337_vm7, %v3939_v61, %v3940_v53  ;;  %v12393_v34 = vadd.f32 %v10179_v22, %v12195_v51  ;;  %v3419_v60 = vshll.u32 %v12376_v49, 16  ;;  %v16348_v50 = vshll.u32 %v12280_v55, 16  ;;  %v12407_v61 = vld [vmem:[%s10907_s28 + $0x18] sm:$0xe]  ;;  %v1064_v53 = vpop.f32.mrf.mxu1 }
 0x10d   : > { %v3398_v25 = vsel %vm10963_vm4, %v3393_v41, %v3397_v27  ;;  %v3416_v38 = vor.u32 %v3415_v30, %v3412_v32  ;;  %v16142_v10 = vshrl.u32 %v12376_v49, 16  ;;  %v9319_v51 = vcombine.low %v3374_v57, %v3384_v11  ;;  %v12419_v57 = vpop.f32.mrf.mxu0 }
 0x10e   : > { %v12399_v20 = vrot.slane %v16348_v50, 6  ;;  %v3408_v21 = vsel %vm10963_vm4, %v3403_v36, %v3407_v39  ;;  %v3421_v22 = vrot.slane %v3419_v60, 5  ;;  %v3429_v50 = vshll.u32 %v12385_v58, 16  ;;  %v10180_v39 = vpop.f32.mrf.mxu1 }
 0x10f   : > { %v3417_v30 = vrot.slane %v3416_v38, 4  ;;  %v3425_v41 = vrot.slane %v16142_v10, 4  ;;  %v9320_v11 = vcombine.low %v3398_v25, %v3408_v21  ;;  %v12423_v36 = vrot.slane %v3419_v60, 6  ;;  %v9293_v10 = vld [vmem:[%s10907_s28 + $0x84] sm:$0xf]  ;;  %v12431_v40 = vpop.f32.mrf.mxu0 }
 0x110   : > { %16349 = vst [vmem:[#allocation25_spill] sm:$0xff] %v12399_v20  ;;  %10356 = vmatmul.mubr.msk.bf16.gmra.mxu0 %vm685_vm3, %v12326_v44  ;;  %v9361_v44 = vrot.slane %v12407_v61, 9  ;;  %v3944_v38 = vrot.slane %v12106_v26, 5  ;;  %v3431_v27 = vrot.slane %v3429_v50, 5  ;;  %v3947_v20 = vrot.slane %v12118_v52, 5  ;;  %v10738_v52 = vld [vmem:[%s10907_s28 + $0xc0] sm:$0xff]  }
 0x111   : > { %10338 = vmatmul.mubr.msk.bf16.gmra.mxu1 %vm685_vm3, %v10736_v46  ;;  %10359 = vmatprep.mubr.msk.bf16.mxu0 %vm685_vm3, %v9318_v37  ;;  %16350 = vst [vmem:[#allocation26_spill] sm:$0xff] %v12423_v36  ;;  %v3426_v32 = vor.u32 %v3425_v41, %v3421_v22  ;;  %v4381_v46 = vshrl.u32 %v12407_v61, 16  ;;  %v1067_v37 = vpop.f32.mrf.mxu1  ;;  %v12434_v60 = vld [vmem:[%s10907_s28 + $0x88] sm:$0xf]  ;;  %v3422_v25 = vsel %vm10963_vm4, %v3417_v30, %v3421_v22  ;;  %v12445_v50 = vld [vmem:[%s10907_s28 + $0x8c] sm:$0x1]  ;;  %v12453_v22 = vpop.f32.mrf.mxu0 }
 0x112   : > { %10341 = vmatprep.mubr.msk.bf16.mxu1 %vm685_vm3, %v10737_v54  ;;  %16351 = vst [vmem:[#allocation27_spill] sm:$0xff] %v12434_v60  ;;  %v3946_v21 = vrot.slane %v3944_v38, 4  ;;  %v12439_v26 = vadd.f32 %v1064_v53, %v12219_v48  ;;  %v12442_v54 = vadd.f32 %v10180_v39, %v12250_v4  ;;  %16354 = vst [vmem:[#allocation30_spill] sm:$0xff] %v12445_v50  ;;  %v4384_v15 = vshll.u32 %v12407_v61, 16 }
 0x113   : > { %v3427_v41 = vrot.slane %v3426_v32, 4  ;;  %v12450_v36 = vsel %vm11337_vm7, %v9361_v44, %v3944_v38  ;;  %v12456_v30 = vadd.f32 %v1067_v37, %v12271_v5  ;;  %v10183_v48 = vpop.f32.mrf.mxu1  ;;  %v12458_v53 = vrot.slane %v4381_v46, 5  ;;  %v12462_v32 = vld [vmem:[%s10907_s28 + $0x24] sm:$0xe]  ;;  %v12472_v46 = vpop.f32.mrf.mxu0  ;;  %v9296_v37 = vld [vmem:[%s10907_s28 + $0x90] sm:$0xf] }
 0x114   : > { %16352 = vst [vmem:[#allocation28_spill] sm:$0xff] %v12439_v26  ;;  %16353 = vst [vmem:[#allocation29_spill] sm:$0xff] %v12442_v54  ;;  %v3434_v4 = vshrl.u32 %v9293_v10, 16  ;;  %v3437_v39 = vshll.u32 %v9293_v10, 16  ;;  %v12468_v61 = vsel %vm11337_vm7, %v3946_v21, %v3947_v20  ;;  %v16144_v5 = vshrl.u32 %v12434_v60, 16 }
 0x115   : > { %16355 = vst [vmem:[#allocation31_spill] sm:$0xff] %v12456_v30  ;;  %16356 = vst [vmem:[#allocation32_spill] sm:$0xff] %v12462_v32  ;;  %v3432_v44 = vsel %vm10963_vm4, %v3427_v41, %v3431_v27  ;;  %v3453_v38 = vshll.u32 %v12445_v50, 16  ;;  %v12475_v10 = vpop.f32.mrf.mxu1  ;;  %v16357_v27 = vshll.u32 %v12434_v60, 16  ;;  %v9362_v8 = vrot.slane %v12462_v32, 9  ;;  %v12487_v26 = vpop.f32.mrf.mxu0 }
 0x116   : > { %v9321_v23 = vcombine.low %v3422_v25, %v3432_v44  ;;  %v3436_v42 = vrot.slane %v3434_v4, 4  ;;  %v3439_v30 = vrot.slane %v3437_v39, 5  ;;  %v3449_v20 = vrot.slane %v16144_v5, 4  ;;  %v12485_v54 = vld [vmem:[%s10907_s28 + $0x94] sm:$0xf] }
 0x117   : > { %v3445_v41 = vrot.slane %v16357_v27, 5  ;;  %v3455_v21 = vrot.slane %v3453_v38, 5  ;;  %v3951_v50 = vrot.slane %v12136_v2, 5  ;;  %v10184_v25 = vpop.f32.mrf.mxu1  ;;  %v12493_v39 = vadd.f32 %v10183_v48, %v12305_v56  ;;  %v12496_v44 = vld [vmem:[%s10907_s28 + $0x98] sm:$0x1] }
 0x118   : > { %10360 = vmatmul.mubr.msk.bf16.gmra.mxu0 %vm685_vm3, %v9319_v51  ;;  %v3440_v4 = vor.u32 %v3439_v30, %v3436_v42  ;;  %v3954_v51 = vrot.slane %v12148_v3, 5  ;;  %v3458_v38 = vshrl.u32 %v9296_v37, 16  ;;  %v16359_v27 = vcombine.low %v12382_v47, %v12390_v59  ;;  %v12504_v30 = vpop.f32.mrf.mxu0 }
 0x119   : > { %10342 = vmatmul.mubr.msk.bf16.gmra.mxu1 %vm685_vm3, %v10738_v52  ;;  %10363 = vmatprep.mubr.msk.bf16.mxu0 %vm685_vm3, %v9320_v11  ;;  %16358 = vst [vmem:[#allocation33_spill] sm:$0xff] %v12493_v39  ;;  %v3450_v5 = vor.u32 %v3449_v20, %v3445_v41  ;;  %v3952_v52 = vsel %vm11337_vm7, %v9362_v8, %v3951_v50  ;;  %v3953_v11 = vrot.slane %v3951_v50, 4  ;;  %v3461_v42 = vshll.u32 %v9296_v37, 16  ;;  %v1083_v3 = vpop.f32.mrf.mxu1 }
 0x11a   : > { %10381 = vmatprep.mubr.msk.bf16.mxu1 %vm685_vm3, %v16359_v27  ;;  %v3441_v56 = vrot.slane %v3440_v4, 4  ;;  %v3460_v48 = vrot.slane %v3458_v38, 4  ;;  %v3467_v39 = vshll.u32 %v12485_v54, 16  ;;  %v16154_v2 = vshrl.u32 %v12485_v54, 16  ;;  %v12512_v27 = vld [vmem:[%s10907_s28 + $0x30] sm:$0xe]  ;;  %v12514_v8 = vpop.f32.mrf.mxu0 }
 0x11b   : > { %v3451_v32 = vrot.slane %v3450_v5, 4  ;;  %v3955_v47 = vsel %vm11337_vm7, %v3953_v11, %v3954_v51  ;;  %v3463_v59 = vrot.slane %v3461_v42, 5  ;;  %v3477_v20 = vshll.u32 %v12496_v44, 16  ;;  %v12516_v50 = vpop.f32.mrf.mxu1 }
 0x11c   : > { %v9378_v37 = vcombine.low %v12450_v36, %v12468_v61  ;;  %v3446_v4 = vsel %vm10963_vm4, %v3441_v56, %v3445_v41  ;;  %v3469_v38 = vrot.slane %v3467_v39, 5  ;;  %v3473_v5 = vrot.slane %v16154_v2, 4  ;;  %v9302_v56 = vld [vmem:[%s10907_s28 + $0xa8] sm:$0xf] }
 0x11d   : > { %v12524_v51 = vrot.slane %v4384_v15, 6  ;;  %v3456_v11 = vsel %vm10963_vm4, %v3451_v32, %v3455_v21  ;;  %v9379_v42 = vcombine.low %v3952_v52, %v3955_v47  ;;  %v3464_v60 = vor.u32 %v3463_v59, %v3460_v48  ;;  %v12528_v14 = vpop.f32.mrf.mxu1  ;;  %v9299_v32 = vld [vmem:[%s10907_s28 + $0x9c] sm:$0xf]  ;;  %v12536_v21 = vpop.f32.mrf.mxu0 }
 0x11e   : > { %v9322_v28 = vcombine.low %v3446_v4, %v3456_v11  ;;  %v3474_v58 = vor.u32 %v3473_v5, %v3469_v38  ;;  %v3479_v36 = vrot.slane %v3477_v20, 5  ;;  %v9363_v61 = vrot.slane %v12512_v27, 9  ;;  %v12561_v20 = vld [vmem:[%s10907_s28 + $0xa4] sm:$0x1] }
 0x11f   : > { %v3465_v41 = vrot.slane %v3464_v60, 4  ;;  %v3958_v15 = vrot.slane %v12156_v1, 5  ;;  %v3961_v2 = vrot.slane %v12168_v29, 5  ;;  %v12538_v52 = vpop.f32.mrf.mxu1  ;;  %v12542_v47 = vrot.slane %v3467_v39, 6  ;;  %v12552_v60 = vld [vmem:[%s10907_s28 + $0xa0] sm:$0xf] }
 0x120   : > { %10364 = vmatmul.mubr.msk.bf16.gmra.mxu0 %vm685_vm3, %v9321_v23  ;;  %v3475_v48 = vrot.slane %v3474_v58, 4  ;;  %v12546_v23 = vadd.f32 %v12475_v10, %v12319_v13  ;;  %v12549_v29 = vadd.f32 %v10184_v25, %v12347_v24  ;;  %16362 = vst [vmem:[#allocation36_spill] sm:$0xff] %v12552_v60  ;;  %16363 = vst [vmem:[#allocation37_spill] sm:$0xff] %v12561_v20  ;;  %v12563_v13 = vpop.f32.mrf.mxu0  ;;  %v3482_v4 = vshrl.u32 %v9299_v32, 16  ;;  %v12605_v39 = vld [vmem:[%s10907_s28 + $0xb0] sm:$0x1] }
 0x121   : > { %10382 = vmatmul.mubr.msk.bf16.vlgmr.msra.gmra.mxu1 %vm685_vm3, %v9378_v37  ;;  %10367 = vmatprep.mubr.msk.bf16.mxu0 %vm685_vm3, %v9322_v28  ;;  %16360 = vst [vmem:[#allocation34_spill] sm:$0xff] %v12542_v47  ;;  %v3470_v59 = vsel %vm10963_vm4, %v3465_v41, %v3469_v38  ;;  %v3959_v28 = vsel %vm11337_vm7, %v9363_v61, %v3958_v15  ;;  %v3960_v58 = vrot.slane %v3958_v15, 4  ;;  %v12565_v10 = vpop.f32.mrf.mxu1  ;;  %v12574_v38 = vld [vmem:[%s10907_s28 + $0x3c] sm:$0xe]  ;;  %v16155_v61 = vshll.u32 %v12552_v60, 16 }
 0x122   : > { %16361 = vst [vmem:[#allocation35_spill] sm:$0xff] %v12549_v29  ;;  %10385 = vmatprep.mubr.msk.bf16.mxu1 %vm685_vm3, %v9379_v42  ;;  %v3480_v24 = vsel %vm10963_vm4, %v3475_v48, %v3479_v36  ;;  %v12571_v37 = vadd.f32 %v1083_v3, %v12370_v6  ;;  %16365 = vst [vmem:[#allocation39_spill] sm:$0xff] %v12574_v38  ;;  %v3485_v42 = vshll.u32 %v9299_v32, 16  ;;  %v12579_v41 = vpop.f32.mrf.mxu0  ;;  %v3484_v48 = vrot.slane %v3482_v4, 4 }
 0x123   : > { %v9323_v5 = vcombine.low %v3470_v59, %v3480_v24  ;;  %v3962_v11 = vsel %vm11337_vm7, %v3960_v58, %v3961_v2  ;;  %v12581_v15 = vpop.f32.mrf.mxu1  ;;  %v16161_v6 = vshrl.u32 %v12552_v60, 16  ;;  %v3501_v3 = vshll.u32 %v12561_v20, 16  ;;  %v12591_v58 = vld [vmem:[%s10907_s28 + $0xac] sm:$0xf]  ;;  %16369 = vst [vmem:[#allocation43_spill] sm:$0xff] %v12605_v39 }
 0x124   : > { %16364 = vst [vmem:[#allocation38_spill] sm:$0xff] %v12571_v37  ;;  %v9380_v36 = vcombine.low %v3959_v28, %v3962_v11  ;;  %v3487_v25 = vrot.slane %v3485_v42, 5  ;;  %v3493_v59 = vrot.slane %v16155_v61, 5  ;;  %v9364_v2 = vrot.slane %v12574_v38, 9  ;;  %16366 = vst [vmem:[#allocation40_spill] sm:$0xff] %v12591_v58  ;;  %v12593_v24 = vpop.f32.mrf.mxu0 }
 0x125   : > { %v3965_v32 = vrot.slane %v12193_v0, 5  ;;  %16367 = vst [vmem:[#allocation41_spill] sm:$0xff] %v12593_v24  ;;  %v12595_v28 = vpop.f32.mrf.mxu1  ;;  %v3497_v4 = vrot.slane %v16161_v6, 4  ;;  %v3503_v11 = vrot.slane %v3501_v3, 5  ;;  %v3968_v42 = vrot.slane %v12204_v63, 5 }
 0x126   : > { %v12602_v61 = vadd.f32 %v12516_v50, %v12403_v7  ;;  %v3488_v47 = vor.u32 %v3487_v25, %v3484_v48  ;;  %v3506_v38 = vshrl.u32 %v9302_v56, 16  ;;  %v12610_v20 = vpop.f32.mrf.mxu0  ;;  %v3509_v6 = vshll.u32 %v9302_v56, 16 }
 0x127   : > { %v3966_v37 = vsel %vm11337_vm7, %v9364_v2, %v3965_v32  ;;  %v3967_v0 = vrot.slane %v3965_v32, 4  ;;  %v12612_v3 = vpop.f32.mrf.mxu1  ;;  %v3498_v63 = vor.u32 %v3497_v4, %v3493_v59  ;;  %v16165_v7 = vshll.u32 %v12591_v58, 16 }
 0x128   : > { %16368 = vst [vmem:[#allocation42_spill] sm:$0xff] %v12602_v61  ;;  %10368 = vmatmul.mubr.msk.bf16.gmra.mxu0 %vm685_vm3, %v9323_v5  ;;  %v12618_v5 = vld [vmem:[%s10907_s28 + $0x48] sm:$0xe]  ;;  %v3489_v25 = vrot.slane %v3488_v47, 4  ;;  %v3508_v2 = vrot.slane %v3506_v38, 4  ;;  %v3525_v32 = vshll.u32 %v12605_v39, 16  ;;  %v12623_v61 = vpop.f32.mrf.mxu0 }
 0x129   : > { %10386 = vmatmul.mubr.msk.bf16.gmra.mxu1 %vm685_vm3, %v9380_v36  ;;  %16370 = vst [vmem:[#allocation44_spill] sm:$0xff] %v12618_v5  ;;  %v3969_v48 = vsel %vm11337_vm7, %v3967_v0, %v3968_v42  ;;  %v12625_v60 = vpop.f32.mrf.mxu1  ;;  %v3499_v36 = vrot.slane %v3498_v63, 4  ;;  %v3511_v4 = vrot.slane %v3509_v6, 5  ;;  %v3517_v50 = vrot.slane %v16165_v7, 5  ;;  %v9305_v39 = vld [vmem:[%s10907_s28 + $0xb4] sm:$0xf] }
 0x12a   : > { %v9381_v56 = vcombine.low %v3966_v37, %v3969_v48  ;;  %v3494_v47 = vsel %vm10963_vm4, %v3489_v25, %v3493_v59  ;;  %v16371_v24 = vshrl.u32 %v12591_v58, 16  ;;  %v3527_v38 = vrot.slane %v3525_v32, 5  ;;  %v12635_v29 = vpop.f32.mrf.mxu0  ;;  %v12648_v25 = vld [vmem:[%s10907_s28 + $0xb8] sm:$0xf] }
 0x12b   : > { %v9365_v42 = vrot.slane %v12618_v5, 9  ;;  %v12637_v63 = vpop.f32.mrf.mxu1  ;;  %v3504_v37 = vsel %vm10963_vm4, %v3499_v36, %v3503_v11  ;;  %v3512_v6 = vor.u32 %v3511_v4, %v3508_v2  ;;  %v3972_v59 = vrot.slane %v12217_v12, 5  ;;  %16373 = vst [vmem:[#allocation46_spill] sm:$0xff] %v12648_v25  ;;  %v12659_v2 = vld [vmem:[%s10907_s28 + $0xbc] sm:$0x1] }
 0x12c   : > { %v3521_v0 = vrot.slane %v16371_v24, 4  ;;  %10389 = vmatprep.mubr.msk.bf16.mxu1 %vm685_vm3, %v9381_v56  ;;  %v12645_v24 = vadd.f32 %v12528_v14, %v12419_v57  ;;  %v9324_v48 = vcombine.low %v3494_v47, %v3504_v37  ;;  %v12652_v7 = vadd.f32 %v12538_v52, %v12431_v40  ;;  %16376 = vst [vmem:[#allocation49_spill] sm:$0xff] %v12659_v2  ;;  %v12661_v36 = vpop.f32.mrf.mxu0  ;;  %v9308_v12 = vld [vmem:[%s10907_s28 + $0xc0] sm:$0xf]  ;;  %v12690_v5 = vld [vmem:[%s10907_s28 + $0xc4] sm:$0xf] }
 0x12d   : > { %v12656_v11 = vadd.f32 %v12565_v10, %v12453_v22  ;;  %16377 = vst [vmem:[#allocation50_spill] sm:$0xff] %v12661_v36  ;;  %v12663_v56 = vpop.f32.mrf.mxu1  ;;  %v3513_v14 = vrot.slane %v3512_v6, 4  ;;  %v3973_v57 = vsel %vm11337_vm7, %v9365_v42, %v3972_v59  ;;  %v3974_v4 = vrot.slane %v3972_v59, 4  ;;  %16381 = vst [vmem:[#allocation52_spill] sm:$0xff] %v12690_v5 }
 0x12e   : > { %16372 = vst [vmem:[#allocation45_spill] sm:$0xff] %v12645_v24  ;;  %v3522_v32 = vor.u32 %v3521_v0, %v3517_v50  ;;  %16374 = vst [vmem:[#allocation47_spill] sm:$0xff] %v12652_v7  ;;  %v3530_v47 = vshrl.u32 %v9305_v39, 16  ;;  %10371 = vmatprep.mubr.msk.bf16.mxu0 %vm685_vm3, %v9324_v48  ;;  %v3533_v52 = vshll.u32 %v9305_v39, 16  ;;  %v12671_v0 = vld [vmem:[%s10907_s28 + $0x54] sm:$0xe]  ;;  %v12673_v37 = vpop.f32.mrf.mxu0 }
 0x12f   : > { %16375 = vst [vmem:[#allocation48_spill] sm:$0xff] %v12656_v11  ;;  %16378 = vst [vmem:[#allocation51_spill] sm:$0xff] %v12671_v0  ;;  %v12675_v6 = vpop.f32.mrf.mxu1  ;;  %v3518_v42 = vsel %vm10963_vm4, %v3513_v14, %v3517_v50  ;;  %v16379_v59 = vrot.slane %v12226_v33, 5  ;;  %v3549_v39 = vshll.u32 %v12659_v2, 16  ;;  %v16380_v7 = vshll.u32 %v12648_v25, 16 }
 0x130   : > { %v3523_v40 = vrot.slane %v3522_v32, 4  ;;  %v3532_v32 = vrot.slane %v3530_v47, 4  ;;  %v3535_v11 = vrot.slane %v3533_v52, 5  ;;  %v12692_v50 = vpop.f32.mrf.mxu0  ;;  %v12704_v52 = vadd.f32 %v12581_v15, %v12472_v46  ;;  %v12719_v15 = vld [vmem:[%s10907_s28 + $0x60] sm:$0xe] }
 0x131   : > { %v3976_v48 = vsel %vm11337_vm7, %v3974_v4, %v16379_v59  ;;  %v3541_v24 = vrot.slane %v16380_v7, 5  ;;  %v12694_v33 = vpop.f32.mrf.mxu1  ;;  %v16383_v4 = vshrl.u32 %v12648_v25, 16  ;;  %v3551_v59 = vrot.slane %v3549_v39, 5  ;;  %v12712_v39 = vld [vmem:[%s10907_s28 + $0xc8] sm:$0x1] }
 0x132   : > { %v3528_v10 = vsel %vm10963_vm4, %v3523_v40, %v3527_v38  ;;  %v9382_v22 = vcombine.low %v3973_v57, %v3976_v48  ;;  %16382 = vst [vmem:[#allocation53_spill] sm:$0xff] %v12694_v33  ;;  %v9366_v38 = vrot.slane %v12671_v0, 9  ;;  %v3536_v57 = vor.u32 %v3535_v11, %v3532_v32  ;;  %16384 = vst [vmem:[#allocation54_spill] sm:$0xff] %v12704_v52  ;;  %v12706_v48 = vpop.f32.mrf.mxu0 }
 0x133   : > { %v9325_v14 = vcombine.low %v3518_v42, %v3528_v10  ;;  %v3545_v47 = vrot.slane %v16383_v4, 4  ;;  %v3979_v7 = vrot.slane %v12255_v16, 5  ;;  %v3982_v40 = vrot.slane %v12265_v17, 5  ;;  %v12708_v10 = vpop.f32.mrf.mxu1  ;;  %16385 = vst [vmem:[#allocation55_spill] sm:$0xff] %v12712_v39 }
 0x134   : > { %10390 = vmatmul.mubr.msk.bf16.gmra.mxu1 %vm685_vm3, %v9382_v22  ;;  %v3554_v22 = vshrl.u32 %v9308_v12, 16  ;;  %v3557_v11 = vshll.u32 %v9308_v12, 16  ;;  %v16178_v32 = vshll.u32 %v12690_v5, 16  ;;  %v3537_v4 = vrot.slane %v3536_v57, 4  ;;  %v12721_v52 = vpop.f32.mrf.mxu0 }
 0x135   : > { %10372 = vmatmul.mubr.msk.bf16.gmra.mxu0 %vm685_vm3, %v9325_v14  ;;  %v3546_v42 = vor.u32 %v3545_v47, %v3541_v24  ;;  %v3980_v17 = vsel %vm11337_vm7, %v9366_v38, %v3979_v7  ;;  %v3981_v16 = vrot.slane %v3979_v7, 4  ;;  %v16179_v46 = vshrl.u32 %v12690_v5, 16  ;;  %16386 = vst [vmem:[#allocation56_spill] sm:$0xff] %v12721_v52  ;;  %v12723_v0 = vpop.f32.mrf.mxu1 }
 0x136   : > { %v3556_v47 = vrot.slane %v3554_v22, 4  ;;  %v3559_v2 = vrot.slane %v3557_v11, 5  ;;  %v3565_v12 = vrot.slane %v16178_v32, 5  ;;  %v3542_v57 = vsel %vm10963_vm4, %v3537_v4, %v3541_v24  ;;  %v12734_v58 = vpop.f32.mrf.mxu0 }
 0x137   : > { %v3547_v14 = vrot.slane %v3546_v42, 4  ;;  %v3983_v38 = vsel %vm11337_vm7, %v3981_v16, %v3982_v40  ;;  %v3569_v7 = vrot.slane %v16179_v46, 4  ;;  %v3573_v25 = vshll.u32 %v12712_v39, 16  ;;  %v12736_v42 = vpop.f32.mrf.mxu1  ;;  %v12743_v40 = vld [vmem:[%s10907_s28 + $0x6c] sm:$0xe] }
 0x138   : > { %v9383_v11 = vcombine.low %v3980_v17, %v3983_v38  ;;  %v3560_v32 = vor.u32 %v3559_v2, %v3556_v47  ;;  %v9367_v36 = vrot.slane %v12719_v15, 9  ;;  %v3986_v16 = vrot.slane %v12280_v55, 5  ;;  %16387 = vst [vmem:[#allocation57_spill] sm:$0xff] %v12743_v40  ;;  %v12745_v46 = vpop.f32.mrf.mxu0  ;;  %v9636_v17 = vld [vmem:[%s16094_s1 + $0x16] sm:$0x3] }
 0x139   : > { %v3552_v22 = vsel %vm10963_vm4, %v3547_v14, %v3551_v59  ;;  %v3570_v4 = vor.u32 %v3569_v7, %v3565_v12  ;;  %v3575_v52 = vrot.slane %v3573_v25, 5  ;;  %v12747_v39 = vpop.f32.mrf.mxu1  ;;  %v16388_v5 = vshrl.u32 %v12512_v27, 16 }
 0x13a   : > { %v9326_v24 = vcombine.low %v3542_v57, %v3552_v22  ;;  %10393 = vmatprep.mubr.msk.bf16.mxu1 %vm685_vm3, %v9383_v11  ;;  %v3561_v2 = vrot.slane %v3560_v32, 4  ;;  %v12756_v59 = vadd.f32 %v12595_v28, %v12487_v26  ;;  %v12760_v25 = vadd.f32 %v12612_v3, %v12504_v30  ;;  %v10806_v26 = vld [vmem:[%s16094_s1 + $0x12] sm:$0x3]  ;;  %v12772_v30 = vpop.f32.mrf.mxu0 }
 0x13b   : > { %v12751_v33 = vrot.slane %v16388_v5, 5  ;;  %v3571_v5 = vrot.slane %v3570_v4, 4  ;;  %v3987_v14 = vsel %vm11337_vm7, %v9367_v36, %v3986_v16  ;;  %v3988_v32 = vrot.slane %v3986_v16, 4  ;;  %v12774_v3 = vpop.f32.mrf.mxu1 }
 0x13c   : > { %10375 = vmatprep.mubr.msk.bf16.mxu0 %vm685_vm3, %v9326_v24  ;;  %v5278_v28 = vsel %vm734_vm0, %v10806_v26, 0  ;;  %v3566_v47 = vsel %vm10963_vm4, %v3561_v2, %v3565_v12  ;;  %v9368_v57 = vrot.slane %v12743_v40, 9  ;;  %v3993_v38 = vrot.slane %v12322_v43, 5  ;;  %v12788_v24 = vld [vmem:[%s10907_s28 + $0x14] sm:$0x3]  ;;  %v12792_v16 = vpop.f32.mrf.mxu0 }
 0x13d   : > { %10448 = vmatpush3.bf16.msra.mxu1 %v5278_v28  ;;  %v3996_v36 = vrot.slane %v12333_v62, 5  ;;  %v3576_v7 = vsel %vm10963_vm4, %v3571_v5, %v3575_v52  ;;  %v16389_v22 = vrot.slane %v12294_v18, 5  ;;  %v4358_v12 = vshrl.u32 %v12342_v45, 16  ;;  %v12794_v2 = vpop.f32.mrf.mxu1  ;;  %v12804_v43 = vld [vmem:[%s10907_s28 + $0x78] sm:$0xe] }
 0x13e   : > { %v4361_v4 = vshll.u32 %v12342_v45, 16  ;;  %10693 = vmatprep.subr.msk.bf16.mxu1 %vm734_vm0, %v9636_v17  ;;  %v9327_v62 = vcombine.low %v3566_v47, %v3576_v7  ;;  %v3994_v18 = vsel %vm11337_vm7, %v9368_v57, %v3993_v38  ;;  %v3995_v5 = vrot.slane %v3993_v38, 4  ;;  %v12806_v40 = vpop.f32.mrf.mxu0 }
 0x13f   : > { %v3990_v11 = vsel %vm11337_vm7, %v3988_v32, %v16389_v22  ;;  %v4360_v26 = vrot.slane %v4358_v12, 5  ;;  %v16390_v28 = vshrl.u32 %v12071_v9, 16  ;;  %v16391_v45 = vshll.u32 %v12071_v9, 16  ;;  %v12808_v17 = vpop.f32.mrf.mxu1 }
 0x140   : > { %v9384_v52 = vcombine.low %v3987_v14, %v3990_v11  ;;  %v4363_v32 = vrot.slane %v4361_v4, 6  ;;  %10376 = vmatmul.mubr.msk.bf16.gmra.mxu0 %vm685_vm3, %v9327_v62  ;;  %v3997_v14 = vsel %vm11337_vm7, %v3995_v5, %v3996_v36  ;;  %v4372_v47 = vshrl.u32 %v12788_v24, 16  ;;  %v12825_v4 = vld [vmem:[%s10907_s28 + $0x20] sm:$0x3]  ;;  %v12827_v62 = vpop.f32.mrf.mxu0 }
 0x141   : > { %v4366_v22 = vrot.slane %v16390_v28, 5  ;;  %v4367_v35 = vrot.slane %v16391_v45, 6  ;;  %v4375_v57 = vshll.u32 %v12788_v24, 16  ;;  %v12818_v9 = vadd.f32 %v12637_v63, %v12536_v21  ;;  %16392 = vst [vmem:[#allocation58_spill] sm:$0xff] %v12825_v4  ;;  %v12829_v36 = vpop.f32.mrf.mxu1 }
 0x142   : > { %10394 = vmatmul.mubr.msk.bf16.gmra.mxu1 %vm685_vm3, %v9384_v52  ;;  %v9385_v38 = vcombine.low %v3994_v18, %v3997_v14  ;;  %v4364_v7 = vor.u32 %v4363_v32, %v4360_v26  ;;  %v12822_v12 = vadd.f32 %v12673_v37, %v12393_v34  ;;  %v4374_v52 = vrot.slane %v4372_v47, 5  ;;  %v12840_v26 = vpop.f32.mrf.mxu0 }
 0x143   : > { %v4368_v11 = vor.u32 %v4367_v35, %v4366_v22  ;;  %v4377_v5 = vrot.slane %v4375_v57, 6  ;;  %v9369_v28 = vrot.slane %v12804_v43, 9  ;;  %v4000_v21 = vrot.slane %v12376_v49, 5  ;;  %v12842_v32 = vpop.f32.mrf.mxu1 }
 0x144   : > { %v16393_v63 = vshll.u32 %v12512_v27, 16  ;;  %10397 = vmatprep.mubr.msk.bf16.mxu1 %vm685_vm3, %v9385_v38  ;;  %v4365_v35 = vrot.slane %v4364_v7, 4  ;;  %v4387_v37 = vor.u32 %v12524_v51, %v12458_v53  ;;  %v4395_v27 = vshrl.u32 %v12825_v4, 16  ;;  %v12854_v38 = vpop.f32.mrf.mxu0 }
 0x145   : > { %v4370_v34 = vrot.slane %v4368_v11, 4  ;;  %v4378_v22 = vor.u32 %v4377_v5, %v4374_v52  ;;  %v4001_v45 = vsel %vm11337_vm7, %v9369_v28, %v4000_v21  ;;  %v4002_v14 = vrot.slane %v4000_v21, 4  ;;  %v12856_v7 = vpop.f32.mrf.mxu1  ;;  %v16395_v5 = vld [vmem:[#allocation24_spill] sm:$0xff] }
 0x146   : > { %v12835_v18 = vrot.slane %v16393_v63, 6  ;;  %v12849_v47 = vadd.f32 %v12625_v60, %v12514_v8  ;;  %v4369_v57 = vsel %vm11523_vm10, %v4365_v35, %v4368_v11  ;;  %v4388_v53 = vrot.slane %v4387_v37, 4  ;;  %v12869_v11 = vld [vmem:[%s10907_s28 + $0x84] sm:$0xe]  ;;  %v16399_v37 = vld [vmem:[#allocation4_spill] sm:$0xff]  ;;  %v12872_v49 = vpop.f32.mrf.mxu0 }
 0x147   : > { %v4398_v51 = vshll.u32 %v12825_v4, 16  ;;  %v4379_v52 = vsel %vm11523_vm10, %v4370_v34, %v4378_v22  ;;  %v16396_v28 = vrot.slane %v16395_v5, 5  ;;  %v4397_v8 = vrot.slane %v4395_v27, 5  ;;  %16398 = vst [vmem:[#allocation60_spill] sm:$0xff] %v12869_v11  ;;  %v12874_v34 = vpop.f32.mrf.mxu1  ;;  %v16400_v22 = vld [vmem:[#allocation16_spill] sm:$0xff] }
 0x148   : > { %16394 = vst [vmem:[#allocation59_spill] sm:$0xff] %v12849_v47  ;;  %v12866_v60 = vadd.f32 %v12663_v56, %v12563_v13  ;;  %v9426_v63 = vcombine.low %v4369_v57, %v4379_v52  ;;  %v4393_v47 = vrot.slane %v16399_v37, 4  ;;  %v16401_v27 = vld [vmem:[#allocation28_spill] sm:$0xff]  ;;  %v12884_v13 = vadd.f32 %v12675_v6, %v12579_v41  ;;  %v16404_v56 = vld [vmem:[#allocation29_spill] sm:$0xff]  ;;  %v16406_v52 = vld [vmem:[#allocation27_spill] sm:$0xff]  ;;  %v12900_v41 = vpop.f32.mrf.mxu0 }
 0x149   : > { %v4004_v21 = vsel %vm11337_vm7, %v4002_v14, %v16396_v28  ;;  %v4400_v4 = vrot.slane %v4398_v51, 6  ;;  %v5637_v14 = vsel %vm734_vm0, %v16400_v22, 0  ;;  %v12880_v5 = vadd.f32 %v12692_v50, %v16401_v27  ;;  %v12902_v6 = vpop.f32.mrf.mxu1  ;;  %v16410_v22 = vld [vmem:[#allocation32_spill] sm:$0xff] }
 0x14a   : > { %16397 = vst [vmem:[#allocation24_spill] sm:$0xff] %v12866_v60  ;;  %v9386_v35 = vcombine.low %v4001_v45, %v4004_v21  ;;  %16403 = vst [vmem:[#allocation16_spill] sm:$0xff] %v12884_v13  ;;  %v12888_v45 = vadd.f32 %v12706_v48, %v16404_v56  ;;  %10415 = vmatprep.mubr.msk.bf16.mxu0 %vm685_vm3, %v9426_v63  ;;  %v4392_v57 = vsel %vm11523_vm10, %v4388_v53, %v16399_v37  ;;  %v12898_v21 = vld [vmem:[%s10907_s28 + $0x2c] sm:$0x3]  ;;  %v16409_v48 = vld [vmem:[#allocation30_spill] sm:$0xff]  ;;  %vm8713_vm13 = vcmask 130048  }
 0x14b   : > { %16402 = vst [vmem:[#allocation4_spill] sm:$0xff] %v12880_v5  ;;  %v4401_v51 = vor.u32 %v4400_v4, %v4397_v8  ;;  %v9370_v50 = vrot.slane %v12869_v11, 9  ;;  %v4007_v28 = vrot.slane %v16406_v52, 5  ;;  %16407 = vst [vmem:[#allocation29_spill] sm:$0xff] %v12898_v21  ;;  %v4010_v63 = vrot.slane %v16409_v48, 5  ;;  %v16411_v56 = vld [vmem:[#allocation6_spill] sm:$0xff]  ;;  %v12917_v48 = vpop.f32.mrf.mxu1 }
 0x14c   : > { %16405 = vst [vmem:[#allocation28_spill] sm:$0xff] %v12888_v45  ;;  %10398 = vmatmul.mubr.msk.bf16.gmra.mxu1 %vm685_vm3, %v9386_v35  ;;  %16408 = vst [vmem:[#allocation61_spill] sm:$0xff] %v12902_v6  ;;  %v4404_v35 = vshrl.u32 %v16410_v22, 16  ;;  %v4407_v27 = vshll.u32 %v16410_v22, 16  ;;  %v16412_v53 = vshrl.u32 %v16411_v56, 16  ;;  %v16413_v11 = vshll.u32 %v16411_v56, 16  ;;  %v12915_v45 = vpop.f32.mrf.mxu0 }
 0x14d   : > { %v4402_v8 = vsel %vm11523_vm10, %v4393_v47, %v4401_v51  ;;  %v4008_v37 = vsel %vm11337_vm7, %v9370_v50, %v4007_v28  ;;  %v4009_v52 = vrot.slane %v4007_v28, 4  ;;  %v12921_v60 = vld [vmem:[%s10907_s28 + $0x90] sm:$0xe]  ;;  %v4421_v50 = vshll.u32 %v12898_v21, 16  ;;  %v12931_v28 = vld [vmem:[%s10907_s28 + $0x38] sm:$0x3] }
 0x14e   : > { %v4412_v4 = vrot.slane %v16412_v53, 5  ;;  %v4413_v6 = vrot.slane %v16413_v11, 6  ;;  %v9427_v13 = vcombine.low %v4392_v57, %v4402_v8  ;;  %v4406_v22 = vrot.slane %v4404_v35, 5  ;;  %v12933_v56 = vpop.f32.mrf.mxu0  ;;  %v12935_v57 = vpop.f32.mrf.mxu1  ;;  %v9701_v35 = vld [vmem:[%s16094_s1 + $0x18] sm:$0x3] }
 0x14f   : > { %v4409_v5 = vrot.slane %v4407_v27, 6  ;;  %v4418_v53 = vshrl.u32 %v12898_v21, 16  ;;  %v4011_v47 = vsel %vm11337_vm7, %v4009_v52, %v4010_v63  ;;  %v12928_v11 = vadd.f32 %v12708_v10, %v12610_v20  ;;  %16415 = vst [vmem:[#allocation32_spill] sm:$0xff] %v12933_v56  ;;  %v16416_v27 = vld [vmem:[#allocation33_spill] sm:$0xff] }
 0x150   : > { %v4414_v51 = vor.u32 %v4413_v6, %v4412_v4  ;;  %10416 = vmatmul.mubr.msk.bf16.vlgmr.msra.gmra.mxu0 %vm685_vm3, %v9427_v13  ;;  %v9387_v52 = vcombine.low %v4008_v37, %v4011_v47  ;;  %v12943_v4 = vadd.f32 %v12734_v58, %v16416_v27  ;;  %v4423_v10 = vrot.slane %v4421_v50, 6  ;;  %v12947_v21 = vpop.f32.mrf.mxu0  ;;  %v12949_v56 = vpop.f32.mrf.mxu1 }
 0x151   : > { %16414 = vst [vmem:[#allocation30_spill] sm:$0xff] %v12928_v11  ;;  %v4410_v6 = vor.u32 %v4409_v5, %v4406_v22  ;;  %v4420_v63 = vrot.slane %v4418_v53, 5  ;;  %10482 = vmatpush3.bf16.msra.mxu0 %v5637_v14  ;;  %v9371_v8 = vrot.slane %v12921_v60, 9  ;;  %v4014_v11 = vrot.slane %v12485_v54, 5 }
 0x152   : > { %v4416_v20 = vrot.slane %v4414_v51, 4  ;;  %10401 = vmatprep.mubr.msk.bf16.mxu1 %vm685_vm3, %v9387_v52  ;;  %v4433_v5 = vor.u32 %v12835_v18, %v12751_v33  ;;  %v16417_v58 = vshrl.u32 %v12156_v1, 16  ;;  %v4441_v14 = vshrl.u32 %v12931_v28, 16  ;;  %10694 = vmatprep.subr.msk.bf16.mxu0 %vm734_vm0, %v9701_v35  ;;  %v12961_v52 = vpop.f32.mrf.mxu0  ;;  %v16419_v18 = vld [vmem:[#allocation10_spill] sm:$0xff] }
 0x153   : > { %v4411_v13 = vrot.slane %v4410_v6, 4  ;;  %v4424_v22 = vor.u32 %v4423_v10, %v4420_v63  ;;  %v4015_v53 = vsel %vm11337_vm7, %v9371_v8, %v4014_v11  ;;  %v4016_v47 = vrot.slane %v4014_v11, 4  ;;  %v12963_v6 = vpop.f32.mrf.mxu1 }
 0x154   : > { %v4435_v37 = vrot.slane %v16417_v58, 5  ;;  %v4444_v50 = vshll.u32 %v12931_v28, 16  ;;  %16418 = vst [vmem:[#allocation6_spill] sm:$0xff] %v12963_v6  ;;  %v4434_v33 = vrot.slane %v4433_v5, 4  ;;  %v4443_v58 = vrot.slane %v4441_v14, 5 }
 0x155   : > { %v4415_v1 = vsel %vm11523_vm10, %v4411_v13, %v4414_v51  ;;  %v4425_v35 = vsel %vm11523_vm10, %v4416_v20, %v4424_v22  ;;  %v16420_v63 = vrot.slane %v12496_v44, 5  ;;  %v12976_v8 = vadd.f32 %v12723_v0, %v12623_v61  ;;  %v12979_v6 = vld [vmem:[%s10907_s28 + $0x9c] sm:$0xe]  ;;  %v12981_v51 = vpop.f32.mrf.mxu0  ;;  %v12983_v13 = vpop.f32.mrf.mxu1  ;;  %v16423_v0 = vld [vmem:[#allocation35_spill] sm:$0xff] }
 0x156   : > { %v4437_v27 = vor.u32 %v16419_v18, %v4435_v37  ;;  %v4446_v10 = vrot.slane %v4444_v50, 6  ;;  %16421 = vst [vmem:[#allocation33_spill] sm:$0xff] %v12979_v6  ;;  %v9428_v5 = vcombine.low %v4415_v1, %v4425_v35  ;;  %v12989_v22 = vadd.f32 %v12745_v46, %v12546_v23  ;;  %v16427_v1 = vld [vmem:[#allocation41_spill] sm:$0xff]  ;;  %v16433_v46 = vld [vmem:[#allocation36_spill] sm:$0xff] }
 0x157   : > { %v4018_v11 = vsel %vm11337_vm7, %v4016_v47, %v16420_v63  ;;  %v12993_v61 = vadd.f32 %v12736_v42, %v12635_v29  ;;  %v12997_v47 = vadd.f32 %v12772_v30, %v16423_v0  ;;  %v12999_v50 = vpop.f32.mrf.mxu0  ;;  %v9372_v29 = vrot.slane %v12979_v6, 9  ;;  %v13016_v30 = vld [vmem:[%s10907_s28 + $0x44] sm:$0x3]  ;;  %v16435_v63 = vld [vmem:[#allocation37_spill] sm:$0xff] }
 0x158   : > { %v9388_v37 = vcombine.low %v4015_v53, %v4018_v11  ;;  %v4438_v44 = vsel %vm11523_vm10, %v4434_v33, %v4437_v27  ;;  %v4439_v20 = vrot.slane %v4437_v27, 4  ;;  %v4447_v14 = vor.u32 %v4446_v10, %v4443_v58  ;;  %16425 = vst [vmem:[#allocation62_spill] sm:$0xff] %v12999_v50  ;;  %v13001_v53 = vpop.f32.mrf.mxu1  ;;  %v16428_v33 = vld [vmem:[#allocation53_spill] sm:$0xff]  ;;  %v16430_v27 = vld [vmem:[#allocation31_spill] sm:$0xff]  ;;  %v16431_v58 = vld [vmem:[#allocation56_spill] sm:$0xff]  ;;  %10419 = vmatprep.mubr.msk.bf16.mxu0 %vm685_vm3, %v9428_v5 }
 0x159   : > { %16422 = vst [vmem:[#allocation10_spill] sm:$0xff] %v12993_v61  ;;  %16424 = vst [vmem:[#allocation35_spill] sm:$0xff] %v12997_v47  ;;  %v13005_v18 = vadd.f32 %v16428_v33, %v16427_v1  ;;  %v13009_v23 = vadd.f32 %v16431_v58, %v16430_v27  ;;  %v4021_v42 = vrot.slane %v16433_v46, 5  ;;  %v4024_v11 = vrot.slane %v16435_v63, 5  ;;  %v16436_v10 = vld [vmem:[#allocation39_spill] sm:$0xff]  ;;  %v13023_v33 = vpop.f32.mrf.mxu0  ;;  %v16438_v46 = vld [vmem:[#allocation5_spill] sm:$0xff] }
 0x15a   : > { %16426 = vst [vmem:[#allocation63_spill] sm:$0xff] %v13001_v53  ;;  %10402 = vmatmul.mubr.msk.bf16.gmra.mxu1 %vm685_vm3, %v9388_v37  ;;  %16434 = vst [vmem:[#allocation31_spill] sm:$0xff] %v13016_v30  ;;  %v4448_v35 = vsel %vm11523_vm10, %v4439_v20, %v4447_v14  ;;  %v4450_v0 = vshrl.u32 %v16436_v10, 16  ;;  %v4453_v1 = vshll.u32 %v16436_v10, 16  ;;  %v13025_v5 = vpop.f32.mrf.mxu1  ;;  %v16439_v6 = vshrl.u32 %v16438_v46, 16 }
 0x15b   : > { %16429 = vst [vmem:[#allocation41_spill] sm:$0xff] %v13005_v18  ;;  %16432 = vst [vmem:[#allocation53_spill] sm:$0xff] %v13009_v23  ;;  %v9429_v37 = vcombine.low %v4438_v44, %v4448_v35  ;;  %v4022_v27 = vsel %vm11337_vm7, %v9372_v29, %v4021_v42  ;;  %v4023_v58 = vrot.slane %v4021_v42, 4  ;;  %v16440_v14 = vshll.u32 %v16438_v46, 16  ;;  %v13035_v10 = vld [vmem:[%s10907_s28 + $0xa8] sm:$0xe]  ;;  %v13037_v18 = vpop.f32.mrf.mxu0 }
 0x15c   : > { %16437 = vst [vmem:[#allocation56_spill] sm:$0xff] %v13025_v5  ;;  %v4458_v47 = vrot.slane %v16439_v6, 5  ;;  %v4452_v23 = vrot.slane %v4450_v0, 5  ;;  %v4455_v20 = vrot.slane %v4453_v1, 6  ;;  %v4464_v50 = vshrl.u32 %v13016_v30, 16  ;;  %16441 = vst [vmem:[#allocation37_spill] sm:$0xff] %v13035_v10  ;;  %v13039_v5 = vpop.f32.mrf.mxu1 }
 0x15d   : > { %v4459_v63 = vrot.slane %v16440_v14, 6  ;;  %16442 = vst [vmem:[#allocation39_spill] sm:$0xff] %v13039_v5  ;;  %10420 = vmatmul.mubr.msk.bf16.gmra.mxu0 %vm685_vm3, %v9429_v37  ;;  %v16443_v44 = vld [vmem:[#allocation50_spill] sm:$0xff]  ;;  %v4025_v6 = vsel %vm11337_vm7, %v4023_v58, %v4024_v11  ;;  %v4467_v46 = vshll.u32 %v13016_v30, 16  ;;  %v13053_v61 = vpop.f32.mrf.mxu0  ;;  %v16450_v11 = vld [vmem:[#allocation43_spill] sm:$0xff] }
 0x15e   : > { %v13044_v29 = vadd.f32 %v12747_v39, %v16443_v44  ;;  %v16445_v42 = vld [vmem:[#allocation42_spill] sm:$0xff]  ;;  %v9389_v0 = vcombine.low %v4022_v27, %v4025_v6  ;;  %v4456_v1 = vor.u32 %v4455_v20, %v4452_v23  ;;  %v4466_v5 = vrot.slane %v4464_v50, 5  ;;  %v13055_v37 = vpop.f32.mrf.mxu1  ;;  %v16449_v44 = vld [vmem:[#allocation40_spill] sm:$0xff] }
 0x15f   : > { %v13051_v35 = vadd.f32 %v12806_v40, %v16445_v42  ;;  %v4460_v14 = vor.u32 %v4459_v63, %v4458_v47  ;;  %16447 = vst [vmem:[#allocation42_spill] sm:$0xff] %v13053_v61  ;;  %16448 = vst [vmem:[#allocation64_spill] sm:$0xff] %v13055_v37  ;;  %v4469_v53 = vrot.slane %v4467_v46, 6  ;;  %v9373_v39 = vrot.slane %v13035_v10, 9  ;;  %v13061_v30 = vld [vmem:[%s10907_s28 + $0x50] sm:$0x3]  ;;  %v13066_v20 = vpop.f32.mrf.mxu0 }
 0x160   : > { %16444 = vst [vmem:[#allocation5_spill] sm:$0xff] %v13044_v29  ;;  %v4028_v29 = vrot.slane %v16449_v44, 5  ;;  %v4031_v58 = vrot.slane %v16450_v11, 5  ;;  %10405 = vmatprep.mubr.msk.bf16.mxu1 %vm685_vm3, %v9389_v0  ;;  %v4457_v40 = vrot.slane %v4456_v1, 4  ;;  %v16451_v23 = vld [vmem:[#allocation44_spill] sm:$0xff]  ;;  %16452 = vst [vmem:[#allocation43_spill] sm:$0xff] %v13066_v20  ;;  %v13068_v63 = vpop.f32.mrf.mxu1 }
 0x161   : > { %16446 = vst [vmem:[#allocation50_spill] sm:$0xff] %v13051_v35  ;;  %v4462_v27 = vrot.slane %v4460_v14, 4  ;;  %v4473_v47 = vshrl.u32 %v16451_v23, 16  ;;  %v4476_v50 = vshll.u32 %v16451_v23, 16  ;;  %16453 = vst [vmem:[#allocation44_spill] sm:$0xff] %v13068_v63  ;;  %v4470_v6 = vor.u32 %v4469_v53, %v4466_v5  ;;  %v16454_v11 = vld [vmem:[#allocation11_spill] sm:$0xff]  ;;  %v13077_v35 = vpop.f32.mrf.mxu0 }
 0x162   : > { %v4029_v46 = vsel %vm11337_vm7, %v9373_v39, %v4028_v29  ;;  %v4030_v42 = vrot.slane %v4028_v29, 4  ;;  %v16455_v44 = vshrl.u32 %v16454_v11, 16  ;;  %v4461_v0 = vsel %vm11523_vm10, %v4457_v40, %v4460_v14  ;;  %16456 = vst [vmem:[#allocation11_spill] sm:$0xff] %v13077_v35  ;;  %v13079_v20 = vpop.f32.mrf.mxu1  ;;  %v16458_v29 = vld [vmem:[#allocation17_spill] sm:$0xff]  ;;  %v16460_v35 = vld [vmem:[#allocation38_spill] sm:$0xff] }
 0x163   : > { %v4475_v1 = vrot.slane %v4473_v47, 5  ;;  %v4478_v37 = vrot.slane %v4476_v50, 6  ;;  %v4487_v23 = vshrl.u32 %v13061_v30, 16  ;;  %16457 = vst [vmem:[#allocation65_spill] sm:$0xff] %v13079_v20  ;;  %v4471_v53 = vsel %vm11523_vm10, %v4462_v27, %v4470_v6  ;;  %v13088_v50 = vld [vmem:[%s10907_s28 + $0xb4] sm:$0xe]  ;;  %v13090_v63 = vpop.f32.mrf.mxu0 }
 0x164   : > { %v4481_v10 = vrot.slane %v16455_v44, 5  ;;  %v4032_v5 = vsel %vm11337_vm7, %v4030_v42, %v4031_v58  ;;  %v4490_v44 = vshll.u32 %v13061_v30, 16  ;;  %v9430_v11 = vcombine.low %v4461_v0, %v4471_v53  ;;  %16459 = vst [vmem:[#allocation17_spill] sm:$0xff] %v13088_v50  ;;  %v16461_v61 = vld [vmem:[#allocation45_spill] sm:$0xff]  ;;  %v16463_v42 = vld [vmem:[#allocation12_spill] sm:$0xff] }
 0x165   : > { %v9390_v14 = vcombine.low %v4029_v46, %v4032_v5  ;;  %v4479_v40 = vor.u32 %v4478_v37, %v4475_v1  ;;  %v4489_v47 = vrot.slane %v4487_v23, 5  ;;  %v13094_v20 = vadd.f32 %v12792_v16, %v16460_v35  ;;  %v16462_v58 = vld [vmem:[#allocation9_spill] sm:$0xff]  ;;  %v16464_v35 = vld [vmem:[#allocation47_spill] sm:$0xff]  ;;  %v13114_v1 = vpop.f32.mrf.mxu0  ;;  %v16467_v23 = vld [vmem:[#allocation14_spill] sm:$0xff] }
 0x166   : > { %v4483_v39 = vor.u32 %v16458_v29, %v4481_v10  ;;  %v4492_v6 = vrot.slane %v4490_v44, 6  ;;  %v13098_v10 = vadd.f32 %v12827_v62, %v16461_v61  ;;  %10423 = vmatprep.mubr.msk.bf16.mxu0 %vm685_vm3, %v9430_v11  ;;  %v13103_v37 = vadd.f32 %v12774_v3, %v16462_v58  ;;  %v13116_v62 = vpop.f32.mrf.mxu1  ;;  %v16468_v5 = vld [vmem:[#allocation46_spill] sm:$0xff]  ;;  %v16469_v44 = vld [vmem:[#allocation49_spill] sm:$0xff] }
 0x167   : > { %10406 = vmatmul.mubr.msk.bf16.gmra.mxu1 %vm685_vm3, %v9390_v14  ;;  %v4480_v46 = vrot.slane %v4479_v40, 4  ;;  %v13108_v16 = vadd.f32 %v12794_v2, %v16463_v42  ;;  %v13112_v0 = vadd.f32 %v12840_v26, %v16464_v35  ;;  %16466 = vst [vmem:[#allocation45_spill] sm:$0xff] %v13116_v62  ;;  %v13120_v3 = vadd.f32 %v12808_v17, %v16467_v23  ;;  %v13128_v11 = vld [vmem:[%s10907_s28 + $0x5c] sm:$0x3]  ;;  %v16470_v14 = vld [vmem:[#allocation51_spill] sm:$0xff] }
 0x168   : > { %v4485_v27 = vrot.slane %v4483_v39, 4  ;;  %v4493_v61 = vor.u32 %v4492_v6, %v4489_v47  ;;  %v9374_v53 = vrot.slane %v13088_v50, 9  ;;  %v4035_v29 = vrot.slane %v16468_v5, 5  ;;  %v13132_v6 = vpop.f32.mrf.mxu0  ;;  %v16472_v35 = vld [vmem:[#allocation13_spill] sm:$0xff] }
 0x169   : > { %16465 = vst [vmem:[#allocation38_spill] sm:$0xff] %v13112_v0  ;;  %v4484_v2 = vsel %vm11523_vm10, %v4480_v46, %v4483_v39  ;;  %v4038_v26 = vrot.slane %v16469_v44, 5  ;;  %v4496_v40 = vshrl.u32 %v16470_v14, 16  ;;  %v4499_v47 = vshll.u32 %v16470_v14, 16  ;;  %16471 = vst [vmem:[#allocation9_spill] sm:$0xff] %v13132_v6  ;;  %v13147_v6 = vpop.f32.mrf.mxu1 }
 0x16a   : > { %v4494_v17 = vsel %vm11523_vm10, %v4485_v27, %v4493_v61  ;;  %v4036_v58 = vsel %vm11337_vm7, %v9374_v53, %v4035_v29  ;;  %v4037_v42 = vrot.slane %v4035_v29, 4  ;;  %v16473_v23 = vshrl.u32 %v16472_v35, 16  ;;  %v13143_v0 = vld [vmem:[%s10907_s28 + $0xc0] sm:$0xe]  ;;  %v13145_v14 = vpop.f32.mrf.mxu0  ;;  %16476 = vst [vmem:[#allocation47_spill] sm:$0xff] %v13147_v6  ;;  %v16477_v27 = vld [vmem:[#allocation15_spill] sm:$0xff] }
 0x16b   : > { %v9431_v46 = vcombine.low %v4484_v2, %v4494_v17  ;;  %v4498_v44 = vrot.slane %v4496_v40, 5  ;;  %v4501_v62 = vrot.slane %v4499_v47, 6  ;;  %v16474_v5 = vshll.u32 %v16472_v35, 16  ;;  %16475 = vst [vmem:[#allocation12_spill] sm:$0xff] %v13145_v14  ;;  %v16479_v17 = vld [vmem:[#allocation54_spill] sm:$0xff] }
 0x16c   : > { %v4504_v39 = vrot.slane %v16473_v23, 5  ;;  %v13151_v61 = vadd.f32 %v12829_v36, %v16477_v27  ;;  %v4039_v53 = vsel %vm11337_vm7, %v4037_v42, %v4038_v26  ;;  %v4510_v29 = vshrl.u32 %v13128_v11, 16  ;;  %v13162_v23 = vpop.f32.mrf.mxu0  ;;  %v13164_v36 = vpop.f32.mrf.mxu1  ;;  %v16482_v42 = vld [vmem:[#allocation52_spill] sm:$0xff]  ;;  %v13169_v14 = vld [vmem:[%s10907_s28 + $0x68] sm:$0x3] }
 0x16d   : > { %v4505_v50 = vrot.slane %v16474_v5, 6  ;;  %v4513_v2 = vshll.u32 %v13128_v11, 16  ;;  %10424 = vmatmul.mubr.msk.bf16.gmra.mxu0 %vm685_vm3, %v9431_v46  ;;  %v9391_v5 = vcombine.low %v4036_v58, %v4039_v53  ;;  %v4502_v40 = vor.u32 %v4501_v62, %v4498_v44  ;;  %16480 = vst [vmem:[#allocation49_spill] sm:$0xff] %v13162_v23  ;;  %16481 = vst [vmem:[#allocation51_spill] sm:$0xff] %v13164_v36  ;;  %v16483_v58 = vld [vmem:[#allocation55_spill] sm:$0xff] }
 0x16e   : > { %16478 = vst [vmem:[#allocation14_spill] sm:$0xff] %v13151_v61  ;;  %v13160_v35 = vadd.f32 %v12872_v49, %v16479_v17  ;;  %v4512_v27 = vrot.slane %v4510_v29, 5  ;;  %v9375_v26 = vrot.slane %v13143_v0, 9  ;;  %v4042_v6 = vrot.slane %v16482_v42, 5  ;;  %v13174_v46 = vpop.f32.mrf.mxu0  ;;  %v13176_v44 = vpop.f32.mrf.mxu1 }
 0x16f   : > { %v4506_v47 = vor.u32 %v4505_v50, %v4504_v39  ;;  %v4515_v61 = vrot.slane %v4513_v2, 6  ;;  %10409 = vmatprep.mubr.msk.bf16.mxu1 %vm685_vm3, %v9391_v5  ;;  %v4503_v62 = vrot.slane %v4502_v40, 4  ;;  %v4045_v39 = vrot.slane %v16483_v58, 5  ;;  %16484 = vst [vmem:[#allocation13_spill] sm:$0xff] %v13174_v46  ;;  %16485 = vst [vmem:[#allocation15_spill] sm:$0xff] %v13176_v44  ;;  %v16490_v46 = vld [vmem:[#allocation48_spill] sm:$0xff] }
 0x170   : > { %v4519_v49 = vshrl.u32 %v12719_v15, 16  ;;  %v4043_v29 = vsel %vm11337_vm7, %v9375_v26, %v4042_v6  ;;  %v4044_v2 = vrot.slane %v4042_v6, 4  ;;  %v4522_v17 = vshll.u32 %v12719_v15, 16  ;;  %v13191_v15 = vpop.f32.mrf.mxu0  ;;  %v13193_v26 = vpop.f32.mrf.mxu1 }
 0x171   : > { %v4508_v50 = vrot.slane %v4506_v47, 4  ;;  %v4516_v53 = vor.u32 %v4515_v61, %v4512_v27  ;;  %v4507_v5 = vsel %vm11523_vm10, %v4503_v62, %v4506_v47  ;;  %v16486_v36 = vshrl.u32 %v12280_v55, 16  ;;  %16487 = vst [vmem:[#allocation54_spill] sm:$0xff] %v13191_v15  ;;  %16488 = vst [vmem:[#allocation55_spill] sm:$0xff] %v13193_v26  ;;  %v16489_v55 = vld [vmem:[#allocation25_spill] sm:$0xff] }
 0x172   : > { %v4521_v40 = vrot.slane %v4519_v49, 5  ;;  %v4533_v23 = vshrl.u32 %v13169_v14, 16  ;;  %v4046_v61 = vsel %vm11337_vm7, %v4044_v2, %v4045_v39  ;;  %v4524_v27 = vrot.slane %v4522_v17, 6  ;;  %v13205_v2 = vld [vmem:[%s10907_s28 + $0x74] sm:$0x3]  ;;  %v16491_v17 = vld [vmem:[#allocation19_spill] sm:$0xff] }
 0x173   : > { %v4527_v58 = vrot.slane %v16486_v36, 5  ;;  %v4517_v44 = vsel %vm11523_vm10, %v4508_v50, %v4516_v53  ;;  %v4536_v6 = vshll.u32 %v13169_v14, 16  ;;  %v9392_v62 = vcombine.low %v4043_v29, %v4046_v61  ;;  %v13226_v61 = vpop.f32.mrf.mxu1  ;;  %v10807_v15 = vld [vmem:[%s10907_s28 + $0x10] sm:$0xf] }
 0x174   : > { %v9432_v47 = vcombine.low %v4507_v5, %v4517_v44  ;;  %v4535_v49 = vrot.slane %v4533_v23, 5  ;;  %v13198_v42 = vadd.f32 %v12854_v38, %v16490_v46  ;;  %v4525_v50 = vor.u32 %v4524_v27, %v4521_v40  ;;  %v16492_v38 = vld [vmem:[#allocation20_spill] sm:$0xff]  ;;  %v16493_v5 = vld [vmem:[#allocation21_spill] sm:$0xff]  ;;  %v13228_v27 = vpop.f32.mrf.mxu0 }
 0x175   : > { %v4529_v36 = vor.u32 %v16489_v55, %v4527_v58  ;;  %v4538_v53 = vrot.slane %v4536_v6, 6  ;;  %v13202_v39 = vadd.f32 %v12900_v41, %v12756_v59  ;;  %v13210_v44 = vadd.f32 %v12842_v32, %v16491_v17  ;;  %10410 = vmatmul.mubr.msk.bf16.gmra.mxu1 %vm685_vm3, %v9392_v62  ;;  %v16494_v58 = vld [vmem:[#allocation57_spill] sm:$0xff]  ;;  %16495 = vst [vmem:[#allocation25_spill] sm:$0xff] %v13228_v27 }
 0x176   : > { %10427 = vmatprep.mubr.msk.bf16.mxu0 %vm685_vm3, %v9432_v47  ;;  %v13215_v46 = vadd.f32 %v12856_v7, %v16492_v38  ;;  %v13219_v59 = vadd.f32 %v12915_v45, %v12760_v25  ;;  %v4526_v41 = vrot.slane %v4525_v50, 4  ;;  %v13223_v40 = vadd.f32 %v12874_v34, %v16493_v5  ;;  %v16496_v7 = vld [vmem:[#allocation18_spill] sm:$0xff]  ;;  %v13242_v38 = vpop.f32.mrf.mxu1  ;;  %v13244_v5 = vpop.f32.mrf.mxu0 }
 0x177   : > { %v4531_v23 = vrot.slane %v4529_v36, 4  ;;  %v4539_v29 = vor.u32 %v4538_v53, %v4535_v49  ;;  %v4542_v32 = vshrl.u32 %v16494_v58, 16  ;;  %v4545_v6 = vshll.u32 %v16494_v58, 16  ;;  %v9458_v49 = vld [vmem:[%s10907_s28 + $0xc] sm:$0xc]  ;;  %16499 = vst [vmem:[#allocation48_spill] sm:$0xff] %v13242_v38 }
 0x178   : > { %v16497_v47 = vshrl.u32 %v16496_v7, 16  ;;  %v16498_v25 = vshll.u32 %v16496_v7, 16  ;;  %v4556_v55 = vshrl.u32 %v13205_v2, 16  ;;  %v4530_v34 = vsel %vm11523_vm10, %v4526_v41, %v4529_v36  ;;  %16500 = vst [vmem:[#allocation19_spill] sm:$0xff] %v13244_v5  ;;  %v13249_v41 = vld [vmem:[%s10907_s28 + $0x80] sm:$0x3] }
 0x179   : > { %v4540_v50 = vsel %vm11523_vm10, %v4531_v23, %v4539_v29  ;;  %v4544_v53 = vrot.slane %v4542_v32, 5  ;;  %v4559_v17 = vshll.u32 %v13205_v2, 16  ;;  %v4547_v7 = vrot.slane %v4545_v6, 6  ;;  %16501 = vst [vmem:[#allocation20_spill] sm:$0xff] %v13249_v41 }
 0x17a   : > { %v4550_v62 = vrot.slane %v16497_v47, 5  ;;  %v4551_v45 = vrot.slane %v16498_v25, 6  ;;  %v9433_v58 = vcombine.low %v4530_v34, %v4540_v50  ;;  %v4558_v25 = vrot.slane %v4556_v55, 5 }
 0x17b   : > { %v4561_v31 = vrot.slane %v4559_v17, 6  ;;  %v9474_v26 = vrot.slane %v9458_v49, 10  ;;  %v5069_v27 = vrot.slane %v10807_v15, 6  ;;  %v5072_v36 = vrot.slane %v12788_v24, 6  ;;  %v13262_v15 = vpop.f32.mrf.mxu0 }
 0x17c   : > { %v4552_v47 = vor.u32 %v4551_v45, %v4550_v62  ;;  %10428 = vmatmul.mubr.msk.bf16.gmra.mxu0 %vm685_vm3, %v9433_v58  ;;  %v4548_v23 = vor.u32 %v4547_v7, %v4544_v53  ;;  %v13254_v32 = vadd.f32 %v12947_v21, %v12818_v9  ;;  %v13258_v6 = vadd.f32 %v12917_v48, %v12822_v12  ;;  %v13260_v62 = vpop.f32.mrf.mxu1  ;;  %v16505_v9 = vld [vmem:[#allocation23_spill] sm:$0xff]  ;;  %v9459_v48 = vld [vmem:[%s10907_s28 + $0x18] sm:$0xc] }
 0x17d   : > { %16502 = vst [vmem:[#allocation21_spill] sm:$0xff] %v13260_v62  ;;  %16503 = vst [vmem:[#allocation57_spill] sm:$0xff] %v13262_v15  ;;  %v4562_v24 = vor.u32 %v4561_v31, %v4558_v25  ;;  %v5070_v55 = vsel %vm11818_vm12, %v9474_v26, %v5069_v27  ;;  %v5071_v49 = vrot.slane %v5069_v27, 4  ;;  %v4565_v34 = vshrl.u32 %v12804_v43, 16  ;;  %v13282_v15 = vpop.f32.mrf.mxu0 }
 0x17e   : > { %v4554_v29 = vrot.slane %v4552_v47, 4  ;;  %v4549_v50 = vrot.slane %v4548_v23, 4  ;;  %v4568_v53 = vshll.u32 %v12804_v43, 16  ;;  %v16506_v21 = vshrl.u32 %v16505_v9, 16  ;;  %v16507_v23 = vld [vmem:[#allocation26_spill] sm:$0xff]  ;;  %16509 = vst [vmem:[#allocation23_spill] sm:$0xff] %v13282_v15 }
 0x17f   : > { %v4579_v12 = vshrl.u32 %v13249_v41, 16  ;;  %v5073_v31 = vsel %vm11818_vm12, %v5071_v49, %v5072_v36  ;;  %v4567_v26 = vrot.slane %v4565_v34, 5  ;;  %v4582_v27 = vshll.u32 %v13249_v41, 16  ;;  %v10808_v34 = vld [vmem:[%s10907_s28 + $0x1c] sm:$0xf]  ;;  %v16510_v41 = vld [vmem:[#allocation58_spill] sm:$0xff] }
 0x180   : > { %v4573_v17 = vrot.slane %v16506_v21, 5  ;;  %v4563_v58 = vsel %vm11523_vm10, %v4554_v29, %v4562_v24  ;;  %v4553_v7 = vsel %vm11523_vm10, %v4549_v50, %v4552_v47  ;;  %v9491_v43 = vcombine.low %v5070_v55, %v5073_v31  ;;  %v13280_v21 = vpop.f32.mrf.mxu1  ;;  %v16511_v50 = vld [vmem:[#allocation24_spill] sm:$0xff] }
 0x181   : > { %v4570_v25 = vrot.slane %v4568_v53, 6  ;;  %16508 = vst [vmem:[#allocation18_spill] sm:$0xff] %v13280_v21  ;;  %v9434_v62 = vcombine.low %v4553_v7, %v4563_v58  ;;  %v4581_v29 = vrot.slane %v4579_v12, 5  ;;  %v4584_v24 = vrot.slane %v4582_v27, 6 }
 0x182   : > { %v4575_v9 = vor.u32 %v16507_v23, %v4573_v17  ;;  %v9475_v5 = vrot.slane %v9459_v48, 10  ;;  %10449 = vmatprep.mubr.msk.bf16.mxu1 %vm685_vm3, %v9491_v43  ;;  %v5076_v38 = vrot.slane %v10808_v34, 6  ;;  %v5079_v47 = vrot.slane %v16510_v41, 6  ;;  %v16512_v17 = vld [vmem:[#allocation4_spill] sm:$0xff]  ;;  %v13306_v7 = vpop.f32.mrf.mxu1  ;;  %v16516_v43 = vld [vmem:[#allocation22_spill] sm:$0xff]  ;;  %v16518_v23 = vld [vmem:[#allocation59_spill] sm:$0xff] }
 0x183   : > { %v4571_v36 = vor.u32 %v4570_v25, %v4567_v26  ;;  %10431 = vmatprep.mubr.msk.bf16.mxu0 %vm685_vm3, %v9434_v62  ;;  %v4585_v55 = vor.u32 %v4584_v24, %v4581_v29  ;;  %v13290_v53 = vadd.f32 %v12961_v52, %v16511_v50  ;;  %v13294_v12 = vadd.f32 %v12935_v57, %v16512_v17  ;;  %v16513_v48 = vld [vmem:[#allocation16_spill] sm:$0xff]  ;;  %v13308_v52 = vpop.f32.mrf.mxu0  ;;  %v16517_v57 = vld [vmem:[#allocation61_spill] sm:$0xff] }
 0x184   : > { %v4577_v49 = vrot.slane %v4575_v9, 4  ;;  %v13298_v58 = vadd.f32 %v12981_v51, %v16513_v48  ;;  %v5077_v41 = vsel %vm11818_vm12, %v9475_v5, %v5076_v38  ;;  %v5078_v26 = vrot.slane %v5076_v38, 4  ;;  %v16514_v62 = vld [vmem:[#allocation28_spill] sm:$0xff]  ;;  %16515 = vst [vmem:[#allocation26_spill] sm:$0xff] %v13308_v52  ;;  %v13321_v38 = vld [vmem:[%s10907_s28 + $0x8c] sm:$0x3] }
 0x185   : > { %v4572_v31 = vrot.slane %v4571_v36, 4  ;;  %v13304_v27 = vadd.f32 %v12949_v56, %v16514_v62  ;;  %v13312_v25 = vadd.f32 %v16517_v57, %v16516_v43  ;;  %v16519_v51 = vld [vmem:[#allocation32_spill] sm:$0xff]  ;;  %v9460_v36 = vld [vmem:[%s10907_s28 + $0x24] sm:$0xc]  ;;  %v16521_v48 = vld [vmem:[#allocation27_spill] sm:$0xff]  ;;  %v13332_v57 = vpop.f32.mrf.mxu1  ;;  %v5093_v52 = vrot.slane %v12931_v28, 6 }
 0x186   : > { %v13316_v29 = vadd.f32 %v16519_v51, %v16518_v23  ;;  %v4586_v5 = vsel %vm11523_vm10, %v4577_v49, %v4585_v55  ;;  %v16520_v24 = vld [vmem:[#allocation60_spill] sm:$0xff]  ;;  %v5080_v50 = vsel %vm11818_vm12, %v5078_v26, %v5079_v47  ;;  %v16522_v62 = vshrl.u32 %v16521_v48, 16  ;;  %16523 = vst [vmem:[#allocation58_spill] sm:$0xff] %v13332_v57  ;;  %v13334_v49 = vpop.f32.mrf.mxu0 }
 0x187   : > { %v4588_v56 = vshrl.u32 %v16520_v24, 16  ;;  %v4576_v34 = vsel %vm11523_vm10, %v4572_v31, %v4575_v9  ;;  %v4591_v17 = vshll.u32 %v16520_v24, 16  ;;  %16524 = vst [vmem:[#allocation24_spill] sm:$0xff] %v13334_v49  ;;  %v9492_v23 = vcombine.low %v5077_v41, %v5080_v50  ;;  %v13340_v24 = vpop.f32.mrf.mxu1  ;;  %v16529_v50 = vld [vmem:[#allocation30_spill] sm:$0xff]  ;;  %v10810_v57 = vld [vmem:[%s10907_s28 + $0x34] sm:$0xf] }
 0x188   : > { %v4596_v43 = vrot.slane %v16522_v62, 5  ;;  %v9435_v55 = vcombine.low %v4576_v34, %v4586_v5  ;;  %v16525_v15 = vshll.u32 %v16521_v48, 16  ;;  %v4602_v31 = vshrl.u32 %v13321_v38, 16  ;;  %16526 = vst [vmem:[#allocation4_spill] sm:$0xff] %v13340_v24  ;;  %v13342_v62 = vpop.f32.mrf.mxu0  ;;  %v10809_v5 = vld [vmem:[%s10907_s28 + $0x28] sm:$0xf] }
 0x189   : > { %v4590_v51 = vrot.slane %v4588_v56, 5  ;;  %v4593_v9 = vrot.slane %v4591_v17, 6  ;;  %v4605_v47 = vshll.u32 %v13321_v38, 16  ;;  %v9476_v26 = vrot.slane %v9460_v36, 10  ;;  %16527 = vst [vmem:[#allocation16_spill] sm:$0xff] %v13342_v62  ;;  %10450 = vmatmul.mubr.msk.bf16.vlgmr.msra.gmra.mxu1 %vm685_vm3, %v9492_v23  ;;  %v16528_v34 = vld [vmem:[#allocation29_spill] sm:$0xff] }
 0x18a   : > { %v4597_v21 = vrot.slane %v16525_v15, 6  ;;  %10432 = vmatmul.mubr.msk.bf16.gmra.mxu0 %vm685_vm3, %v9435_v55  ;;  %v5083_v56 = vrot.slane %v10809_v5, 6  ;;  %v5086_v15 = vrot.slane %v16528_v34, 6  ;;  %v13350_v17 = vadd.f32 %v13023_v33, %v16529_v50  ;;  %v13357_v55 = vld [vmem:[%s10907_s28 + $0x98] sm:$0x3] }
 0x18b   : > { %v4594_v48 = vor.u32 %v4593_v9, %v4590_v51  ;;  %v4604_v49 = vrot.slane %v4602_v31, 5  ;;  %v4607_v36 = vrot.slane %v4605_v47, 6  ;;  %v13354_v24 = vadd.f32 %v12983_v13, %v12943_v4  ;;  %16531 = vst [vmem:[#allocation22_spill] sm:$0xff] %v13357_v55  ;;  %v13365_v47 = vpop.f32.mrf.mxu1  ;;  %v13367_v4 = vpop.f32.mrf.mxu0 }
 0x18c   : > { %v4598_v41 = vor.u32 %v4597_v21, %v4596_v43  ;;  %v5084_v21 = vsel %vm11818_vm12, %v9476_v26, %v5083_v56  ;;  %v5085_v43 = vrot.slane %v5083_v56, 4  ;;  %v4611_v5 = vshrl.u32 %v12921_v60, 16  ;;  %16533 = vst [vmem:[#allocation61_spill] sm:$0xff] %v13365_v47  ;;  %16534 = vst [vmem:[#allocation59_spill] sm:$0xff] %v13367_v4  ;;  %v16535_v4 = vld [vmem:[#allocation34_spill] sm:$0xff] }
 0x18d   : > { %16530 = vst [vmem:[#allocation28_spill] sm:$0xff] %v13354_v24  ;;  %v4595_v34 = vrot.slane %v4594_v48, 4  ;;  %v4608_v33 = vor.u32 %v4607_v36, %v4604_v49  ;;  %v4614_v51 = vshll.u32 %v12921_v60, 16  ;;  %v16532_v9 = vshrl.u32 %v12485_v54, 16  ;;  %v9461_v48 = vld [vmem:[%s10907_s28 + $0x30] sm:$0xc]  ;;  %v13382_v24 = vpop.f32.mrf.mxu1 }
 0x18e   : > { %v4600_v23 = vrot.slane %v4598_v41, 4  ;;  %v5087_v13 = vsel %vm11818_vm12, %v5085_v43, %v5086_v15  ;;  %v4613_v50 = vrot.slane %v4611_v5, 5  ;;  %v4625_v26 = vshrl.u32 %v13357_v55, 16  ;;  %16536 = vst [vmem:[#allocation32_spill] sm:$0xff] %v13382_v24 }
 0x18f   : > { %v4619_v31 = vrot.slane %v16532_v9, 5  ;;  %v4628_v56 = vshll.u32 %v13357_v55, 16  ;;  %v4599_v60 = vsel %vm11523_vm10, %v4595_v34, %v4598_v41  ;;  %v9493_v49 = vcombine.low %v5084_v21, %v5087_v13  ;;  %v13384_v41 = vpop.f32.mrf.mxu0  ;;  %v16540_v13 = vld [vmem:[#allocation42_spill] sm:$0xff] }
 0x190   : > { %v4609_v54 = vsel %vm11523_vm10, %v4600_v23, %v4608_v33  ;;  %v4616_v36 = vrot.slane %v4614_v51, 6  ;;  %v4627_v62 = vrot.slane %v4625_v26, 5  ;;  %v9477_v5 = vrot.slane %v9461_v48, 10  ;;  %16537 = vst [vmem:[#allocation60_spill] sm:$0xff] %v13384_v41  ;;  %v16538_v33 = vld [vmem:[#allocation63_spill] sm:$0xff]  ;;  %v13401_v26 = vpop.f32.mrf.mxu1  ;;  %v16546_v48 = vld [vmem:[#allocation6_spill] sm:$0xff] }
 0x191   : > { %v9436_v9 = vcombine.low %v4599_v60, %v4609_v54  ;;  %v4621_v47 = vor.u32 %v16535_v4, %v4619_v31  ;;  %v4630_v15 = vrot.slane %v4628_v56, 6  ;;  %10453 = vmatprep.mubr.msk.bf16.mxu1 %vm685_vm3, %v9493_v49  ;;  %v5090_v55 = vrot.slane %v10810_v57, 6  ;;  %v16539_v4 = vld [vmem:[#allocation10_spill] sm:$0xff]  ;;  %16541 = vst [vmem:[#allocation27_spill] sm:$0xff] %v13401_v26  ;;  %v16548_v49 = vld [vmem:[#allocation56_spill] sm:$0xff] }
 0x192   : > { %v4617_v43 = vor.u32 %v4616_v36, %v4613_v50  ;;  %v13389_v34 = vadd.f32 %v13037_v18, %v12976_v8  ;;  %v13393_v51 = vadd.f32 %v16538_v33, %v12989_v22  ;;  %v13399_v50 = vadd.f32 %v16540_v13, %v16539_v4  ;;  %v16543_v8 = vld [vmem:[#allocation41_spill] sm:$0xff]  ;;  %v16544_v18 = vld [vmem:[#allocation62_spill] sm:$0xff] }
 0x193   : > { %10435 = vmatprep.mubr.msk.bf16.mxu0 %vm685_vm3, %v9436_v9  ;;  %v4623_v23 = vrot.slane %v4621_v47, 4  ;;  %v4631_v21 = vor.u32 %v4630_v15, %v4627_v62  ;;  %v5091_v28 = vsel %vm11818_vm12, %v9477_v5, %v5090_v55  ;;  %v5092_v31 = vrot.slane %v5090_v55, 4  ;;  %v13403_v62 = vpop.f32.mrf.mxu0  ;;  %v16545_v22 = vld [vmem:[#allocation53_spill] sm:$0xff]  ;;  %v16547_v55 = vld [vmem:[#allocation35_spill] sm:$0xff]  ;;  %v13420_v9 = vld [vmem:[%s10907_s28 + $0xa4] sm:$0x3] }
 0x194   : > { %v4618_v57 = vrot.slane %v4617_v43, 4  ;;  %16542 = vst [vmem:[#allocation29_spill] sm:$0xff] %v13403_v62  ;;  %v13407_v56 = vadd.f32 %v16544_v18, %v16543_v8  ;;  %v13411_v60 = vadd.f32 %v16546_v48, %v16545_v22  ;;  %v13417_v36 = vadd.f32 %v16548_v49, %v16547_v55  ;;  %16549 = vst [vmem:[#allocation30_spill] sm:$0xff] %v13420_v9  ;;  %v16550_v5 = vld [vmem:[#allocation33_spill] sm:$0xff]  ;;  %v16552_v18 = vld [vmem:[#allocation36_spill] sm:$0xff] }
 0x195   : > { %v4632_v54 = vsel %vm11523_vm10, %v4623_v23, %v4631_v21  ;;  %v5094_v43 = vsel %vm11818_vm12, %v5092_v31, %v5093_v52  ;;  %v4634_v33 = vshrl.u32 %v16550_v5, 16  ;;  %v4637_v4 = vshll.u32 %v16550_v5, 16  ;;  %v9462_v13 = vld [vmem:[%s10907_s28 + $0x3c] sm:$0xc]  ;;  %v13429_v8 = vpop.f32.mrf.mxu0  ;;  %v13448_v62 = vld [vmem:[%s10907_s28 + $0xb0] sm:$0x3] }
 0x196   : > { %v4622_v15 = vsel %vm11523_vm10, %v4618_v57, %v4621_v47  ;;  %16551 = vst [vmem:[#allocation34_spill] sm:$0xff] %v13429_v8  ;;  %v9494_v21 = vcombine.low %v5091_v28, %v5094_v43  ;;  %v16553_v22 = vshrl.u32 %v16552_v18, 16  ;;  %v16554_v55 = vshll.u32 %v16552_v18, 16  ;;  %v13435_v47 = vpop.f32.mrf.mxu1 }
 0x197   : > { %v9437_v23 = vcombine.low %v4622_v15, %v4632_v54  ;;  %16555 = vst [vmem:[#allocation63_spill] sm:$0xff] %v13435_v47  ;;  %v4636_v52 = vrot.slane %v4634_v33, 5  ;;  %v4639_v57 = vrot.slane %v4637_v4, 6  ;;  %v4648_v31 = vshrl.u32 %v13420_v9, 16  ;;  %v10811_v15 = vld [vmem:[%s10907_s28 + $0x40] sm:$0xf]  ;;  %v13450_v26 = vpop.f32.mrf.mxu0 }
 0x198   : > { %v4642_v48 = vrot.slane %v16553_v22, 5  ;;  %v4643_v49 = vrot.slane %v16554_v55, 6  ;;  %v4651_v5 = vshll.u32 %v13420_v9, 16  ;;  %10454 = vmatmul.mubr.msk.bf16.gmra.mxu1 %vm685_vm3, %v9494_v21  ;;  %v9478_v54 = vrot.slane %v9462_v13, 10  ;;  %v16556_v22 = vld [vmem:[#allocation31_spill] sm:$0xff]  ;;  %16559 = vst [vmem:[#allocation42_spill] sm:$0xff] %v13450_v26 }
 0x199   : > { %10436 = vmatmul.mubr.msk.bf16.gmra.mxu0 %vm685_vm3, %v9437_v23  ;;  %v5097_v43 = vrot.slane %v10811_v15, 6  ;;  %v5100_v18 = vrot.slane %v16556_v22, 6  ;;  %v4640_v55 = vor.u32 %v4639_v57, %v4636_v52  ;;  %v4650_v8 = vrot.slane %v4648_v31, 5  ;;  %v16557_v33 = vld [vmem:[#allocation11_spill] sm:$0xff]  ;;  %v13458_v52 = vpop.f32.mrf.mxu1  ;;  %v16565_v26 = vld [vmem:[#allocation40_spill] sm:$0xff] }
 0x19a   : > { %v4644_v28 = vor.u32 %v4643_v49, %v4642_v48  ;;  %v4653_v47 = vrot.slane %v4651_v5, 6  ;;  %v13445_v4 = vadd.f32 %v16557_v33, %v13103_v37  ;;  %v16560_v48 = vld [vmem:[#allocation50_spill] sm:$0xff]  ;;  %v16561_v49 = vld [vmem:[#allocation64_spill] sm:$0xff]  ;;  %16563 = vst [vmem:[#allocation62_spill] sm:$0xff] %v13458_v52  ;;  %v16564_v37 = vld [vmem:[#allocation37_spill] sm:$0xff]  ;;  %v16566_v41 = vshrl.u32 %v16565_v26, 16  ;;  %v13474_v52 = vpop.f32.mrf.mxu0 }
 0x19b   : > { %v5098_v13 = vsel %vm11818_vm12, %v9478_v54, %v5097_v43  ;;  %v5099_v21 = vrot.slane %v5097_v43, 4  ;;  %v13456_v15 = vadd.f32 %v16561_v49, %v16560_v48  ;;  %v4641_v57 = vrot.slane %v4640_v55, 4  ;;  %v9463_v49 = vld [vmem:[%s10907_s28 + $0x48] sm:$0xc]  ;;  %16568 = vst [vmem:[#allocation53_spill] sm:$0xff] %v13474_v52 }
 0x19c   : > { %16558 = vst [vmem:[#allocation10_spill] sm:$0xff] %v13445_v4  ;;  %v4646_v23 = vrot.slane %v4644_v28, 4  ;;  %v4654_v31 = vor.u32 %v4653_v47, %v4650_v8  ;;  %v4657_v5 = vshrl.u32 %v16564_v37, 16  ;;  %v4660_v22 = vshll.u32 %v16564_v37, 16  ;;  %v10812_v9 = vld [vmem:[%s10907_s28 + $0x4c] sm:$0xf] }
 0x19d   : > { %16562 = vst [vmem:[#allocation41_spill] sm:$0xff] %v13456_v15  ;;  %v5101_v33 = vsel %vm11818_vm12, %v5099_v21, %v5100_v18  ;;  %v4665_v24 = vrot.slane %v16566_v41, 5  ;;  %v16567_v54 = vshll.u32 %v16565_v26, 16  ;;  %v4671_v48 = vshrl.u32 %v13448_v62, 16  ;;  %v13476_v26 = vpop.f32.mrf.mxu1 }
 0x19e   : > { %v4645_v8 = vsel %vm11523_vm10, %v4641_v57, %v4644_v28  ;;  %v4655_v47 = vsel %vm11523_vm10, %v4646_v23, %v4654_v31  ;;  %v9495_v55 = vcombine.low %v5098_v13, %v5101_v33  ;;  %v4659_v37 = vrot.slane %v4657_v5, 5  ;;  %v13482_v23 = vpop.f32.mrf.mxu0  ;;  %v16570_v5 = vld [vmem:[#allocation44_spill] sm:$0xff] }
 0x19f   : > { %v4666_v43 = vrot.slane %v16567_v54, 6  ;;  %v9438_v18 = vcombine.low %v4645_v8, %v4655_v47  ;;  %v4662_v21 = vrot.slane %v4660_v22, 6  ;;  %v4673_v15 = vrot.slane %v4671_v48, 5  ;;  %16569 = vst [vmem:[#allocation6_spill] sm:$0xff] %v13482_v23  ;;  %v13493_v33 = vpop.f32.mrf.mxu1 }
 0x1a0   : > { %10457 = vmatprep.mubr.msk.bf16.mxu1 %vm685_vm3, %v9495_v55  ;;  %v4674_v54 = vshll.u32 %v13448_v62, 16  ;;  %v9479_v4 = vrot.slane %v9463_v49, 10  ;;  %v5104_v28 = vrot.slane %v10812_v9, 6  ;;  %v5107_v57 = vrot.slane %v13061_v30, 6  ;;  %16571 = vst [vmem:[#allocation35_spill] sm:$0xff] %v13493_v33  ;;  %v13501_v49 = vpop.f32.mrf.mxu0 }
 0x1a1   : > { %v4667_v41 = vor.u32 %v4666_v43, %v4665_v24  ;;  %10439 = vmatprep.mubr.msk.bf16.mxu0 %vm685_vm3, %v9438_v18  ;;  %v4663_v13 = vor.u32 %v4662_v21, %v4659_v37  ;;  %v13487_v24 = vadd.f32 %v13090_v63, %v13108_v16  ;;  %v13491_v22 = vadd.f32 %v16570_v5, %v13098_v10  ;;  %v16573_v63 = vld [vmem:[#allocation5_spill] sm:$0xff]  ;;  %v16574_v16 = vld [vmem:[#allocation43_spill] sm:$0xff]  ;;  %v16576_v37 = vld [vmem:[#allocation38_spill] sm:$0xff] }
 0x1a2   : > { %v4676_v9 = vrot.slane %v4674_v54, 6  ;;  %v5105_v30 = vsel %vm11818_vm12, %v9479_v4, %v5104_v28  ;;  %v5106_v43 = vrot.slane %v5104_v28, 4  ;;  %v13499_v48 = vadd.f32 %v13114_v1, %v13120_v3  ;;  %16572 = vst [vmem:[#allocation56_spill] sm:$0xff] %v13501_v49  ;;  %v16575_v10 = vld [vmem:[#allocation39_spill] sm:$0xff]  ;;  %v16577_v18 = vld [vmem:[#allocation65_spill] sm:$0xff]  ;;  %v13518_v54 = vpop.f32.mrf.mxu1 }
 0x1a3   : > { %v4669_v31 = vrot.slane %v4667_v41, 4  ;;  %v13505_v8 = vadd.f32 %v16574_v16, %v16573_v63  ;;  %v13509_v47 = vadd.f32 %v16575_v10, %v13094_v20  ;;  %v4664_v55 = vrot.slane %v4663_v13, 4  ;;  %v13516_v4 = vld [vmem:[%s10907_s28 + $0xbc] sm:$0x3]  ;;  %16578 = vst [vmem:[#allocation33_spill] sm:$0xff] %v13518_v54  ;;  %v13525_v20 = vpop.f32.mrf.mxu0 }
 0x1a4   : > { %v13513_v21 = vadd.f32 %v16577_v18, %v16576_v37  ;;  %v4677_v1 = vor.u32 %v4676_v9, %v4673_v15  ;;  %v5108_v3 = vsel %vm11818_vm12, %v5106_v43, %v5107_v57  ;;  %v16579_v28 = vld [vmem:[#allocation17_spill] sm:$0xff]  ;;  %v9464_v16 = vld [vmem:[%s10907_s28 + $0x54] sm:$0xc]  ;;  %16580 = vst [vmem:[#allocation36_spill] sm:$0xff] %v13525_v20  ;;  %v16581_v37 = vld [vmem:[#allocation46_spill] sm:$0xff]  ;;  %v13533_v9 = vpop.f32.mrf.mxu1  ;;  %v4694_v20 = vshrl.u32 %v13516_v4, 16 }
 0x1a5   : > { %v4680_v5 = vshrl.u32 %v16579_v28, 16  ;;  %v4683_v63 = vshll.u32 %v16579_v28, 16  ;;  %v4668_v13 = vsel %vm11523_vm10, %v4664_v55, %v4667_v41  ;;  %v9496_v10 = vcombine.low %v5105_v30, %v5108_v3  ;;  %16584 = vst [vmem:[#allocation31_spill] sm:$0xff] %v13533_v9  ;;  %v13538_v23 = vpop.f32.mrf.mxu0  ;;  %v10813_v9 = vld [vmem:[%s10907_s28 + $0x58] sm:$0xf] }
 0x1a6   : > { %v16582_v18 = vshrl.u32 %v16581_v37, 16  ;;  %v16583_v54 = vshll.u32 %v16581_v37, 16  ;;  %v4678_v57 = vsel %vm11523_vm10, %v4669_v31, %v4677_v1  ;;  %16585 = vst [vmem:[#allocation11_spill] sm:$0xff] %v13538_v23  ;;  %v4697_v55 = vshll.u32 %v13516_v4, 16  ;;  %v9465_v23 = vld [vmem:[%s10907_s28 + $0x60] sm:$0xc] }
 0x1a7   : > { %v4682_v43 = vrot.slane %v4680_v5, 5  ;;  %v4685_v28 = vrot.slane %v4683_v63, 6  ;;  %v9439_v41 = vcombine.low %v4668_v13, %v4678_v57  ;;  %10458 = vmatmul.mubr.msk.bf16.gmra.mxu1 %vm685_vm3, %v9496_v10  ;;  %v9480_v3 = vrot.slane %v9464_v16, 10  ;;  %v13546_v5 = vpop.f32.mrf.mxu0  ;;  %v16589_v16 = vld [vmem:[#allocation47_spill] sm:$0xff] }
 0x1a8   : > { %v4688_v49 = vrot.slane %v16582_v18, 5  ;;  %v4689_v15 = vrot.slane %v16583_v54, 6  ;;  %v13542_v54 = vpop.f32.mrf.mxu1  ;;  %v4696_v18 = vrot.slane %v4694_v20, 5  ;;  %v5111_v31 = vrot.slane %v10813_v9, 6  ;;  %16587 = vst [vmem:[#allocation64_spill] sm:$0xff] %v13546_v5 }
 0x1a9   : > { %16586 = vst [vmem:[#allocation50_spill] sm:$0xff] %v13542_v54  ;;  %v4686_v37 = vor.u32 %v4685_v28, %v4682_v43  ;;  %v5114_v1 = vrot.slane %v13128_v11, 6  ;;  %10440 = vmatmul.mubr.msk.bf16.gmra.mxu0 %vm685_vm3, %v9439_v41  ;;  %v4699_v13 = vrot.slane %v4697_v55, 6  ;;  %v13558_v20 = vld [vmem:[%s10907_s28 + $0xc8] sm:$0x3]  ;;  %v4703_v28 = vshrl.u32 %v13143_v0, 16  ;;  %v13565_v41 = vpop.f32.mrf.mxu0 }
 0x1aa   : > { %v4690_v30 = vor.u32 %v4689_v15, %v4688_v49  ;;  %v16588_v49 = vld [vmem:[#allocation12_spill] sm:$0xff]  ;;  %v13555_v15 = vadd.f32 %v16589_v16, %v13160_v35  ;;  %v13560_v9 = vpop.f32.mrf.mxu1  ;;  %v5112_v57 = vsel %vm11818_vm12, %v9480_v3, %v5111_v31  ;;  %v5113_v43 = vrot.slane %v5111_v31, 4  ;;  %16591 = vst [vmem:[#allocation40_spill] sm:$0xff] %v13565_v41 }
 0x1ab   : > { %v13551_v10 = vadd.f32 %v16588_v49, %v13210_v44  ;;  %16590 = vst [vmem:[#allocation37_spill] sm:$0xff] %v13560_v9  ;;  %v4687_v11 = vrot.slane %v4686_v37, 4  ;;  %v4700_v55 = vor.u32 %v4699_v13, %v4696_v18  ;;  %v4706_v44 = vshll.u32 %v13143_v0, 16  ;;  %v16592_v49 = vld [vmem:[#allocation52_spill] sm:$0xff]  ;;  %v13580_v0 = vpop.f32.mrf.mxu0 }
 0x1ac   : > { %v4692_v63 = vrot.slane %v4690_v30, 4  ;;  %v16593_v5 = vshrl.u32 %v16592_v49, 16  ;;  %v16594_v16 = vshll.u32 %v16592_v49, 16  ;;  %v13573_v9 = vpop.f32.mrf.mxu1  ;;  %v5115_v37 = vsel %vm11818_vm12, %v5113_v43, %v5114_v1  ;;  %16596 = vst [vmem:[#allocation5_spill] sm:$0xff] %v13580_v0  ;;  %v10814_v0 = vld [vmem:[%s10907_s28 + $0x64] sm:$0xf] }
 0x1ad   : > { %16595 = vst [vmem:[#allocation44_spill] sm:$0xff] %v13573_v9  ;;  %v4691_v3 = vsel %vm11523_vm10, %v4687_v11, %v4690_v30  ;;  %v4705_v31 = vrot.slane %v4703_v28, 5  ;;  %v4717_v18 = vshrl.u32 %v13558_v20, 16  ;;  %v9497_v13 = vcombine.low %v5112_v57, %v5115_v37  ;;  %v13587_v11 = vpop.f32.mrf.mxu0 }
 0x1ae   : > { %v4711_v35 = vrot.slane %v16593_v5, 5  ;;  %v4712_v54 = vrot.slane %v16594_v16, 6  ;;  %v4701_v5 = vsel %vm11523_vm10, %v4692_v63, %v4700_v55  ;;  %v4708_v49 = vrot.slane %v4706_v44, 6  ;;  %v13584_v41 = vpop.f32.mrf.mxu1  ;;  %v16598_v55 = vld [vmem:[#allocation49_spill] sm:$0xff] }
 0x1af   : > { %16597 = vst [vmem:[#allocation43_spill] sm:$0xff] %v13584_v41  ;;  %v9440_v9 = vcombine.low %v4691_v3, %v4701_v5  ;;  %v4719_v33 = vrot.slane %v4717_v18, 5  ;;  %v4720_v30 = vshll.u32 %v13558_v20, 16  ;;  %v9481_v1 = vrot.slane %v9465_v23, 10  ;;  %10461 = vmatprep.mubr.msk.bf16.mxu1 %vm685_vm3, %v9497_v13  ;;  %v16599_v23 = vld [vmem:[#allocation51_spill] sm:$0xff]  ;;  %v16600_v3 = vld [vmem:[#allocation13_spill] sm:$0xff]  ;;  %v13608_v18 = vpop.f32.mrf.mxu0 }
 0x1b0   : > { %v4713_v16 = vor.u32 %v4712_v54, %v4711_v35  ;;  %v4709_v43 = vor.u32 %v4708_v49, %v4705_v31  ;;  %v5118_v52 = vrot.slane %v10814_v0, 6  ;;  %v5121_v63 = vrot.slane %v13169_v14, 6  ;;  %v13592_v57 = vpop.f32.mrf.mxu1  ;;  %v9466_v31 = vld [vmem:[%s10907_s28 + $0x6c] sm:$0xc]  ;;  %v16603_v13 = vld [vmem:[#allocation14_spill] sm:$0xff]  ;;  %v16604_v49 = vld [vmem:[#allocation9_spill] sm:$0xff] }
 0x1b1   : > { %10443 = vmatprep.mubr.msk.bf16.mxu0 %vm685_vm3, %v9440_v9  ;;  %v4722_v54 = vrot.slane %v4720_v30, 6  ;;  %v13597_v44 = vadd.f32 %v16598_v55, %v13215_v46  ;;  %v13601_v35 = vadd.f32 %v16599_v23, %v13202_v39  ;;  %v13605_v37 = vadd.f32 %v16600_v3, %v13223_v40  ;;  %v16601_v46 = vld [vmem:[#allocation15_spill] sm:$0xff]  ;;  %v13621_v40 = vld [vmem:[%s16094_s1 + $0x1a] sm:$0x3]  ;;  %v13635_v23 = vpop.f32.mrf.mxu0 }
 0x1b2   : > { %v4715_v28 = vrot.slane %v4713_v16, 4  ;;  %v4710_v14 = vrot.slane %v4709_v43, 4  ;;  %v5119_v9 = vsel %vm11818_vm12, %v9481_v1, %v5118_v52  ;;  %v5120_v0 = vrot.slane %v5118_v52, 4  ;;  %v13616_v39 = vpop.f32.mrf.mxu1  ;;  %16602 = vst [vmem:[#allocation39_spill] sm:$0xff] %v13621_v40  ;;  %v16605_v43 = vld [vmem:[#allocation45_spill] sm:$0xff]  ;;  %16606 = vst [vmem:[#allocation38_spill] sm:$0xff] %v13635_v23 }
 0x1b3   : > { %v13614_v5 = vadd.f32 %v16601_v46, %v13219_v59  ;;  %v13625_v30 = vadd.f32 %v16604_v49, %v16603_v13  ;;  %v13629_v1 = vadd.f32 %v16605_v43, %v13198_v42  ;;  %v4723_v52 = vor.u32 %v4722_v54, %v4719_v33  ;;  %v10815_v59 = vld [vmem:[%s16094_s1 + $0x16] sm:$0x3]  ;;  %v10816_v42 = vld [vmem:[%s10907_s28 + $0x70] sm:$0xf]  ;;  %v9467_v43 = vld [vmem:[%s10907_s28 + $0x78] sm:$0xc] }
 0x1b4   : > { %v6363_v55 = vsel %vm734_vm0, %v10815_v59, 0  ;;  %v4714_v3 = vsel %vm11523_vm10, %v4710_v14, %v4713_v16  ;;  %v5122_v46 = vsel %vm11818_vm12, %v5120_v0, %v5121_v63  ;;  %v9482_v13 = vrot.slane %v9466_v31, 10  ;;  %v13643_v33 = vpop.f32.mrf.mxu1  ;;  %v10739_v23 = vld [vmem:[%s10907_s28 + $0x18] sm:$0xff]   ;;  %v13653_v63 = vpop.f32.mrf.mxu0 }
 0x1b5   : > { %10516 = vmatpush3.bf16.msra.mxu1 %v6363_v55  ;;  %v5125_v49 = vrot.slane %v10816_v42, 6  ;;  %v4724_v54 = vsel %vm11523_vm10, %v4715_v28, %v4723_v52  ;;  %v9498_v59 = vcombine.low %v5119_v9, %v5122_v46  ;;  %v5128_v41 = vrot.slane %v13205_v2, 6  ;;  %16607 = vst [vmem:[#allocation65_spill] sm:$0xff] %v13653_v63  ;;  %v16608_v28 = vld [vmem:[#allocation25_spill] sm:$0xff]  ;;  %v16611_v46 = vld [vmem:[#allocation20_spill] sm:$0xff] }
 0x1b6   : > { %v13651_v16 = vadd.f32 %v13226_v61, %v13254_v32  ;;  %10695 = vmatprep.subr.msk.bf16.mxu1 %vm734_vm0, %v13621_v40  ;;  %v9441_v31 = vcombine.low %v4714_v3, %v4724_v54  ;;  %v13661_v9 = vadd.f32 %v16608_v28, %v13258_v6  ;;  %v13663_v2 = vpop.f32.mrf.mxu1  ;;  %v16610_v61 = vld [vmem:[#allocation54_spill] sm:$0xff]  ;;  %v9483_v52 = vrot.slane %v9467_v43, 10  ;;  %v10817_v55 = vld [vmem:[%s10907_s28 + $0x7c] sm:$0xf]  ;;  %v16612_v54 = vld [vmem:[#allocation48_spill] sm:$0xff] }
 0x1b7   : > { %v5126_v14 = vsel %vm11818_vm12, %v9482_v13, %v5125_v49  ;;  %v5127_v0 = vrot.slane %v5125_v49, 4  ;;  %16609 = vst [vmem:[#allocation17_spill] sm:$0xff] %v13663_v2  ;;  %10462 = vmatmul.mubr.msk.bf16.gmra.mxu1 %vm685_vm3, %v9498_v59  ;;  %v13668_v32 = vadd.f32 %v16610_v61, %v13312_v25  ;;  %v5132_v3 = vrot.slane %v10817_v55, 6  ;;  %v9468_v13 = vld [vmem:[%s10907_s28 + $0x84] sm:$0xc]  ;;  %v13673_v49 = vpop.f32.mrf.mxu0  ;;  %v16613_v25 = vld [vmem:[#allocation19_spill] sm:$0xff] }
 0x1b8   : > { %v5135_v42 = vrot.slane %v16611_v46, 6  ;;  %10444 = vmatmul.mubr.msk.bf16.gmra.mxu0 %vm685_vm3, %v9441_v31  ;;  %v13680_v59 = vadd.f32 %v16612_v54, %v13290_v53  ;;  %v13684_v43 = vadd.f32 %v16613_v25, %v13294_v12  ;;  %v16614_v28 = vld [vmem:[#allocation21_spill] sm:$0xff]  ;;  %v13690_v55 = vpop.f32.mrf.mxu1  ;;  %v9469_v54 = vld [vmem:[%s10907_s28 + $0x90] sm:$0xc]  ;;  %v10740_v40 = vld [vmem:[%s10907_s28 + $0x24] sm:$0xff]  }
 0x1b9   : > { %v5129_v6 = vsel %vm11818_vm12, %v5127_v0, %v5128_v41  ;;  %v13688_v61 = vadd.f32 %v16614_v28, %v13298_v58  ;;  %16615 = vst [vmem:[#allocation46_spill] sm:$0xff] %v13690_v55  ;;  %10483 = vmatprep.mubr.msk.bf16.mxu0 %vm685_vm3, %v10739_v23  ;;  %v5133_v41 = vsel %vm11818_vm12, %v9483_v52, %v5132_v3  ;;  %v5134_v31 = vrot.slane %v5132_v3, 4  ;;  %v16616_v53 = vld [vmem:[#allocation57_spill] sm:$0xff]  ;;  %v13700_v12 = vpop.f32.mrf.mxu0  ;;  %v16618_v58 = vld [vmem:[#allocation55_spill] sm:$0xff]  ;;  %v10820_v2 = vld [vmem:[%s10907_s28 + $0x94] sm:$0xf] }
 0x1ba   : > { %v9499_v46 = vcombine.low %v5126_v14, %v5129_v6  ;;  %v13697_v0 = vadd.f32 %v16616_v53, %v13304_v27  ;;  %16617 = vst [vmem:[#allocation12_spill] sm:$0xff] %v13700_v12  ;;  %v13704_v25 = vadd.f32 %v16618_v58, %v13316_v29  ;;  %v10818_v23 = vld [vmem:[%s16094_s1 + $0x18] sm:$0x3]  ;;  %v9484_v52 = vrot.slane %v9468_v13, 10  ;;  %v10819_v3 = vld [vmem:[%s10907_s28 + $0x88] sm:$0xf]  ;;  %v13711_v27 = vpop.f32.mrf.mxu1 }
 0x1bb   : > { %v6833_v14 = vsel %vm734_vm0, %v10818_v23, 0  ;;  %v5139_v6 = vrot.slane %v10819_v3, 6  ;;  %16619 = vst [vmem:[#allocation47_spill] sm:$0xff] %v13711_v27  ;;  %v5136_v28 = vsel %vm11818_vm12, %v5134_v31, %v5135_v42  ;;  %v5142_v29 = vrot.slane %v13321_v38, 6  ;;  %v16620_v58 = vld [vmem:[#allocation28_spill] sm:$0xff]  ;;  %v16621_v23 = vld [vmem:[#allocation26_spill] sm:$0xff]  ;;  %v13725_v19 = vpop.f32.mrf.mxu0 }
 0x1bc   : > { %10465 = vmatprep.mubr.msk.bf16.mxu1 %vm685_vm3, %v9499_v46  ;;  %v13719_v53 = vadd.f32 %v13306_v7, %v13350_v17  ;;  %v13723_v13 = vadd.f32 %v16621_v23, %v16620_v58  ;;  %16622 = vst [vmem:[#allocation52_spill] sm:$0xff] %v13725_v19  ;;  %v9500_v3 = vcombine.low %v5133_v41, %v5136_v28  ;;  %v9485_v31 = vrot.slane %v9469_v54, 10  ;;  %v13730_v38 = vpop.f32.mrf.mxu1  ;;  %v16624_v17 = vld [vmem:[#allocation22_spill] sm:$0xff]  ;;  %v16626_v19 = vld [vmem:[#allocation24_spill] sm:$0xff]  ;;  %v9470_v28 = vld [vmem:[%s10907_s28 + $0x9c] sm:$0xc] }
 0x1bd   : > { %v5140_v46 = vsel %vm11818_vm12, %v9484_v52, %v5139_v6  ;;  %v5141_v42 = vrot.slane %v5139_v6, 4  ;;  %16623 = vst [vmem:[#allocation49_spill] sm:$0xff] %v13730_v38  ;;  %v5146_v7 = vrot.slane %v10820_v2, 6  ;;  %v5149_v63 = vrot.slane %v16624_v17, 6  ;;  %v16625_v58 = vld [vmem:[#allocation58_spill] sm:$0xff]  ;;  %v13743_v27 = vpop.f32.mrf.mxu0  ;;  %v10741_v6 = vld [vmem:[%s10907_s28 + $0x30] sm:$0xff]  }
 0x1be   : > { %v13736_v23 = vadd.f32 %v16625_v58, %v13389_v34  ;;  %v13740_v41 = vadd.f32 %v16626_v19, %v13393_v51  ;;  %16627 = vst [vmem:[#allocation51_spill] sm:$0xff] %v13743_v27  ;;  %v16628_v52 = vld [vmem:[#allocation18_spill] sm:$0xff]  ;;  %v16629_v17 = vld [vmem:[#allocation4_spill] sm:$0xff]  ;;  %v9471_v51 = vld [vmem:[%s10907_s28 + $0xa8] sm:$0xc]  ;;  %v13761_v38 = vpop.f32.mrf.mxu1 }
 0x1bf   : > { %v13747_v54 = vadd.f32 %v16628_v52, %v13407_v56  ;;  %v5143_v2 = vsel %vm11818_vm12, %v5141_v42, %v5142_v29  ;;  %v13754_v34 = vadd.f32 %v16629_v17, %v13399_v50  ;;  %v16630_v58 = vld [vmem:[#allocation16_spill] sm:$0xff]  ;;  %16631 = vst [vmem:[#allocation13_spill] sm:$0xff] %v13761_v38  ;;  %10466 = vmatmul.mubr.msk.bf16.gmra.mxu1 %vm685_vm3, %v9500_v3  ;;  %v16632_v56 = vld [vmem:[#allocation23_spill] sm:$0xff]  ;;  %v5148_v50 = vrot.slane %v5146_v7, 4  ;;  %v13770_v42 = vpop.f32.mrf.mxu0  ;;  %v10821_v17 = vld [vmem:[%s10907_s28 + $0xa0] sm:$0xf] }
 0x1c0   : > { %v13758_v19 = vadd.f32 %v16630_v58, %v13417_v36  ;;  %v13766_v52 = vadd.f32 %v16632_v56, %v13411_v60  ;;  %v9501_v27 = vcombine.low %v5140_v46, %v5143_v2  ;;  %v5147_v29 = vsel %vm11818_vm12, %v9485_v31, %v5146_v7  ;;  %16633 = vst [vmem:[#allocation15_spill] sm:$0xff] %v13770_v42  ;;  %v13775_v36 = vld [vmem:[%s16094_s1 + $0x1c] sm:$0x3]  ;;  %v16635_v60 = vld [vmem:[#allocation30_spill] sm:$0xff]  ;;  %v16637_v2 = vld [vmem:[#allocation32_spill] sm:$0xff]  ;;  %v13784_v7 = vpop.f32.mrf.mxu1 }
 0x1c1   : > { %16634 = vst [vmem:[#allocation14_spill] sm:$0xff] %v13775_v36  ;;  %10484 = vmatmul.mubr.msk.bf16.vlgmr.msra.gmra.mxu0 %vm685_vm3, %v10740_v40  ;;  %v9486_v3 = vrot.slane %v9470_v28, 10  ;;  %v5153_v58 = vrot.slane %v10821_v17, 6  ;;  %v5156_v56 = vrot.slane %v16635_v60, 6  ;;  %v16636_v46 = vld [vmem:[#allocation10_spill] sm:$0xff]  ;;  %v5150_v38 = vsel %vm11818_vm12, %v5148_v50, %v5149_v63  ;;  %v16638_v42 = vld [vmem:[#allocation41_spill] sm:$0xff]  ;;  %v13794_v55 = vpop.f32.mrf.mxu0 }
 0x1c2   : > { %v13782_v31 = vadd.f32 %v16637_v2, %v16636_v46  ;;  %10550 = vmatpush3.bf16.msra.mxu0 %v6833_v14  ;;  %10469 = vmatprep.mubr.msk.bf16.mxu1 %vm685_vm3, %v9501_v27  ;;  %v16639_v40 = vld [vmem:[#allocation60_spill] sm:$0xff]  ;;  %v9487_v17 = vrot.slane %v9471_v51, 10  ;;  %v10822_v12 = vld [vmem:[%s10907_s28 + $0xac] sm:$0xf]  ;;  %16640 = vst [vmem:[#allocation9_spill] sm:$0xff] %v13794_v55  ;;  %v16641_v46 = vld [vmem:[#allocation61_spill] sm:$0xff]  ;;  %v13805_v51 = vpop.f32.mrf.mxu1 }
 0x1c3   : > { %v13791_v28 = vadd.f32 %v16639_v40, %v16638_v42  ;;  %v5160_v60 = vrot.slane %v10822_v12, 6  ;;  %10487 = vmatprep.mubr.msk.bf16.mxu0 %vm685_vm3, %v10741_v6  ;;  %v13799_v14 = vadd.f32 %v16641_v46, %v13505_v8  ;;  %v5154_v27 = vsel %vm11818_vm12, %v9486_v3, %v5153_v58  ;;  %v9472_v42 = vld [vmem:[%s10907_s28 + $0xb4] sm:$0xc]  ;;  %16642 = vst [vmem:[#allocation45_spill] sm:$0xff] %v13805_v51  ;;  %v16643_v2 = vld [vmem:[#allocation27_spill] sm:$0xff]  ;;  %v16644_v40 = vld [vmem:[#allocation29_spill] sm:$0xff] }
 0x1c4   : > { %v5155_v63 = vrot.slane %v5153_v58, 4  ;;  %v5163_v50 = vrot.slane %v13448_v62, 6  ;;  %10696 = vmatprep.subr.msk.bf16.mxu0 %vm734_vm0, %v13775_v36  ;;  %v9502_v12 = vcombine.low %v5147_v29, %v5150_v38  ;;  %v13811_v8 = vadd.f32 %v16643_v2, %v13487_v24  ;;  %v13817_v58 = vpop.f32.mrf.mxu0  ;;  %v10742_v62 = vld [vmem:[%s10907_s28 + $0x3c] sm:$0xff]   ;;  %v16646_v46 = vld [vmem:[#allocation59_spill] sm:$0xff] }
 0x1c5   : > { %v5162_v6 = vrot.slane %v5160_v60, 4  ;;  %v13815_v3 = vadd.f32 %v16644_v40, %v13491_v22  ;;  %16645 = vst [vmem:[#allocation25_spill] sm:$0xff] %v13817_v58  ;;  %v13822_v51 = vadd.f32 %v16646_v46, %v13509_v47  ;;  %v16647_v29 = vld [vmem:[#allocation63_spill] sm:$0xff]  ;;  %v16648_v24 = vld [vmem:[#allocation34_spill] sm:$0xff]  ;;  %v13835_v40 = vpop.f32.mrf.mxu1  ;;  %v13840_v47 = vsel %vm11818_vm12, %v9487_v17, %v5160_v60 }
 0x1c6   : > { %v5157_v38 = vsel %vm11818_vm12, %v5155_v63, %v5156_v56  ;;  %v13828_v36 = vadd.f32 %v16647_v29, %v13499_v48  ;;  %v13832_v2 = vadd.f32 %v16648_v24, %v13513_v21  ;;  %v9473_v22 = vld [vmem:[%s10907_s28 + $0xc0] sm:$0xc]  ;;  %v10743_v55 = vld [vmem:[%s10907_s28 + $0x48] sm:$0xff]   ;;  %v9488_v48 = vrot.slane %v9472_v42, 10  ;;  %v13846_v46 = vpop.f32.mrf.mxu0  ;;  %v10823_v29 = vld [vmem:[%s10907_s28 + $0xb8] sm:$0xf] }
 0x1c7   : > { %v9503_v58 = vcombine.low %v5154_v27, %v5157_v38  ;;  %v16649_v56 = vld [vmem:[#allocation62_spill] sm:$0xff]  ;;  %16650 = vst [vmem:[#allocation54_spill] sm:$0xff] %v13846_v46  ;;  %v5164_v21 = vsel %vm11818_vm12, %v5162_v6, %v5163_v50  ;;  %v5167_v24 = vrot.slane %v10823_v29, 6  ;;  %v5170_v27 = vrot.slane %v13516_v4, 6  ;;  %v13856_v17 = vpop.f32.mrf.mxu1  ;;  %10470 = vmatmul.mubr.msk.bf16.gmra.mxu1 %vm685_vm3, %v9502_v12  ;;  %v9588_v4 = vld [vmem:[%s10907_s28 + $0x18] sm:$0xf] }
 0x1c8   : > { %v13844_v63 = vadd.f32 %v16649_v56, %v13625_v30  ;;  %v13854_v38 = vadd.f32 %v13476_v26, %v13551_v10  ;;  %16651 = vst [vmem:[#allocation20_spill] sm:$0xff] %v13856_v17  ;;  %v16652_v30 = vld [vmem:[#allocation53_spill] sm:$0xff]  ;;  %v9489_v42 = vrot.slane %v9473_v22, 10  ;;  %v10824_v56 = vld [vmem:[%s10907_s28 + $0xc4] sm:$0xf]  ;;  %v5177_v6 = vrot.slane %v13558_v20, 6  ;;  %v13866_v29 = vpop.f32.mrf.mxu0 }
 0x1c9   : > { %v13861_v60 = vadd.f32 %v16652_v30, %v13555_v15  ;;  %v5174_v50 = vrot.slane %v10824_v56, 6  ;;  %16653 = vst [vmem:[#allocation48_spill] sm:$0xff] %v13866_v29  ;;  %10488 = vmatmul.mubr.msk.bf16.gmra.mxu0 %vm685_vm3, %v10742_v62  ;;  %10473 = vmatprep.mubr.msk.bf16.mxu1 %vm685_vm3, %v9503_v58  ;;  %v5168_v26 = vsel %vm11818_vm12, %v9488_v48, %v5167_v24  ;;  %v5169_v10 = vrot.slane %v5167_v24, 4  ;;  %v16654_v15 = vld [vmem:[#allocation35_spill] sm:$0xff]  ;;  %v16655_v22 = vld [vmem:[#allocation6_spill] sm:$0xff]  ;;  %v13883_v56 = vpop.f32.mrf.mxu1 }
 0x1ca   : > { %v13874_v12 = vadd.f32 %v16654_v15, %v13597_v44  ;;  %v13878_v30 = vadd.f32 %v16655_v22, %v13601_v35  ;;  %v13881_v20 = vld [vmem:[%s10907_s28 + $0x1c] sm:$0xf]  ;;  %16656 = vst [vmem:[#allocation19_spill] sm:$0xff] %v13883_v56  ;;  %10491 = vmatprep.mubr.msk.bf16.mxu0 %vm685_vm3, %v10743_v55  ;;  %v16657_v58 = vld [vmem:[#allocation42_spill] sm:$0xff]  ;;  %v16660_v35 = vld [vmem:[#allocation56_spill] sm:$0xff]  ;;  %v13901_v17 = vpop.f32.mrf.mxu0  ;;  %v9504_v55 = vcombine.low %v13840_v47, %v5164_v21 }
 0x1cb   : > { %v13888_v62 = vadd.f32 %v16657_v58, %v13629_v1  ;;  %v5176_v48 = vrot.slane %v5174_v50, 4  ;;  %v16659_v44 = vld [vmem:[#allocation33_spill] sm:$0xff]  ;;  %v13896_v15 = vadd.f32 %v16660_v35, %v13614_v5  ;;  %v13899_v22 = vld [vmem:[%s10907_s28 + $0x20] sm:$0x1]  ;;  %16662 = vst [vmem:[#allocation55_spill] sm:$0xff] %v13901_v17  ;;  %v5171_v1 = vsel %vm11818_vm12, %v5169_v10, %v5170_v27  ;;  %v16664_v35 = vld [vmem:[#allocation31_spill] sm:$0xff] }
 0x1cc   : > { %v13892_v24 = vadd.f32 %v16659_v44, %v13605_v37  ;;  %16661 = vst [vmem:[#allocation57_spill] sm:$0xff] %v13899_v22  ;;  %v13908_v58 = vsel %vm11818_vm12, %v9489_v42, %v5174_v50  ;;  %v5881_v37 = vshrl.u32 %v9588_v4, 16  ;;  %v13910_v44 = vpop.f32.mrf.mxu1  ;;  %v9505_v5 = vcombine.low %v5168_v26, %v5171_v1  ;;  %v9591_v21 = vld [vmem:[%s10907_s28 + $0x24] sm:$0xf]  ;;  %v13919_v29 = vld [vmem:[%s10907_s28 + $0x28] sm:$0xf]  ;;  %v13921_v27 = vpop.f32.mrf.mxu0 }
 0x1cd   : > { %16658 = vst [vmem:[#allocation21_spill] sm:$0xff] %v13888_v62  ;;  %16663 = vst [vmem:[#allocation28_spill] sm:$0xff] %v13910_v44  ;;  %v13914_v46 = vadd.f32 %v16664_v35, %v13668_v32  ;;  %v5884_v17 = vshll.u32 %v9588_v4, 16  ;;  %v10744_v10 = vld [vmem:[%s10907_s28 + $0x54] sm:$0xff]   ;;  %v13926_v42 = vsel %vm11818_vm12, %v5176_v48, %v5177_v6  ;;  %v16212_v26 = vshrl.u32 %v13881_v20, 16  ;;  %v10745_v35 = vld [vmem:[%s10907_s28 + $0x60] sm:$0xff]  }
 0x1ce   : > { %16666 = vst [vmem:[#allocation22_spill] sm:$0xff] %v13919_v29  ;;  %16667 = vst [vmem:[#allocation58_spill] sm:$0xff] %v13921_v27  ;;  %v5883_v50 = vrot.slane %v5881_v37, 4  ;;  %v5900_v1 = vshll.u32 %v13899_v22, 16  ;;  %v13931_v32 = vld [vmem:[%s10907_s28 + $0x2c] sm:$0x1]  ;;  %v13933_v4 = vpop.f32.mrf.mxu1  ;;  %v13946_v37 = vpop.f32.mrf.mxu0 }
 0x1cf   : > { %16665 = vst [vmem:[#allocation26_spill] sm:$0xff] %v13914_v46  ;;  %16668 = vst [vmem:[#allocation24_spill] sm:$0xff] %v13933_v4  ;;  %v5886_v47 = vrot.slane %v5884_v17, 5  ;;  %v16669_v44 = vshll.u32 %v13881_v20, 16  ;;  %v16670_v27 = vld [vmem:[#allocation11_spill] sm:$0xff]  ;;  %v16671_v6 = vld [vmem:[#allocation50_spill] sm:$0xff]  ;;  %10474 = vmatmul.mubr.msk.bf16.gmra.mxu1 %vm685_vm3, %v9504_v55 }
 0x1d0   : > { %v13940_v56 = vadd.f32 %v16670_v27, %v13651_v16  ;;  %v13944_v48 = vadd.f32 %v16671_v6, %v13661_v9  ;;  %16672 = vst [vmem:[#allocation18_spill] sm:$0xff] %v13946_v37  ;;  %v5896_v45 = vrot.slane %v16212_v26, 4  ;;  %v5902_v22 = vrot.slane %v5900_v1, 5  ;;  %v13950_v17 = vpop.f32.mrf.mxu1  ;;  %v13956_v6 = vpop.f32.mrf.mxu0  ;;  %10477 = vmatprep.mubr.msk.bf16.mxu1 %vm685_vm3, %v9505_v5  ;;  %v16675_v55 = vld [vmem:[#allocation64_spill] sm:$0xff] }
 0x1d1   : > { %v5892_v46 = vrot.slane %v16669_v44, 5  ;;  %v5905_v4 = vshrl.u32 %v9591_v21, 16  ;;  %v5908_v62 = vshll.u32 %v9591_v21, 16  ;;  %16673 = vst [vmem:[#allocation4_spill] sm:$0xff] %v13950_v17  ;;  %v5887_v44 = vor.u32 %v5886_v47, %v5883_v50  ;;  %16674 = vst [vmem:[#allocation16_spill] sm:$0xff] %v13956_v6  ;;  %10492 = vmatmul.mubr.msk.bf16.gmra.mxu0 %vm685_vm3, %v10744_v10  ;;  %v16680_v17 = vld [vmem:[#allocation37_spill] sm:$0xff] }
 0x1d2   : > { %v5924_v9 = vshll.u32 %v13931_v32, 16  ;;  %v13962_v47 = vadd.f32 %v16675_v55, %v13680_v59  ;;  %v13964_v50 = vpop.f32.mrf.mxu1  ;;  %10495 = vmatprep.mubr.msk.bf16.mxu0 %vm685_vm3, %v10745_v35  ;;  %v9506_v27 = vcombine.low %v13908_v58, %v13926_v42  ;;  %v16677_v10 = vshll.u32 %v13919_v29, 16  ;;  %v13974_v37 = vpop.f32.mrf.mxu0  ;;  %v16682_v58 = vld [vmem:[#allocation40_spill] sm:$0xff] }
 0x1d3   : > { %v5897_v1 = vor.u32 %v5896_v45, %v5892_v46  ;;  %v5907_v21 = vrot.slane %v5905_v4, 4  ;;  %v5910_v26 = vrot.slane %v5908_v62, 5  ;;  %16676 = vst [vmem:[#allocation23_spill] sm:$0xff] %v13964_v50  ;;  %v5888_v16 = vrot.slane %v5887_v44, 4  ;;  %v9594_v4 = vld [vmem:[%s10907_s28 + $0x30] sm:$0xf] }
 0x1d4   : > { %v5916_v5 = vrot.slane %v16677_v10, 5  ;;  %v16678_v45 = vshrl.u32 %v13919_v29, 16  ;;  %16679 = vst [vmem:[#allocation30_spill] sm:$0xff] %v13974_v37  ;;  %v13978_v35 = vadd.f32 %v16680_v17, %v13684_v43  ;;  %v13982_v42 = vadd.f32 %v16682_v58, %v13688_v61  ;;  %v13985_v44 = vld [vmem:[%s10907_s28 + $0x34] sm:$0xf]  ;;  %v13987_v10 = vpop.f32.mrf.mxu1  ;;  %v13998_v17 = vpop.f32.mrf.mxu0  ;;  %v10746_v61 = vld [vmem:[%s10907_s28 + $0x6c] sm:$0xff]  }
 0x1d5   : > { %v5898_v59 = vrot.slane %v5897_v1, 4  ;;  %v5911_v55 = vor.u32 %v5910_v26, %v5907_v21  ;;  %16684 = vst [vmem:[#allocation41_spill] sm:$0xff] %v13985_v44  ;;  %16685 = vst [vmem:[#allocation60_spill] sm:$0xff] %v13987_v10  ;;  %v5926_v1 = vrot.slane %v5924_v9, 5  ;;  %v16687_v26 = vld [vmem:[#allocation44_spill] sm:$0xff]  ;;  %v10747_v10 = vld [vmem:[%s10907_s28 + $0x78] sm:$0xff]  }
 0x1d6   : > { %v5920_v62 = vrot.slane %v16678_v45, 4  ;;  %16681 = vst [vmem:[#allocation10_spill] sm:$0xff] %v13978_v35  ;;  %16683 = vst [vmem:[#allocation32_spill] sm:$0xff] %v13982_v42  ;;  %v5893_v45 = vsel %vm10963_vm4, %v5888_v16, %v5892_v46  ;;  %v13993_v21 = vadd.f32 %v16687_v26, %v13697_v0  ;;  %v13996_v43 = vld [vmem:[%s10907_s28 + $0x38] sm:$0x1]  ;;  %v16690_v58 = vld [vmem:[#allocation36_spill] sm:$0xff]  ;;  %v14007_v9 = vpop.f32.mrf.mxu1  ;;  %v14012_v35 = vpop.f32.mrf.mxu0 }
 0x1d7   : > { %16689 = vst [vmem:[#allocation27_spill] sm:$0xff] %v13998_v17  ;;  %v14003_v37 = vadd.f32 %v16690_v58, %v13704_v25  ;;  %v5903_v46 = vsel %vm10963_vm4, %v5898_v59, %v5902_v22  ;;  %v5912_v16 = vrot.slane %v5911_v55, 4  ;;  %16691 = vst [vmem:[#allocation29_spill] sm:$0xff] %v14007_v9  ;;  %v16213_v17 = vshll.u32 %v13985_v44, 16  ;;  %v9597_v42 = vld [vmem:[%s10907_s28 + $0x3c] sm:$0xf]  ;;  %10478 = vmatmul.mubr.msk.bf16.gmra.mxu1 %vm685_vm3, %v9506_v27 }
 0x1d8   : > { %v5921_v50 = vor.u32 %v5920_v62, %v5916_v5  ;;  %16688 = vst [vmem:[#allocation61_spill] sm:$0xff] %v13993_v21  ;;  %v5929_v62 = vshrl.u32 %v9594_v4, 16  ;;  %v9637_v0 = vcombine.low %v5893_v45, %v5903_v46  ;;  %v5932_v21 = vshll.u32 %v9594_v4, 16  ;;  %16692 = vst [vmem:[#allocation59_spill] sm:$0xff] %v14012_v35  ;;  %v14019_v55 = vld [vmem:[%s10907_s28 + $0x40] sm:$0xf]  ;;  %v14021_v9 = vpop.f32.mrf.mxu1 }
 0x1d9   : > { %v5917_v25 = vsel %vm10963_vm4, %v5912_v16, %v5916_v5  ;;  %v16214_v22 = vshrl.u32 %v13985_v44, 16  ;;  %v5948_v59 = vshll.u32 %v13996_v43, 16  ;;  %16693 = vst [vmem:[#allocation63_spill] sm:$0xff] %v14021_v9  ;;  %v5940_v45 = vrot.slane %v16213_v17, 5  ;;  %v14033_v46 = vld [vmem:[%s10907_s28 + $0x44] sm:$0x1]  ;;  %v14035_v16 = vpop.f32.mrf.mxu0  ;;  %10496 = vmatmul.mubr.msk.bf16.gmra.mxu0 %vm685_vm3, %v10746_v61 }
 0x1da   : > { %v5922_v26 = vrot.slane %v5921_v50, 4  ;;  %v5931_v58 = vrot.slane %v5929_v62, 4  ;;  %v5934_v4 = vrot.slane %v5932_v21, 5  ;;  %v14030_v5 = vadd.f32 %v13587_v11, %v13719_v53  ;;  %16694 = vst [vmem:[#allocation34_spill] sm:$0xff] %v14035_v16  ;;  %10517 = vmatprep.mubr.msk.bf16.mxu1 %vm685_vm3, %v9637_v0  ;;  %10499 = vmatprep.mubr.msk.bf16.mxu0 %vm685_vm3, %v10747_v10  ;;  %v16701_v9 = vld [vmem:[#allocation38_spill] sm:$0xff] }
 0x1db   : > { %v5950_v21 = vrot.slane %v5948_v59, 5  ;;  %v14043_v62 = vadd.f32 %v13592_v57, %v13723_v13  ;;  %v5953_v53 = vshrl.u32 %v9597_v42, 16  ;;  %v5956_v17 = vshll.u32 %v9597_v42, 16  ;;  %v14049_v0 = vpop.f32.mrf.mxu0  ;;  %v16698_v59 = vld [vmem:[#allocation5_spill] sm:$0xff] }
 0x1dc   : > { %v5927_v50 = vsel %vm10963_vm4, %v5922_v26, %v5926_v1  ;;  %v5944_v1 = vrot.slane %v16214_v22, 4  ;;  %v14045_v26 = vpop.f32.mrf.mxu1  ;;  %v5935_v11 = vor.u32 %v5934_v4, %v5931_v58  ;;  %v16215_v61 = vshll.u32 %v14019_v55, 16  ;;  %16695 = vst [vmem:[#allocation62_spill] sm:$0xff] %v14049_v0  ;;  %v10748_v22 = vld [vmem:[%s10907_s28 + $0x84] sm:$0xff]  }
 0x1dd   : > { %v9638_v27 = vcombine.low %v5917_v25, %v5927_v50  ;;  %v5972_v57 = vshll.u32 %v14033_v46, 16  ;;  %v14055_v13 = vadd.f32 %v13608_v18, %v13736_v23  ;;  %v5955_v50 = vrot.slane %v5953_v53, 4 }
 0x1de   : > { %v5945_v25 = vor.u32 %v5944_v1, %v5940_v45  ;;  %v14057_v10 = vpop.f32.mrf.mxu1  ;;  %v5936_v58 = vrot.slane %v5935_v11, 4  ;;  %v5958_v42 = vrot.slane %v5956_v17, 5  ;;  %v5964_v4 = vrot.slane %v16215_v61, 5  ;;  %v14061_v1 = vpop.f32.mrf.mxu0  ;;  %v9600_v17 = vld [vmem:[%s10907_s28 + $0x48] sm:$0xf] }
 0x1df   : > { %16696 = vst [vmem:[#allocation53_spill] sm:$0xff] %v14057_v10  ;;  %16697 = vst [vmem:[#allocation35_spill] sm:$0xff] %v14061_v1  ;;  %v14066_v0 = vadd.f32 %v16698_v59, %v13747_v54  ;;  %v16699_v18 = vshrl.u32 %v14019_v55, 16  ;;  %v14072_v11 = vadd.f32 %v13616_v39, %v13740_v41  ;;  %v10749_v10 = vld [vmem:[%s10907_s28 + $0x90] sm:$0xff]   ;;  %v14082_v54 = vadd.f32 %v16701_v9, %v13754_v34  ;;  %v14089_v59 = vld [vmem:[%s10907_s28 + $0x4c] sm:$0xf] }
 0x1e0   : > { %v5946_v35 = vrot.slane %v5945_v25, 4  ;;  %v14075_v53 = vpop.f32.mrf.mxu1  ;;  %v5941_v61 = vsel %vm10963_vm4, %v5936_v58, %v5940_v45  ;;  %v5959_v1 = vor.u32 %v5958_v42, %v5955_v50  ;;  %v14086_v25 = vadd.f32 %v13643_v33, %v13758_v19  ;;  %16702 = vst [vmem:[#allocation42_spill] sm:$0xff] %v14089_v59  ;;  %v14092_v39 = vld [vmem:[%s10907_s28 + $0x50] sm:$0x1]  ;;  %v14094_v41 = vpop.f32.mrf.mxu0  ;;  %10518 = vmatmul.mubr.msk.bf16.vlgmr.msra.gmra.mxu1 %vm685_vm3, %v9638_v27 }
 0x1e1   : > { %v5968_v23 = vrot.slane %v16699_v18, 4  ;;  %16700 = vst [vmem:[#allocation6_spill] sm:$0xff] %v14075_v53  ;;  %16703 = vst [vmem:[#allocation33_spill] sm:$0xff] %v14094_v41  ;;  %v16704_v18 = vld [vmem:[#allocation43_spill] sm:$0xff]  ;;  %v5974_v9 = vrot.slane %v5972_v57, 5  ;;  %v5977_v50 = vshrl.u32 %v9600_v17, 16  ;;  %10500 = vmatmul.mubr.msk.bf16.gmra.mxu0 %vm685_vm3, %v10748_v22 }
 0x1e2   : > { %v14098_v53 = vadd.f32 %v16704_v18, %v13766_v52  ;;  %v5951_v45 = vsel %vm10963_vm4, %v5946_v35, %v5950_v21  ;;  %v14102_v58 = vpop.f32.mrf.mxu1  ;;  %v5960_v19 = vrot.slane %v5959_v1, 4  ;;  %v5980_v42 = vshll.u32 %v9600_v17, 16  ;;  %v14105_v41 = vpop.f32.mrf.mxu0  ;;  %v9603_v57 = vld [vmem:[%s10907_s28 + $0x54] sm:$0xf]  ;;  %10503 = vmatprep.mubr.msk.bf16.mxu0 %vm685_vm3, %v10749_v10  ;;  %v14123_v17 = vld [vmem:[%s10907_s28 + $0x58] sm:$0xf] }
 0x1e3   : > { %v5969_v34 = vor.u32 %v5968_v23, %v5964_v4  ;;  %16705 = vst [vmem:[#allocation56_spill] sm:$0xff] %v14102_v58  ;;  %v9639_v33 = vcombine.low %v5941_v61, %v5951_v45  ;;  %16706 = vst [vmem:[#allocation31_spill] sm:$0xff] %v14105_v41  ;;  %v16216_v18 = vshll.u32 %v14089_v59, 16  ;;  %v16217_v35 = vshrl.u32 %v14089_v59, 16 }
 0x1e4   : > { %v5996_v21 = vshll.u32 %v14092_v39, 16  ;;  %v14112_v23 = vpop.f32.mrf.mxu1  ;;  %v5965_v27 = vsel %vm10963_vm4, %v5960_v19, %v5964_v4  ;;  %v5979_v61 = vrot.slane %v5977_v50, 4  ;;  %v5982_v22 = vrot.slane %v5980_v42, 5  ;;  %v14125_v45 = vpop.f32.mrf.mxu0  ;;  %v14134_v19 = vld [vmem:[%s10907_s28 + $0x5c] sm:$0x1]  ;;  %v16710_v42 = vld [vmem:[#allocation46_spill] sm:$0xff] }
 0x1e5   : > { %v5970_v52 = vrot.slane %v5969_v34, 4  ;;  %16707 = vst [vmem:[#allocation11_spill] sm:$0xff] %v14112_v23  ;;  %10521 = vmatprep.mubr.msk.bf16.mxu1 %vm685_vm3, %v9639_v33  ;;  %v14120_v1 = vadd.f32 %v13673_v49, %v13782_v31  ;;  %16708 = vst [vmem:[#allocation50_spill] sm:$0xff] %v14125_v45  ;;  %v5988_v10 = vrot.slane %v16216_v18, 5  ;;  %v5992_v4 = vrot.slane %v16217_v35, 4 }
 0x1e6   : > { %v5998_v33 = vrot.slane %v5996_v21, 5  ;;  %v14136_v50 = vpop.f32.mrf.mxu1  ;;  %v5983_v31 = vor.u32 %v5982_v22, %v5979_v61  ;;  %v14140_v45 = vadd.f32 %v16710_v42, %v13791_v28  ;;  %v6001_v41 = vshrl.u32 %v9603_v57, 16  ;;  %v16713_v22 = vld [vmem:[#allocation12_spill] sm:$0xff] }
 0x1e7   : > { %v5975_v34 = vsel %vm10963_vm4, %v5970_v52, %v5974_v9  ;;  %16709 = vst [vmem:[#allocation64_spill] sm:$0xff] %v14136_v50  ;;  %v14142_v9 = vpop.f32.mrf.mxu0  ;;  %v10750_v52 = vld [vmem:[%s10907_s28 + $0x9c] sm:$0xff]   ;;  %v5993_v18 = vor.u32 %v5992_v4, %v5988_v10  ;;  %v6004_v23 = vshll.u32 %v9603_v57, 16  ;;  %v16218_v35 = vshll.u32 %v14123_v17, 16  ;;  %v10751_v50 = vld [vmem:[%s10907_s28 + $0xa8] sm:$0xff]  }
 0x1e8   : > { %v9640_v49 = vcombine.low %v5965_v27, %v5975_v34  ;;  %16711 = vst [vmem:[#allocation37_spill] sm:$0xff] %v14142_v9  ;;  %v16219_v21 = vshrl.u32 %v14123_v17, 16  ;;  %v14147_v58 = vpop.f32.mrf.mxu1  ;;  %v5984_v27 = vrot.slane %v5983_v31, 4  ;;  %v6003_v61 = vrot.slane %v6001_v41, 4  ;;  %v9606_v31 = vld [vmem:[%s10907_s28 + $0x60] sm:$0xf] }
 0x1e9   : > { %16712 = vst [vmem:[#allocation40_spill] sm:$0xff] %v14147_v58  ;;  %v6020_v28 = vshll.u32 %v14134_v19, 16  ;;  %v14153_v34 = vadd.f32 %v16713_v22, %v13811_v8  ;;  %v14155_v42 = vpop.f32.mrf.mxu0  ;;  %v5994_v4 = vrot.slane %v5993_v18, 4  ;;  %v6006_v57 = vrot.slane %v6004_v23, 5  ;;  %v16716_v22 = vld [vmem:[#allocation47_spill] sm:$0xff]  ;;  %v16718_v23 = vld [vmem:[#allocation52_spill] sm:$0xff]  ;;  %10504 = vmatmul.mubr.msk.bf16.gmra.mxu0 %vm685_vm3, %v10750_v52 }
 0x1ea   : > { %16714 = vst [vmem:[#allocation3_spill] sm:$0xff] %v14155_v42  ;;  %v6012_v9 = vrot.slane %v16218_v35, 5  ;;  %v6016_v58 = vrot.slane %v16219_v21, 4  ;;  %v14162_v16 = vpop.f32.mrf.mxu1  ;;  %10522 = vmatmul.mubr.msk.bf16.gmra.mxu1 %vm685_vm3, %v9640_v49  ;;  %v5989_v8 = vsel %vm10963_vm4, %v5984_v27, %v5988_v10  ;;  %v14169_v18 = vadd.f32 %v16716_v22, %v13815_v3  ;;  %v14176_v42 = vld [vmem:[%s10907_s28 + $0x64] sm:$0xf]  ;;  %v16725_v52 = vld [vmem:[#allocation17_spill] sm:$0xff]  ;;  %10507 = vmatprep.mubr.msk.bf16.mxu0 %vm685_vm3, %v10751_v50 }
 0x1eb   : > { %16715 = vst [vmem:[#allocation44_spill] sm:$0xff] %v14162_v16  ;;  %v6022_v41 = vrot.slane %v6020_v28, 5  ;;  %v14173_v35 = vadd.f32 %v16718_v23, %v13828_v36  ;;  %16719 = vst [vmem:[#allocation5_spill] sm:$0xff] %v14176_v42  ;;  %v14178_v21 = vpop.f32.mrf.mxu0  ;;  %v5999_v49 = vsel %vm10963_vm4, %v5994_v4, %v5998_v33  ;;  %v6007_v10 = vor.u32 %v6006_v57, %v6003_v61  ;;  %v16721_v28 = vld [vmem:[#allocation49_spill] sm:$0xff]  ;;  %v14188_v22 = vld [vmem:[%s10907_s28 + $0x68] sm:$0x1] }
 0x1ec   : > { %16717 = vst [vmem:[#allocation36_spill] sm:$0xff] %v14169_v18  ;;  %16720 = vst [vmem:[#allocation38_spill] sm:$0xff] %v14178_v21  ;;  %v6017_v27 = vor.u32 %v6016_v58, %v6012_v9  ;;  %v14185_v3 = vadd.f32 %v16721_v28, %v13832_v2  ;;  %v14190_v36 = vpop.f32.mrf.mxu1  ;;  %v16724_v23 = vld [vmem:[#allocation65_spill] sm:$0xff]  ;;  %v14198_v21 = vadd.f32 %v16725_v52, %v13822_v51  ;;  %v6025_v33 = vshrl.u32 %v9606_v31, 16 }
 0x1ed   : > { %16722 = vst [vmem:[#allocation43_spill] sm:$0xff] %v14188_v22  ;;  %16723 = vst [vmem:[#allocation46_spill] sm:$0xff] %v14190_v36  ;;  %v14194_v16 = vadd.f32 %v16724_v23, %v13799_v14  ;;  %v9641_v58 = vcombine.low %v5989_v8, %v5999_v49  ;;  %v14201_v2 = vpop.f32.mrf.mxu0  ;;  %v6008_v61 = vrot.slane %v6007_v10, 4  ;;  %v6028_v57 = vshll.u32 %v9606_v31, 16  ;;  %v9609_v14 = vld [vmem:[%s10907_s28 + $0x6c] sm:$0xf] }
 0x1ee   : > { %16726 = vst [vmem:[#allocation12_spill] sm:$0xff] %v14201_v2  ;;  %v6018_v4 = vrot.slane %v6017_v27, 4  ;;  %v14205_v23 = vpop.f32.mrf.mxu1  ;;  %v6027_v51 = vrot.slane %v6025_v33, 4  ;;  %v6044_v8 = vshll.u32 %v14188_v22, 16  ;;  %v16728_v49 = vld [vmem:[#allocation15_spill] sm:$0xff]  ;;  %v10752_v27 = vld [vmem:[%s10907_s28 + $0xb4] sm:$0xff]  }
 0x1ef   : > { %16727 = vst [vmem:[#allocation47_spill] sm:$0xff] %v14205_v23  ;;  %10525 = vmatprep.mubr.msk.bf16.mxu1 %vm685_vm3, %v9641_v58  ;;  %v14212_v52 = vadd.f32 %v16728_v49, %v13854_v38  ;;  %v14215_v10 = vld [vmem:[%s10907_s28 + $0x70] sm:$0xf]  ;;  %v14217_v31 = vpop.f32.mrf.mxu0  ;;  %v6013_v28 = vsel %vm10963_vm4, %v6008_v61, %v6012_v9  ;;  %v6030_v33 = vrot.slane %v6028_v57, 5  ;;  %v16731_v50 = vshll.u32 %v14176_v42, 16  ;;  %v10753_v49 = vld [vmem:[%s10907_s28 + $0xc0] sm:$0xff]  }
 0x1f0   : > { %16730 = vst [vmem:[#allocation49_spill] sm:$0xff] %v14217_v31  ;;  %v6023_v58 = vsel %vm10963_vm4, %v6018_v4, %v6022_v41  ;;  %v14227_v2 = vld [vmem:[%s10907_s28 + $0x74] sm:$0x1]  ;;  %v14229_v36 = vpop.f32.mrf.mxu1  ;;  %v6046_v22 = vrot.slane %v6044_v8, 5  ;;  %v14236_v9 = vadd.f32 %v13784_v7, %v13861_v60  ;;  %v6049_v4 = vshrl.u32 %v9609_v14, 16  ;;  %v16736_v7 = vld [vmem:[#allocation9_spill] sm:$0xff] }
 0x1f1   : > { %16729 = vst [vmem:[#allocation52_spill] sm:$0xff] %v14212_v52  ;;  %v6036_v23 = vrot.slane %v16731_v50, 5  ;;  %16732 = vst [vmem:[#allocation65_spill] sm:$0xff] %v14229_v36  ;;  %v9642_v38 = vcombine.low %v6013_v28, %v6023_v58  ;;  %v16733_v52 = vshrl.u32 %v14176_v42, 16  ;;  %v14238_v61 = vpop.f32.mrf.mxu0  ;;  %v6031_v41 = vor.u32 %v6030_v33, %v6027_v51  ;;  %10508 = vmatmul.mubr.msk.bf16.gmra.mxu0 %vm685_vm3, %v10752_v27 }
 0x1f2   : > { %16734 = vst [vmem:[#allocation17_spill] sm:$0xff] %v14238_v61  ;;  %v6052_v57 = vshll.u32 %v9609_v14, 16  ;;  %v16221_v50 = vshll.u32 %v14215_v10, 16  ;;  %v14241_v18 = vpop.f32.mrf.mxu1  ;;  %v6068_v8 = vshll.u32 %v14227_v2, 16  ;;  %v14248_v60 = vadd.f32 %v16736_v7, %v13874_v12  ;;  %10511 = vmatprep.mubr.msk.bf16.mxu0 %vm685_vm3, %v10753_v49  ;;  %v16743_v49 = vld [vmem:[#allocation25_spill] sm:$0xff] }
 0x1f3   : > { %v6040_v31 = vrot.slane %v16733_v52, 4  ;;  %16735 = vst [vmem:[#allocation15_spill] sm:$0xff] %v14241_v18  ;;  %10526 = vmatmul.mubr.msk.bf16.gmra.mxu1 %vm685_vm3, %v9642_v38  ;;  %v14250_v58 = vpop.f32.mrf.mxu0  ;;  %v6032_v14 = vrot.slane %v6031_v41, 4  ;;  %v6051_v51 = vrot.slane %v6049_v4, 4  ;;  %v16739_v52 = vld [vmem:[#allocation51_spill] sm:$0xff]  ;;  %v16740_v7 = vshrl.u32 %v14215_v10, 16 }
 0x1f4   : > { %16737 = vst [vmem:[#allocation9_spill] sm:$0xff] %v14250_v58  ;;  %v6054_v33 = vrot.slane %v6052_v57, 5  ;;  %v14255_v38 = vpop.f32.mrf.mxu1  ;;  %v14259_v18 = vadd.f32 %v16739_v52, %v13844_v63  ;;  %v16741_v41 = vld [vmem:[#allocation45_spill] sm:$0xff]  ;;  %v16862_v6 = vshll.u32 %v13881_v20, 16 }
 0x1f5   : > { %v6041_v28 = vor.u32 %v6040_v31, %v6036_v23  ;;  %v6060_v31 = vrot.slane %v16221_v50, 5  ;;  %16738 = vst [vmem:[#allocation66_spill] sm:$0xff] %v14255_v38  ;;  %v6064_v27 = vrot.slane %v16740_v7, 4  ;;  %v14266_v4 = vadd.f32 %v16741_v41, %v13878_v30  ;;  %v9612_v57 = vld [vmem:[%s10907_s28 + $0x78] sm:$0xf]  ;;  %v14269_v50 = vpop.f32.mrf.mxu0 }
 0x1f6   : > { %16742 = vst [vmem:[#allocation51_spill] sm:$0xff] %v14269_v50  ;;  %v6037_v63 = vsel %vm10963_vm4, %v6032_v14, %v6036_v23  ;;  %v6055_v52 = vor.u32 %v6054_v33, %v6051_v51  ;;  %v14275_v38 = vadd.f32 %v16743_v49, %v13892_v24  ;;  %v14282_v7 = vld [vmem:[%s10907_s28 + $0x7c] sm:$0xf]  ;;  %v14284_v30 = vpop.f32.mrf.mxu1  ;;  %v6070_v51 = vrot.slane %v6068_v8, 5  ;;  %v14293_v33 = vld [vmem:[%s10907_s28 + $0x80] sm:$0x1] }
 0x1f7   : > { %v6042_v12 = vrot.slane %v6041_v28, 4  ;;  %v14279_v28 = vadd.f32 %v13835_v40, %v13896_v15  ;;  %16745 = vst [vmem:[#allocation25_spill] sm:$0xff] %v14282_v7  ;;  %16746 = vst [vmem:[#allocation67_spill] sm:$0xff] %v14284_v30  ;;  %v16747_v41 = vld [vmem:[#allocation21_spill] sm:$0xff]  ;;  %v6065_v14 = vor.u32 %v6064_v27, %v6060_v31  ;;  %v10754_v40 = vld [vmem:[%s10907_s28 + $0xcc] sm:$0xff]   ;;  %v6073_v30 = vshrl.u32 %v9612_v57, 16 }
 0x1f8   : > { %v16748_v58 = vld [vmem:[#allocation13_spill] sm:$0xff]  ;;  %16749 = vst [vmem:[#allocation21_spill] sm:$0xff] %v14293_v33  ;;  %v6056_v15 = vrot.slane %v6055_v52, 4  ;;  %v16751_v50 = vld [vmem:[#allocation39_spill] sm:$0xff]  ;;  %v16224_v8 = vshll.u32 %v14282_v7, 16 }
 0x1f9   : > { %16744 = vst [vmem:[#allocation45_spill] sm:$0xff] %v14279_v28  ;;  %v14288_v61 = vadd.f32 %v16748_v58, %v16747_v41  ;;  %v6047_v23 = vsel %vm10963_vm4, %v6042_v12, %v6046_v22  ;;  %v14296_v24 = vld [vmem:[%s10907_s28 + $0x18] sm:$0xe]  ;;  %v7511_v36 = vsel %vm734_vm0, %v16751_v50, 0  ;;  %v14301_v28 = vpop.f32.mrf.mxu0  ;;  %v14303_v58 = vpop.f32.mrf.mxu1  ;;  %v6066_v41 = vrot.slane %v6065_v14, 4  ;;  %10512 = vmatmul.mubr.msk.bf16.gmra.mxu0 %vm685_vm3, %v10754_v40 }
 0x1fa   : > { %16750 = vst [vmem:[#allocation13_spill] sm:$0xff] %v14296_v24  ;;  %v9643_v49 = vcombine.low %v6037_v63, %v6047_v23  ;;  %16752 = vst [vmem:[#allocation39_spill] sm:$0xff] %v14301_v28  ;;  %10584 = vmatpush3.bf16.msra.mxu1 %v7511_v36  ;;  %v6076_v22 = vshll.u32 %v9612_v57, 16  ;;  %v16226_v12 = vshrl.u32 %v14282_v7, 16  ;;  %v6061_v27 = vsel %vm10963_vm4, %v6056_v15, %v6060_v31  ;;  %v16755_v28 = vld [vmem:[#allocation57_spill] sm:$0xff] }
 0x1fb   : > { %16753 = vst [vmem:[#allocation68_spill] sm:$0xff] %v14303_v58  ;;  %v6075_v50 = vrot.slane %v6073_v30, 4  ;;  %v6092_v63 = vshll.u32 %v14293_v33, 16  ;;  %v9685_v52 = vrot.slane %v14296_v24, 9  ;;  %v6071_v23 = vsel %vm10963_vm4, %v6066_v41, %v6070_v51  ;;  %v14319_v58 = vpop.f32.mrf.mxu1  ;;  %v14325_v51 = vld [vmem:[%s10907_s28 + $0x88] sm:$0xf]  ;;  %v14327_v41 = vpop.f32.mrf.mxu0 }
 0x1fc   : > { %10529 = vmatprep.mubr.msk.bf16.mxu1 %vm685_vm3, %v9643_v49  ;;  %v6078_v36 = vrot.slane %v6076_v22, 5  ;;  %v6084_v57 = vrot.slane %v16224_v8, 5  ;;  %v6088_v14 = vrot.slane %v16226_v12, 4  ;;  %v9615_v49 = vld [vmem:[%s10907_s28 + $0x84] sm:$0xf]  ;;  %16754 = vst [vmem:[#allocation69_spill] sm:$0xff] %v14319_v58  ;;  %v9644_v31 = vcombine.low %v6061_v27, %v6071_v23 }
 0x1fd   : > { %v6094_v30 = vrot.slane %v6092_v63, 5  ;;  %v6624_v15 = vrot.slane %v13881_v20, 5  ;;  %v6627_v24 = vrot.slane %v16755_v28, 5  ;;  %16756 = vst [vmem:[#allocation57_spill] sm:$0xff] %v14325_v51  ;;  %16757 = vst [vmem:[#allocation70_spill] sm:$0xff] %v14327_v41  ;;  %v16758_v33 = vld [vmem:[#allocation19_spill] sm:$0xff]  ;;  %v14345_v41 = vpop.f32.mrf.mxu1 }
 0x1fe   : > { %v6079_v22 = vor.u32 %v6078_v36, %v6075_v50  ;;  %v6089_v8 = vor.u32 %v6088_v14, %v6084_v57  ;;  %v14331_v12 = vadd.f32 %v16758_v33, %v13940_v56  ;;  %v16760_v58 = vld [vmem:[#allocation48_spill] sm:$0xff]  ;;  %v14338_v40 = vld [vmem:[%s10907_s28 + $0x8c] sm:$0x1]  ;;  %10530 = vmatmul.mubr.msk.bf16.gmra.mxu1 %vm685_vm3, %v9644_v31  ;;  %v6097_v23 = vshrl.u32 %v9615_v49, 16  ;;  %16763 = vst [vmem:[#allocation7_spill] sm:$0xff] %v14345_v41 }
 0x1ff   : > { %v14335_v7 = vadd.f32 %v16760_v58, %v13944_v48  ;;  %v6625_v27 = vsel %vm11337_vm7, %v9685_v52, %v6624_v15  ;;  %v6626_v63 = vrot.slane %v6624_v15, 4  ;;  %v6100_v50 = vshll.u32 %v9615_v49, 16  ;;  %v14353_v52 = vpop.f32.mrf.mxu0  ;;  %v14361_v33 = vpop.f32.mrf.mxu1  ;;  %v15128_v28 = vld [vmem:[%s10907_s28 + $0x80] sm:$0x3] }
 0x200   : > { %16759 = vst [vmem:[#allocation19_spill] sm:$0xff] %v14331_v12  ;;  %v6080_v36 = vrot.slane %v6079_v22, 4  ;;  %v6090_v14 = vrot.slane %v6089_v8, 4  ;;  %v16229_v56 = vshll.u32 %v14325_v51, 16  ;;  %v6099_v58 = vrot.slane %v6097_v23, 4  ;;  %16764 = vst [vmem:[#allocation71_spill] sm:$0xff] %v14353_v52 }
 0x201   : > { %16761 = vst [vmem:[#allocation48_spill] sm:$0xff] %v14335_v7  ;;  %v6628_v48 = vsel %vm11337_vm7, %v6626_v63, %v6627_v24  ;;  %v6102_v7 = vrot.slane %v6100_v50, 5  ;;  %v6116_v31 = vshll.u32 %v14338_v40, 16  ;;  %v14351_v12 = vld [vmem:[%s10907_s28 + $0x24] sm:$0xe]  ;;  %16765 = vst [vmem:[#allocation72_spill] sm:$0xff] %v14361_v33  ;;  %v14390_v33 = vpop.f32.mrf.mxu1 }
 0x202   : > { %v6085_v8 = vsel %vm10963_vm4, %v6080_v36, %v6084_v57  ;;  %v6095_v49 = vsel %vm10963_vm4, %v6090_v14, %v6094_v30  ;;  %v9702_v15 = vcombine.low %v6625_v27, %v6628_v48  ;;  %v6108_v22 = vrot.slane %v16229_v56, 5  ;;  %v16766_v24 = vld [vmem:[#allocation26_spill] sm:$0xff]  ;;  %v14369_v36 = vpop.f32.mrf.mxu0  ;;  %16777 = vst [vmem:[#allocation73_spill] sm:$0xff] %v14390_v33 }
 0x203   : > { %v16767_v63 = vld [vmem:[#allocation54_spill] sm:$0xff]  ;;  %v9645_v50 = vcombine.low %v6085_v8, %v6095_v49  ;;  %v6103_v41 = vor.u32 %v6102_v7, %v6099_v58  ;;  %v16768_v52 = vshrl.u32 %v14325_v51, 16  ;;  %16769 = vst [vmem:[#allocation26_spill] sm:$0xff] %v14369_v36  ;;  %v6118_v30 = vrot.slane %v6116_v31, 5  ;;  %v16770_v7 = vld [vmem:[#allocation28_spill] sm:$0xff]  ;;  %v16773_v49 = vld [vmem:[#allocation55_spill] sm:$0xff] }
 0x204   : > { %v14365_v23 = vadd.f32 %v16767_v63, %v16766_v24  ;;  %10551 = vmatprep.mubr.msk.bf16.mxu0 %vm685_vm3, %v9702_v15  ;;  %v9686_v27 = vrot.slane %v14351_v12, 9  ;;  %v6631_v14 = vrot.slane %v13919_v29, 5  ;;  %v6634_v48 = vrot.slane %v13931_v32, 5  ;;  %v9618_v31 = vld [vmem:[%s10907_s28 + $0x90] sm:$0xf]  ;;  %v14388_v56 = vpop.f32.mrf.mxu0  ;;  %v16782_v36 = vld [vmem:[#allocation58_spill] sm:$0xff] }
 0x205   : > { %v6112_v57 = vrot.slane %v16768_v52, 4  ;;  %10533 = vmatprep.mubr.msk.bf16.mxu1 %vm685_vm3, %v9645_v50  ;;  %v6104_v24 = vrot.slane %v6103_v41, 4  ;;  %v14378_v58 = vadd.f32 %v16770_v7, %v13962_v47  ;;  %v16772_v52 = vld [vmem:[#allocation10_spill] sm:$0xff]  ;;  %v14386_v15 = vld [vmem:[%s10907_s28 + $0x94] sm:$0xf]  ;;  %16776 = vst [vmem:[#allocation55_spill] sm:$0xff] %v14388_v56 }
 0x206   : > { %v14382_v63 = vadd.f32 %v16773_v49, %v16772_v52  ;;  %16775 = vst [vmem:[#allocation10_spill] sm:$0xff] %v14386_v15  ;;  %v6632_v32 = vsel %vm11337_vm7, %v9686_v27, %v6631_v14  ;;  %v6633_v41 = vrot.slane %v6631_v14, 4  ;;  %v16778_v50 = vld [vmem:[#allocation32_spill] sm:$0xff]  ;;  %v16781_v7 = vld [vmem:[#allocation61_spill] sm:$0xff]  ;;  %v16785_v27 = vld [vmem:[#allocation14_spill] sm:$0xff] }
 0x207   : > { %v6113_v8 = vor.u32 %v6112_v57, %v6108_v22  ;;  %16771 = vst [vmem:[#allocation54_spill] sm:$0xff] %v14378_v58  ;;  %v16779_v57 = vld [vmem:[#allocation24_spill] sm:$0xff]  ;;  %v14400_v52 = vadd.f32 %v16782_v36, %v16781_v7  ;;  %v14403_v49 = vld [vmem:[%s10907_s28 + $0x98] sm:$0x1]  ;;  %v6109_v33 = vsel %vm10963_vm4, %v6104_v24, %v6108_v22  ;;  %v7965_v14 = vsel %vm734_vm0, %v16785_v27, 0  ;;  %v14425_v27 = vpop.f32.mrf.mxu1 }
 0x208   : > { %16774 = vst [vmem:[#allocation28_spill] sm:$0xff] %v14382_v63  ;;  %v14396_v47 = vadd.f32 %v16779_v57, %v16778_v50  ;;  %v16784_v63 = vld [vmem:[#allocation20_spill] sm:$0xff]  ;;  %v6635_v50 = vsel %vm11337_vm7, %v6633_v41, %v6634_v48  ;;  %v6121_v57 = vshrl.u32 %v9618_v31, 16  ;;  %v6124_v36 = vshll.u32 %v9618_v31, 16  ;;  %16787 = vst [vmem:[#allocation58_spill] sm:$0xff] %v14425_v27 }
 0x209   : > { %16783 = vst [vmem:[#allocation24_spill] sm:$0xff] %v14400_v52  ;;  %v14407_v58 = vadd.f32 %v16784_v63, %v14003_v37  ;;  %v6114_v56 = vrot.slane %v6113_v8, 4  ;;  %v16232_v7 = vshll.u32 %v14386_v15, 16  ;;  %v14417_v52 = vld [vmem:[%s10907_s28 + $0x30] sm:$0xe]  ;;  %v9703_v63 = vcombine.low %v6632_v32, %v6635_v50  ;;  %v14423_v8 = vpop.f32.mrf.mxu0 }
 0x20a   : > { %16780 = vst [vmem:[#allocation32_spill] sm:$0xff] %v14396_v47  ;;  %v16233_v22 = vshrl.u32 %v14386_v15, 16  ;;  %v6140_v24 = vshll.u32 %v14403_v49, 16  ;;  %16786 = vst [vmem:[#allocation61_spill] sm:$0xff] %v14423_v8  ;;  %v6123_v41 = vrot.slane %v6121_v57, 4  ;;  %v6126_v31 = vrot.slane %v6124_v36, 5 }
 0x20b   : > { %v6119_v37 = vsel %vm10963_vm4, %v6114_v56, %v6118_v30  ;;  %v6132_v47 = vrot.slane %v16232_v7, 5  ;;  %v9621_v29 = vld [vmem:[%s10907_s28 + $0x9c] sm:$0xf]  ;;  %10552 = vmatmul.mubr.msk.bf16.vlgmr.msra.gmra.mxu0 %vm685_vm3, %v9703_v63  ;;  %v9687_v32 = vrot.slane %v14417_v52, 9  ;;  %v6638_v50 = vrot.slane %v13985_v44, 5  ;;  %v16789_v36 = vld [vmem:[#allocation23_spill] sm:$0xff]  ;;  %v14453_v44 = vpop.f32.mrf.mxu0 }
 0x20c   : > { %v9646_v48 = vcombine.low %v6109_v33, %v6119_v37  ;;  %v6136_v56 = vrot.slane %v16233_v22, 4  ;;  %v6142_v30 = vrot.slane %v6140_v24, 5  ;;  %v14436_v8 = vld [vmem:[%s10907_s28 + $0xa0] sm:$0xf]  ;;  %10618 = vmatpush3.bf16.msra.mxu0 %v7965_v14  ;;  %v6127_v33 = vor.u32 %v6126_v31, %v6123_v41  ;;  %v16791_v63 = vld [vmem:[#allocation16_spill] sm:$0xff]  ;;  %v14455_v41 = vpop.f32.mrf.mxu1 }
 0x20d   : > { %16788 = vst [vmem:[#allocation20_spill] sm:$0xff] %v14436_v8  ;;  %v6641_v57 = vrot.slane %v13996_v43, 5  ;;  %v14442_v37 = vadd.f32 %v16789_v36, %v14030_v5  ;;  %v14446_v24 = vadd.f32 %v16791_v63, %v14043_v62  ;;  %v14449_v7 = vld [vmem:[%s10907_s28 + $0xa4] sm:$0x1]  ;;  %v6639_v27 = vsel %vm11337_vm7, %v9687_v32, %v6638_v50  ;;  %16793 = vst [vmem:[#allocation16_spill] sm:$0xff] %v14453_v44 }
 0x20e   : > { %10534 = vmatmul.mubr.msk.bf16.gmra.mxu1 %vm685_vm3, %v9646_v48  ;;  %v6137_v22 = vor.u32 %v6136_v56, %v6132_v47  ;;  %v6640_v48 = vrot.slane %v6638_v50, 4  ;;  %v6145_v14 = vshrl.u32 %v9621_v29, 16  ;;  %16794 = vst [vmem:[#allocation74_spill] sm:$0xff] %v14455_v41  ;;  %v6128_v43 = vrot.slane %v6127_v33, 4  ;;  %v14460_v62 = vld [vmem:[%s10907_s28 + $0x3c] sm:$0xe]  ;;  %v14465_v50 = vpop.f32.mrf.mxu0  ;;  %v14467_v44 = vpop.f32.mrf.mxu1 }
 0x20f   : > { %16790 = vst [vmem:[#allocation14_spill] sm:$0xff] %v14442_v37  ;;  %16792 = vst [vmem:[#allocation23_spill] sm:$0xff] %v14446_v24  ;;  %v6148_v31 = vshll.u32 %v9621_v29, 16  ;;  %v6164_v32 = vshll.u32 %v14449_v7, 16  ;;  %v16797_v36 = vshll.u32 %v14436_v8, 16 }
 0x210   : > { %v6138_v63 = vrot.slane %v6137_v22, 4  ;;  %v6642_v56 = vsel %vm11337_vm7, %v6640_v48, %v6641_v57  ;;  %v6147_v24 = vrot.slane %v6145_v14, 4  ;;  %16795 = vst [vmem:[#allocation75_spill] sm:$0xff] %v14465_v50  ;;  %16796 = vst [vmem:[#allocation76_spill] sm:$0xff] %v14467_v44  ;;  %v6133_v29 = vsel %vm10963_vm4, %v6128_v43, %v6132_v47  ;;  %v14478_v37 = vpop.f32.mrf.mxu1 }
 0x211   : > { %v9704_v33 = vcombine.low %v6639_v27, %v6642_v56  ;;  %v6150_v5 = vrot.slane %v6148_v31, 5  ;;  %v6156_v41 = vrot.slane %v16797_v36, 5  ;;  %v16798_v57 = vshrl.u32 %v14436_v8, 16  ;;  %16799 = vst [vmem:[#allocation77_spill] sm:$0xff] %v14478_v37  ;;  %v9624_v31 = vld [vmem:[%s10907_s28 + $0xa8] sm:$0xf] }
 0x212   : > { %v6143_v22 = vsel %vm10963_vm4, %v6138_v63, %v6142_v30  ;;  %v6166_v14 = vrot.slane %v6164_v32, 5  ;;  %v9688_v50 = vrot.slane %v14460_v62, 9  ;;  %v6645_v27 = vrot.slane %v14019_v55, 5  ;;  %v16800_v30 = vld [vmem:[#allocation60_spill] sm:$0xff]  ;;  %v16801_v56 = vld [vmem:[#allocation30_spill] sm:$0xff] }
 0x213   : > { %v6160_v48 = vrot.slane %v16798_v57, 4  ;;  %v9647_v44 = vcombine.low %v6133_v29, %v6143_v22  ;;  %10555 = vmatprep.mubr.msk.bf16.mxu0 %vm685_vm3, %v9704_v33  ;;  %v6151_v47 = vor.u32 %v6150_v5, %v6147_v24  ;;  %v6648_v43 = vrot.slane %v14033_v46, 5  ;;  %v16802_v29 = vld [vmem:[#allocation29_spill] sm:$0xff]  ;;  %v14497_v24 = vld [vmem:[%s10907_s28 + $0xac] sm:$0xf]  ;;  %v14499_v5 = vpop.f32.mrf.mxu0  ;;  %v14501_v46 = vpop.f32.mrf.mxu1 }
 0x214   : > { %v14486_v63 = vadd.f32 %v16800_v30, %v14055_v13  ;;  %v14490_v32 = vadd.f32 %v16801_v56, %v14072_v11  ;;  %v14494_v22 = vadd.f32 %v16802_v29, %v14082_v54  ;;  %16803 = vst [vmem:[#allocation60_spill] sm:$0xff] %v14499_v5  ;;  %16804 = vst [vmem:[#allocation30_spill] sm:$0xff] %v14501_v46  ;;  %v6647_v57 = vrot.slane %v6645_v27, 4  ;;  %v16805_v11 = vld [vmem:[#allocation27_spill] sm:$0xff]  ;;  %v16806_v54 = vld [vmem:[#allocation4_spill] sm:$0xff] }
 0x215   : > { %v6161_v36 = vor.u32 %v6160_v48, %v6156_v41  ;;  %10537 = vmatprep.mubr.msk.bf16.mxu1 %vm685_vm3, %v9647_v44  ;;  %v6152_v33 = vrot.slane %v6151_v47, 4  ;;  %v6646_v13 = vsel %vm11337_vm7, %v9688_v50, %v6645_v27  ;;  %v14508_v48 = vadd.f32 %v16805_v11, %v14086_v25  ;;  %v16807_v56 = vld [vmem:[#allocation18_spill] sm:$0xff]  ;;  %v14519_v37 = vld [vmem:[%s10907_s28 + $0xb0] sm:$0x1]  ;;  %v14529_v11 = vpop.f32.mrf.mxu1  ;;  %v14534_v5 = vpop.f32.mrf.mxu0 }
 0x216   : > { %v14512_v30 = vadd.f32 %v16806_v54, %v14066_v0  ;;  %v14516_v29 = vadd.f32 %v16807_v56, %v14098_v53  ;;  %v6169_v44 = vshrl.u32 %v9624_v31, 16  ;;  %v6649_v25 = vsel %vm11337_vm7, %v6647_v57, %v6648_v43  ;;  %v14527_v0 = vld [vmem:[%s10907_s28 + $0x48] sm:$0xe]  ;;  %16808 = vst [vmem:[#allocation29_spill] sm:$0xff] %v14529_v11  ;;  %16809 = vst [vmem:[#allocation27_spill] sm:$0xff] %v14534_v5 }
 0x217   : > { %v6162_v46 = vrot.slane %v6161_v36, 4  ;;  %v6157_v50 = vsel %vm10963_vm4, %v6152_v33, %v6156_v41  ;;  %v6172_v47 = vshll.u32 %v9624_v31, 16  ;;  %v16236_v27 = vshll.u32 %v14497_v24, 16  ;;  %v9627_v57 = vld [vmem:[%s10907_s28 + $0xb4] sm:$0xf]  ;;  %v14540_v11 = vpop.f32.mrf.mxu1 }
 0x218   : > { %v9705_v36 = vcombine.low %v6646_v13, %v6649_v25  ;;  %v6171_v54 = vrot.slane %v6169_v44, 4  ;;  %v16237_v56 = vshrl.u32 %v14497_v24, 16  ;;  %v6188_v31 = vshll.u32 %v14519_v37, 16  ;;  %16810 = vst [vmem:[#allocation4_spill] sm:$0xff] %v14540_v11 }
 0x219   : > { %v6167_v53 = vsel %vm10963_vm4, %v6162_v46, %v6166_v14  ;;  %v6174_v33 = vrot.slane %v6172_v47, 5  ;;  %v6180_v43 = vrot.slane %v16236_v27, 5  ;;  %v9689_v46 = vrot.slane %v14527_v0, 9 }
 0x21a   : > { %v9648_v41 = vcombine.low %v6157_v50, %v6167_v53  ;;  %10556 = vmatmul.mubr.msk.bf16.gmra.mxu0 %vm685_vm3, %v9705_v36  ;;  %v6184_v14 = vrot.slane %v16237_v56, 4  ;;  %v6652_v13 = vrot.slane %v14089_v59, 5  ;;  %v6655_v44 = vrot.slane %v14092_v39, 5  ;;  %v14549_v50 = vld [vmem:[%s10907_s28 + $0xb8] sm:$0xf]  ;;  %v16813_v36 = vld [vmem:[#allocation34_spill] sm:$0xff] }
 0x21b   : > { %16811 = vst [vmem:[#allocation18_spill] sm:$0xff] %v14549_v50  ;;  %v6175_v25 = vor.u32 %v6174_v33, %v6171_v54  ;;  %v6190_v47 = vrot.slane %v6188_v31, 5  ;;  %v14554_v53 = vadd.f32 %v14045_v26, %v14120_v1  ;;  %v14558_v27 = vadd.f32 %v16813_v36, %v14140_v45  ;;  %v14561_v56 = vld [vmem:[%s10907_s28 + $0xbc] sm:$0x1]  ;;  %v14567_v54 = vpop.f32.mrf.mxu1  ;;  %v14572_v45 = vld [vmem:[%s10907_s28 + $0x54] sm:$0xe] }
 0x21c   : > { %10538 = vmatmul.mubr.msk.bf16.gmra.mxu1 %vm685_vm3, %v9648_v41  ;;  %v6185_v11 = vor.u32 %v6184_v14, %v6180_v43  ;;  %v6653_v39 = vsel %vm11337_vm7, %v9689_v46, %v6652_v13  ;;  %v6654_v5 = vrot.slane %v6652_v13, 4  ;;  %v6193_v59 = vshrl.u32 %v9627_v57, 16  ;;  %v14565_v41 = vpop.f32.mrf.mxu0  ;;  %16816 = vst [vmem:[#allocation80_spill] sm:$0xff] %v14567_v54 }
 0x21d   : > { %16812 = vst [vmem:[#allocation78_spill] sm:$0xff] %v14554_v53  ;;  %16814 = vst [vmem:[#allocation34_spill] sm:$0xff] %v14558_v27  ;;  %v6176_v33 = vrot.slane %v6175_v25, 4  ;;  %v6196_v31 = vshll.u32 %v9627_v57, 16  ;;  %v16240_v26 = vshll.u32 %v14549_v50, 16  ;;  %v6212_v46 = vshll.u32 %v14561_v56, 16 }
 0x21e   : > { %16815 = vst [vmem:[#allocation79_spill] sm:$0xff] %v14565_v41  ;;  %v6186_v36 = vrot.slane %v6185_v11, 4  ;;  %v6656_v14 = vsel %vm11337_vm7, %v6654_v5, %v6655_v44  ;;  %v6195_v27 = vrot.slane %v6193_v59, 4  ;;  %v14577_v13 = vpop.f32.mrf.mxu0  ;;  %v16818_v41 = vld [vmem:[#allocation63_spill] sm:$0xff]  ;;  %v16819_v5 = vshrl.u32 %v14549_v50, 16 }
 0x21f   : > { %16817 = vst [vmem:[#allocation81_spill] sm:$0xff] %v14577_v13  ;;  %v6181_v25 = vsel %vm10963_vm4, %v6176_v33, %v6180_v43  ;;  %v9706_v57 = vcombine.low %v6653_v39, %v6656_v14  ;;  %v6198_v54 = vrot.slane %v6196_v31, 5  ;;  %v6204_v1 = vrot.slane %v16240_v26, 5  ;;  %v14594_v43 = vpop.f32.mrf.mxu1  ;;  %v9630_v31 = vld [vmem:[%s10907_s28 + $0xc0] sm:$0xf]  ;;  %v16822_v14 = vld [vmem:[#allocation53_spill] sm:$0xff] }
 0x220   : > { %v14585_v11 = vadd.f32 %v16818_v41, %v14194_v16  ;;  %v6191_v59 = vsel %vm10963_vm4, %v6186_v36, %v6190_v47  ;;  %v6208_v44 = vrot.slane %v16819_v5, 4  ;;  %v9690_v13 = vrot.slane %v14572_v45, 9  ;;  %v14592_v53 = vpop.f32.mrf.mxu0  ;;  %16821 = vst [vmem:[#allocation82_spill] sm:$0xff] %v14594_v43  ;;  %v16823_v26 = vld [vmem:[#allocation6_spill] sm:$0xff] }
 0x221   : > { %16820 = vst [vmem:[#allocation63_spill] sm:$0xff] %v14592_v53  ;;  %v9649_v39 = vcombine.low %v6181_v25, %v6191_v59  ;;  %10559 = vmatprep.mubr.msk.bf16.mxu0 %vm685_vm3, %v9706_v57  ;;  %v6199_v33 = vor.u32 %v6198_v54, %v6195_v27  ;;  %v6659_v16 = vrot.slane %v14123_v17, 5  ;;  %v6662_v41 = vrot.slane %v14134_v19, 5  ;;  %v14609_v25 = vld [vmem:[%s10907_s28 + $0xc4] sm:$0xf] }
 0x222   : > { %v6209_v47 = vor.u32 %v6208_v44, %v6204_v1  ;;  %v6214_v36 = vrot.slane %v6212_v46, 5  ;;  %v14602_v5 = vadd.f32 %v16822_v14, %v14153_v34  ;;  %v14606_v53 = vadd.f32 %v16823_v26, %v14173_v35  ;;  %16825 = vst [vmem:[#allocation6_spill] sm:$0xff] %v14609_v25  ;;  %v16826_v46 = vld [vmem:[#allocation35_spill] sm:$0xff]  ;;  %v16829_v26 = vld [vmem:[#allocation36_spill] sm:$0xff]  ;;  %v16830_v44 = vld [vmem:[#allocation62_spill] sm:$0xff]  ;;  %v14629_v43 = vpop.f32.mrf.mxu0 }
 0x223   : > { %10541 = vmatprep.mubr.msk.bf16.mxu1 %vm685_vm3, %v9649_v39  ;;  %v6200_v27 = vrot.slane %v6199_v33, 4  ;;  %v6660_v19 = vsel %vm11337_vm7, %v9690_v13, %v6659_v16  ;;  %v6661_v54 = vrot.slane %v6659_v16, 4  ;;  %v14616_v57 = vadd.f32 %v16826_v46, %v14185_v3  ;;  %v16828_v34 = vld [vmem:[#allocation59_spill] sm:$0xff]  ;;  %16832 = vst [vmem:[#allocation36_spill] sm:$0xff] %v14629_v43  ;;  %v14631_v13 = vpop.f32.mrf.mxu1  ;;  %v14639_v46 = vld [vmem:[%s10907_s28 + $0x60] sm:$0xe] }
 0x224   : > { %16824 = vst [vmem:[#allocation53_spill] sm:$0xff] %v14606_v53  ;;  %v14620_v59 = vadd.f32 %v16828_v34, %v14198_v21  ;;  %v6210_v35 = vrot.slane %v6209_v47, 4  ;;  %v14624_v14 = vadd.f32 %v16830_v44, %v16829_v26  ;;  %v14627_v39 = vld [vmem:[%s10907_s28 + $0xc8] sm:$0x1]  ;;  %v6217_v33 = vshrl.u32 %v9630_v31, 16  ;;  %16833 = vst [vmem:[#allocation62_spill] sm:$0xff] %v14631_v13 }
 0x225   : > { %16827 = vst [vmem:[#allocation35_spill] sm:$0xff] %v14616_v57  ;;  %16831 = vst [vmem:[#allocation59_spill] sm:$0xff] %v14627_v39  ;;  %v6205_v3 = vsel %vm10963_vm4, %v6200_v27, %v6204_v1  ;;  %v6663_v21 = vsel %vm11337_vm7, %v6661_v54, %v6662_v41  ;;  %v6220_v16 = vshll.u32 %v9630_v31, 16  ;;  %v16241_v47 = vshll.u32 %v14609_v25, 16  ;;  %v14644_v13 = vpop.f32.mrf.mxu1  ;;  %v9633_v27 = vld [vmem:[%s10907_s28 + $0xcc] sm:$0xf] }
 0x226   : > { %16834 = vst [vmem:[#allocation83_spill] sm:$0xff] %v14639_v46  ;;  %v6215_v34 = vsel %vm10963_vm4, %v6210_v35, %v6214_v36  ;;  %v9707_v26 = vcombine.low %v6660_v19, %v6663_v21  ;;  %v6219_v44 = vrot.slane %v6217_v33, 4  ;;  %v16242_v43 = vshrl.u32 %v14609_v25, 16  ;;  %16835 = vst [vmem:[#allocation84_spill] sm:$0xff] %v14644_v13  ;;  %v16836_v35 = vld [vmem:[#allocation43_spill] sm:$0xff]  ;;  %v14659_v21 = vpop.f32.mrf.mxu0 }
 0x227   : > { %v9650_v57 = vcombine.low %v6205_v3, %v6215_v34  ;;  %v6222_v1 = vrot.slane %v6220_v16, 5  ;;  %v6228_v41 = vrot.slane %v16241_v47, 5  ;;  %v6236_v31 = vshll.u32 %v14627_v39, 16  ;;  %v14657_v3 = vld [vmem:[%s10907_s28 + $0xd0] sm:$0xf]  ;;  %16838 = vst [vmem:[#allocation85_spill] sm:$0xff] %v14659_v21  ;;  %v14675_v25 = vpop.f32.mrf.mxu1 }
 0x228   : > { %10560 = vmatmul.mubr.msk.bf16.gmra.mxu0 %vm685_vm3, %v9707_v26  ;;  %v6232_v36 = vrot.slane %v16242_v43, 4  ;;  %v9691_v19 = vrot.slane %v14639_v46, 9  ;;  %v6666_v54 = vrot.slane %v14176_v42, 5  ;;  %v6669_v33 = vrot.slane %v16836_v35, 5  ;;  %16837 = vst [vmem:[#allocation43_spill] sm:$0xff] %v14657_v3  ;;  %v16839_v16 = vld [vmem:[#allocation56_spill] sm:$0xff] }
 0x229   : > { %10542 = vmatmul.mubr.msk.bf16.gmra.mxu1 %vm685_vm3, %v9650_v57  ;;  %v14664_v34 = vadd.f32 %v16839_v16, %v14259_v18  ;;  %v16840_v26 = vld [vmem:[#allocation33_spill] sm:$0xff]  ;;  %v6223_v43 = vor.u32 %v6222_v1, %v6219_v44  ;;  %v6238_v13 = vrot.slane %v6236_v31, 5  ;;  %v14671_v42 = vld [vmem:[%s10907_s28 + $0xd4] sm:$0x1]  ;;  %v6241_v39 = vshrl.u32 %v9633_v27, 16  ;;  %v14682_v44 = vpop.f32.mrf.mxu0 }
 0x22a   : > { %v14668_v47 = vadd.f32 %v16840_v26, %v14288_v61  ;;  %16841 = vst [vmem:[#allocation56_spill] sm:$0xff] %v14671_v42  ;;  %v6233_v35 = vor.u32 %v6232_v36, %v6228_v41  ;;  %v6667_v46 = vsel %vm11337_vm7, %v9691_v19, %v6666_v54  ;;  %v6668_v21 = vrot.slane %v6666_v54, 4  ;;  %16842 = vst [vmem:[#allocation33_spill] sm:$0xff] %v14675_v25  ;;  %v14680_v61 = vld [vmem:[%s10907_s28 + $0x6c] sm:$0xe]  ;;  %v16844_v25 = vld [vmem:[#allocation52_spill] sm:$0xff] }
 0x22b   : > { %v6224_v57 = vrot.slane %v6223_v43, 4  ;;  %v6244_v53 = vshll.u32 %v9633_v27, 16  ;;  %v16251_v18 = vshll.u32 %v14657_v3, 16  ;;  %16843 = vst [vmem:[#allocation86_spill] sm:$0xff] %v14682_v44  ;;  %v6243_v36 = vrot.slane %v6241_v39, 4 }
 0x22c   : > { %v6234_v1 = vrot.slane %v6233_v35, 4  ;;  %v6670_v31 = vsel %vm11337_vm7, %v6668_v21, %v6669_v33  ;;  %v6260_v19 = vshll.u32 %v14671_v42, 16  ;;  %v16845_v35 = vld [vmem:[#allocation11_spill] sm:$0xff]  ;;  %v16846_v39 = vshrl.u32 %v14657_v3, 16  ;;  %v14700_v42 = vpop.f32.mrf.mxu1 }
 0x22d   : > { %v6229_v43 = vsel %vm10963_vm4, %v6224_v57, %v6228_v41  ;;  %v9708_v27 = vcombine.low %v6667_v46, %v6670_v31  ;;  %v6246_v54 = vrot.slane %v6244_v53, 5  ;;  %v6252_v26 = vrot.slane %v16251_v18, 5  ;;  %16847 = vst [vmem:[#allocation52_spill] sm:$0xff] %v14700_v42  ;;  %v16851_v18 = vld [vmem:[#allocation64_spill] sm:$0xff]  ;;  %v16855_v42 = vld [vmem:[#allocation37_spill] sm:$0xff] }
 0x22e   : > { %v6239_v16 = vsel %vm10963_vm4, %v6234_v1, %v6238_v13  ;;  %v14695_v44 = vadd.f32 %v16845_v35, %v16844_v25  ;;  %v6256_v33 = vrot.slane %v16846_v39, 4  ;;  %v9692_v21 = vrot.slane %v14680_v61, 9  ;;  %v14706_v13 = vld [vmem:[%s10907_s28 + $0x78] sm:$0xe]  ;;  %v14708_v1 = vpop.f32.mrf.mxu0  ;;  %v16850_v25 = vld [vmem:[#allocation31_spill] sm:$0xff] }
 0x22f   : > { %v9651_v41 = vcombine.low %v6229_v43, %v6239_v16  ;;  %10563 = vmatprep.mubr.msk.bf16.mxu0 %vm685_vm3, %v9708_v27  ;;  %v6247_v53 = vor.u32 %v6246_v54, %v6243_v36  ;;  %v6673_v46 = vrot.slane %v14215_v10, 5  ;;  %v6676_v57 = vrot.slane %v14227_v2, 5  ;;  %16848 = vst [vmem:[#allocation11_spill] sm:$0xff] %v14706_v13  ;;  %16849 = vst [vmem:[#allocation87_spill] sm:$0xff] %v14708_v1  ;;  %v16852_v27 = vld [vmem:[#allocation50_spill] sm:$0xff] }
 0x230   : > { %v14712_v31 = vadd.f32 %v16850_v25, %v14236_v9  ;;  %v6257_v35 = vor.u32 %v6256_v33, %v6252_v26  ;;  %v6262_v39 = vrot.slane %v6260_v19, 5  ;;  %v14716_v16 = vadd.f32 %v16851_v18, %v14248_v60  ;;  %v16853_v33 = vld [vmem:[#allocation40_spill] sm:$0xff]  ;;  %v16854_v25 = vld [vmem:[#allocation45_spill] sm:$0xff] }
 0x231   : > { %10545 = vmatprep.mubr.msk.bf16.mxu1 %vm685_vm3, %v9651_v41  ;;  %v6248_v36 = vrot.slane %v6247_v53, 4  ;;  %v6674_v2 = vsel %vm11337_vm7, %v9692_v21, %v6673_v46  ;;  %v6675_v43 = vrot.slane %v6673_v46, 4  ;;  %v14723_v54 = vadd.f32 %v16852_v27, %v14266_v4  ;;  %v14734_v41 = vpop.f32.mrf.mxu1  ;;  %v16857_v53 = vld [vmem:[#allocation25_spill] sm:$0xff] }
 0x232   : > { %v6258_v9 = vrot.slane %v6257_v35, 4  ;;  %v14727_v19 = vadd.f32 %v16853_v33, %v14275_v38  ;;  %v14731_v60 = vadd.f32 %v16855_v42, %v16854_v25  ;;  %v9693_v18 = vrot.slane %v14706_v13, 9  ;;  %16856 = vst [vmem:[#allocation31_spill] sm:$0xff] %v14734_v41  ;;  %v16858_v35 = vld [vmem:[#allocation21_spill] sm:$0xff]  ;;  %v14743_v38 = vld [vmem:[%s10907_s28 + $0x20] sm:$0x3]  ;;  %v14745_v33 = vpop.f32.mrf.mxu0 }
 0x233   : > { %v6253_v21 = vsel %vm10963_vm4, %v6248_v36, %v6252_v26  ;;  %v6677_v4 = vsel %vm11337_vm7, %v6675_v43, %v6676_v57  ;;  %v6680_v46 = vrot.slane %v16857_v53, 5  ;;  %v6683_v27 = vrot.slane %v16858_v35, 5  ;;  %16859 = vst [vmem:[#allocation64_spill] sm:$0xff] %v14745_v33  ;;  %v16860_v41 = vld [vmem:[#allocation13_spill] sm:$0xff] }
 0x234   : > { %v6263_v42 = vsel %vm10963_vm4, %v6258_v9, %v6262_v39  ;;  %v9709_v25 = vcombine.low %v6674_v2, %v6677_v4  ;;  %v7045_v1 = vshrl.u32 %v16860_v41, 16  ;;  %v7048_v26 = vshll.u32 %v16860_v41, 16  ;;  %v14760_v9 = vld [vmem:[%s10907_s28 + $0x84] sm:$0xe]  ;;  %v14762_v41 = vpop.f32.mrf.mxu1  ;;  %v16866_v4 = vld [vmem:[#allocation3_spill] sm:$0xff] }
 0x235   : > { %v9652_v36 = vcombine.low %v6253_v21, %v6263_v42  ;;  %v6681_v57 = vsel %vm11337_vm7, %v9693_v18, %v6680_v46  ;;  %v6682_v43 = vrot.slane %v6680_v46, 4  ;;  %v16861_v35 = vshrl.u32 %v13881_v20, 16  ;;  %16863 = vst [vmem:[#allocation50_spill] sm:$0xff] %v14760_v9  ;;  %16864 = vst [vmem:[#allocation40_spill] sm:$0xff] %v14762_v41  ;;  %v16865_v18 = vld [vmem:[#allocation44_spill] sm:$0xff]  ;;  %v14776_v42 = vpop.f32.mrf.mxu0 }
 0x236   : > { %10564 = vmatmul.mubr.msk.bf16.gmra.mxu0 %vm685_vm3, %v9709_v25  ;;  %v7047_v13 = vrot.slane %v7045_v1, 5  ;;  %v7050_v33 = vrot.slane %v7048_v26, 6  ;;  %v7054_v39 = vrot.slane %v16862_v6, 6  ;;  %v7059_v2 = vshrl.u32 %v14743_v38, 16  ;;  %16868 = vst [vmem:[#allocation37_spill] sm:$0xff] %v14776_v42 }
 0x237   : > { %v7053_v53 = vrot.slane %v16861_v35, 5  ;;  %10546 = vmatmul.mubr.msk.bf16.gmra.mxu1 %vm685_vm3, %v9652_v36  ;;  %v14767_v21 = vadd.f32 %v16865_v18, %v14365_v23  ;;  %v14771_v46 = vadd.f32 %v16866_v4, %v14407_v58  ;;  %v6684_v20 = vsel %vm11337_vm7, %v6682_v43, %v6683_v27  ;;  %v14781_v4 = vpop.f32.mrf.mxu0  ;;  %v14785_v41 = vld [vmem:[%s10907_s28 + $0x2c] sm:$0x3] }
 0x238   : > { %v7062_v1 = vshll.u32 %v14743_v38, 16  ;;  %v9710_v25 = vcombine.low %v6681_v57, %v6684_v20  ;;  %v7051_v26 = vor.u32 %v7050_v33, %v7047_v13  ;;  %v7061_v36 = vrot.slane %v7059_v2, 5  ;;  %16869 = vst [vmem:[#allocation21_spill] sm:$0xff] %v14781_v4  ;;  %16870 = vst [vmem:[#allocation13_spill] sm:$0xff] %v14785_v41  ;;  %v16872_v2 = vld [vmem:[#allocation22_spill] sm:$0xff] }
 0x239   : > { %16867 = vst [vmem:[#allocation45_spill] sm:$0xff] %v14771_v46  ;;  %v7055_v35 = vor.u32 %v7054_v39, %v7053_v53  ;;  %v9694_v23 = vrot.slane %v14760_v9, 9  ;;  %v6687_v18 = vrot.slane %v14325_v51, 5  ;;  %v6690_v58 = vrot.slane %v14338_v40, 5  ;;  %v14789_v53 = vpop.f32.mrf.mxu1 }
 0x23a   : > { %v7064_v6 = vrot.slane %v7062_v1, 6  ;;  %10567 = vmatprep.mubr.msk.bf16.mxu0 %vm685_vm3, %v9710_v25  ;;  %v7052_v27 = vrot.slane %v7051_v26, 4  ;;  %v7068_v57 = vshrl.u32 %v14351_v12, 16  ;;  %v7071_v13 = vshll.u32 %v14351_v12, 16  ;;  %16871 = vst [vmem:[#allocation44_spill] sm:$0xff] %v14789_v53 }
 0x23b   : > { %v7057_v43 = vrot.slane %v7055_v35, 4  ;;  %v6688_v39 = vsel %vm11337_vm7, %v9694_v23, %v6687_v18  ;;  %v6689_v40 = vrot.slane %v6687_v18, 4  ;;  %v16873_v20 = vshrl.u32 %v16872_v2, 16  ;;  %v14805_v18 = vpop.f32.mrf.mxu0 }
 0x23c   : > { %v7065_v33 = vor.u32 %v7064_v6, %v7061_v36  ;;  %v7056_v26 = vsel %vm11523_vm10, %v7052_v27, %v7055_v35  ;;  %v7070_v4 = vrot.slane %v7068_v57, 5  ;;  %v7073_v42 = vrot.slane %v7071_v13, 6  ;;  %16876 = vst [vmem:[#allocation3_spill] sm:$0xff] %v14805_v18  ;;  %v14808_v57 = vld [vmem:[%s10907_s28 + $0x90] sm:$0xe]  ;;  %v14810_v13 = vpop.f32.mrf.mxu1 }
 0x23d   : > { %v7076_v1 = vrot.slane %v16873_v20, 5  ;;  %v16875_v51 = vshll.u32 %v16872_v2, 16  ;;  %v6691_v36 = vsel %vm11337_vm7, %v6689_v40, %v6690_v58  ;;  %v7082_v6 = vshrl.u32 %v14785_v41, 16  ;;  %16877 = vst [vmem:[#allocation22_spill] sm:$0xff] %v14808_v57  ;;  %16878 = vst [vmem:[#allocation8_spill] sm:$0xff] %v14810_v13  ;;  %v16880_v2 = vld [vmem:[#allocation38_spill] sm:$0xff] }
 0x23e   : > { %v7066_v12 = vsel %vm11523_vm10, %v7057_v43, %v7065_v33  ;;  %v7085_v23 = vshll.u32 %v14785_v41, 16  ;;  %v9711_v53 = vcombine.low %v6688_v39, %v6691_v36  ;;  %v7074_v35 = vor.u32 %v7073_v42, %v7070_v4  ;;  %v16881_v33 = vld [vmem:[#allocation48_spill] sm:$0xff]  ;;  %v16882_v58 = vld [vmem:[#allocation46_spill] sm:$0xff]  ;;  %v14859_v13 = vld [vmem:[%s10907_s28 + $0x9c] sm:$0xe] }
 0x23f   : > { %v7077_v9 = vrot.slane %v16875_v51, 6  ;;  %v9751_v20 = vcombine.low %v7056_v26, %v7066_v12  ;;  %v16879_v51 = vld [vmem:[#allocation19_spill] sm:$0xff]  ;;  %v14818_v40 = vadd.f32 %v16882_v58, %v16881_v33  ;;  %v7084_v46 = vrot.slane %v7082_v6, 5  ;;  %v16883_v4 = vld [vmem:[#allocation54_spill] sm:$0xff]  ;;  %v16884_v39 = vld [vmem:[#allocation12_spill] sm:$0xff] }
 0x240   : > { %v14814_v43 = vadd.f32 %v16880_v2, %v16879_v51  ;;  %v7087_v41 = vrot.slane %v7085_v23, 6  ;;  %10568 = vmatmul.mubr.msk.bf16.gmra.mxu0 %vm685_vm3, %v9711_v53  ;;  %v16885_v26 = vld [vmem:[#allocation28_spill] sm:$0xff]  ;;  %v16886_v12 = vld [vmem:[#allocation47_spill] sm:$0xff]  ;;  %v16888_v6 = vld [vmem:[#allocation49_spill] sm:$0xff]  ;;  %v9695_v53 = vrot.slane %v14808_v57, 9 }
 0x241   : > { %v7078_v27 = vor.u32 %v7077_v9, %v7076_v1  ;;  %10585 = vmatprep.mubr.msk.bf16.mxu1 %vm685_vm3, %v9751_v20  ;;  %v7075_v9 = vrot.slane %v7074_v35, 4  ;;  %v14824_v1 = vadd.f32 %v16884_v39, %v16883_v4  ;;  %v14828_v36 = vadd.f32 %v16886_v12, %v16885_v26  ;;  %v16887_v2 = vld [vmem:[#allocation32_spill] sm:$0xff]  ;;  %v16890_v20 = vld [vmem:[#allocation65_spill] sm:$0xff]  ;;  %v14839_v35 = vpop.f32.mrf.mxu0  ;;  %v14849_v12 = vpop.f32.mrf.mxu1 }
 0x242   : > { %v7088_v51 = vor.u32 %v7087_v41, %v7084_v46  ;;  %v14832_v33 = vadd.f32 %v16888_v6, %v16887_v2  ;;  %v16889_v23 = vld [vmem:[#allocation24_spill] sm:$0xff]  ;;  %16892 = vst [vmem:[#allocation38_spill] sm:$0xff] %v14839_v35  ;;  %v6694_v39 = vrot.slane %v14386_v15, 5  ;;  %v6697_v26 = vrot.slane %v14403_v49, 5  ;;  %v14846_v41 = vld [vmem:[%s10907_s28 + $0x38] sm:$0x3] }
 0x243   : > { %v7080_v42 = vrot.slane %v7078_v27, 4  ;;  %v14836_v58 = vadd.f32 %v16890_v20, %v16889_v23  ;;  %v7079_v4 = vsel %vm11523_vm10, %v7075_v9, %v7078_v27  ;;  %v7091_v46 = vshrl.u32 %v14417_v52, 16  ;;  %16893 = vst [vmem:[#allocation48_spill] sm:$0xff] %v14849_v12  ;;  %v16894_v23 = vld [vmem:[#allocation41_spill] sm:$0xff] }
 0x244   : > { %v7094_v6 = vshll.u32 %v14417_v52, 16  ;;  %v16895_v20 = vshrl.u32 %v16894_v23, 16  ;;  %v16896_v27 = vshll.u32 %v16894_v23, 16  ;;  %v6695_v18 = vsel %vm11337_vm7, %v9695_v53, %v6694_v39  ;;  %v16898_v23 = vld [vmem:[#allocation17_spill] sm:$0xff] }
 0x245   : > { %16891 = vst [vmem:[#allocation19_spill] sm:$0xff] %v14836_v58  ;;  %v7089_v2 = vsel %vm11523_vm10, %v7080_v42, %v7088_v51  ;;  %v6696_v15 = vrot.slane %v6694_v39, 4  ;;  %v7093_v57 = vrot.slane %v7091_v46, 5  ;;  %v7105_v42 = vshrl.u32 %v14846_v41, 16  ;;  %v14865_v51 = vpop.f32.mrf.mxu0  ;;  %v14879_v46 = vpop.f32.mrf.mxu1 }
 0x246   : > { %v7099_v35 = vrot.slane %v16895_v20, 5  ;;  %v7100_v9 = vrot.slane %v16896_v27, 6  ;;  %v9752_v49 = vcombine.low %v7079_v4, %v7089_v2  ;;  %v7096_v12 = vrot.slane %v7094_v6, 6  ;;  %16897 = vst [vmem:[#allocation46_spill] sm:$0xff] %v14865_v51  ;;  %v16899_v4 = vld [vmem:[#allocation15_spill] sm:$0xff]  ;;  %16900 = vst [vmem:[#allocation54_spill] sm:$0xff] %v14879_v46 }
 0x247   : > { %v7108_v52 = vshll.u32 %v14846_v41, 16  ;;  %v14870_v20 = vadd.f32 %v16898_v23, %v14512_v30  ;;  %v14874_v53 = vadd.f32 %v16899_v4, %v14516_v29  ;;  %v9696_v39 = vrot.slane %v14859_v13, 9  ;;  %v14886_v29 = vld [vmem:[%s10907_s28 + $0x44] sm:$0x3]  ;;  %v14897_v46 = vpop.f32.mrf.mxu1 }
 0x248   : > { %v7101_v58 = vor.u32 %v7100_v9, %v7099_v35  ;;  %10586 = vmatmul.mubr.msk.bf16.vlgmr.msra.gmra.mxu1 %vm685_vm3, %v9752_v49  ;;  %v6698_v35 = vsel %vm11337_vm7, %v6696_v15, %v6697_v26  ;;  %v7097_v6 = vor.u32 %v7096_v12, %v7093_v57  ;;  %v7107_v9 = vrot.slane %v7105_v42, 5  ;;  %v14881_v49 = vpop.f32.mrf.mxu0  ;;  %16904 = vst [vmem:[#allocation28_spill] sm:$0xff] %v14897_v46  ;;  %v16909_v46 = vld [vmem:[#allocation66_spill] sm:$0xff] }
 0x249   : > { %v9712_v2 = vcombine.low %v6695_v18, %v6698_v35  ;;  %16901 = vst [vmem:[#allocation12_spill] sm:$0xff] %v14881_v49  ;;  %v7110_v51 = vrot.slane %v7108_v52, 6  ;;  %v6701_v30 = vrot.slane %v14436_v8, 5  ;;  %v6704_v23 = vrot.slane %v14449_v7, 5 }
 0x24a   : > { %v7103_v27 = vrot.slane %v7101_v58, 4  ;;  %v7114_v4 = vshrl.u32 %v14460_v62, 16  ;;  %v7098_v15 = vrot.slane %v7097_v6, 4  ;;  %v7117_v26 = vshll.u32 %v14460_v62, 16  ;;  %v14899_v8 = vpop.f32.mrf.mxu0 }
 0x24b   : > { %10571 = vmatprep.mubr.msk.bf16.mxu0 %vm685_vm3, %v9712_v2  ;;  %v16902_v18 = vshrl.u32 %v14019_v55, 16  ;;  %v16903_v12 = vshll.u32 %v14019_v55, 16  ;;  %v7111_v52 = vor.u32 %v7110_v51, %v7107_v9  ;;  %v6702_v35 = vsel %vm11337_vm7, %v9696_v39, %v6701_v30  ;;  %16905 = vst [vmem:[#allocation47_spill] sm:$0xff] %v14899_v8  ;;  %v16906_v51 = vld [vmem:[#allocation14_spill] sm:$0xff]  ;;  %v16907_v9 = vld [vmem:[#allocation9_spill] sm:$0xff]  ;;  %v16908_v8 = vld [vmem:[#allocation23_spill] sm:$0xff] }
 0x24c   : > { %v6703_v7 = vrot.slane %v6701_v30, 4  ;;  %v7116_v49 = vrot.slane %v7114_v4, 5  ;;  %v7102_v62 = vsel %vm11523_vm10, %v7098_v15, %v7101_v58  ;;  %v7119_v2 = vrot.slane %v7117_v26, 6 }
 0x24d   : > { %v7122_v57 = vrot.slane %v16902_v18, 5  ;;  %v7123_v42 = vrot.slane %v16903_v12, 6  ;;  %v7128_v18 = vshrl.u32 %v14886_v29, 16  ;;  %v7112_v55 = vsel %vm11523_vm10, %v7103_v27, %v7111_v52 }
 0x24e   : > { %v14908_v39 = vadd.f32 %v16907_v9, %v16906_v51  ;;  %v6705_v30 = vsel %vm11337_vm7, %v6703_v7, %v6704_v23  ;;  %v7131_v4 = vshll.u32 %v14886_v29, 16  ;;  %v9753_v12 = vcombine.low %v7102_v62, %v7112_v55  ;;  %v16910_v51 = vld [vmem:[#allocation51_spill] sm:$0xff]  ;;  %v14924_v23 = vpop.f32.mrf.mxu1  ;;  %v14926_v7 = vpop.f32.mrf.mxu0 }
 0x24f   : > { %v7124_v6 = vor.u32 %v7123_v42, %v7122_v57  ;;  %v14915_v58 = vadd.f32 %v16909_v46, %v16908_v8  ;;  %v9713_v15 = vcombine.low %v6702_v35, %v6705_v30  ;;  %v7120_v26 = vor.u32 %v7119_v2, %v7116_v49  ;;  %v14918_v57 = vld [vmem:[%s10907_s28 + $0xa8] sm:$0xe]  ;;  %16911 = vst [vmem:[#allocation32_spill] sm:$0xff] %v14924_v23 }
 0x250   : > { %v7130_v27 = vrot.slane %v7128_v18, 5  ;;  %v7133_v52 = vrot.slane %v7131_v4, 6  ;;  %v14922_v9 = vadd.f32 %v16910_v51, %v14486_v63  ;;  %16912 = vst [vmem:[#allocation49_spill] sm:$0xff] %v14926_v7  ;;  %10589 = vmatprep.mubr.msk.bf16.mxu1 %vm685_vm3, %v9753_v12  ;;  %v16913_v46 = vld [vmem:[#allocation67_spill] sm:$0xff]  ;;  %v16915_v63 = vld [vmem:[#allocation68_spill] sm:$0xff]  ;;  %v9697_v55 = vrot.slane %v14918_v57, 9 }
 0x251   : > { %v7126_v42 = vrot.slane %v7124_v6, 4  ;;  %10572 = vmatmul.mubr.msk.bf16.gmra.mxu0 %vm685_vm3, %v9713_v15  ;;  %v7121_v8 = vrot.slane %v7120_v26, 4  ;;  %v14932_v49 = vadd.f32 %v16913_v46, %v14490_v32  ;;  %v16914_v35 = vld [vmem:[#allocation39_spill] sm:$0xff]  ;;  %v14940_v2 = vadd.f32 %v16915_v63, %v14508_v48  ;;  %v14946_v12 = vld [vmem:[%s10907_s28 + $0x50] sm:$0x3]  ;;  %v16916_v26 = vld [vmem:[#allocation42_spill] sm:$0xff]  ;;  %v14960_v63 = vpop.f32.mrf.mxu0 }
 0x252   : > { %v14936_v62 = vadd.f32 %v16914_v35, %v14494_v22  ;;  %v7134_v18 = vor.u32 %v7133_v52, %v7130_v27  ;;  %v6708_v30 = vrot.slane %v14497_v24, 5  ;;  %v6711_v4 = vrot.slane %v14519_v37, 5  ;;  %16919 = vst [vmem:[#allocation24_spill] sm:$0xff] %v14960_v63 }
 0x253   : > { %v7125_v32 = vsel %vm11523_vm10, %v7121_v8, %v7124_v6  ;;  %v7137_v22 = vshrl.u32 %v14527_v0, 16  ;;  %v7140_v15 = vshll.u32 %v14527_v0, 16  ;;  %v16917_v48 = vshrl.u32 %v16916_v26, 16  ;;  %v14962_v6 = vpop.f32.mrf.mxu1 }
 0x254   : > { %v7135_v27 = vsel %vm11523_vm10, %v7126_v42, %v7134_v18  ;;  %v6709_v52 = vsel %vm11337_vm7, %v9697_v55, %v6708_v30  ;;  %v6710_v37 = vrot.slane %v6708_v30, 4  ;;  %v16918_v46 = vshll.u32 %v16916_v26, 16  ;;  %16920 = vst [vmem:[#allocation65_spill] sm:$0xff] %v14962_v6  ;;  %v16921_v42 = vld [vmem:[#allocation70_spill] sm:$0xff] }
 0x255   : > { %v7145_v51 = vrot.slane %v16917_v48, 5  ;;  %v9754_v8 = vcombine.low %v7125_v32, %v7135_v27  ;;  %v7139_v7 = vrot.slane %v7137_v22, 5  ;;  %v7142_v0 = vrot.slane %v7140_v15, 6  ;;  %v14966_v48 = vld [vmem:[%s10907_s28 + $0xb4] sm:$0xe]  ;;  %v14977_v32 = vpop.f32.mrf.mxu1  ;;  %v16924_v22 = vld [vmem:[#allocation69_spill] sm:$0xff] }
 0x256   : > { %v7146_v35 = vrot.slane %v16918_v46, 6  ;;  %v7151_v23 = vshrl.u32 %v14946_v12, 16  ;;  %v14970_v18 = vadd.f32 %v16921_v42, %v14585_v11  ;;  %v6712_v55 = vsel %vm11337_vm7, %v6710_v37, %v6711_v4  ;;  %v14975_v46 = vpop.f32.mrf.mxu0  ;;  %16923 = vst [vmem:[#allocation17_spill] sm:$0xff] %v14977_v32  ;;  %v14989_v32 = vld [vmem:[%s10907_s28 + $0x5c] sm:$0x3] }
 0x257   : > { %v7154_v26 = vshll.u32 %v14946_v12, 16  ;;  %16922 = vst [vmem:[#allocation41_spill] sm:$0xff] %v14975_v46  ;;  %10590 = vmatmul.mubr.msk.bf16.gmra.mxu1 %vm685_vm3, %v9754_v8  ;;  %v14982_v15 = vadd.f32 %v16924_v22, %v14620_v59  ;;  %v9714_v27 = vcombine.low %v6709_v52, %v6712_v55  ;;  %v7143_v11 = vor.u32 %v7142_v0, %v7139_v7  ;;  %v14999_v22 = vpop.f32.mrf.mxu1 }
 0x258   : > { %v7147_v30 = vor.u32 %v7146_v35, %v7145_v51  ;;  %v7153_v42 = vrot.slane %v7151_v23, 5  ;;  %v9698_v4 = vrot.slane %v14966_v48, 9  ;;  %v6715_v51 = vrot.slane %v14549_v50, 5  ;;  %16925 = vst [vmem:[#allocation15_spill] sm:$0xff] %v14989_v32  ;;  %16928 = vst [vmem:[#allocation9_spill] sm:$0xff] %v14999_v22 }
 0x259   : > { %v7156_v63 = vrot.slane %v7154_v26, 6  ;;  %10575 = vmatprep.mubr.msk.bf16.mxu0 %vm685_vm3, %v9714_v27  ;;  %v7144_v37 = vrot.slane %v7143_v11, 4  ;;  %v6718_v35 = vrot.slane %v14561_v56, 5  ;;  %v7160_v8 = vshrl.u32 %v14572_v45, 16  ;;  %v14997_v26 = vpop.f32.mrf.mxu0 }
 0x25a   : > { %v7149_v6 = vrot.slane %v7147_v30, 4  ;;  %v7163_v59 = vshll.u32 %v14572_v45, 16  ;;  %v6716_v23 = vsel %vm11337_vm7, %v9698_v4, %v6715_v51  ;;  %v6717_v7 = vrot.slane %v6715_v51, 4  ;;  %16927 = vst [vmem:[#allocation14_spill] sm:$0xff] %v14997_v26 }
 0x25b   : > { %v7157_v52 = vor.u32 %v7156_v63, %v7153_v42  ;;  %v16926_v0 = vshrl.u32 %v14123_v17, 16  ;;  %v7148_v56 = vsel %vm11523_vm10, %v7144_v37, %v7147_v30  ;;  %v7162_v27 = vrot.slane %v7160_v8, 5  ;;  %v15012_v30 = vld [vmem:[%s10907_s28 + $0xc0] sm:$0xe]  ;;  %v16932_v8 = vld [vmem:[#allocation71_spill] sm:$0xff] }
 0x25c   : > { %v7165_v11 = vrot.slane %v7163_v59, 6  ;;  %v16929_v45 = vshll.u32 %v14123_v17, 16  ;;  %v6719_v4 = vsel %vm11337_vm7, %v6717_v7, %v6718_v35  ;;  %v7174_v51 = vshrl.u32 %v14989_v32, 16  ;;  %16930 = vst [vmem:[#allocation23_spill] sm:$0xff] %v15012_v30  ;;  %v16931_v37 = vld [vmem:[#allocation78_spill] sm:$0xff]  ;;  %v15022_v7 = vpop.f32.mrf.mxu0 }
 0x25d   : > { %v7168_v55 = vrot.slane %v16926_v0, 5  ;;  %v7158_v42 = vsel %vm11523_vm10, %v7149_v6, %v7157_v52  ;;  %v7177_v0 = vshll.u32 %v14989_v32, 16  ;;  %v9715_v22 = vcombine.low %v6716_v23, %v6719_v4  ;;  %v16933_v59 = vld [vmem:[#allocation34_spill] sm:$0xff]  ;;  %16935 = vst [vmem:[#allocation66_spill] sm:$0xff] %v15022_v7  ;;  %v15024_v32 = vpop.f32.mrf.mxu1  ;;  %v16939_v4 = vld [vmem:[#allocation53_spill] sm:$0xff] }
 0x25e   : > { %v7169_v63 = vrot.slane %v16929_v45, 6  ;;  %v9755_v26 = vcombine.low %v7148_v56, %v7158_v42  ;;  %v7166_v46 = vor.u32 %v7165_v11, %v7162_v27  ;;  %v15016_v17 = vadd.f32 %v16932_v8, %v16931_v37  ;;  %v16934_v45 = vld [vmem:[#allocation7_spill] sm:$0xff]  ;;  %16936 = vst [vmem:[#allocation51_spill] sm:$0xff] %v15024_v32  ;;  %v16937_v56 = vld [vmem:[#allocation26_spill] sm:$0xff]  ;;  %v16938_v11 = vld [vmem:[#allocation72_spill] sm:$0xff] }
 0x25f   : > { %v15020_v6 = vadd.f32 %v16934_v45, %v16933_v59  ;;  %v7176_v52 = vrot.slane %v7174_v51, 5  ;;  %v7179_v35 = vrot.slane %v7177_v0, 6  ;;  %10576 = vmatmul.mubr.msk.bf16.gmra.mxu0 %vm685_vm3, %v9715_v22  ;;  %v15030_v27 = vadd.f32 %v16937_v56, %v14602_v5  ;;  %v16940_v51 = vld [vmem:[#allocation55_spill] sm:$0xff]  ;;  %v16945_v5 = vld [vmem:[#allocation6_spill] sm:$0xff]  ;;  %16967 = vst [vmem:[#allocation26_spill] sm:$0xff] %v15128_v28 }
 0x260   : > { %v7170_v50 = vor.u32 %v7169_v63, %v7168_v55  ;;  %10593 = vmatprep.mubr.msk.bf16.mxu1 %vm685_vm3, %v9755_v26  ;;  %v7167_v23 = vrot.slane %v7166_v46, 4  ;;  %v15034_v63 = vadd.f32 %v16938_v11, %v14624_v14  ;;  %v15038_v0 = vadd.f32 %v16940_v51, %v16939_v4  ;;  %v16942_v37 = vld [vmem:[#allocation35_spill] sm:$0xff]  ;;  %v16943_v26 = vld [vmem:[#allocation73_spill] sm:$0xff] }
 0x261   : > { %v7180_v42 = vor.u32 %v7179_v35, %v7176_v52  ;;  %v15042_v8 = vadd.f32 %v16943_v26, %v16942_v37  ;;  %v9699_v46 = vrot.slane %v15012_v30, 9  ;;  %v6722_v59 = vrot.slane %v16945_v5, 5  ;;  %v16946_v45 = vld [vmem:[#allocation59_spill] sm:$0xff]  ;;  %v16948_v51 = vld [vmem:[#allocation5_spill] sm:$0xff] }
 0x262   : > { %v7172_v55 = vrot.slane %v7170_v50, 4  ;;  %16941 = vst [vmem:[#allocation67_spill] sm:$0xff] %v15038_v0  ;;  %v7171_v22 = vsel %vm11523_vm10, %v7167_v23, %v7170_v50  ;;  %v6725_v56 = vrot.slane %v16946_v45, 5  ;;  %v15050_v14 = vld [vmem:[%s10907_s28 + $0x68] sm:$0x3]  ;;  %v16949_v37 = vshrl.u32 %v16948_v51, 16  ;;  %v15063_v23 = vpop.f32.mrf.mxu0  ;;  %v15065_v45 = vpop.f32.mrf.mxu1 }
 0x263   : > { %16944 = vst [vmem:[#allocation39_spill] sm:$0xff] %v15042_v8  ;;  %v16947_v52 = vld [vmem:[#allocation83_spill] sm:$0xff]  ;;  %v16950_v32 = vshll.u32 %v16948_v51, 16  ;;  %16951 = vst [vmem:[#allocation68_spill] sm:$0xff] %v15063_v23  ;;  %v6723_v30 = vsel %vm11337_vm7, %v9699_v46, %v6722_v59  ;;  %v6724_v8 = vrot.slane %v6722_v59, 4  ;;  %v7197_v0 = vshrl.u32 %v15050_v14, 16 }
 0x264   : > { %v7183_v35 = vshrl.u32 %v16947_v52, 16  ;;  %v7181_v11 = vsel %vm11523_vm10, %v7172_v55, %v7180_v42  ;;  %v7186_v4 = vshll.u32 %v16947_v52, 16  ;;  %v7191_v26 = vrot.slane %v16949_v37, 5  ;;  %v15061_v50 = vld [vmem:[%s10907_s28 + $0xcc] sm:$0xe]  ;;  %16952 = vst [vmem:[#allocation42_spill] sm:$0xff] %v15065_v45 }
 0x265   : > { %v7192_v7 = vrot.slane %v16950_v32, 6  ;;  %v9756_v5 = vcombine.low %v7171_v22, %v7181_v11  ;;  %v7200_v51 = vshll.u32 %v15050_v14, 16  ;;  %v15071_v32 = vpop.f32.mrf.mxu1  ;;  %v16954_v37 = vld [vmem:[#allocation61_spill] sm:$0xff]  ;;  %v16956_v22 = vld [vmem:[#allocation58_spill] sm:$0xff]  ;;  %v9700_v59 = vrot.slane %v15061_v50, 9 }
 0x266   : > { %v7185_v55 = vrot.slane %v7183_v35, 5  ;;  %v7188_v42 = vrot.slane %v7186_v4, 6  ;;  %16953 = vst [vmem:[#allocation70_spill] sm:$0xff] %v15071_v32  ;;  %v15076_v45 = vadd.f32 %v16954_v37, %v14664_v34  ;;  %v15080_v46 = vadd.f32 %v16956_v22, %v14668_v47  ;;  %v15085_v32 = vpop.f32.mrf.mxu0  ;;  %v16958_v34 = vld [vmem:[#allocation56_spill] sm:$0xff] }
 0x267   : > { %v7193_v52 = vor.u32 %v7192_v7, %v7191_v26  ;;  %10594 = vmatmul.mubr.msk.bf16.gmra.mxu1 %vm685_vm3, %v9756_v5  ;;  %v6726_v7 = vsel %vm11337_vm7, %v6724_v8, %v6725_v56  ;;  %v7199_v26 = vrot.slane %v7197_v0, 5  ;;  %16957 = vst [vmem:[#allocation78_spill] sm:$0xff] %v15085_v32  ;;  %v7202_v5 = vrot.slane %v7200_v51, 6  ;;  %v15099_v51 = vpop.f32.mrf.mxu1 }
 0x268   : > { %16955 = vst [vmem:[#allocation69_spill] sm:$0xff] %v15076_v45  ;;  %v9716_v35 = vcombine.low %v6723_v30, %v6726_v7  ;;  %v7189_v11 = vor.u32 %v7188_v42, %v7185_v55  ;;  %v6729_v23 = vrot.slane %v14657_v3, 5  ;;  %v6732_v37 = vrot.slane %v16958_v34, 5  ;;  %v15090_v45 = vld [vmem:[%s10907_s28 + $0x74] sm:$0x3]  ;;  %16961 = vst [vmem:[#allocation71_spill] sm:$0xff] %v15099_v51 }
 0x269   : > { %v7195_v4 = vrot.slane %v7193_v52, 4  ;;  %v7206_v47 = vshrl.u32 %v14680_v61, 16  ;;  %v7209_v56 = vshll.u32 %v14680_v61, 16  ;;  %v16959_v30 = vshrl.u32 %v14215_v10, 16 }
 0x26a   : > { %10579 = vmatprep.mubr.msk.bf16.mxu0 %vm685_vm3, %v9716_v35  ;;  %v7190_v8 = vrot.slane %v7189_v11, 4  ;;  %v16960_v0 = vshll.u32 %v14215_v10, 16  ;;  %v7203_v22 = vor.u32 %v7202_v5, %v7199_v26  ;;  %v6730_v7 = vsel %vm11337_vm7, %v9700_v59, %v6729_v23  ;;  %v16963_v26 = vld [vmem:[#allocation16_spill] sm:$0xff] }
 0x26b   : > { %v7214_v55 = vrot.slane %v16959_v30, 5  ;;  %v6731_v34 = vrot.slane %v6729_v23, 4  ;;  %v7208_v32 = vrot.slane %v7206_v47, 5  ;;  %v7211_v11 = vrot.slane %v7209_v56, 6  ;;  %v15106_v30 = vpop.f32.mrf.mxu0  ;;  %v16964_v47 = vld [vmem:[#allocation74_spill] sm:$0xff] }
 0x26c   : > { %v7215_v42 = vrot.slane %v16960_v0, 6  ;;  %v7194_v35 = vsel %vm11523_vm10, %v7190_v8, %v7193_v52  ;;  %v7220_v61 = vshrl.u32 %v15090_v45, 16  ;;  %16962 = vst [vmem:[#allocation34_spill] sm:$0xff] %v15106_v30  ;;  %v7204_v10 = vsel %vm11523_vm10, %v7195_v4, %v7203_v22  ;;  %v15121_v0 = vpop.f32.mrf.mxu1  ;;  %v10825_v30 = vld [vmem:[%s10907_s28 + $0x1c] sm:$0xf] }
 0x26d   : > { %v15112_v5 = vadd.f32 %v16963_v26, %v14695_v44  ;;  %v6733_v23 = vsel %vm11337_vm7, %v6731_v34, %v6732_v37  ;;  %v7223_v59 = vshll.u32 %v15090_v45, 16  ;;  %v9757_v52 = vcombine.low %v7194_v35, %v7204_v10  ;;  %16965 = vst [vmem:[#allocation7_spill] sm:$0xff] %v15121_v0  ;;  %v16966_v44 = vld [vmem:[#allocation75_spill] sm:$0xff]  ;;  %v16970_v35 = vld [vmem:[#allocation77_spill] sm:$0xff] }
 0x26e   : > { %v7216_v3 = vor.u32 %v7215_v42, %v7214_v55  ;;  %v15119_v8 = vadd.f32 %v16964_v47, %v14712_v31  ;;  %v9717_v56 = vcombine.low %v6730_v7, %v6733_v23  ;;  %v7212_v55 = vor.u32 %v7211_v11, %v7208_v32  ;;  %v16968_v31 = vld [vmem:[#allocation76_spill] sm:$0xff]  ;;  %v16972_v23 = vld [vmem:[#allocation11_spill] sm:$0xff]  ;;  %v16973_v47 = vld [vmem:[#allocation25_spill] sm:$0xff] }
 0x26f   : > { %v7222_v42 = vrot.slane %v7220_v61, 5  ;;  %v7225_v22 = vrot.slane %v7223_v59, 6  ;;  %v15125_v26 = vadd.f32 %v16966_v44, %v14716_v16  ;;  %10597 = vmatprep.mubr.msk.bf16.mxu1 %vm685_vm3, %v9757_v52  ;;  %v15134_v7 = vadd.f32 %v16968_v31, %v14723_v54  ;;  %v16969_v32 = vld [vmem:[#allocation60_spill] sm:$0xff]  ;;  %v9783_v16 = vld [vmem:[%s10907_s28 + $0x18] sm:$0xc]  ;;  %v15145_v61 = vpop.f32.mrf.mxu0 }
 0x270   : > { %v7218_v4 = vrot.slane %v7216_v3, 4  ;;  %10580 = vmatmul.mubr.msk.bf16.gmra.mxu0 %vm685_vm3, %v9717_v56  ;;  %v7213_v37 = vrot.slane %v7212_v55, 4  ;;  %v15138_v34 = vadd.f32 %v16969_v32, %v14727_v19  ;;  %v15142_v11 = vadd.f32 %v16970_v35, %v14731_v60  ;;  %16971 = vst [vmem:[#allocation72_spill] sm:$0xff] %v15145_v61  ;;  %v15157_v32 = vpop.f32.mrf.mxu1 }
 0x271   : > { %v7226_v10 = vor.u32 %v7225_v22, %v7222_v42  ;;  %v7229_v59 = vshrl.u32 %v16972_v23, 16  ;;  %v7232_v52 = vshll.u32 %v16972_v23, 16  ;;  %v16974_v56 = vshrl.u32 %v16973_v47, 16  ;;  %16976 = vst [vmem:[#allocation53_spill] sm:$0xff] %v15157_v32 }
 0x272   : > { %v7217_v55 = vsel %vm11523_vm10, %v7213_v37, %v7216_v3  ;;  %v16975_v19 = vshll.u32 %v16973_v47, 16  ;;  %v7243_v60 = vshrl.u32 %v15128_v28, 16  ;;  %v7246_v31 = vshll.u32 %v15128_v28, 16  ;;  %v15161_v47 = vpop.f32.mrf.mxu0 }
 0x273   : > { %v7237_v54 = vrot.slane %v16974_v56, 5  ;;  %v7227_v42 = vsel %vm11523_vm10, %v7218_v4, %v7226_v10  ;;  %v7231_v22 = vrot.slane %v7229_v59, 5  ;;  %v7234_v35 = vrot.slane %v7232_v52, 6  ;;  %16977 = vst [vmem:[#allocation55_spill] sm:$0xff] %v15161_v47  ;;  %v15169_v4 = vpop.f32.mrf.mxu1  ;;  %v16982_v10 = vld [vmem:[#allocation30_spill] sm:$0xff] }
 0x274   : > { %v7238_v44 = vrot.slane %v16975_v19, 6  ;;  %v9799_v23 = vrot.slane %v9783_v16, 10  ;;  %v9758_v56 = vcombine.low %v7217_v55, %v7227_v42  ;;  %v7245_v3 = vrot.slane %v7243_v60, 5  ;;  %v16978_v19 = vld [vmem:[#allocation27_spill] sm:$0xff]  ;;  %16980 = vst [vmem:[#allocation73_spill] sm:$0xff] %v15169_v4  ;;  %v16981_v16 = vld [vmem:[#allocation45_spill] sm:$0xff]  ;;  %v15180_v60 = vpop.f32.mrf.mxu0 }
 0x275   : > { %v7248_v37 = vrot.slane %v7246_v31, 6  ;;  %v15165_v61 = vadd.f32 %v16978_v19, %v14767_v21  ;;  %v7235_v51 = vor.u32 %v7234_v35, %v7231_v22  ;;  %v7756_v32 = vrot.slane %v10825_v30, 6  ;;  %v15177_v55 = vld [vmem:[%s10907_s28 + $0x8c] sm:$0x3]  ;;  %v16984_v21 = vld [vmem:[#allocation50_spill] sm:$0xff]  ;;  %16985 = vst [vmem:[#allocation83_spill] sm:$0xff] %v15180_v60  ;;  %v15197_v60 = vpop.f32.mrf.mxu1 }
 0x276   : > { %v7239_v0 = vor.u32 %v7238_v44, %v7237_v54  ;;  %v7759_v28 = vrot.slane %v14743_v38, 6  ;;  %10598 = vmatmul.mubr.msk.bf16.gmra.mxu1 %vm685_vm3, %v9758_v56  ;;  %v15174_v59 = vadd.f32 %v16982_v10, %v16981_v16  ;;  %v7252_v44 = vshrl.u32 %v16984_v21, 16  ;;  %v16987_v19 = vld [vmem:[#allocation57_spill] sm:$0xff]  ;;  %v9784_v4 = vld [vmem:[%s10907_s28 + $0x24] sm:$0xc]  ;;  %16990 = vst [vmem:[#allocation5_spill] sm:$0xff] %v15197_v60 }
 0x277   : > { %16979 = vst [vmem:[#allocation35_spill] sm:$0xff] %v15165_v61  ;;  %v7249_v54 = vor.u32 %v7248_v37, %v7245_v3  ;;  %v7236_v30 = vrot.slane %v7235_v51, 4  ;;  %v7757_v38 = vsel %vm11818_vm12, %v9799_v23, %v7756_v32  ;;  %v7758_v42 = vrot.slane %v7756_v32, 4  ;;  %v10826_v61 = vld [vmem:[%s10907_s28 + $0x28] sm:$0xf] }
 0x278   : > { %16983 = vst [vmem:[#allocation59_spill] sm:$0xff] %v15174_v59  ;;  %v7241_v52 = vrot.slane %v7239_v0, 4  ;;  %v7255_v22 = vshll.u32 %v16984_v21, 16  ;;  %v7254_v56 = vrot.slane %v7252_v44, 5  ;;  %v16988_v16 = vshrl.u32 %v16987_v19, 16 }
 0x279   : > { %v16989_v37 = vshll.u32 %v16987_v19, 16  ;;  %v7240_v51 = vsel %vm11523_vm10, %v7236_v30, %v7239_v0  ;;  %v7760_v32 = vsel %vm11818_vm12, %v7758_v42, %v7759_v28  ;;  %v7266_v21 = vshrl.u32 %v15177_v55, 16  ;;  %v15200_v19 = vpop.f32.mrf.mxu0  ;;  %v16992_v28 = vld [vmem:[#allocation29_spill] sm:$0xff] }
 0x27a   : > { %v7250_v35 = vsel %vm11523_vm10, %v7241_v52, %v7249_v54  ;;  %v7260_v3 = vrot.slane %v16988_v16, 5  ;;  %v7257_v23 = vrot.slane %v7255_v22, 6  ;;  %v9816_v54 = vcombine.low %v7757_v38, %v7760_v32  ;;  %16991 = vst [vmem:[#allocation61_spill] sm:$0xff] %v15200_v19  ;;  %v16993_v22 = vld [vmem:[#allocation13_spill] sm:$0xff] }
 0x27b   : > { %v7261_v10 = vrot.slane %v16989_v37, 6  ;;  %v9759_v52 = vcombine.low %v7240_v51, %v7250_v35  ;;  %v7269_v16 = vshll.u32 %v15177_v55, 16  ;;  %v7268_v47 = vrot.slane %v7266_v21, 5  ;;  %v15216_v51 = vpop.f32.mrf.mxu1  ;;  %v16997_v21 = vld [vmem:[#allocation81_spill] sm:$0xff] }
 0x27c   : > { %v7258_v37 = vor.u32 %v7257_v23, %v7254_v56  ;;  %v9800_v59 = vrot.slane %v9784_v4, 10  ;;  %v7763_v0 = vrot.slane %v10826_v61, 6  ;;  %10619 = vmatprep.mubr.msk.bf16.mxu0 %vm685_vm3, %v9816_v54  ;;  %v15207_v30 = vadd.f32 %v16992_v28, %v14814_v43  ;;  %16995 = vst [vmem:[#allocation58_spill] sm:$0xff] %v15216_v51  ;;  %v16996_v43 = vld [vmem:[#allocation4_spill] sm:$0xff] }
 0x27d   : > { %v7262_v44 = vor.u32 %v7261_v10, %v7260_v3  ;;  %10601 = vmatprep.mubr.msk.bf16.mxu1 %vm685_vm3, %v9759_v52  ;;  %v7271_v42 = vrot.slane %v7269_v16, 6  ;;  %v7766_v35 = vrot.slane %v16993_v22, 6  ;;  %v16994_v3 = vld [vmem:[#allocation79_spill] sm:$0xff]  ;;  %v15220_v23 = vadd.f32 %v16996_v43, %v14824_v1  ;;  %v16998_v54 = vld [vmem:[#allocation80_spill] sm:$0xff]  ;;  %v15231_v16 = vld [vmem:[%s10907_s28 + $0x98] sm:$0x3] }
 0x27e   : > { %v15212_v56 = vadd.f32 %v16994_v3, %v14818_v40  ;;  %v7259_v4 = vrot.slane %v7258_v37, 4  ;;  %v7764_v61 = vsel %vm11818_vm12, %v9800_v59, %v7763_v0  ;;  %v7765_v10 = vrot.slane %v7763_v0, 4  ;;  %v15233_v37 = vpop.f32.mrf.mxu0  ;;  %v17000_v1 = vld [vmem:[#allocation19_spill] sm:$0xff]  ;;  %v9785_v22 = vld [vmem:[%s10907_s28 + $0x30] sm:$0xc] }
 0x27f   : > { %v7264_v38 = vrot.slane %v7262_v44, 4  ;;  %v7272_v32 = vor.u32 %v7271_v42, %v7268_v47  ;;  %v15224_v52 = vadd.f32 %v16997_v21, %v14828_v36  ;;  %v15228_v40 = vadd.f32 %v16998_v54, %v14832_v33  ;;  %16999 = vst [vmem:[#allocation56_spill] sm:$0xff] %v15233_v37  ;;  %v17001_v0 = vld [vmem:[#allocation63_spill] sm:$0xff]  ;;  %v17002_v36 = vld [vmem:[#allocation22_spill] sm:$0xff] }
 0x280   : > { %v7263_v59 = vsel %vm11523_vm10, %v7259_v4, %v7262_v44  ;;  %v7767_v47 = vsel %vm11818_vm12, %v7765_v10, %v7766_v35  ;;  %v15241_v28 = vadd.f32 %v17001_v0, %v17000_v1  ;;  %v7275_v42 = vshrl.u32 %v17002_v36, 16  ;;  %v17003_v21 = vld [vmem:[#allocation10_spill] sm:$0xff]  ;;  %v15253_v0 = vpop.f32.mrf.mxu1 }
 0x281   : > { %v7273_v33 = vsel %vm11523_vm10, %v7264_v38, %v7272_v32  ;;  %v9817_v3 = vcombine.low %v7764_v61, %v7767_v47  ;;  %v7278_v43 = vshll.u32 %v17002_v36, 16  ;;  %v17004_v54 = vshrl.u32 %v17003_v21, 16  ;;  %17006 = vst [vmem:[#allocation16_spill] sm:$0xff] %v15253_v0  ;;  %v10827_v32 = vld [vmem:[%s10907_s28 + $0x34] sm:$0xf]  ;;  %v15258_v36 = vpop.f32.mrf.mxu0 }
 0x282   : > { %v9760_v4 = vcombine.low %v7263_v59, %v7273_v33  ;;  %v7277_v37 = vrot.slane %v7275_v42, 5  ;;  %v17005_v35 = vshll.u32 %v17003_v21, 16  ;;  %v7289_v1 = vshrl.u32 %v15231_v16, 16  ;;  %17007 = vst [vmem:[#allocation74_spill] sm:$0xff] %v15258_v36  ;;  %v17008_v59 = vld [vmem:[#allocation82_spill] sm:$0xff] }
 0x283   : > { %v7283_v44 = vrot.slane %v17004_v54, 5  ;;  %10620 = vmatmul.mubr.msk.bf16.vlgmr.msra.gmra.mxu0 %vm685_vm3, %v9817_v3  ;;  %v7280_v51 = vrot.slane %v7278_v43, 6  ;;  %v7292_v38 = vshll.u32 %v15231_v16, 16  ;;  %v9801_v61 = vrot.slane %v9785_v22, 10  ;;  %v15266_v3 = vpop.f32.mrf.mxu1  ;;  %v15270_v0 = vpop.f32.mrf.mxu0 }
 0x284   : > { %v7284_v10 = vrot.slane %v17005_v35, 6  ;;  %v7770_v47 = vrot.slane %v10827_v32, 6  ;;  %10602 = vmatmul.mubr.msk.bf16.gmra.mxu1 %vm685_vm3, %v9760_v4  ;;  %v15263_v42 = vadd.f32 %v17008_v59, %v14870_v20  ;;  %v7291_v21 = vrot.slane %v7289_v1, 5  ;;  %17009 = vst [vmem:[#allocation75_spill] sm:$0xff] %v15266_v3  ;;  %17010 = vst [vmem:[#allocation76_spill] sm:$0xff] %v15270_v0  ;;  %v17011_v4 = vld [vmem:[#allocation36_spill] sm:$0xff] }
 0x285   : > { %v7773_v54 = vrot.slane %v14846_v41, 6  ;;  %v7281_v43 = vor.u32 %v7280_v51, %v7277_v37  ;;  %v7294_v22 = vrot.slane %v7292_v38, 6  ;;  %v15274_v36 = vadd.f32 %v17011_v4, %v14874_v53  ;;  %v15281_v1 = vpop.f32.mrf.mxu1  ;;  %v9786_v3 = vld [vmem:[%s10907_s28 + $0x3c] sm:$0xc]  ;;  %v15288_v53 = vpop.f32.mrf.mxu0 }
 0x286   : > { %v7285_v33 = vor.u32 %v7284_v10, %v7283_v44  ;;  %v7771_v35 = vsel %vm11818_vm12, %v9801_v61, %v7770_v47  ;;  %v7772_v32 = vrot.slane %v7770_v47, 4  ;;  %v15277_v44 = vld [vmem:[%s10907_s28 + $0xa4] sm:$0x3]  ;;  %v7298_v41 = vshrl.u32 %v14859_v13, 16  ;;  %v17013_v61 = vld [vmem:[#allocation20_spill] sm:$0xff] }
 0x287   : > { %17012 = vst [vmem:[#allocation60_spill] sm:$0xff] %v15274_v36  ;;  %v7301_v10 = vshll.u32 %v14859_v13, 16  ;;  %v7282_v51 = vrot.slane %v7281_v43, 4  ;;  %v7295_v37 = vor.u32 %v7294_v22, %v7291_v21  ;;  %v17014_v47 = vshrl.u32 %v17013_v61, 16  ;;  %v15292_v36 = vpop.f32.mrf.mxu1 }
 0x288   : > { %v7287_v20 = vrot.slane %v7285_v33, 4  ;;  %v7774_v38 = vsel %vm11818_vm12, %v7772_v32, %v7773_v54  ;;  %v7300_v0 = vrot.slane %v7298_v41, 5  ;;  %v17015_v19 = vshll.u32 %v17013_v61, 16  ;;  %17016 = vst [vmem:[#allocation77_spill] sm:$0xff] %v15292_v36  ;;  %v15300_v32 = vpop.f32.mrf.mxu0 }
 0x289   : > { %v7306_v59 = vrot.slane %v17014_v47, 5  ;;  %v9818_v4 = vcombine.low %v7771_v35, %v7774_v38  ;;  %v7303_v60 = vrot.slane %v7301_v10, 6  ;;  %v7286_v21 = vsel %vm11523_vm10, %v7282_v51, %v7285_v33  ;;  %17017 = vst [vmem:[#allocation11_spill] sm:$0xff] %v15300_v32  ;;  %v15303_v38 = vpop.f32.mrf.mxu1  ;;  %v10828_v33 = vld [vmem:[%s10907_s28 + $0x40] sm:$0xf] }
 0x28a   : > { %v7307_v13 = vrot.slane %v17015_v19, 6  ;;  %v7296_v54 = vsel %vm11523_vm10, %v7287_v20, %v7295_v37  ;;  %v7312_v43 = vshrl.u32 %v15277_v44, 16  ;;  %v7315_v22 = vshll.u32 %v15277_v44, 16  ;;  %17018 = vst [vmem:[#allocation25_spill] sm:$0xff] %v15303_v38  ;;  %v15307_v37 = vpop.f32.mrf.mxu0  ;;  %v10830_v38 = vld [vmem:[%s10907_s28 + $0x58] sm:$0xf] }
 0x28b   : > { %v9761_v35 = vcombine.low %v7286_v21, %v7296_v54  ;;  %10623 = vmatprep.mubr.msk.bf16.mxu0 %vm685_vm3, %v9818_v4  ;;  %v7304_v41 = vor.u32 %v7303_v60, %v7300_v0  ;;  %v9802_v19 = vrot.slane %v9786_v3, 10  ;;  %v7777_v51 = vrot.slane %v10828_v33, 6  ;;  %17019 = vst [vmem:[#allocation27_spill] sm:$0xff] %v15307_v37  ;;  %v17020_v21 = vld [vmem:[#allocation62_spill] sm:$0xff]  ;;  %v17021_v60 = vld [vmem:[#allocation85_spill] sm:$0xff]  ;;  %v15318_v4 = vpop.f32.mrf.mxu1 }
 0x28c   : > { %v7308_v10 = vor.u32 %v7307_v13, %v7306_v59  ;;  %v7314_v61 = vrot.slane %v7312_v43, 5  ;;  %v7317_v47 = vrot.slane %v7315_v22, 6  ;;  %v7780_v20 = vrot.slane %v14886_v29, 6  ;;  %17022 = vst [vmem:[#allocation45_spill] sm:$0xff] %v15318_v4  ;;  %v17023_v22 = vld [vmem:[#allocation84_spill] sm:$0xff] }
 0x28d   : > { %10605 = vmatprep.mubr.msk.bf16.mxu1 %vm685_vm3, %v9761_v35  ;;  %v15312_v54 = vadd.f32 %v17020_v21, %v14908_v39  ;;  %v15316_v0 = vadd.f32 %v17021_v60, %v14915_v58  ;;  %v7305_v3 = vrot.slane %v7304_v41, 4  ;;  %v7778_v29 = vsel %vm11818_vm12, %v9802_v19, %v7777_v51  ;;  %v15326_v39 = vpop.f32.mrf.mxu0  ;;  %v17025_v41 = vld [vmem:[#allocation86_spill] sm:$0xff]  ;;  %v17026_v21 = vld [vmem:[#allocation33_spill] sm:$0xff]  ;;  %v17027_v19 = vld [vmem:[#allocation87_spill] sm:$0xff] }
 0x28e   : > { %v7310_v59 = vrot.slane %v7308_v10, 4  ;;  %v7318_v13 = vor.u32 %v7317_v47, %v7314_v61  ;;  %v7779_v43 = vrot.slane %v7777_v51, 4  ;;  %v15324_v35 = vadd.f32 %v17023_v22, %v14922_v9  ;;  %17024 = vst [vmem:[#allocation30_spill] sm:$0xff] %v15326_v39  ;;  %v15343_v51 = vld [vmem:[%s10907_s28 + $0xb0] sm:$0x3]  ;;  %v15345_v9 = vpop.f32.mrf.mxu1 }
 0x28f   : > { %v7309_v58 = vsel %vm11523_vm10, %v7305_v3, %v7308_v10  ;;  %v15332_v33 = vadd.f32 %v17025_v41, %v14932_v49  ;;  %v15336_v61 = vadd.f32 %v17026_v21, %v14936_v62  ;;  %v15340_v47 = vadd.f32 %v17027_v19, %v14940_v2  ;;  %17028 = vst [vmem:[#allocation50_spill] sm:$0xff] %v15345_v9  ;;  %v9787_v62 = vld [vmem:[%s10907_s28 + $0x48] sm:$0xc]  ;;  %v15354_v22 = vpop.f32.mrf.mxu0 }
 0x290   : > { %v7319_v60 = vsel %vm11523_vm10, %v7310_v59, %v7318_v13  ;;  %v7781_v10 = vsel %vm11818_vm12, %v7779_v43, %v7780_v20  ;;  %v7321_v49 = vshrl.u32 %v14918_v57, 16  ;;  %v7324_v3 = vshll.u32 %v14918_v57, 16  ;;  %17029 = vst [vmem:[#allocation2_spill] sm:$0xff] %v15354_v22  ;;  %v15360_v59 = vpop.f32.mrf.mxu1 }
 0x291   : > { %v9762_v2 = vcombine.low %v7309_v58, %v7319_v60  ;;  %v9819_v41 = vcombine.low %v7778_v29, %v7781_v10  ;;  %v17030_v21 = vshrl.u32 %v14497_v24, 16  ;;  %v17031_v9 = vshll.u32 %v14497_v24, 16  ;;  %17032 = vst [vmem:[#allocation57_spill] sm:$0xff] %v15360_v59  ;;  %v15364_v4 = vpop.f32.mrf.mxu0  ;;  %v10829_v60 = vld [vmem:[%s10907_s28 + $0x4c] sm:$0xf] }
 0x292   : > { %v7323_v13 = vrot.slane %v7321_v49, 5  ;;  %v7326_v20 = vrot.slane %v7324_v3, 6  ;;  %v7335_v43 = vshrl.u32 %v15343_v51, 16  ;;  %v7338_v57 = vshll.u32 %v15343_v51, 16  ;;  %17033 = vst [vmem:[#allocation29_spill] sm:$0xff] %v15364_v4  ;;  %v15370_v10 = vpop.f32.mrf.mxu1  ;;  %v17035_v49 = vld [vmem:[#allocation52_spill] sm:$0xff] }
 0x293   : > { %v7329_v19 = vrot.slane %v17030_v21, 5  ;;  %v7330_v39 = vrot.slane %v17031_v9, 6  ;;  %10606 = vmatmul.mubr.msk.bf16.gmra.mxu1 %vm685_vm3, %v9762_v2  ;;  %10624 = vmatmul.mubr.msk.bf16.gmra.mxu0 %vm685_vm3, %v9819_v41  ;;  %v9803_v58 = vrot.slane %v9787_v62, 10  ;;  %v7784_v24 = vrot.slane %v10829_v60, 6  ;;  %17034 = vst [vmem:[#allocation13_spill] sm:$0xff] %v15370_v10  ;;  %v15379_v2 = vpop.f32.mrf.mxu0 }
 0x294   : > { %v7787_v9 = vrot.slane %v14946_v12, 6  ;;  %v15374_v3 = vadd.f32 %v17035_v49, %v14970_v18  ;;  %v7327_v21 = vor.u32 %v7326_v20, %v7323_v13  ;;  %v7337_v59 = vrot.slane %v7335_v43, 5  ;;  %v15377_v4 = vld [vmem:[%s10907_s28 + $0xbc] sm:$0x3]  ;;  %17036 = vst [vmem:[#allocation79_spill] sm:$0xff] %v15379_v2  ;;  %v15387_v60 = vpop.f32.mrf.mxu1 }
 0x295   : > { %v7331_v29 = vor.u32 %v7330_v39, %v7329_v19  ;;  %v7340_v22 = vrot.slane %v7338_v57, 6  ;;  %v17037_v39 = vld [vmem:[#allocation64_spill] sm:$0xff]  ;;  %v7785_v12 = vsel %vm11818_vm12, %v9803_v58, %v7784_v24  ;;  %v7786_v19 = vrot.slane %v7784_v24, 4  ;;  %17038 = vst [vmem:[#allocation4_spill] sm:$0xff] %v15387_v60  ;;  %v15391_v57 = vpop.f32.mrf.mxu0 }
 0x296   : > { %v15383_v62 = vadd.f32 %v17037_v39, %v14982_v15  ;;  %v7328_v18 = vrot.slane %v7327_v21, 4  ;;  %v7344_v20 = vshrl.u32 %v14966_v48, 16  ;;  %v7347_v43 = vshll.u32 %v14966_v48, 16  ;;  %17039 = vst [vmem:[#allocation81_spill] sm:$0xff] %v15391_v57  ;;  %v17040_v15 = vld [vmem:[#allocation18_spill] sm:$0xff] }
 0x297   : > { %v7333_v41 = vrot.slane %v7331_v29, 4  ;;  %v7341_v13 = vor.u32 %v7340_v22, %v7337_v59  ;;  %v7788_v49 = vsel %vm11818_vm12, %v7786_v19, %v7787_v9  ;;  %v17041_v39 = vshrl.u32 %v17040_v15, 16  ;;  %v9788_v21 = vld [vmem:[%s10907_s28 + $0x54] sm:$0xc]  ;;  %v15401_v22 = vpop.f32.mrf.mxu1  ;;  %v15407_v19 = vpop.f32.mrf.mxu0 }
 0x298   : > { %v17042_v10 = vshll.u32 %v17040_v15, 16  ;;  %v7358_v24 = vshrl.u32 %v15377_v4, 16  ;;  %17043 = vst [vmem:[#allocation80_spill] sm:$0xff] %v15401_v22  ;;  %v7332_v48 = vsel %vm11523_vm10, %v7328_v18, %v7331_v29  ;;  %v9820_v57 = vcombine.low %v7785_v12, %v7788_v49  ;;  %17044 = vst [vmem:[#allocation19_spill] sm:$0xff] %v15407_v19  ;;  %v17046_v18 = vld [vmem:[#allocation15_spill] sm:$0xff] }
 0x299   : > { %v7352_v2 = vrot.slane %v17041_v39, 5  ;;  %v7342_v59 = vsel %vm11523_vm10, %v7333_v41, %v7341_v13  ;;  %v7346_v9 = vrot.slane %v7344_v20, 5  ;;  %v7349_v60 = vrot.slane %v7347_v43, 6  ;;  %v15409_v32 = vpop.f32.mrf.mxu1  ;;  %v15415_v41 = vpop.f32.mrf.mxu0  ;;  %v17048_v12 = vld [vmem:[#allocation31_spill] sm:$0xff]  ;;  %v17049_v13 = vld [vmem:[#allocation37_spill] sm:$0xff] }
 0x29a   : > { %v7353_v58 = vrot.slane %v17042_v10, 6  ;;  %v9763_v39 = vcombine.low %v7332_v48, %v7342_v59  ;;  %v7360_v10 = vrot.slane %v7358_v24, 5  ;;  %17045 = vst [vmem:[#allocation63_spill] sm:$0xff] %v15409_v32  ;;  %10627 = vmatprep.mubr.msk.bf16.mxu0 %vm685_vm3, %v9820_v57  ;;  %v7361_v22 = vshll.u32 %v15377_v4, 16  ;;  %17047 = vst [vmem:[#allocation22_spill] sm:$0xff] %v15415_v41 }
 0x29b   : > { %v9804_v37 = vrot.slane %v9788_v21, 10  ;;  %v7791_v29 = vrot.slane %v10830_v38, 6  ;;  %v7794_v36 = vrot.slane %v17046_v18, 6  ;;  %v15424_v20 = vadd.f32 %v17049_v13, %v15020_v6  ;;  %v15426_v49 = vpop.f32.mrf.mxu1  ;;  %v17051_v21 = vld [vmem:[#allocation40_spill] sm:$0xff]  ;;  %v17053_v6 = vld [vmem:[#allocation21_spill] sm:$0xff] }
 0x29c   : > { %v7354_v15 = vor.u32 %v7353_v58, %v7352_v2  ;;  %10609 = vmatprep.mubr.msk.bf16.mxu1 %vm685_vm3, %v9763_v39  ;;  %v15420_v2 = vadd.f32 %v17048_v12, %v15016_v17  ;;  %v7350_v43 = vor.u32 %v7349_v60, %v7346_v9  ;;  %17050 = vst [vmem:[#allocation10_spill] sm:$0xff] %v15426_v49  ;;  %v7363_v38 = vrot.slane %v7361_v22, 6  ;;  %v15434_v17 = vpop.f32.mrf.mxu0  ;;  %v17054_v60 = vld [vmem:[#allocation67_spill] sm:$0xff]  ;;  %v17055_v9 = vld [vmem:[#allocation44_spill] sm:$0xff] }
 0x29d   : > { %v7792_v58 = vsel %vm11818_vm12, %v9804_v37, %v7791_v29  ;;  %v7793_v24 = vrot.slane %v7791_v29, 4  ;;  %v15432_v48 = vadd.f32 %v17051_v21, %v15030_v27  ;;  %17052 = vst [vmem:[#allocation82_spill] sm:$0xff] %v15434_v17  ;;  %v15438_v39 = vadd.f32 %v17053_v6, %v15034_v63  ;;  %v17056_v22 = vld [vmem:[#allocation39_spill] sm:$0xff]  ;;  %v15451_v29 = vpop.f32.mrf.mxu1  ;;  %v9789_v6 = vld [vmem:[%s10907_s28 + $0x60] sm:$0xc]  ;;  %v17151_v31 = vld [vmem:[#allocation81_spill] sm:$0xff] }
 0x29e   : > { %v7356_v57 = vrot.slane %v7354_v15, 4  ;;  %v7351_v59 = vrot.slane %v7350_v43, 4  ;;  %v15442_v18 = vadd.f32 %v17055_v9, %v17054_v60  ;;  %v17057_v12 = vld [vmem:[#allocation3_spill] sm:$0xff]  ;;  %17058 = vst [vmem:[#allocation36_spill] sm:$0xff] %v15451_v29  ;;  %v7364_v27 = vor.u32 %v7363_v38, %v7360_v10  ;;  %v15458_v17 = vpop.f32.mrf.mxu0 }
 0x29f   : > { %v15446_v13 = vadd.f32 %v17057_v12, %v17056_v22  ;;  %v15449_v37 = vld [vmem:[%s10907_s28 + $0xc8] sm:$0x3]  ;;  %v7795_v43 = vsel %vm11818_vm12, %v7793_v24, %v7794_v36  ;;  %17060 = vst [vmem:[#allocation20_spill] sm:$0xff] %v15458_v17  ;;  %v17061_v22 = vld [vmem:[#allocation6_spill] sm:$0xff]  ;;  %v15466_v38 = vpop.f32.mrf.mxu1  ;;  %v9790_v19 = vld [vmem:[%s10907_s28 + $0x6c] sm:$0xc] }
 0x2a0   : > { %v17059_v21 = vld [vmem:[#allocation23_spill] sm:$0xff]  ;;  %v7355_v60 = vsel %vm11523_vm10, %v7351_v59, %v7354_v15  ;;  %v9821_v9 = vcombine.low %v7792_v58, %v7795_v43  ;;  %v17062_v12 = vshrl.u32 %v17061_v22, 16  ;;  %v17063_v29 = vshll.u32 %v17061_v22, 16  ;;  %17064 = vst [vmem:[#allocation62_spill] sm:$0xff] %v15466_v38  ;;  %v15471_v41 = vpop.f32.mrf.mxu0  ;;  %v10831_v38 = vld [vmem:[%s10907_s28 + $0x64] sm:$0xf] }
 0x2a1   : > { %v7367_v32 = vshrl.u32 %v17059_v21, 16  ;;  %v7370_v63 = vshll.u32 %v17059_v21, 16  ;;  %v7365_v36 = vsel %vm11523_vm10, %v7356_v57, %v7364_v27  ;;  %v7381_v17 = vshrl.u32 %v15449_v37, 16  ;;  %17065 = vst [vmem:[#allocation85_spill] sm:$0xff] %v15471_v41 }
 0x2a2   : > { %v7375_v49 = vrot.slane %v17062_v12, 5  ;;  %v7376_v10 = vrot.slane %v17063_v29, 6  ;;  %v9764_v15 = vcombine.low %v7355_v60, %v7365_v36  ;;  %10628 = vmatmul.mubr.msk.bf16.gmra.mxu0 %vm685_vm3, %v9821_v9  ;;  %v7384_v59 = vshll.u32 %v15449_v37, 16  ;;  %v15475_v29 = vpop.f32.mrf.mxu1  ;;  %v15479_v27 = vpop.f32.mrf.mxu0  ;;  %v17069_v60 = vld [vmem:[#allocation8_spill] sm:$0xff] }
 0x2a3   : > { %v7369_v24 = vrot.slane %v7367_v32, 5  ;;  %v7372_v21 = vrot.slane %v7370_v63, 6  ;;  %v9805_v43 = vrot.slane %v9789_v6, 10  ;;  %17066 = vst [vmem:[#allocation84_spill] sm:$0xff] %v15475_v29  ;;  %v7383_v12 = vrot.slane %v7381_v17, 5  ;;  %17067 = vst [vmem:[#allocation86_spill] sm:$0xff] %v15479_v27 }
 0x2a4   : > { %v7377_v58 = vor.u32 %v7376_v10, %v7375_v49  ;;  %v7798_v57 = vrot.slane %v10831_v38, 6  ;;  %v7801_v32 = vrot.slane %v15050_v14, 6  ;;  %10610 = vmatmul.mubr.msk.bf16.gmra.mxu1 %vm685_vm3, %v9764_v15  ;;  %v17068_v63 = vld [vmem:[#allocation69_spill] sm:$0xff]  ;;  %v17070_v49 = vld [vmem:[#allocation38_spill] sm:$0xff]  ;;  %v7386_v36 = vrot.slane %v7384_v59, 6  ;;  %v15493_v38 = vpop.f32.mrf.mxu1  ;;  %v15498_v27 = vpop.f32.mrf.mxu0 }
 0x2a5   : > { %v7373_v22 = vor.u32 %v7372_v21, %v7369_v24  ;;  %v15484_v9 = vadd.f32 %v17069_v60, %v17068_v63  ;;  %v15488_v6 = vadd.f32 %v17070_v49, %v15080_v46  ;;  %v15491_v17 = vld [vmem:[%s10907_s28 + $0xd4] sm:$0x3]  ;;  %17071 = vst [vmem:[#allocation33_spill] sm:$0xff] %v15493_v38  ;;  %v7390_v15 = vshrl.u32 %v15061_v50, 16  ;;  %17072 = vst [vmem:[#allocation87_spill] sm:$0xff] %v15498_v27  ;;  %v17073_v46 = vld [vmem:[#allocation43_spill] sm:$0xff] }
 0x2a6   : > { %v7379_v10 = vrot.slane %v7377_v58, 4  ;;  %v7799_v24 = vsel %vm11818_vm12, %v9805_v43, %v7798_v57  ;;  %v7800_v21 = vrot.slane %v7798_v57, 4  ;;  %v7387_v63 = vor.u32 %v7386_v36, %v7383_v12  ;;  %v15506_v38 = vpop.f32.mrf.mxu1 }
 0x2a7   : > { %v7374_v14 = vrot.slane %v7373_v22, 4  ;;  %v7393_v60 = vshll.u32 %v15061_v50, 16  ;;  %v17074_v49 = vshrl.u32 %v17073_v46, 16  ;;  %v17075_v59 = vshll.u32 %v17073_v46, 16  ;;  %17076 = vst [vmem:[#allocation52_spill] sm:$0xff] %v15506_v38  ;;  %v15513_v50 = vpop.f32.mrf.mxu0 }
 0x2a8   : > { %v7802_v22 = vsel %vm11818_vm12, %v7800_v21, %v7801_v32  ;;  %v7392_v57 = vrot.slane %v7390_v15, 5  ;;  %v7404_v12 = vshrl.u32 %v15491_v17, 16  ;;  %17077 = vst [vmem:[#allocation64_spill] sm:$0xff] %v15513_v50  ;;  %v7388_v36 = vsel %vm11523_vm10, %v7379_v10, %v7387_v63  ;;  %v15517_v38 = vpop.f32.mrf.mxu1  ;;  %v17078_v15 = vld [vmem:[#allocation48_spill] sm:$0xff] }
 0x2a9   : > { %v7398_v29 = vrot.slane %v17074_v49, 5  ;;  %v7399_v41 = vrot.slane %v17075_v59, 6  ;;  %v7378_v43 = vsel %vm11523_vm10, %v7374_v14, %v7377_v58  ;;  %v9822_v46 = vcombine.low %v7799_v24, %v7802_v22  ;;  %v15520_v21 = vpop.f32.mrf.mxu0  ;;  %v10832_v63 = vld [vmem:[%s10907_s28 + $0x70] sm:$0xf] }
 0x2aa   : > { %v7395_v49 = vrot.slane %v7393_v60, 6  ;;  %v9765_v27 = vcombine.low %v7378_v43, %v7388_v36  ;;  %v7406_v58 = vrot.slane %v7404_v12, 5  ;;  %v7407_v14 = vshll.u32 %v15491_v17, 16  ;;  %v15530_v60 = vpop.f32.mrf.mxu1 }
 0x2ab   : > { %v7400_v59 = vor.u32 %v7399_v41, %v7398_v29  ;;  %v9806_v32 = vrot.slane %v9790_v19, 10  ;;  %10631 = vmatprep.mubr.msk.bf16.mxu0 %vm685_vm3, %v9822_v46  ;;  %v15525_v50 = vadd.f32 %v17078_v15, %v15112_v5  ;;  %v7805_v24 = vrot.slane %v10832_v63, 6  ;;  %v9791_v29 = vld [vmem:[%s10907_s28 + $0x78] sm:$0xc]  ;;  %17079 = vst [vmem:[#allocation18_spill] sm:$0xff] %v15530_v60  ;;  %v17080_v19 = vld [vmem:[#allocation46_spill] sm:$0xff]  ;;  %v15541_v36 = vpop.f32.mrf.mxu0 }
 0x2ac   : > { %v7396_v10 = vor.u32 %v7395_v49, %v7392_v57  ;;  %v7808_v41 = vrot.slane %v15090_v45, 6  ;;  %10613 = vmatprep.mubr.msk.bf16.mxu1 %vm685_vm3, %v9765_v27  ;;  %v15535_v43 = vadd.f32 %v17080_v19, %v15119_v8  ;;  %v7409_v12 = vrot.slane %v7407_v14, 6  ;;  %v17081_v5 = vld [vmem:[#allocation54_spill] sm:$0xff]  ;;  %17082 = vst [vmem:[#allocation15_spill] sm:$0xff] %v15541_v36  ;;  %v17083_v27 = vld [vmem:[#allocation12_spill] sm:$0xff]  ;;  %v15549_v8 = vpop.f32.mrf.mxu1 }
 0x2ad   : > { %v7402_v22 = vrot.slane %v7400_v59, 4  ;;  %v15539_v57 = vadd.f32 %v17081_v5, %v15125_v26  ;;  %v7806_v46 = vsel %vm11818_vm12, %v9806_v32, %v7805_v24  ;;  %v7807_v49 = vrot.slane %v7805_v24, 4  ;;  %17084 = vst [vmem:[#allocation31_spill] sm:$0xff] %v15549_v8  ;;  %v17085_v14 = vld [vmem:[#allocation28_spill] sm:$0xff]  ;;  %v17086_v26 = vld [vmem:[#allocation47_spill] sm:$0xff]  ;;  %v15560_v60 = vpop.f32.mrf.mxu0 }
 0x2ae   : > { %v7397_v45 = vrot.slane %v7396_v10, 4  ;;  %v15547_v15 = vadd.f32 %v17083_v27, %v15134_v7  ;;  %v7410_v63 = vor.u32 %v7409_v12, %v7406_v58  ;;  %v15553_v19 = vadd.f32 %v17085_v14, %v15138_v34  ;;  %v9792_v36 = vld [vmem:[%s10907_s28 + $0x84] sm:$0xc]  ;;  %17087 = vst [vmem:[#allocation37_spill] sm:$0xff] %v15560_v60  ;;  %v10833_v24 = vld [vmem:[%s10907_s28 + $0x7c] sm:$0xf]  ;;  %v15568_v27 = vpop.f32.mrf.mxu1 }
 0x2af   : > { %v15557_v5 = vadd.f32 %v17086_v26, %v15142_v11  ;;  %v9807_v10 = vrot.slane %v9791_v29, 10  ;;  %v7809_v7 = vsel %vm11818_vm12, %v7807_v49, %v7808_v41  ;;  %v7812_v58 = vrot.slane %v10833_v24, 6  ;;  %v17088_v12 = vld [vmem:[#allocation26_spill] sm:$0xff]  ;;  %17089 = vst [vmem:[#allocation40_spill] sm:$0xff] %v15568_v27  ;;  %v17090_v14 = vld [vmem:[#allocation35_spill] sm:$0xff]  ;;  %v17091_v26 = vld [vmem:[#allocation32_spill] sm:$0xff]  ;;  %v15580_v41 = vpop.f32.mrf.mxu0 }
 0x2b0   : > { %v7401_v32 = vsel %vm11523_vm10, %v7397_v45, %v7400_v59  ;;  %v7815_v34 = vrot.slane %v17088_v12, 6  ;;  %v7411_v11 = vsel %vm11523_vm10, %v7402_v22, %v7410_v63  ;;  %v9823_v29 = vcombine.low %v7806_v46, %v7809_v7  ;;  %v17092_v59 = vld [vmem:[#allocation59_spill] sm:$0xff]  ;;  %v17093_v45 = vld [vmem:[#allocation49_spill] sm:$0xff]  ;;  %v15584_v22 = vpop.f32.mrf.mxu1  ;;  %v17095_v46 = vld [vmem:[#allocation24_spill] sm:$0xff] }
 0x2b1   : > { %v15574_v8 = vadd.f32 %v17091_v26, %v17090_v14  ;;  %v15578_v60 = vadd.f32 %v17093_v45, %v17092_v59  ;;  %v9766_v49 = vcombine.low %v7401_v32, %v7411_v11  ;;  %v7813_v24 = vsel %vm11818_vm12, %v9807_v10, %v7812_v58  ;;  %17094 = vst [vmem:[#allocation21_spill] sm:$0xff] %v15584_v22  ;;  %v17096_v7 = vld [vmem:[#allocation65_spill] sm:$0xff]  ;;  %v10834_v26 = vld [vmem:[%s10907_s28 + $0x88] sm:$0xf]  ;;  %v9793_v10 = vld [vmem:[%s10907_s28 + $0x90] sm:$0xc] }
 0x2b2   : > { %v7814_v12 = vrot.slane %v7812_v58, 4  ;;  %v9808_v25 = vrot.slane %v9792_v36, 10  ;;  %10632 = vmatmul.mubr.msk.bf16.gmra.mxu0 %vm685_vm3, %v9823_v29  ;;  %v15589_v63 = vadd.f32 %v17095_v46, %v15207_v30  ;;  %v15593_v14 = vadd.f32 %v17096_v7, %v15212_v56  ;;  %v15598_v58 = vpop.f32.mrf.mxu0  ;;  %v17097_v30 = vld [vmem:[#allocation41_spill] sm:$0xff]  ;;  %v17099_v45 = vld [vmem:[#allocation14_spill] sm:$0xff]  ;;  %v15616_v7 = vpop.f32.mrf.mxu1 }
 0x2b3   : > { %v7819_v32 = vrot.slane %v10834_v26, 6  ;;  %v7822_v11 = vrot.slane %v15177_v55, 6  ;;  %10614 = vmatmul.mubr.msk.bf16.gmra.mxu1 %vm685_vm3, %v9766_v49  ;;  %v15605_v29 = vadd.f32 %v17097_v30, %v15220_v23  ;;  %v17098_v56 = vld [vmem:[#allocation17_spill] sm:$0xff]  ;;  %v15613_v55 = vadd.f32 %v17099_v45, %v15228_v40  ;;  %17100 = vst [vmem:[#allocation67_spill] sm:$0xff] %v15616_v7  ;;  %v10835_v45 = vld [vmem:[%s10907_s28 + $0x94] sm:$0xf] }
 0x2b4   : > { %v7816_v36 = vsel %vm11818_vm12, %v7814_v12, %v7815_v34  ;;  %v15609_v59 = vadd.f32 %v17098_v56, %v15224_v52  ;;  %v9794_v46 = vld [vmem:[%s10907_s28 + $0x9c] sm:$0xc]  ;;  %v15624_v30 = vpop.f32.mrf.mxu0  ;;  %v17103_v52 = vld [vmem:[#allocation66_spill] sm:$0xff]  ;;  %v9809_v40 = vrot.slane %v9793_v10, 10  ;;  %v7826_v7 = vrot.slane %v10835_v45, 6 }
 0x2b5   : > { %v9824_v49 = vcombine.low %v7813_v24, %v7816_v36  ;;  %v7820_v34 = vsel %vm11818_vm12, %v9808_v25, %v7819_v32  ;;  %v7821_v12 = vrot.slane %v7819_v32, 4  ;;  %v17101_v23 = vld [vmem:[#allocation9_spill] sm:$0xff]  ;;  %17102 = vst [vmem:[#allocation44_spill] sm:$0xff] %v15624_v30  ;;  %v15628_v56 = vadd.f32 %v17103_v52, %v15263_v42  ;;  %v15632_v36 = vpop.f32.mrf.mxu1  ;;  %v17105_v25 = vld [vmem:[#allocation60_spill] sm:$0xff]  ;;  %v17106_v32 = vld [vmem:[#allocation51_spill] sm:$0xff] }
 0x2b6   : > { %v15622_v26 = vadd.f32 %v17101_v23, %v15241_v28  ;;  %v7829_v24 = vrot.slane %v15231_v16, 6  ;;  %17104 = vst [vmem:[#allocation39_spill] sm:$0xff] %v15632_v36  ;;  %v15639_v23 = vadd.f32 %v17106_v32, %v17105_v25  ;;  %v9810_v22 = vrot.slane %v9794_v46, 10  ;;  %v10836_v42 = vld [vmem:[%s10907_s28 + $0xa0] sm:$0xf]  ;;  %v15642_v10 = vpop.f32.mrf.mxu0 }
 0x2b7   : > { %10635 = vmatprep.mubr.msk.bf16.mxu0 %vm685_vm3, %v9824_v49  ;;  %v7823_v28 = vsel %vm11818_vm12, %v7821_v12, %v7822_v11  ;;  %v7833_v52 = vrot.slane %v10836_v42, 6  ;;  %v7827_v16 = vsel %vm11818_vm12, %v9809_v40, %v7826_v7  ;;  %v7828_v27 = vrot.slane %v7826_v7, 4  ;;  %v9795_v36 = vld [vmem:[%s10907_s28 + $0xa8] sm:$0xc]  ;;  %v15648_v30 = vpop.f32.mrf.mxu1  ;;  %v17108_v11 = vld [vmem:[#allocation68_spill] sm:$0xff]  ;;  %v17109_v46 = vld [vmem:[#allocation42_spill] sm:$0xff] }
 0x2b8   : > { %v9825_v45 = vcombine.low %v7820_v34, %v7823_v28  ;;  %v7836_v49 = vrot.slane %v15277_v44, 6  ;;  %17107 = vst [vmem:[#allocation3_spill] sm:$0xff] %v15648_v30  ;;  %v15652_v12 = vadd.f32 %v17108_v11, %v15312_v54  ;;  %v15656_v25 = vadd.f32 %v17109_v46, %v15316_v0  ;;  %v15660_v40 = vpop.f32.mrf.mxu0  ;;  %v17111_v7 = vld [vmem:[#allocation78_spill] sm:$0xff] }
 0x2b9   : > { %v7834_v34 = vsel %vm11818_vm12, %v9810_v22, %v7833_v52  ;;  %v7835_v28 = vrot.slane %v7833_v52, 4  ;;  %17110 = vst [vmem:[#allocation23_spill] sm:$0xff] %v15660_v40  ;;  %v7830_v44 = vsel %vm11818_vm12, %v7828_v27, %v7829_v24  ;;  %v15666_v32 = vadd.f32 %v17111_v7, %v15324_v35  ;;  %v17112_v54 = vld [vmem:[#allocation70_spill] sm:$0xff]  ;;  %v9796_v22 = vld [vmem:[%s10907_s28 + $0xb4] sm:$0xc]  ;;  %v15677_v52 = vpop.f32.mrf.mxu1  ;;  %v17115_v35 = vld [vmem:[#allocation71_spill] sm:$0xff] }
 0x2ba   : > { %v15670_v42 = vadd.f32 %v17112_v54, %v15332_v33  ;;  %v17113_v0 = vld [vmem:[#allocation34_spill] sm:$0xff]  ;;  %17114 = vst [vmem:[#allocation6_spill] sm:$0xff] %v15677_v52  ;;  %10636 = vmatmul.mubr.msk.bf16.gmra.mxu0 %vm685_vm3, %v9825_v45  ;;  %v9826_v46 = vcombine.low %v7827_v16, %v7830_v44  ;;  %v15684_v24 = vadd.f32 %v17115_v35, %v15340_v47  ;;  %v9811_v33 = vrot.slane %v9795_v36, 10  ;;  %v15686_v7 = vpop.f32.mrf.mxu0  ;;  %v10837_v45 = vld [vmem:[%s10907_s28 + $0xac] sm:$0xf] }
 0x2bb   : > { %v15674_v11 = vadd.f32 %v17113_v0, %v15336_v61  ;;  %v7837_v27 = vsel %vm11818_vm12, %v7835_v28, %v7836_v49  ;;  %17116 = vst [vmem:[#allocation69_spill] sm:$0xff] %v15686_v7  ;;  %v17117_v61 = vld [vmem:[#allocation72_spill] sm:$0xff]  ;;  %v17118_v0 = vld [vmem:[#allocation7_spill] sm:$0xff]  ;;  %v7840_v16 = vrot.slane %v10837_v45, 6  ;;  %v7843_v49 = vrot.slane %v15343_v51, 6  ;;  %v15698_v28 = vpop.f32.mrf.mxu1  ;;  %v17122_v51 = vld [vmem:[#allocation53_spill] sm:$0xff] }
 0x2bc   : > { %v15690_v54 = vadd.f32 %v17117_v61, %v15374_v3  ;;  %v15694_v52 = vadd.f32 %v17118_v0, %v15383_v62  ;;  %17119 = vst [vmem:[#allocation8_spill] sm:$0xff] %v15698_v28  ;;  %10639 = vmatprep.mubr.msk.bf16.mxu0 %vm685_vm3, %v9826_v46  ;;  %v9827_v47 = vcombine.low %v7834_v34, %v7837_v27  ;;  %v17120_v36 = vld [vmem:[#allocation55_spill] sm:$0xff]  ;;  %v9812_v3 = vrot.slane %v9796_v22, 10  ;;  %v10838_v35 = vld [vmem:[%s10907_s28 + $0xb8] sm:$0xf]  ;;  %v15706_v62 = vpop.f32.mrf.mxu0 }
 0x2bd   : > { %v15703_v44 = vadd.f32 %v17120_v36, %v15420_v2  ;;  %v7847_v61 = vrot.slane %v10838_v35, 6  ;;  %17121 = vst [vmem:[#allocation38_spill] sm:$0xff] %v15706_v62  ;;  %v7841_v0 = vsel %vm11818_vm12, %v9811_v33, %v7840_v16  ;;  %v7842_v45 = vrot.slane %v7840_v16, 4  ;;  %v9797_v46 = vld [vmem:[%s10907_s28 + $0xc0] sm:$0xc]  ;;  %v15716_v27 = vpop.f32.mrf.mxu1  ;;  %v17124_v22 = vld [vmem:[#allocation83_spill] sm:$0xff] }
 0x2be   : > { %v15712_v28 = vadd.f32 %v17122_v51, %v15424_v20  ;;  %v7850_v34 = vrot.slane %v15377_v4, 6  ;;  %17123 = vst [vmem:[#allocation43_spill] sm:$0xff] %v15716_v27  ;;  %v15720_v36 = vadd.f32 %v17124_v22, %v15432_v48  ;;  %v17125_v35 = vld [vmem:[#allocation73_spill] sm:$0xff]  ;;  %v9798_v20 = vld [vmem:[%s10907_s28 + $0xcc] sm:$0xc]  ;;  %v15731_v51 = vpop.f32.mrf.mxu0  ;;  %v9813_v7 = vrot.slane %v9797_v46, 10 }
 0x2bf   : > { %v7849_v2 = vrot.slane %v7847_v61, 4  ;;  %v15724_v62 = vadd.f32 %v17125_v35, %v15438_v39  ;;  %v17126_v33 = vld [vmem:[#allocation61_spill] sm:$0xff]  ;;  %17127 = vst [vmem:[#allocation48_spill] sm:$0xff] %v15731_v51  ;;  %v7844_v4 = vsel %vm11818_vm12, %v7842_v45, %v7843_v49  ;;  %v7848_v27 = vsel %vm11818_vm12, %v9812_v3, %v7847_v61  ;;  %v17129_v39 = vld [vmem:[#allocation58_spill] sm:$0xff] }
 0x2c0   : > { %v15728_v16 = vadd.f32 %v17126_v33, %v15442_v18  ;;  %v17128_v48 = vld [vmem:[#allocation5_spill] sm:$0xff]  ;;  %v15743_v35 = vadd.f32 %v17129_v39, %v15488_v6  ;;  %v15745_v18 = vpop.f32.mrf.mxu1  ;;  %v9828_v33 = vcombine.low %v7841_v0, %v7844_v4  ;;  %v10839_v51 = vld [vmem:[%s10907_s28 + $0xc4] sm:$0xf]  ;;  %v7857_v49 = vrot.slane %v15449_v37, 6  ;;  %v15749_v45 = vpop.f32.mrf.mxu0  ;;  %v17132_v6 = vld [vmem:[#allocation16_spill] sm:$0xff] }
 0x2c1   : > { %v15739_v22 = vadd.f32 %v17128_v48, %v15446_v13  ;;  %17130 = vst [vmem:[#allocation46_spill] sm:$0xff] %v15745_v18  ;;  %v7854_v30 = vrot.slane %v10839_v51, 6  ;;  %v7851_v3 = vsel %vm11818_vm12, %v7849_v2, %v7850_v34  ;;  %v17131_v13 = vld [vmem:[#allocation74_spill] sm:$0xff]  ;;  %v5455_v48 = vadd.f32 %v17132_v6, %v15535_v43  ;;  %v17133_v0 = vld [vmem:[#allocation56_spill] sm:$0xff]  ;;  %v17135_v2 = vld [vmem:[#allocation75_spill] sm:$0xff] }
 0x2c2   : > { %v5017_v61 = vadd.f32 %v17131_v13, %v15525_v50  ;;  %v9814_v39 = vrot.slane %v9798_v20, 10  ;;  %v15757_v40 = vpop.f32.mrf.mxu1  ;;  %10640 = vmatmul.mubr.msk.bf16.gmra.mxu0 %vm685_vm3, %v9827_v47  ;;  %v5012_v46 = vadd.f32 %v17133_v0, %v15484_v9  ;;  %v10840_v51 = vld [vmem:[%s10907_s28 + $0xd0] sm:$0xf]  ;;  %v7864_v18 = vrot.slane %v15491_v17, 6  ;;  %v15764_v34 = vpop.f32.mrf.mxu0 }
 0x2c3   : > { %v7856_v37 = vrot.slane %v7854_v30, 4  ;;  %v7861_v4 = vrot.slane %v10840_v51, 6  ;;  %10643 = vmatprep.mubr.msk.bf16.mxu0 %vm685_vm3, %v9828_v33  ;;  %v17134_v50 = vld [vmem:[#allocation76_spill] sm:$0xff]  ;;  %v5453_v20 = vadd.f32 %v17135_v2, %v15547_v15  ;;  %v5018_v47 = vadd.f32 %v15288_v53, %v15553_v19  ;;  %v17136_v53 = vld [vmem:[#allocation77_spill] sm:$0xff]  ;;  %v17141_v51 = vld [vmem:[#allocation30_spill] sm:$0xff] }
 0x2c4   : > { %v5015_v43 = vadd.f32 %v17134_v50, %v15539_v57  ;;  %v5456_v9 = vadd.f32 %v15281_v1, %v15557_v5  ;;  %v9829_v13 = vcombine.low %v7848_v27, %v7851_v3  ;;  %v7855_v17 = vsel %vm11818_vm12, %v9813_v7, %v7854_v30  ;;  %v15779_v0 = vpop.f32.mrf.mxu0  ;;  %v15781_v57 = vpop.f32.mrf.mxu1  ;;  %v17137_v1 = vld [vmem:[#allocation25_spill] sm:$0xff]  ;;  %v17138_v27 = vld [vmem:[#allocation27_spill] sm:$0xff] }
 0x2c5   : > { %v7858_v6 = vsel %vm11818_vm12, %v7856_v37, %v7857_v49  ;;  %v7863_v33 = vrot.slane %v7861_v4, 4  ;;  %v7862_v15 = vsel %vm11818_vm12, %v9814_v39, %v7861_v4  ;;  %v5454_v19 = vadd.f32 %v17136_v53, %v15578_v60  ;;  %v17139_v7 = vld [vmem:[#allocation11_spill] sm:$0xff]  ;;  %v17140_v3 = vld [vmem:[#allocation45_spill] sm:$0xff]  ;;  %v17143_v39 = vld [vmem:[#allocation50_spill] sm:$0xff] }
 0x2c6   : > { %v5459_v5 = vadd.f32 %v17137_v1, %v15589_v63  ;;  %v15791_v30 = vadd.f32 %v17138_v27, %v15593_v14  ;;  %v5016_v49 = vadd.f32 %v17139_v7, %v15574_v8  ;;  %v5457_v37 = vadd.f32 %v17140_v3, %v15605_v29  ;;  %v10513_v4 = vpop.f32.mrf.mxu0  ;;  %v17144_v14 = vld [vmem:[#allocation2_spill] sm:$0xff]  ;;  %v17146_v8 = vld [vmem:[#allocation29_spill] sm:$0xff]  ;;  %v17149_v27 = vld [vmem:[#allocation79_spill] sm:$0xff] }
 0x2c7   : > { %v15799_v50 = vadd.f32 %v17141_v51, %v15609_v59  ;;  %v5460_v60 = vadd.f32 %v17143_v39, %v15613_v55  ;;  %v9830_v2 = vcombine.low %v7855_v17, %v7858_v6  ;;  %v7865_v63 = vsel %vm11818_vm12, %v7863_v33, %v7864_v18  ;;  %v17148_v29 = vld [vmem:[#allocation13_spill] sm:$0xff]  ;;  %v17150_v55 = vld [vmem:[#allocation4_spill] sm:$0xff]  ;;  %v10531_v6 = vpop.f32.mrf.mxu1  ;;  %v17154_v39 = vld [vmem:[#allocation19_spill] sm:$0xff] }
 0x2c8   : > { %v15807_v53 = vadd.f32 %v17144_v14, %v15622_v26  ;;  %v15811_v1 = vadd.f32 %v17146_v8, %v15639_v23  ;;  %v5463_v59 = vadd.f32 %v17148_v29, %v15652_v12  ;;  %v5806_v7 = vadd.f32 %v17149_v27, %v15656_v25  ;;  %v5785_v33 = vpop.f32.mrf.mxu0  ;;  %v17152_v26 = vld [vmem:[#allocation57_spill] sm:$0xff]  ;;  %v17153_v23 = vld [vmem:[#allocation80_spill] sm:$0xff]  ;;  %v17155_v14 = vld [vmem:[#allocation22_spill] sm:$0xff] }
 0x2c9   : > { %17142 = vst [vmem:[#allocation54_spill] sm:$0xff] %v15799_v50  ;;  %v5461_v17 = vadd.f32 %v17150_v55, %v15666_v32  ;;  %v5804_v18 = vadd.f32 %v17151_v31, %v15670_v42  ;;  %v5458_v3 = vadd.f32 %v17152_v26, %v15628_v56  ;;  %v5464_v51 = vadd.f32 %v17153_v23, %v15674_v11  ;;  %v17156_v32 = vld [vmem:[#allocation10_spill] sm:$0xff]  ;;  %v17158_v27 = vld [vmem:[#allocation36_spill] sm:$0xff]  ;;  %v6447_v31 = vpop.f32.mrf.mxu1 }
 0x2ca   : > { %17145 = vst [vmem:[#allocation12_spill] sm:$0xff] %v15807_v53  ;;  %17147 = vst [vmem:[#allocation28_spill] sm:$0xff] %v15811_v1  ;;  %v5807_v12 = vadd.f32 %v17154_v39, %v15684_v24  ;;  %v5805_v25 = vadd.f32 %v17155_v14, %v15694_v52  ;;  %10644 = vmatmul.mubr.msk.bf16.gmra.mxu0 %vm685_vm3, %v9829_v13  ;;  %v5467_v8 = vadd.f32 %v17156_v32, %v15703_v44  ;;  %v17157_v42 = vld [vmem:[#allocation82_spill] sm:$0xff]  ;;  %v17159_v55 = vld [vmem:[#allocation20_spill] sm:$0xff] }
 0x2cb   : > { %v5810_v29 = vadd.f32 %v17157_v42, %v15712_v28  ;;  %v5465_v56 = vadd.f32 %v17158_v27, %v15720_v36  ;;  %v5808_v11 = vadd.f32 %v17159_v55, %v15724_v62  ;;  %10647 = vmatprep.mubr.msk.bf16.mxu0 %vm685_vm3, %v9830_v2  ;;  %v17160_v24 = vld [vmem:[#allocation62_spill] sm:$0xff]  ;;  %v17161_v13 = vld [vmem:[#allocation85_spill] sm:$0xff]  ;;  %v17162_v23 = vld [vmem:[#allocation84_spill] sm:$0xff]  ;;  %v10514_v2 = vpop.f32.mrf.mxu0  ;;  %v5472_v53 = vadd.f32 %v15517_v38, %v5018_v47 }
 0x2cc   : > { %v5468_v52 = vadd.f32 %v17160_v24, %v15728_v16  ;;  %v5811_v26 = vadd.f32 %v17161_v13, %v15739_v22  ;;  %v5466_v44 = vadd.f32 %v17162_v23, %v5012_v46  ;;  %v17163_v39 = vld [vmem:[#allocation86_spill] sm:$0xff]  ;;  %v17164_v14 = vld [vmem:[#allocation33_spill] sm:$0xff]  ;;  %v17165_v36 = vld [vmem:[#allocation87_spill] sm:$0xff]  ;;  %v5815_v16 = vadd.f32 %v15520_v21, %v5456_v9  ;;  %v10532_v23 = vpop.f32.mrf.mxu1 }
 0x2cd   : > { %v5809_v28 = vadd.f32 %v17163_v39, %v15743_v35  ;;  %v5471_v32 = vadd.f32 %v17164_v14, %v5017_v61  ;;  %v5814_v42 = vadd.f32 %v17165_v36, %v5455_v48  ;;  %v17166_v27 = vld [vmem:[#allocation52_spill] sm:$0xff]  ;;  %v17168_v24 = vld [vmem:[#allocation18_spill] sm:$0xff]  ;;  %v17169_v13 = vld [vmem:[#allocation15_spill] sm:$0xff]  ;;  %v9831_v50 = vcombine.low %v7862_v15, %v7865_v63  ;;  %v5788_v15 = vpop.f32.mrf.mxu0 }
 0x2ce   : > { %v5469_v62 = vadd.f32 %v17166_v27, %v5015_v43  ;;  %v17167_v55 = vld [vmem:[#allocation64_spill] sm:$0xff]  ;;  %v5470_v22 = vadd.f32 %v17168_v24, %v5016_v49  ;;  %v5813_v46 = vadd.f32 %v17169_v13, %v5454_v19  ;;  %v17170_v35 = vld [vmem:[#allocation37_spill] sm:$0xff]  ;;  %v5816_v61 = vadd.f32 %v15580_v41, %v5457_v37  ;;  %v17171_v48 = vld [vmem:[#allocation63_spill] sm:$0xff] }
 0x2cf   : > { %v5812_v1 = vadd.f32 %v17167_v55, %v5453_v20  ;;  %v5818_v39 = vadd.f32 %v17170_v35, %v5459_v5  ;;  %v5462_v43 = vadd.f32 %v17171_v48, %v15690_v54  ;;  %v5819_v20 = vadd.f32 %v15598_v58, %v5460_v60  ;;  %v17172_v14 = vld [vmem:[#allocation44_spill] sm:$0xff]  ;;  %v17173_v21 = vld [vmem:[#allocation39_spill] sm:$0xff]  ;;  %v17176_v63 = vld [vmem:[#allocation69_spill] sm:$0xff]  ;;  %v6450_v58 = vpop.f32.mrf.mxu1 }
 0x2d0   : > { %v5817_v36 = vadd.f32 %v17172_v14, %v5458_v3  ;;  %v5822_v38 = vadd.f32 %v15642_v10, %v5463_v59  ;;  %v6532_v47 = vadd.f32 %v17173_v21, %v5806_v7  ;;  %v17174_v9 = vld [vmem:[#allocation23_spill] sm:$0xff]  ;;  %v5823_v5 = vadd.f32 %v17176_v63, %v5464_v51  ;;  %v17177_v55 = vld [vmem:[#allocation6_spill] sm:$0xff]  ;;  %v17179_v54 = vld [vmem:[#allocation8_spill] sm:$0xff]  ;;  %v15877_v21 = vpop.f32.mrf.mxu0 }
 0x2d1   : > { %v5820_v49 = vadd.f32 %v17174_v9, %v5461_v17  ;;  %v17175_v19 = vld [vmem:[#allocation3_spill] sm:$0xff]  ;;  %v6533_v41 = vadd.f32 %v17177_v55, %v5807_v12  ;;  %v17178_v37 = vld [vmem:[#allocation38_spill] sm:$0xff]  ;;  %v6531_v13 = vadd.f32 %v17179_v54, %v5805_v25  ;;  %v17180_v60 = vld [vmem:[#allocation48_spill] sm:$0xff]  ;;  %v5824_v17 = vadd.f32 %v15749_v45, %v5465_v56  ;;  %v10535_v56 = vpop.f32.mrf.mxu1 }
 0x2d2   : > { %v6530_v27 = vadd.f32 %v17175_v19, %v5804_v18  ;;  %v5821_v24 = vadd.f32 %v17178_v37, %v5462_v43  ;;  %10648 = vmatmul.mubr.msk.bf16.gmra.mxu0 %vm685_vm3, %v9831_v50  ;;  %v5826_v10 = vadd.f32 %v17180_v60, %v5467_v8  ;;  %v17181_v59 = vld [vmem:[#allocation43_spill] sm:$0xff]  ;;  %v17182_v3 = vld [vmem:[#allocation46_spill] sm:$0xff]  ;;  %v5827_v35 = vadd.f32 %v15764_v34, %v5468_v52  ;;  %v15879_v19 = vpop.f32.mrf.mxu0 }
 0x2d3   : > { %v6536_v7 = vadd.f32 %v17181_v59, %v5810_v29  ;;  %v6534_v18 = vadd.f32 %v17182_v3, %v5808_v11  ;;  %v6537_v51 = vadd.f32 %v15757_v40, %v5811_v26  ;;  %v5825_v12 = vadd.f32 %v15779_v0, %v5466_v44  ;;  %v6463_v34 = vpop.f32.mrf.mxu1 }
 0x2d4   : > { %v6535_v48 = vadd.f32 %v15781_v57, %v5809_v28  ;;  %v5830_v25 = vadd.f32 %v10513_v4, %v5471_v32  ;;  %v6540_v43 = vadd.f32 %v10531_v6, %v5814_v42  ;;  %v5828_v14 = vadd.f32 %v5785_v33, %v5469_v62  ;;  %v15881_v26 = vpop.f32.mrf.mxu0 }
 0x2d5   : > { %v6538_v50 = vadd.f32 %v6447_v31, %v5812_v1  ;;  %v5831_v8 = vadd.f32 %v10514_v2, %v5472_v53  ;;  %v6541_v29 = vadd.f32 %v10532_v23, %v5815_v16  ;;  %v5829_v9 = vadd.f32 %v5788_v15, %v5470_v22  ;;  %v10536_v52 = vpop.f32.mrf.mxu1 }
 0x2d6   : > { %v6539_v45 = vadd.f32 %v6450_v58, %v5813_v46  ;;  %v6544_v11 = vadd.f32 %v10535_v56, %v5818_v39  ;;  %v6542_v40 = vadd.f32 %v6463_v34, %v5816_v61  ;;  %v6545_v0 = vadd.f32 %v10536_v52, %v5819_v20  ;;  %v15883_v6 = vpop.f32.mrf.mxu0 }
 0x2d7   : > { %v6466_v57 = vpop.f32.mrf.mxu1 }
 0x2d8   : > { %v6543_v4 = vadd.f32 %v6466_v57, %v5817_v36 }
 0x2da   : > { %v10557_v1 = vpop.f32.mrf.mxu0 }
 0x2db   : > { %v15885_v53 = vadd.f32 %v10557_v1, %v6532_v47 }
 0x2dc   : > { %v10539_v33 = vpop.f32.mrf.mxu1  ;;  %v6885_v44 = vpop.f32.mrf.mxu0 }
 0x2dd   : > { %v6548_v31 = vadd.f32 %v10539_v33, %v5822_v38  ;;  %v15887_v32 = vadd.f32 %v6885_v44, %v6530_v27 }
 0x2de   : > { %v6479_v28 = vpop.f32.mrf.mxu1  ;;  %v10558_v62 = vpop.f32.mrf.mxu0 }
 0x2df   : > { %v6546_v42 = vadd.f32 %v6479_v28, %v5820_v49  ;;  %v15889_v16 = vadd.f32 %v10558_v62, %v6533_v41 }
 0x2e0   : > { %v10540_v2 = vpop.f32.mrf.mxu1  ;;  %v6888_v46 = vpop.f32.mrf.mxu0 }
 0x2e1   : > { %v6549_v22 = vadd.f32 %v10540_v2, %v5823_v5  ;;  %v15891_v39 = vadd.f32 %v6888_v46, %v6531_v13 }
 0x2e2   : > { %v6482_v23 = vpop.f32.mrf.mxu1 }
 0x2e3   : > { %v6547_v61 = vadd.f32 %v6482_v23, %v5821_v24 }
 0x2e8   : > { %v10561_v20 = vpop.f32.mrf.mxu0 }
 0x2e9   : > { %v10543_v36 = vpop.f32.mrf.mxu1  ;;  %v15893_v47 = vadd.f32 %v10561_v20, %v6536_v7 }
 0x2ea   : > { %v6552_v38 = vadd.f32 %v10543_v36, %v5826_v10  ;;  %v6901_v15 = vpop.f32.mrf.mxu0 }
 0x2eb   : > { %v6495_v63 = vpop.f32.mrf.mxu1  ;;  %v15895_v27 = vadd.f32 %v6901_v15, %v6534_v18 }
 0x2ec   : > { %v6550_v49 = vadd.f32 %v6495_v63, %v5824_v17  ;;  %v10562_v55 = vpop.f32.mrf.mxu0 }
 0x2ed   : > { %v10544_v37 = vpop.f32.mrf.mxu1  ;;  %v15897_v41 = vadd.f32 %v10562_v55, %v6537_v51 }
 0x2ee   : > { %v6553_v5 = vadd.f32 %v10544_v37, %v5827_v35  ;;  %v6904_v54 = vpop.f32.mrf.mxu0 }
 0x2ef   : > { %v6498_v58 = vpop.f32.mrf.mxu1  ;;  %v15899_v13 = vadd.f32 %v6904_v54, %v6535_v48 }
 0x2f0   : > { %v6551_v24 = vadd.f32 %v6498_v58, %v5825_v12 }
 0x2f6   : > { %v10565_v60 = vpop.f32.mrf.mxu0 }
 0x2f7   : > { %v10547_v59 = vpop.f32.mrf.mxu1  ;;  %v15901_v7 = vadd.f32 %v10565_v60, %v6540_v43 }
 0x2f8   : > { %v6556_v10 = vadd.f32 %v10547_v59, %v5830_v25  ;;  %v6917_v3 = vpop.f32.mrf.mxu0 }
 0x2f9   : > { %v6511_v56 = vpop.f32.mrf.mxu1  ;;  %v15903_v18 = vadd.f32 %v6917_v3, %v6538_v50 }
 0x2fa   : > { %v6554_v17 = vadd.f32 %v6511_v56, %v5828_v14  ;;  %v10566_v34 = vpop.f32.mrf.mxu0 }
 0x2fb   : > { %v10548_v52 = vpop.f32.mrf.mxu1  ;;  %v15905_v51 = vadd.f32 %v10566_v34, %v6541_v29 }
 0x2fc   : > { %v6557_v35 = vadd.f32 %v10548_v52, %v5831_v8  ;;  %v6920_v57 = vpop.f32.mrf.mxu0 }
 0x2fd   : > { %v6514_v1 = vpop.f32.mrf.mxu1  ;;  %v15907_v48 = vadd.f32 %v6920_v57, %v6539_v45 }
 0x2fe   : > { %v6555_v12 = vadd.f32 %v6514_v1, %v5829_v9 }
 0x300   : > { %v10569_v33 = vpop.f32.mrf.mxu0 }
 0x301   : > { %v15909_v44 = vadd.f32 %v10569_v33, %v6544_v11 }
 0x302   : > { %v6933_v43 = vpop.f32.mrf.mxu0 }
 0x303   : > { %v15911_v25 = vadd.f32 %v6933_v43, %v6542_v40  ;;  %v8712_v40 = vld [vmem:[%s16096_s3 + $0x8] sm:$0xff] }
 0x304   : > { %v10570_v28 = vpop.f32.mrf.mxu0  ;;  %10651 = vmatprep.subr.mxu1 %v8712_v40 }
 0x305   : > { %v15913_v50 = vadd.f32 %v10570_v28, %v6545_v0  ;;  %v8711_v0 = vld [vmem:[%s16096_s3] sm:$0xff]  ;;  %10652 = vmatpush3.msra.mxu1 %v8712_v40  ;;  %v17187_v40 = vld [vmem:[#allocation21_spill] sm:$0xff] }
 0x306   : > { %v6936_v14 = vpop.f32.mrf.mxu0  ;;  %10653 = vmatprep.subr.mxu1 %v8711_v0 }
 0x307   : > { %v15915_v62 = vadd.f32 %v6936_v14, %v6543_v4  ;;  %10654 = vmatpush3.msra.mxu1 %v8711_v0 }
 0x308   : > { %v10587_v2 = vpop.f32.mrf.mxu1 }
 0x30a   : > { %v7547_v23 = vpop.f32.mrf.mxu1 }
 0x311   : > { %v10573_v29 = vpop.f32.mrf.mxu0 }
 0x312   : > { %v15917_v8 = vadd.f32 %v10573_v29, %v6548_v31  ;;  %v10588_v31 = vpop.f32.mrf.mxu1  ;;  %v17184_v29 = vld [vmem:[#allocation54_spill] sm:$0xff] }
 0x313   : > { %v6949_v46 = vpop.f32.mrf.mxu0 }
 0x314   : > { %v15919_v45 = vadd.f32 %v6949_v46, %v6546_v42  ;;  %v7550_v42 = vpop.f32.mrf.mxu1 }
 0x315   : > { %v10574_v9 = vpop.f32.mrf.mxu0 }
 0x316   : > { %v15921_v11 = vadd.f32 %v10574_v9, %v6549_v22 }
 0x317   : > { %v6952_v20 = vpop.f32.mrf.mxu0  ;;  %v10591_v63 = vpop.f32.mrf.mxu1 }
 0x318   : > { %v15929_v4 = vadd.f32 %v6952_v20, %v6547_v61  ;;  %v17186_v20 = vld [vmem:[#allocation12_spill] sm:$0xff] }
 0x319   : > { %v7563_v60 = vpop.f32.mrf.mxu1 }
 0x31b   : > { %v10592_v59 = vpop.f32.mrf.mxu1 }
 0x31d   : > { %v7566_v3 = vpop.f32.mrf.mxu1 }
 0x31f   : > { %v10577_v36 = vpop.f32.mrf.mxu0 }
 0x320   : > { %v15931_v22 = vadd.f32 %v10577_v36, %v6552_v38 }
 0x321   : > { %v6965_v15 = vpop.f32.mrf.mxu0 }
 0x322   : > { %v15933_v55 = vadd.f32 %v6965_v15, %v6550_v49  ;;  %v15964_v15 = vld [vmem:[%s16095_s2] ss:$0 sm:$0xff] }
 0x323   : > { %v10578_v37 = vpop.f32.mrf.mxu0 }
 0x324   : > { %v15935_v54 = vadd.f32 %v10578_v37, %v6553_v5  ;;  %v17189_v37 = vld [vmem:[#allocation67_spill] sm:$0xff] }
 0x325   : > { %v6968_v58 = vpop.f32.mrf.mxu0 }
 0x326   : > { %v15937_v61 = vadd.f32 %v6968_v58, %v6551_v24  ;;  %v17183_v24 = vld [vmem:[#allocation31_spill] sm:$0xff] }
 0x327   : > { %v15943_v38 = vpop.f32.mrf.mxu1  ;;  %v6528_v14 = vadd.f32 %v17183_v24, %v15791_v30  ;;  %v17188_v30 = vld [vmem:[#allocation28_spill] sm:$0xff] }
 0x328   : > { %v6527_v58 = vadd.f32 %v17189_v37, %v17188_v30  ;;  %v7681_v37 = vadd.f32 %v10592_v59, %v15889_v16  ;;  %v7684_v59 = vadd.f32 %v15943_v38, %v15893_v47 }
 0x329   : > { %v7579_v43 = vpop.f32.mrf.mxu1 }
 0x32a   : > { %v6997_v24 = vadd.f32 %v15883_v6, %v6527_v58 }
 0x32b   : > { %v15949_v28 = vpop.f32.mrf.mxu1 }
 0x32d   : > { %v15956_v9 = vpop.f32.mrf.mxu1 }
 0x330   : > { %v10581_v56 = vpop.f32.mrf.mxu0 }
 0x331   : > { %v15939_v34 = vadd.f32 %v10581_v56, %v6556_v10  ;;  %v17185_v10 = vld [vmem:[#allocation40_spill] sm:$0xff] }
 0x332   : > { %v6981_v52 = vpop.f32.mrf.mxu0  ;;  %v6526_v46 = vadd.f32 %v17185_v10, %v17184_v29  ;;  %v7675_v10 = vadd.f32 %v7550_v42, %v6997_v24  ;;  %v7678_v42 = vadd.f32 %v7563_v60, %v15887_v32 }
 0x333   : > { %v15941_v57 = vadd.f32 %v6981_v52, %v6554_v17  ;;  %v6998_v17 = vadd.f32 %v15877_v21, %v6528_v14 }
 0x334   : > { %v10582_v1 = vpop.f32.mrf.mxu0  ;;  %v6996_v0 = vadd.f32 %v15879_v19, %v6526_v46 }
 0x335   : > { %v15945_v49 = vadd.f32 %v10582_v1, %v6557_v35  ;;  %v6529_v35 = vadd.f32 %v17187_v40, %v17186_v20 }
 0x336   : > { %v6984_v33 = vpop.f32.mrf.mxu0  ;;  %v7674_v21 = vadd.f32 %v7547_v23, %v6996_v0  ;;  %v15969_v1 = vpop.f32.mrf.mxu1 }
 0x337   : > { %v15947_v5 = vadd.f32 %v6984_v33, %v6555_v12  ;;  %v7676_v12 = vadd.f32 %v10587_v2, %v6998_v17  ;;  %v6999_v56 = vadd.f32 %v15881_v26, %v6529_v35 }
 0x338   : > { %v7595_v20 = vpop.f32.mrf.mxu1 }
 0x339   : > { %v7677_v19 = vadd.f32 %v10588_v31, %v6999_v56  ;;  %v7680_v31 = vadd.f32 %v10591_v63, %v15885_v53 }
 0x33a   : > { %v10600_v6 = vpop.f32.mrf.mxu1 }
 0x33c   : > { %v7598_v0 = vpop.f32.mrf.mxu1 }
 0x343   : > { %v10621_v36 = vpop.f32.mrf.mxu0 }
 0x344   : > { %v8130_v52 = vadd.f32 %v10621_v36, %v7676_v12  ;;  %v10603_v58 = vpop.f32.mrf.mxu1 }
 0x345   : > { %v8001_v33 = vpop.f32.mrf.mxu0 }
 0x346   : > { %v8128_v2 = vadd.f32 %v8001_v33, %v7674_v21  ;;  %v8169_v14 = vadd.f32 %v15964_v15, %v8130_v52  ;;  %v7679_v33 = vadd.f32 %v7566_v3, %v15891_v39  ;;  %v7611_v63 = vpop.f32.mrf.mxu1  ;;  %v7682_v39 = vadd.f32 %v7579_v43, %v15895_v27 }
 0x347   : > { %v10622_v29 = vpop.f32.mrf.mxu0 }
 0x348   : > { %v8131_v46 = vadd.f32 %v10622_v29, %v7677_v19  ;;  %8231 = vxpose.xlu1.b32.start [1/2] (short) (narrow) %v8169_v14, 8  ;;  %v8167_v17 = vadd.f32 %v15964_v15, %v8128_v2  ;;  %v10604_v16 = vpop.f32.mrf.mxu1 }
 0x349   : > { %v8004_v40 = vpop.f32.mrf.mxu0 }
 0x34a   : > { %v8129_v26 = vadd.f32 %v8004_v40, %v7675_v10  ;;  %8199 = vxpose.xlu0.b32.start [1/2] (short) (narrow) %v8167_v17, 8  ;;  %v8170_v23 = vadd.f32 %v15964_v15, %v8131_v46  ;;  %v7614_v3 = vpop.f32.mrf.mxu1  ;;  %v7685_v46 = vadd.f32 %v15949_v28, %v15897_v41 }
 0x34c   : > { %8232 = vxpose.xlu1.b32.end [2/2] (short) (narrow) %v8170_v23, 8  ;;  %v8168_v35 = vadd.f32 %v15964_v15, %v8129_v26  ;;  %v7683_v23 = vadd.f32 %v15956_v9, %v15899_v13  ;;  %v7686_v9 = vadd.f32 %v7595_v20, %v15903_v18 }
 0x34e   : > { %8200 = vxpose.xlu0.b32.end [2/2] (short) (narrow) %v8168_v35, 8 }
 0x353   : > { %v10625_v12 = vpop.f32.mrf.mxu0  ;;  %v10607_v35 = vpop.f32.mrf.mxu1 }
 0x354   : > { %v8134_v36 = vadd.f32 %v10625_v12, %v7680_v31 }
 0x355   : > { %v8017_v30 = vpop.f32.mrf.mxu0  ;;  %v7627_v12 = vpop.f32.mrf.mxu1 }
 0x356   : > { %v8132_v56 = vadd.f32 %v8017_v30, %v7678_v42  ;;  %v8173_v21 = vadd.f32 %v15964_v15, %v8134_v36  ;;  %v7688_v42 = vadd.f32 %v15969_v1, %v15901_v7  ;;  %v7692_v1 = vadd.f32 %v10603_v58, %v15909_v44 }
 0x357   : > { %v10626_v52 = vpop.f32.mrf.mxu0  ;;  %v10608_v28 = vpop.f32.mrf.mxu1  ;;  %v7691_v58 = vadd.f32 %v7614_v3, %v15915_v62 }
 0x358   : > { %v8135_v24 = vadd.f32 %v10626_v52, %v7681_v37  ;;  %8295 = vxpose.xlu1.b32.start [1/2] (short) (narrow) %v8173_v21, 8  ;;  %v8171_v19 = vadd.f32 %v15964_v15, %v8132_v56  ;;  %v7689_v56 = vadd.f32 %v10600_v6, %v15905_v51  ;;  %v7690_v51 = vadd.f32 %v7611_v63, %v15911_v25 }
 0x359   : > { %v8020_v53 = vpop.f32.mrf.mxu0  ;;  %v7630_v30 = vpop.f32.mrf.mxu1 }
 0x35a   : > { %v8174_v2 = vadd.f32 %v15964_v15, %v8135_v24  ;;  %v8133_v32 = vadd.f32 %v8020_v53, %v7679_v33  ;;  %8263 = vxpose.xlu0.b32.start [1/2] (short) (narrow) %v8171_v19, 8  ;;  %v7687_v24 = vadd.f32 %v7598_v0, %v15907_v48 }
 0x35c   : > { %v8172_v60 = vadd.f32 %v15964_v15, %v8133_v32  ;;  %8296 = vxpose.xlu1.b32.end [2/2] (short) (narrow) %v8174_v2, 8 }
 0x35e   : > { %8264 = vxpose.xlu0.b32.end [2/2] (short) (narrow) %v8172_v60, 8 }
 0x362   : > { %v10629_v14 = vpop.f32.mrf.mxu0 }
 0x363   : > { %v8138_v29 = vadd.f32 %v10629_v14, %v7684_v59  ;;  %v7693_v59 = vadd.f32 %v10604_v16, %v15913_v50  ;;  %v7694_v16 = vadd.f32 %v7627_v12, %v15919_v45 }
 0x364   : > { %v8033_v10 = vpop.f32.mrf.mxu0  ;;  %v10611_v2 = vpop.f32.mrf.mxu1 }
 0x365   : > { %v8136_v17 = vadd.f32 %v8033_v10, %v7682_v39  ;;  %v8177_v40 = vadd.f32 %v15964_v15, %v8138_v29 }
 0x366   : > { %v10630_v26 = vpop.f32.mrf.mxu0  ;;  %v7643_v48 = vpop.f32.mrf.mxu1 }
 0x367   : > { %v8139_v31 = vadd.f32 %v10630_v26, %v7685_v46  ;;  %8359 = vxpose.xlu1.b32.start [1/2] (short) (narrow) %v8177_v40, 8  ;;  %v8175_v47 = vadd.f32 %v15964_v15, %v8136_v17  ;;  %v7696_v46 = vadd.f32 %v10607_v35, %v15917_v8  ;;  %v7695_v35 = vadd.f32 %v7630_v30, %v15929_v4 }
 0x368   : > { %v8036_v38 = vpop.f32.mrf.mxu0  ;;  %v10612_v25 = vpop.f32.mrf.mxu1 }
 0x369   : > { %v8178_v27 = vadd.f32 %v15964_v15, %v8139_v31  ;;  %v8137_v43 = vadd.f32 %v8036_v38, %v7683_v23  ;;  %8327 = vxpose.xlu0.b32.start [1/2] (short) (narrow) %v8175_v47, 8  ;;  %v7697_v31 = vadd.f32 %v10608_v28, %v15921_v11  ;;  %v7698_v28 = vadd.f32 %v7643_v48, %v15933_v55 }
 0x36a   : > { %v7646_v62 = vpop.f32.mrf.mxu1 }
 0x36b   : > { %v8176_v41 = vadd.f32 %v15964_v15, %v8137_v43  ;;  %8360 = vxpose.xlu1.b32.end [2/2] (short) (narrow) %v8178_v27, 8 }
 0x36d   : > { %8328 = vxpose.xlu0.b32.end [2/2] (short) (narrow) %v8176_v41, 8  ;;  %v7700_v41 = vadd.f32 %v10611_v2, %v15931_v22 }
 0x372   : > { %v10633_v13 = vpop.f32.mrf.mxu0 }
 0x373   : > { %v8142_v36 = vadd.f32 %v10633_v13, %v7688_v42  ;;  %v10615_v45 = vpop.f32.mrf.mxu1 }
 0x374   : > { %v8049_v37 = vpop.f32.mrf.mxu0 }
 0x375   : > { %v8140_v21 = vadd.f32 %v8049_v37, %v7686_v9  ;;  %v8181_v52 = vadd.f32 %v15964_v15, %v8142_v36  ;;  %v7659_v4 = vpop.f32.mrf.mxu1  ;;  %v7701_v37 = vadd.f32 %v10612_v25, %v15935_v54 }
 0x376   : > { %v10634_v33 = vpop.f32.mrf.mxu0 }
 0x377   : > { %v8143_v19 = vadd.f32 %v10634_v33, %v7689_v56  ;;  %8423 = vxpose.xlu1.b32.start [1/2] (short) (narrow) %v8181_v52, 8  ;;  %v8179_v53 = vadd.f32 %v15964_v15, %v8140_v21  ;;  %v7699_v52 = vadd.f32 %v7646_v62, %v15937_v61  ;;  %v10616_v55 = vpop.f32.mrf.mxu1 }
 0x378   : > { %v8052_v7 = vpop.f32.mrf.mxu0 }
 0x379   : > { %v8182_v18 = vadd.f32 %v15964_v15, %v8143_v19  ;;  %v8141_v20 = vadd.f32 %v8052_v7, %v7687_v24  ;;  %8391 = vxpose.xlu0.b32.start [1/2] (short) (narrow) %v8179_v53, 8  ;;  %v7704_v53 = vadd.f32 %v10615_v45, %v15939_v34  ;;  %v7662_v61 = vpop.f32.mrf.mxu1 }
 0x37a   : > { %v10637_v32 = vpop.f32.mrf.mxu0  ;;  %v7703_v48 = vadd.f32 %v7662_v61, %v15947_v5 }
 0x37b   : > { %v8180_v6 = vadd.f32 %v15964_v15, %v8141_v20  ;;  %v8146_v60 = vadd.f32 %v10637_v32, %v7692_v1  ;;  %8424 = vxpose.xlu1.b32.end [2/2] (short) (narrow) %v8182_v18, 8  ;;  %v7702_v1 = vadd.f32 %v7659_v4, %v15941_v57 }
 0x37c   : > { %v8065_v0 = vpop.f32.mrf.mxu0 }
 0x37d   : > { %v8144_v14 = vadd.f32 %v8065_v0, %v7690_v51  ;;  %8392 = vxpose.xlu0.b32.end [2/2] (short) (narrow) %v8180_v6, 8  ;;  %v8185_v39 = vadd.f32 %v15964_v15, %v8146_v60  ;;  %v7705_v51 = vadd.f32 %v10616_v55, %v15945_v49 }
 0x37e   : > { %v10638_v44 = vpop.f32.mrf.mxu0 }
 0x37f   : > { %v8147_v29 = vadd.f32 %v10638_v44, %v7693_v59  ;;  %8487 = vxpose.xlu1.b32.start [1/2] (short) (narrow) %v8185_v39, 8  ;;  %v8183_v10 = vadd.f32 %v15964_v15, %v8144_v14 }
 0x380   : > { %v8068_v63 = vpop.f32.mrf.mxu0 }
 0x381   : > { %v8186_v17 = vadd.f32 %v15964_v15, %v8147_v29  ;;  %v8145_v40 = vadd.f32 %v8068_v63, %v7691_v58  ;;  %8455 = vxpose.xlu0.b32.start [1/2] (short) (narrow) %v8183_v10, 8 }
 0x382   : > { %v10641_v50 = vpop.f32.mrf.mxu0 }
 0x383   : > { %v8184_v26 = vadd.f32 %v15964_v15, %v8145_v40  ;;  %v8150_v23 = vadd.f32 %v10641_v50, %v7696_v46  ;;  %8488 = vxpose.xlu1.b32.end [2/2] (short) (narrow) %v8186_v17, 8 }
 0x384   : > { %v8081_v3 = vpop.f32.mrf.mxu0 }
 0x385   : > { %v8148_v47 = vadd.f32 %v8081_v3, %v7694_v16  ;;  %8456 = vxpose.xlu0.b32.end [2/2] (short) (narrow) %v8184_v26, 8  ;;  %v8189_v38 = vadd.f32 %v15964_v15, %v8150_v23 }
 0x386   : > { %v10642_v8 = vpop.f32.mrf.mxu0 }
 0x387   : > { %v8151_v27 = vadd.f32 %v10642_v8, %v7697_v31  ;;  %8551 = vxpose.xlu1.b32.start [1/2] (short) (narrow) %v8189_v38, 8  ;;  %v8187_v43 = vadd.f32 %v15964_v15, %v8148_v47 }
 0x388   : > { %v8084_v12 = vpop.f32.mrf.mxu0 }
 0x389   : > { %v8190_v42 = vadd.f32 %v15964_v15, %v8151_v27  ;;  %v8149_v13 = vadd.f32 %v8084_v12, %v7695_v35  ;;  %8519 = vxpose.xlu0.b32.start [1/2] (short) (narrow) %v8187_v43, 8 }
 0x38a   : > { %v10645_v11 = vpop.f32.mrf.mxu0 }
 0x38b   : > { %v8188_v9 = vadd.f32 %v15964_v15, %v8149_v13  ;;  %v8154_v36 = vadd.f32 %v10645_v11, %v7700_v41  ;;  %8552 = vxpose.xlu1.b32.end [2/2] (short) (narrow) %v8190_v42, 8 }
 0x38c   : > { %v8097_v30 = vpop.f32.mrf.mxu0 }
 0x38d   : > { %v8152_v56 = vadd.f32 %v8097_v30, %v7698_v28  ;;  %8520 = vxpose.xlu0.b32.end [2/2] (short) (narrow) %v8188_v9, 8  ;;  %v8193_v21 = vadd.f32 %v15964_v15, %v8154_v36 }
 0x38e   : > { %v10646_v22 = vpop.f32.mrf.mxu0 }
 0x38f   : > { %v8155_v33 = vadd.f32 %v10646_v22, %v7701_v37  ;;  %8615 = vxpose.xlu1.b32.start [1/2] (short) (narrow) %v8193_v21, 8  ;;  %v8191_v24 = vadd.f32 %v15964_v15, %v8152_v56 }
 0x390   : > { %v8100_v19 = vpop.f32.mrf.mxu0 }
 0x391   : > { %v8194_v2 = vadd.f32 %v15964_v15, %v8155_v33  ;;  %v8153_v7 = vadd.f32 %v8100_v19, %v7699_v52  ;;  %8583 = vxpose.xlu0.b32.start [1/2] (short) (narrow) %v8191_v24, 8 }
 0x392   : > { %v10649_v54 = vpop.f32.mrf.mxu0 }
 0x393   : > { %v8192_v18 = vadd.f32 %v15964_v15, %v8153_v7  ;;  %v8158_v20 = vadd.f32 %v10649_v54, %v7704_v53  ;;  %8616 = vxpose.xlu1.b32.end [2/2] (short) (narrow) %v8194_v2, 8 }
 0x394   : > { %v8113_v32 = vpop.f32.mrf.mxu0 }
 0x395   : > { %v8156_v6 = vadd.f32 %v8113_v32, %v7702_v1  ;;  %8584 = vxpose.xlu0.b32.end [2/2] (short) (narrow) %v8192_v18, 8  ;;  %v8197_v60 = vadd.f32 %v15964_v15, %v8158_v20 }
 0x396   : > { %v10650_v34 = vpop.f32.mrf.mxu0 }
 0x397   : > { %v8159_v0 = vadd.f32 %v10650_v34, %v7705_v51  ;;  %8679 = vxpose.xlu1.b32.start [1/2] (short) (narrow) %v8197_v60, 8  ;;  %v8195_v59 = vadd.f32 %v15964_v15, %v8156_v6 }
 0x398   : > { %v8116_v57 = vpop.f32.mrf.mxu0 }
 0x399   : > { %v8198_v14 = vadd.f32 %v15964_v15, %v8159_v0  ;;  %v8157_v39 = vadd.f32 %v8116_v57, %v7703_v48  ;;  %8647 = vxpose.xlu0.b32.start [1/2] (short) (narrow) %v8195_v59, 8 }
 0x39b   : > { %v8196_v44 = vadd.f32 %v15964_v15, %v8157_v39  ;;  %8680 = vxpose.xlu1.b32.end [2/2] (short) (narrow) %v8198_v14, 8 }
 0x39d   : > { %8648 = vxpose.xlu0.b32.end [2/2] (short) (narrow) %v8196_v44, 8 }
 0x3c4   : > { %v8247_v49 = vpop.trf.xlu1 }
 0x3c6   : > { %v8215_v58 = vpop.trf.xlu0 }
 0x3c7   : > { %10655 = vmatprep.mubr.msk.f32.mxu1 %vm8713_vm13, %v8215_v58 }
 0x3c8   : > { %10656 = vmatmul.mubr.msk.f32.vlgmr.msra.gmra.mxu1 %vm8713_vm13, %v8247_v49 }
 0x3d4   : > { %v8311_v5 = vpop.trf.xlu1 }
 0x3d6   : > { %v8279_v29 = vpop.trf.xlu0 }
 0x3d7   : > { %10658 = vmatprep.mubr.msk.f32.mxu1 %vm8713_vm13, %v8279_v29 }
 0x3d8   : > { %10659 = vmatmul.mubr.msk.f32.gmra.mxu1 %vm8713_vm13, %v8311_v5 }
 0x3e3   : > { %v8375_v10 = vpop.trf.xlu1 }
 0x3e5   : > { %v8343_v25 = vpop.trf.xlu0 }
 0x3e6   : > { %10661 = vmatprep.mubr.msk.f32.mxu1 %vm8713_vm13, %v8343_v25 }
 0x3e7   : > { %10662 = vmatmul.mubr.msk.f32.gmra.mxu1 %vm8713_vm13, %v8375_v10 }
 0x3f3   : > { %v8439_v15 = vpop.trf.xlu1 }
 0x3f5   : > { %v8407_v63 = vpop.trf.xlu0 }
 0x3f6   : > { %10664 = vmatprep.mubr.msk.f32.mxu1 %vm8713_vm13, %v8407_v63 }
 0x3f7   : > { %10665 = vmatmul.mubr.msk.f32.gmra.mxu1 %vm8713_vm13, %v8439_v15 }
 0x3fb   : > { %v8503_v46 = vpop.trf.xlu1 }
 0x3fd   : > { %v8471_v17 = vpop.trf.xlu0 }
 0x3fe   : > { %10667 = vmatprep.mubr.msk.f32.mxu1 %vm8713_vm13, %v8471_v17 }
 0x3ff   : > { %10668 = vmatmul.mubr.msk.f32.gmra.mxu1 %vm8713_vm13, %v8503_v46 }
 0x403   : > { %v8567_v40 = vpop.trf.xlu1 }
 0x405   : > { %v8535_v50 = vpop.trf.xlu0 }
 0x406   : > { %10670 = vmatprep.mubr.msk.f32.mxu1 %vm8713_vm13, %v8535_v50 }
 0x407   : > { %10671 = vmatmul.mubr.msk.f32.gmra.mxu1 %vm8713_vm13, %v8567_v40 }
 0x40b   : > { %v8631_v16 = vpop.trf.xlu1 }
 0x40d   : > { %v8599_v26 = vpop.trf.xlu0 }
 0x40e   : > { %10673 = vmatprep.mubr.msk.f32.mxu1 %vm8713_vm13, %v8599_v26 }
 0x40f   : > { %10674 = vmatmul.mubr.msk.f32.gmra.mxu1 %vm8713_vm13, %v8631_v16 }
 0x413   : > { %v8695_v23 = vpop.trf.xlu1 }
 0x415   : > { %v8663_v62 = vpop.trf.xlu0 }
 0x416   : > { %10676 = vmatprep.mubr.msk.f32.mxu1 %vm8713_vm13, %v8663_v62 }
 0x417   : > { %10677 = vmatmul.mubr.msk.f32.gmra.mxu1 %vm8713_vm13, %v8695_v23 }
 0x488   : > { %v10657_v3 = vpop.f32.mrf.mxu1 }
 0x489   : > { %10755 = vtanh.f32 %v10657_v3 }
 0x48a   : > { %v8828_v31 = vpop.f32.mrf.mxu1 }
 0x48b   : > { %10757 = vtanh.f32 %v8828_v31 }
 0x496   : > { %v10756_v47 = vpop.eup %10755 }
 0x497   : > { %8924 = vst.msk [vmem:[%s16056_s18 + $0x8] sm:$0xff] %vm8713_vm13, %v10756_v47 }
 0x498   : > { %v10660_v38 = vpop.f32.mrf.mxu1  ;;  %v10758_v8 = vpop.eup %10757 }
 0x499   : > { %10759 = vtanh.f32 %v10660_v38  ;;  %8923 = vst.msk [vmem:[%s16056_s18] sm:$0xff] %vm8713_vm13, %v10758_v8 }
 0x49a   : > { %v8838_v35 = vpop.f32.mrf.mxu1 }
 0x49b   : > { %10761 = vtanh.f32 %v8838_v35 }
 0x4a6   : > { %v10760_v27 = vpop.eup %10759 }
 0x4a7   : > { %v10663_v43 = vpop.f32.mrf.mxu1  ;;  %8926 = vst.msk [vmem:[%s16056_s18 + $0x18] sm:$0xff] %vm8713_vm13, %v10760_v27 }
 0x4a8   : > { %10763 = vtanh.f32 %v10663_v43  ;;  %v10762_v45 = vpop.eup %10761 }
 0x4a9   : > { %v8848_v12 = vpop.f32.mrf.mxu1  ;;  %8925 = vst.msk [vmem:[%s16056_s18 + $0x10] sm:$0xff] %vm8713_vm13, %v10762_v45 }
 0x4aa   : > { %10765 = vtanh.f32 %v8848_v12 }
 0x4b5   : > { %v10764_v41 = vpop.eup %10763 }
 0x4b6   : > { %8928 = vst.msk [vmem:[%s16056_s18 + $0x28] sm:$0xff] %vm8713_vm13, %v10764_v41 }
 0x4b7   : > { %v10666_v42 = vpop.f32.mrf.mxu1  ;;  %v10766_v13 = vpop.eup %10765 }
 0x4b8   : > { %10767 = vtanh.f32 %v10666_v42  ;;  %8927 = vst.msk [vmem:[%s16056_s18 + $0x20] sm:$0xff] %vm8713_vm13, %v10766_v13 }
 0x4b9   : > { %v8858_v11 = vpop.f32.mrf.mxu1 }
 0x4ba   : > { %10769 = vtanh.f32 %v8858_v11 }
 0x4bf   : > { %v10669_v28 = vpop.f32.mrf.mxu1 }
 0x4c0   : > { %10771 = vtanh.f32 %v10669_v28 }
 0x4c1   : > { %v8868_v9 = vpop.f32.mrf.mxu1 }
 0x4c2   : > { %10773 = vtanh.f32 %v8868_v9 }
 0x4c5   : > { %v10768_v36 = vpop.eup %10767 }
 0x4c6   : > { %8930 = vst.msk [vmem:[%s16056_s18 + $0x38] sm:$0xff] %vm8713_vm13, %v10768_v36 }
 0x4c7   : > { %v10770_v4 = vpop.eup %10769  ;;  %v10672_v30 = vpop.f32.mrf.mxu1 }
 0x4c8   : > { %8929 = vst.msk [vmem:[%s16056_s18 + $0x30] sm:$0xff] %vm8713_vm13, %v10770_v4  ;;  %10775 = vtanh.f32 %v10672_v30 }
 0x4c9   : > { %v8878_v37 = vpop.f32.mrf.mxu1 }
 0x4ca   : > { %10777 = vtanh.f32 %v8878_v37 }
 0x4cd   : > { %v10772_v56 = vpop.eup %10771 }
 0x4ce   : > { %8932 = vst.msk [vmem:[%s16056_s18 + $0x48] sm:$0xff] %vm8713_vm13, %v10772_v56 }
 0x4cf   : > { %v10774_v21 = vpop.eup %10773  ;;  %v10675_v22 = vpop.f32.mrf.mxu1 }
 0x4d0   : > { %8931 = vst.msk [vmem:[%s16056_s18 + $0x40] sm:$0xff] %vm8713_vm13, %v10774_v21  ;;  %10779 = vtanh.f32 %v10675_v22 }
 0x4d1   : > { %v8888_v52 = vpop.f32.mrf.mxu1 }
 0x4d2   : > { %10781 = vtanh.f32 %v8888_v52 }
 0x4d5   : > { %v10776_v33 = vpop.eup %10775 }
 0x4d6   : > { %8934 = vst.msk [vmem:[%s16056_s18 + $0x58] sm:$0xff] %vm8713_vm13, %v10776_v33 }
 0x4d7   : > { %v10778_v24 = vpop.eup %10777  ;;  %v10678_v55 = vpop.f32.mrf.mxu1 }
 0x4d8   : > { %8933 = vst.msk [vmem:[%s16056_s18 + $0x50] sm:$0xff] %vm8713_vm13, %v10778_v24  ;;  %10783 = vtanh.f32 %v10678_v55 }
 0x4d9   : > { %v8898_v19 = vpop.f32.mrf.mxu1 }
 0x4da   : > { %10785 = vtanh.f32 %v8898_v19 }
 0x4dd   : > { %v10780_v53 = vpop.eup %10779 }
 0x4de   : > { %8936 = vst.msk [vmem:[%s16056_s18 + $0x68] sm:$0xff] %vm8713_vm13, %v10780_v53 }
 0x4df   : > { %v10782_v2 = vpop.eup %10781 }
 0x4e0   : > { %8935 = vst.msk [vmem:[%s16056_s18 + $0x60] sm:$0xff] %vm8713_vm13, %v10782_v2 }
 0x4e5   : > { %v10784_v7 = vpop.eup %10783 }
 0x4e6   : > { %8938 = vst.msk [vmem:[%s16056_s18 + $0x78] sm:$0xff] %vm8713_vm13, %v10784_v7 }
 0x4e7   : > { %v10786_v54 = vpop.eup %10785 }
 0x4e8   : > { %8937 = vst.msk [vmem:[%s16056_s18 + $0x70] sm:$0xff] %vm8713_vm13, %v10786_v54 }
 0x4e9 PF: > { %s14_s15 = sadd.s32 1, %s10847_s15  }
 0x4ea   : > { %p11_p4 = scmp.ge.s32.totalorder %s14_s15, 4  }
 0x4ec   :  { %13 = sbr.rel (!%p11_p4) target bundleno = 1 (0x1), region = 82 }

</bundles_post_ra>
